<compile_context>
chip_gen: v5e
topology: v5e:2x2
jax: 0.10.0
libtpu: 0.0.40
codegen_flags: <defaults>
</compile_context>

<pallas_src>
import functools
import math

import numpy as np
import jax
import jax.numpy as jnp
from jax import lax
from jax.experimental import pallas as pl
from jax.experimental.pallas import tpu as pltpu


# ---------------------------------------------------------------------------
# sincos positional embedding (verbatim port of the numpy helpers)
# ---------------------------------------------------------------------------
def get_1d_sincos_pos_embed_from_grid(embed_dim, pos):
    assert embed_dim % 2 == 0
    omega = np.arange(embed_dim // 2, dtype=np.float32)
    omega /= embed_dim / 2.0
    omega = 1.0 / 10000 ** omega
    pos = pos.reshape(-1)
    out = np.einsum("m,d->md", pos, omega)
    return np.concatenate([np.sin(out), np.cos(out)], axis=1)


def get_2d_sincos_pos_embed(embed_dim, grid_size):
    grid_h = np.arange(grid_size, dtype=np.float32)
    grid_w = np.arange(grid_size, dtype=np.float32)
    grid = np.meshgrid(grid_w, grid_h)
    grid = np.stack(grid, axis=0).reshape([2, 1, grid_size, grid_size])
    emb_h = get_1d_sincos_pos_embed_from_grid(embed_dim // 2, grid[0])
    emb_w = get_1d_sincos_pos_embed_from_grid(embed_dim // 2, grid[1])
    return np.concatenate([emb_h, emb_w], axis=1)


# ---------------------------------------------------------------------------
# math helpers (usable inside the kernel and in the pure-JAX reference)
# ---------------------------------------------------------------------------
def _layernorm(x, gamma, beta, eps=1e-12):   # module uses eps=1e-12 everywhere
    mean = jnp.mean(x, axis=-1, keepdims=True)
    var = jnp.mean((x - mean) ** 2, axis=-1, keepdims=True)
    return (x - mean) * lax.rsqrt(var + eps) * gamma + beta


# ---------------------------------------------------------------------------
# Pallas kernel: one batch element per grid step.
#   kv_proj -> ln_kv -> fused K/V projection -> multi-head attention against
#   precomputed (pre-scaled) queries -> out_proj -> LayerNorm -> final Linear
# ---------------------------------------------------------------------------
def perceiver_kernel(
    x_ref,          # (1, S, Hvis)  full vision tokens incl. cls (f32)
    q_ref,          # (Q, D)        pre-projected, pre-scaled queries (bf16)
    wkv_ref, bkv_ref,               # kv_proj:  (Hvis, D) bf16, (1, D) f32
    gkv_ref, bgkv_ref,              # ln_kv:    (1, D), (1, D) f32
    wkvf_ref, bkvf_ref,             # fused K/V: (D, 2D) bf16, (T, 2D) f32
    wo_ref, bo_ref,                 # attn out-proj: (D, D) bf16, (1, D) f32
    gp_ref, bp_ref,                 # projection LayerNorm
    wp_ref, bpw_ref,                # projection Linear: (D, D) bf16, (1, D) f32
    o_ref,          # (1, Q, D)
    *, num_heads,
):
    Q, D = q_ref.shape
    T = bkvf_ref.shape[0]
    hd = D // num_heads

    # Drop the cls token in-kernel (avoids an HBM copy in the wrapper).
    x = x_ref[0, pl.ds(1, T), :].astype(jnp.bfloat16)          # (T, Hvis)

    # kv_proj + ln_kv (matmul bf16->f32 acc; LN in f32)
    kv = jnp.dot(x, wkv_ref[...], preferred_element_type=jnp.float32) + bkv_ref[...]
    kv = _layernorm(kv, gkv_ref[...], bgkv_ref[...])            # (T, D) f32

    # fused K/V projection: kv @ [wk | wv] + [pos@wk + bk | bv]
    kvf = jnp.dot(kv.astype(jnp.bfloat16), wkvf_ref[...],
                  preferred_element_type=jnp.float32) + bkvf_ref[...]   # (T, 2D)
    k = kvf[:, :D].astype(jnp.bfloat16)                         # (T, D)
    v = kvf[:, D:].astype(jnp.bfloat16)                         # (T, D)

    q = q_ref[...]                                              # (Q, D) bf16, pre-scaled

    attn = None
    for h in range(num_heads):                                  # static unroll over heads
        sl = slice(h * hd, (h + 1) * hd)
        qh, kh, vh = q[:, sl], k[:, sl], v[:, sl]
        # contract last dims directly -- no transposed copy of K
        scores = lax.dot_general(qh, kh, (((1,), (1,)), ((), ())),
                                 preferred_element_type=jnp.float32)    # (Q, T) f32
        scores = scores - jnp.max(scores, axis=-1, keepdims=True)
        p = jnp.exp(scores)
        p = p * pl.reciprocal(jnp.sum(p, axis=-1, keepdims=True), approx=True)
        ctx_h = jnp.dot(p.astype(jnp.bfloat16), vh,
                        preferred_element_type=jnp.float32)             # (Q, hd)
        # feed head context straight into matching rows of wo (no concat)
        part = jnp.dot(ctx_h.astype(jnp.bfloat16), wo_ref[sl, :],
                       preferred_element_type=jnp.float32)              # (Q, D)
        attn = part if attn is None else attn + part
    attn = attn + bo_ref[...]

    # projection = LayerNorm -> Linear
    y = _layernorm(attn, gp_ref[...], bp_ref[...])
    out = jnp.dot(y.astype(jnp.bfloat16), wp_ref[...],
                  preferred_element_type=jnp.float32) + bpw_ref[...]
    o_ref[0] = out.astype(o_ref.dtype)


# ---------------------------------------------------------------------------
# wrapper
# ---------------------------------------------------------------------------
def vis_projection_perceiver(x, params, *, num_heads=None):
    B, S, Hvis = x.shape
    Q, D = params["query"].shape
    T = S - 1
    assert T == Q, "seq length must be num_queries + 1 (cls token)"
    # TODO(synk): get_abs_pos bicubic interpolation branch is not implemented;
    # it is never taken when sqrt(S-1) == grid_size (as here).
    if num_heads is None:
        num_heads = D // 128
    assert num_heads >= 1 and D % num_heads == 0, "lang_dim must be a multiple of 128"
    scale = 1.0 / math.sqrt(D // num_heads)

    f32, bf16 = jnp.float32, jnp.bfloat16
    hi = lax.Precision.HIGHEST

    # ---- batch-invariant precompute (done once, outside the kernel) ----
    # q = (ln_q(query) + pos_embed) @ wq + bq, pre-scaled by 1/sqrt(head_dim)
    q_in = _layernorm(params["query"], params["ln_q_g"], params["ln_q_b"]) + params["pos_embed"]
    q_pre = ((jnp.dot(q_in, params["wq"], precision=hi) + params["bq"]) * scale).astype(bf16)
    # key positional bias folded into the weight path: k_bias = pos @ wk + bk
    k_bias = jnp.dot(params["pos_embed"], params["wk"], precision=hi) + params["bk"]   # (T, D)
    # fused K/V projection weight and bias
    wkvf = jnp.concatenate([params["wk"], params["wv"]], axis=1).astype(bf16)          # (D, 2D)
    bkvf = jnp.concatenate(
        [k_bias, jnp.broadcast_to(params["bv"][None, :], (T, D))], axis=1
    ).astype(f32)                                                                       # (T, 2D)

    row = lambda p: p.reshape(1, -1).astype(f32)   # 1-D params -> (1, D) for TPU tiling
    inputs = (
        x,                                      # (B, S, Hvis) -- cls dropped in-kernel
        q_pre,
        params["kv_w"].astype(bf16), row(params["kv_b"]),
        row(params["ln_kv_g"]), row(params["ln_kv_b"]),
        wkvf, bkvf,
        params["wo"].astype(bf16), row(params["bo"]),
        row(params["ln_p_g"]), row(params["ln_p_b"]),
        params["wp"].astype(bf16), row(params["bp"]),
    )

    full2d = lambda a: pl.BlockSpec(a.shape, lambda b: (0, 0))
    in_specs = [pl.BlockSpec((1, S, Hvis), lambda b: (b, 0, 0))]
    in_specs += [full2d(a) for a in inputs[1:]]

    # TODO(synk): for B == 1 on v7x (2 TCs), add a second "parallel" grid axis
    # over Q tiles so both cores stay busy; for production-sized D add a grid
    # axis over the N dim of wo/wp instead of full-array weight blocks.
    kernel = functools.partial(perceiver_kernel, num_heads=num_heads)
    return pl.pallas_call(
        kernel,
        out_shape=jax.ShapeDtypeStruct((B, Q, D), x.dtype),
        grid=(B,),
        in_specs=in_specs,
        out_specs=pl.BlockSpec((1, Q, D), lambda b: (b, 0, 0)),
        compiler_params=pltpu.CompilerParams(
            dimension_semantics=("parallel",),
            vmem_limit_bytes=32 * 1024 * 1024,   # explicit; safe on v5e/v6e/v7x
        ),
    )(*inputs)


# ---------------------------------------------------------------------------
# pure-JAX reference (PyTorch-structured math; bf16 matmul operands to match
# the kernel's MXU precision policy) for verification
# ---------------------------------------------------------------------------
def reference(x, params, *, num_heads):
    B, S, _ = x.shape
    Q, D = params["query"].shape
    hd = D // num_heads
    bf16 = jnp.bfloat16
    dot = lambda a, b: jnp.einsum("...ij,jk->...ik", a.astype(bf16), b.astype(bf16),
                                  preferred_element_type=jnp.float32)
    x_tok = x[:, 1:, :]
    kv = dot(x_tok, params["kv_w"]) + params["kv_b"]
    kv = _layernorm(kv, params["ln_kv_g"], params["ln_kv_b"])
    qpe = _layernorm(params["query"], params["ln_q_g"], params["ln_q_b"]) + params["pos_embed"]
    q = dot(qpe, params["wq"]) + params["bq"]                        # (Q, D)
    k = dot(kv + params["pos_embed"][None], params["wk"]) + params["bk"]
    v = dot(kv, params["wv"]) + params["bv"]
    q = jnp.broadcast_to(q[None], (B, Q, D))
    qh = q.reshape(B, Q, num_heads, hd).transpose(0, 2, 1, 3)
    kh = k.reshape(B, -1, num_heads, hd).transpose(0, 2, 1, 3)
    vh = v.reshape(B, -1, num_heads, hd).transpose(0, 2, 1, 3)
    scores = jnp.einsum("bhqd,bhkd->bhqk", qh.astype(bf16), kh.astype(bf16),
                        preferred_element_type=jnp.float32) / math.sqrt(hd)
    p = jax.nn.softmax(scores, axis=-1)
    ctx = jnp.einsum("bhqk,bhkd->bhqd", p.astype(bf16), vh.astype(bf16),
                     preferred_element_type=jnp.float32)
    ctx = ctx.transpose(0, 2, 1, 3).reshape(B, Q, D)
    attn_out = dot(ctx, params["wo"]) + params["bo"]
    y = _layernorm(attn_out, params["ln_p_g"], params["ln_p_b"])
    return dot(y, params["wp"]) + params["bp"]


# ---------------------------------------------------------------------------
# deterministic parameter init (synthetic; shapes follow the module __init__)
# ---------------------------------------------------------------------------
def init_params(key, vis_hidden, lang_dim, grid_size=16):
    D = lang_dim
    ks = jax.random.split(key, 8)
    f = lambda k, shape: (0.02 * jax.random.normal(k, shape, dtype=jnp.float32))
    zeros = lambda: jnp.zeros((D,), jnp.float32)
    ones = lambda: jnp.ones((D,), jnp.float32)
    return dict(
        pos_embed=jnp.asarray(get_2d_sincos_pos_embed(D, grid_size), jnp.float32),
        query=f(ks[0], (grid_size * grid_size, D)),
        kv_w=f(ks[1], (vis_hidden, D)), kv_b=zeros(),
        ln_q_g=ones(), ln_q_b=zeros(),
        ln_kv_g=ones(), ln_kv_b=zeros(),
        wq=f(ks[2], (D, D)), bq=zeros(),
        wk=f(ks[3], (D, D)), bk=zeros(),
        wv=f(ks[4], (D, D)), bv=zeros(),
        wo=f(ks[5], (D, D)), bo=zeros(),
        ln_p_g=ones(), ln_p_b=zeros(),
        wp=f(ks[6], (D, D)), bp=zeros(),
    )


if __name__ == "__main__":
    # grid_size=16 -> 256 queries (hard-coded in the module); lang_dim=256 ->
    # num_heads=2 (exercises the multi-head accumulation path); vis hidden=64;
    # seq = 256 + 1 cls token.
    GRID = 16
    LANG_DIM = 256
    VIS_HIDDEN = 64
    NUM_HEADS = LANG_DIM // 128
    B = 2
    S = GRID * GRID + 1

    key = jax.random.PRNGKey(0)
    k_param, k_x = jax.random.split(key)
    params = init_params(k_param, VIS_HIDDEN, LANG_DIM, GRID)
    x = jax.random.normal(k_x, (B, S, VIS_HIDDEN), dtype=jnp.float32)

    out = jax.block_until_ready(vis_projection_perceiver(x, params, num_heads=NUM_HEADS))
    ref = jax.block_until_ready(reference(x, params, num_heads=NUM_HEADS))

    # Tolerance reflects deliberate bf16 MXU operands + the (mathematically
    # exact) query/key-bias refactoring, which shifts where rounding happens.
    np.testing.assert_allclose(np.asarray(out), np.asarray(ref), rtol=3e-2, atol=1e-2)

    print("KERNEL_OK")
</pallas_src>

<mosaic_0001>
module attributes {stable_mosaic.version = 11 : i64} {
  func.func @perceiver_kernel(%arg0: i32, %arg1: memref<1x257x64xf32, #tpu.memory_space<vmem>>, %arg2: memref<256x256xbf16, #tpu.memory_space<vmem>>, %arg3: memref<64x256xbf16, #tpu.memory_space<vmem>>, %arg4: memref<1x256xf32, #tpu.memory_space<vmem>>, %arg5: memref<1x256xf32, #tpu.memory_space<vmem>>, %arg6: memref<1x256xf32, #tpu.memory_space<vmem>>, %arg7: memref<256x512xbf16, #tpu.memory_space<vmem>>, %arg8: memref<256x512xf32, #tpu.memory_space<vmem>>, %arg9: memref<256x256xbf16, #tpu.memory_space<vmem>>, %arg10: memref<1x256xf32, #tpu.memory_space<vmem>>, %arg11: memref<1x256xf32, #tpu.memory_space<vmem>>, %arg12: memref<1x256xf32, #tpu.memory_space<vmem>>, %arg13: memref<256x256xbf16, #tpu.memory_space<vmem>>, %arg14: memref<1x256xf32, #tpu.memory_space<vmem>>, %arg15: memref<1x256x256xf32, #tpu.memory_space<vmem>>) attributes {dimension_semantics = [#tpu.dimension_semantics<parallel>], iteration_bounds = array<i64: 2>, scalar_prefetch = 0 : i64, scratch_operands = 0 : i64, tpu.core_type = #tpu.core_type<tc>, window_params = [{transform_indices = @transform_0, window_bounds = array<i64: 1, 257, 64>}, {pipeline_mode = #tpu.pipeline_mode<synchronous>, transform_indices = @transform_1, window_bounds = array<i64: 256, 256>}, {pipeline_mode = #tpu.pipeline_mode<synchronous>, transform_indices = @transform_2, window_bounds = array<i64: 64, 256>}, {pipeline_mode = #tpu.pipeline_mode<synchronous>, transform_indices = @transform_3, window_bounds = array<i64: 1, 256>}, {pipeline_mode = #tpu.pipeline_mode<synchronous>, transform_indices = @transform_4, window_bounds = array<i64: 1, 256>}, {pipeline_mode = #tpu.pipeline_mode<synchronous>, transform_indices = @transform_5, window_bounds = array<i64: 1, 256>}, {pipeline_mode = #tpu.pipeline_mode<synchronous>, transform_indices = @transform_6, window_bounds = array<i64: 256, 512>}, {pipeline_mode = #tpu.pipeline_mode<synchronous>, transform_indices = @transform_7, window_bounds = array<i64: 256, 512>}, {pipeline_mode = #tpu.pipeline_mode<synchronous>, transform_indices = @transform_8, window_bounds = array<i64: 256, 256>}, {pipeline_mode = #tpu.pipeline_mode<synchronous>, transform_indices = @transform_9, window_bounds = array<i64: 1, 256>}, {pipeline_mode = #tpu.pipeline_mode<synchronous>, transform_indices = @transform_10, window_bounds = array<i64: 1, 256>}, {pipeline_mode = #tpu.pipeline_mode<synchronous>, transform_indices = @transform_11, window_bounds = array<i64: 1, 256>}, {pipeline_mode = #tpu.pipeline_mode<synchronous>, transform_indices = @transform_12, window_bounds = array<i64: 256, 256>}, {pipeline_mode = #tpu.pipeline_mode<synchronous>, transform_indices = @transform_13, window_bounds = array<i64: 1, 256>}, {transform_indices = @transform_14, window_bounds = array<i64: 1, 256, 256>}]} {
    %c0 = arith.constant 0 : index
    %c1 = arith.constant 1 : index
    %c0_0 = arith.constant 0 : index
    %0 = vector.load %arg1[%c0, %c1, %c0_0] : memref<1x257x64xf32, #tpu.memory_space<vmem>>, vector<1x256x64xf32>
    %1 = vector.shape_cast %0 : vector<1x256x64xf32> to vector<256x64xf32>
    %2 = arith.truncf %1 : vector<256x64xf32> to vector<256x64xbf16>
    %c0_1 = arith.constant 0 : index
    %c0_2 = arith.constant 0 : index
    %3 = vector.load %arg3[%c0_1, %c0_2] : memref<64x256xbf16, #tpu.memory_space<vmem>>, vector<64x256xbf16>
    %cst = arith.constant dense<0.000000e+00> : vector<256x256xf32>
    %4 = tpu.matmul %2, %3, %cst {dimension_numbers = #tpu.dot_dimension_numbers<[1], [0], [0], [1], [0, 0, 1, 1], [], []>} : vector<256x64xbf16>, vector<64x256xbf16>, vector<256x256xf32> -> vector<256x256xf32>
    %c0_3 = arith.constant 0 : index
    %c0_4 = arith.constant 0 : index
    %5 = vector.load %arg4[%c0_3, %c0_4] : memref<1x256xf32, #tpu.memory_space<vmem>>, vector<1x256xf32>
    %6 = vector.broadcast %5 : vector<1x256xf32> to vector<256x256xf32>
    %7 = arith.addf %4, %6 : vector<256x256xf32>
    %c0_5 = arith.constant 0 : index
    %c0_6 = arith.constant 0 : index
    %8 = vector.load %arg5[%c0_5, %c0_6] : memref<1x256xf32, #tpu.memory_space<vmem>>, vector<1x256xf32>
    %c0_7 = arith.constant 0 : index
    %c0_8 = arith.constant 0 : index
    %9 = vector.load %arg6[%c0_7, %c0_8] : memref<1x256xf32, #tpu.memory_space<vmem>>, vector<1x256xf32>
    %cst_9 = arith.constant dense<0.000000e+00> : vector<256xf32>
    %10 = vector.multi_reduction <add>, %7, %cst_9 [1] : vector<256x256xf32> to vector<256xf32>
    %11 = vector.shape_cast %10 : vector<256xf32> to vector<256x1xf32>
    %cst_10 = arith.constant 2.560000e+02 : f32
    %12 = vector.broadcast %cst_10 : f32 to vector<256x1xf32>
    %13 = arith.divf %11, %12 : vector<256x1xf32>
    %14 = vector.broadcast %13 : vector<256x1xf32> to vector<256x256xf32>
    %15 = arith.subf %7, %14 : vector<256x256xf32>
    %16 = arith.mulf %15, %15 : vector<256x256xf32>
    %cst_11 = arith.constant dense<0.000000e+00> : vector<256xf32>
    %17 = vector.multi_reduction <add>, %16, %cst_11 [1] : vector<256x256xf32> to vector<256xf32>
    %18 = vector.shape_cast %17 : vector<256xf32> to vector<256x1xf32>
    %cst_12 = arith.constant 2.560000e+02 : f32
    %19 = vector.broadcast %cst_12 : f32 to vector<256x1xf32>
    %20 = arith.divf %18, %19 : vector<256x1xf32>
    %21 = vector.broadcast %13 : vector<256x1xf32> to vector<256x256xf32>
    %22 = arith.subf %7, %21 : vector<256x256xf32>
    %cst_13 = arith.constant 9.99999996E-13 : f32
    %23 = vector.broadcast %cst_13 : f32 to vector<256x1xf32>
    %24 = arith.addf %20, %23 : vector<256x1xf32>
    %25 = math.rsqrt %24 : vector<256x1xf32>
    %26 = vector.broadcast %25 : vector<256x1xf32> to vector<256x256xf32>
    %27 = arith.mulf %22, %26 : vector<256x256xf32>
    %28 = vector.broadcast %8 : vector<1x256xf32> to vector<256x256xf32>
    %29 = arith.mulf %27, %28 : vector<256x256xf32>
    %30 = vector.broadcast %9 : vector<1x256xf32> to vector<256x256xf32>
    %31 = arith.addf %29, %30 : vector<256x256xf32>
    %32 = arith.truncf %31 : vector<256x256xf32> to vector<256x256xbf16>
    %c0_14 = arith.constant 0 : index
    %c0_15 = arith.constant 0 : index
    %33 = vector.load %arg7[%c0_14, %c0_15] : memref<256x512xbf16, #tpu.memory_space<vmem>>, vector<256x512xbf16>
    %cst_16 = arith.constant dense<0.000000e+00> : vector<256x512xf32>
    %34 = tpu.matmul %32, %33, %cst_16 {dimension_numbers = #tpu.dot_dimension_numbers<[1], [0], [0], [1], [0, 0, 1, 1], [], []>} : vector<256x256xbf16>, vector<256x512xbf16>, vector<256x512xf32> -> vector<256x512xf32>
    %c0_17 = arith.constant 0 : index
    %c0_18 = arith.constant 0 : index
    %35 = vector.load %arg8[%c0_17, %c0_18] : memref<256x512xf32, #tpu.memory_space<vmem>>, vector<256x512xf32>
    %36 = arith.addf %34, %35 : vector<256x512xf32>
    %37 = vector.extract_strided_slice %36 {offsets = [0, 0], sizes = [256, 256], strides = [1, 1]} : vector<256x512xf32> to vector<256x256xf32>
    %38 = arith.truncf %37 : vector<256x256xf32> to vector<256x256xbf16>
    %39 = vector.extract_strided_slice %36 {offsets = [0, 256], sizes = [256, 256], strides = [1, 1]} : vector<256x512xf32> to vector<256x256xf32>
    %40 = arith.truncf %39 : vector<256x256xf32> to vector<256x256xbf16>
    %c0_19 = arith.constant 0 : index
    %c0_20 = arith.constant 0 : index
    %41 = vector.load %arg2[%c0_19, %c0_20] : memref<256x256xbf16, #tpu.memory_space<vmem>>, vector<256x256xbf16>
    %42 = vector.extract_strided_slice %41 {offsets = [0, 0], sizes = [256, 128], strides = [1, 1]} : vector<256x256xbf16> to vector<256x128xbf16>
    %43 = vector.extract_strided_slice %38 {offsets = [0, 0], sizes = [256, 128], strides = [1, 1]} : vector<256x256xbf16> to vector<256x128xbf16>
    %44 = vector.extract_strided_slice %40 {offsets = [0, 0], sizes = [256, 128], strides = [1, 1]} : vector<256x256xbf16> to vector<256x128xbf16>
    %cst_21 = arith.constant dense<0.000000e+00> : vector<256x256xf32>
    %45 = tpu.matmul %42, %43, %cst_21 {dimension_numbers = #tpu.dot_dimension_numbers<[1], [1], [0], [0], [0, 0, 1, 0], [], []>} : vector<256x128xbf16>, vector<256x128xbf16>, vector<256x256xf32> -> vector<256x256xf32>
    %cst_22 = arith.constant dense<0xFF800000> : vector<256xf32>
    %46 = vector.multi_reduction <maximumf>, %45, %cst_22 [1] : vector<256x256xf32> to vector<256xf32>
    %47 = vector.shape_cast %46 : vector<256xf32> to vector<256x1xf32>
    %48 = vector.broadcast %47 : vector<256x1xf32> to vector<256x256xf32>
    %49 = arith.subf %45, %48 : vector<256x256xf32>
    %50 = math.exp %49 : vector<256x256xf32>
    %cst_23 = arith.constant dense<0.000000e+00> : vector<256xf32>
    %51 = vector.multi_reduction <add>, %50, %cst_23 [1] : vector<256x256xf32> to vector<256xf32>
    %52 = vector.shape_cast %51 : vector<256xf32> to vector<256x1xf32>
    %53 = tpu.reciprocal %52 {approx = true} : vector<256x1xf32> -> vector<256x1xf32>
    %54 = vector.broadcast %53 : vector<256x1xf32> to vector<256x256xf32>
    %55 = arith.mulf %50, %54 : vector<256x256xf32>
    %56 = arith.truncf %55 : vector<256x256xf32> to vector<256x256xbf16>
    %cst_24 = arith.constant dense<0.000000e+00> : vector<256x128xf32>
    %57 = tpu.matmul %56, %44, %cst_24 {dimension_numbers = #tpu.dot_dimension_numbers<[1], [0], [0], [1], [0, 0, 1, 1], [], []>} : vector<256x256xbf16>, vector<256x128xbf16>, vector<256x128xf32> -> vector<256x128xf32>
    %58 = arith.truncf %57 : vector<256x128xf32> to vector<256x128xbf16>
    %c0_25 = arith.constant 0 : index
    %c0_26 = arith.constant 0 : index
    %59 = vector.load %arg9[%c0_25, %c0_26] : memref<256x256xbf16, #tpu.memory_space<vmem>>, vector<128x256xbf16>
    %cst_27 = arith.constant dense<0.000000e+00> : vector<256x256xf32>
    %60 = tpu.matmul %58, %59, %cst_27 {dimension_numbers = #tpu.dot_dimension_numbers<[1], [0], [0], [1], [0, 0, 1, 1], [], []>} : vector<256x128xbf16>, vector<128x256xbf16>, vector<256x256xf32> -> vector<256x256xf32>
    %61 = vector.extract_strided_slice %41 {offsets = [0, 128], sizes = [256, 128], strides = [1, 1]} : vector<256x256xbf16> to vector<256x128xbf16>
    %62 = vector.extract_strided_slice %38 {offsets = [0, 128], sizes = [256, 128], strides = [1, 1]} : vector<256x256xbf16> to vector<256x128xbf16>
    %63 = vector.extract_strided_slice %40 {offsets = [0, 128], sizes = [256, 128], strides = [1, 1]} : vector<256x256xbf16> to vector<256x128xbf16>
    %cst_28 = arith.constant dense<0.000000e+00> : vector<256x256xf32>
    %64 = tpu.matmul %61, %62, %cst_28 {dimension_numbers = #tpu.dot_dimension_numbers<[1], [1], [0], [0], [0, 0, 1, 0], [], []>} : vector<256x128xbf16>, vector<256x128xbf16>, vector<256x256xf32> -> vector<256x256xf32>
    %cst_29 = arith.constant dense<0xFF800000> : vector<256xf32>
    %65 = vector.multi_reduction <maximumf>, %64, %cst_29 [1] : vector<256x256xf32> to vector<256xf32>
    %66 = vector.shape_cast %65 : vector<256xf32> to vector<256x1xf32>
    %67 = vector.broadcast %66 : vector<256x1xf32> to vector<256x256xf32>
    %68 = arith.subf %64, %67 : vector<256x256xf32>
    %69 = math.exp %68 : vector<256x256xf32>
    %cst_30 = arith.constant dense<0.000000e+00> : vector<256xf32>
    %70 = vector.multi_reduction <add>, %69, %cst_30 [1] : vector<256x256xf32> to vector<256xf32>
    %71 = vector.shape_cast %70 : vector<256xf32> to vector<256x1xf32>
    %72 = tpu.reciprocal %71 {approx = true} : vector<256x1xf32> -> vector<256x1xf32>
    %73 = vector.broadcast %72 : vector<256x1xf32> to vector<256x256xf32>
    %74 = arith.mulf %69, %73 : vector<256x256xf32>
    %75 = arith.truncf %74 : vector<256x256xf32> to vector<256x256xbf16>
    %cst_31 = arith.constant dense<0.000000e+00> : vector<256x128xf32>
    %76 = tpu.matmul %75, %63, %cst_31 {dimension_numbers = #tpu.dot_dimension_numbers<[1], [0], [0], [1], [0, 0, 1, 1], [], []>} : vector<256x256xbf16>, vector<256x128xbf16>, vector<256x128xf32> -> vector<256x128xf32>
    %77 = arith.truncf %76 : vector<256x128xf32> to vector<256x128xbf16>
    %c128 = arith.constant 128 : index
    %c0_32 = arith.constant 0 : index
    %78 = vector.load %arg9[%c128, %c0_32] : memref<256x256xbf16, #tpu.memory_space<vmem>>, vector<128x256xbf16>
    %cst_33 = arith.constant dense<0.000000e+00> : vector<256x256xf32>
    %79 = tpu.matmul %77, %78, %cst_33 {dimension_numbers = #tpu.dot_dimension_numbers<[1], [0], [0], [1], [0, 0, 1, 1], [], []>} : vector<256x128xbf16>, vector<128x256xbf16>, vector<256x256xf32> -> vector<256x256xf32>
    %80 = arith.addf %60, %79 : vector<256x256xf32>
    %c0_34 = arith.constant 0 : index
    %c0_35 = arith.constant 0 : index
    %81 = vector.load %arg10[%c0_34, %c0_35] : memref<1x256xf32, #tpu.memory_space<vmem>>, vector<1x256xf32>
    %82 = vector.broadcast %81 : vector<1x256xf32> to vector<256x256xf32>
    %83 = arith.addf %80, %82 : vector<256x256xf32>
    %c0_36 = arith.constant 0 : index
    %c0_37 = arith.constant 0 : index
    %84 = vector.load %arg11[%c0_36, %c0_37] : memref<1x256xf32, #tpu.memory_space<vmem>>, vector<1x256xf32>
    %c0_38 = arith.constant 0 : index
    %c0_39 = arith.constant 0 : index
    %85 = vector.load %arg12[%c0_38, %c0_39] : memref<1x256xf32, #tpu.memory_space<vmem>>, vector<1x256xf32>
    %cst_40 = arith.constant dense<0.000000e+00> : vector<256xf32>
    %86 = vector.multi_reduction <add>, %83, %cst_40 [1] : vector<256x256xf32> to vector<256xf32>
    %87 = vector.shape_cast %86 : vector<256xf32> to vector<256x1xf32>
    %cst_41 = arith.constant 2.560000e+02 : f32
    %88 = vector.broadcast %cst_41 : f32 to vector<256x1xf32>
    %89 = arith.divf %87, %88 : vector<256x1xf32>
    %90 = vector.broadcast %89 : vector<256x1xf32> to vector<256x256xf32>
    %91 = arith.subf %83, %90 : vector<256x256xf32>
    %92 = arith.mulf %91, %91 : vector<256x256xf32>
    %cst_42 = arith.constant dense<0.000000e+00> : vector<256xf32>
    %93 = vector.multi_reduction <add>, %92, %cst_42 [1] : vector<256x256xf32> to vector<256xf32>
    %94 = vector.shape_cast %93 : vector<256xf32> to vector<256x1xf32>
    %cst_43 = arith.constant 2.560000e+02 : f32
    %95 = vector.broadcast %cst_43 : f32 to vector<256x1xf32>
    %96 = arith.divf %94, %95 : vector<256x1xf32>
    %97 = vector.broadcast %89 : vector<256x1xf32> to vector<256x256xf32>
    %98 = arith.subf %83, %97 : vector<256x256xf32>
    %cst_44 = arith.constant 9.99999996E-13 : f32
    %99 = vector.broadcast %cst_44 : f32 to vector<256x1xf32>
    %100 = arith.addf %96, %99 : vector<256x1xf32>
    %101 = math.rsqrt %100 : vector<256x1xf32>
    %102 = vector.broadcast %101 : vector<256x1xf32> to vector<256x256xf32>
    %103 = arith.mulf %98, %102 : vector<256x256xf32>
    %104 = vector.broadcast %84 : vector<1x256xf32> to vector<256x256xf32>
    %105 = arith.mulf %103, %104 : vector<256x256xf32>
    %106 = vector.broadcast %85 : vector<1x256xf32> to vector<256x256xf32>
    %107 = arith.addf %105, %106 : vector<256x256xf32>
    %108 = arith.truncf %107 : vector<256x256xf32> to vector<256x256xbf16>
    %c0_45 = arith.constant 0 : index
    %c0_46 = arith.constant 0 : index
    %109 = vector.load %arg13[%c0_45, %c0_46] : memref<256x256xbf16, #tpu.memory_space<vmem>>, vector<256x256xbf16>
    %cst_47 = arith.constant dense<0.000000e+00> : vector<256x256xf32>
    %110 = tpu.matmul %108, %109, %cst_47 {dimension_numbers = #tpu.dot_dimension_numbers<[1], [0], [0], [1], [0, 0, 1, 1], [], []>} : vector<256x256xbf16>, vector<256x256xbf16>, vector<256x256xf32> -> vector<256x256xf32>
    %c0_48 = arith.constant 0 : index
    %c0_49 = arith.constant 0 : index
    %111 = vector.load %arg14[%c0_48, %c0_49] : memref<1x256xf32, #tpu.memory_space<vmem>>, vector<1x256xf32>
    %112 = vector.broadcast %111 : vector<1x256xf32> to vector<256x256xf32>
    %113 = arith.addf %110, %112 : vector<256x256xf32>
    %c0_50 = arith.constant 0 : index
    %c0_51 = arith.constant 0 : index
    %c0_52 = arith.constant 0 : index
    %114 = vector.load %arg15[%c0_50, %c0_51, %c0_52] : memref<1x256x256xf32, #tpu.memory_space<vmem>>, vector<1x256x256xf32>
    %115 = vector.shape_cast %114 : vector<1x256x256xf32> to vector<256x256xf32>
    %116 = vector.shape_cast %113 : vector<256x256xf32> to vector<1x256x256xf32>
    tpu.vector_store %arg15[%c0_50, %c0_51, %c0_52], %116 {strides = array<i32>} : memref<1x256x256xf32, #tpu.memory_space<vmem>>, vector<1x256x256xf32>,
    return
  }
  func.func @transform_0(%arg0: i32) -> (i32, i32, i32) {
    %c0_i32 = arith.constant 0 : i32
    %c0_i32_0 = arith.constant 0 : i32
    %c0_i32_1 = arith.constant 0 : i32
    return %arg0, %c0_i32, %c0_i32_0 : i32, i32, i32
  }
  func.func @transform_1(%arg0: i32) -> (i32, i32) {
    %c0_i32 = arith.constant 0 : i32
    %c0_i32_0 = arith.constant 0 : i32
    %c0_i32_1 = arith.constant 0 : i32
    return %c0_i32, %c0_i32_0 : i32, i32
  }
  func.func @transform_2(%arg0: i32) -> (i32, i32) {
    %c0_i32 = arith.constant 0 : i32
    %c0_i32_0 = arith.constant 0 : i32
    %c0_i32_1 = arith.constant 0 : i32
    return %c0_i32, %c0_i32_0 : i32, i32
  }
  func.func @transform_3(%arg0: i32) -> (i32, i32) {
    %c0_i32 = arith.constant 0 : i32
    %c0_i32_0 = arith.constant 0 : i32
    %c0_i32_1 = arith.constant 0 : i32
    return %c0_i32, %c0_i32_0 : i32, i32
  }
  func.func @transform_4(%arg0: i32) -> (i32, i32) {
    %c0_i32 = arith.constant 0 : i32
    %c0_i32_0 = arith.constant 0 : i32
    %c0_i32_1 = arith.constant 0 : i32
    return %c0_i32, %c0_i32_0 : i32, i32
  }
  func.func @transform_5(%arg0: i32) -> (i32, i32) {
    %c0_i32 = arith.constant 0 : i32
    %c0_i32_0 = arith.constant 0 : i32
    %c0_i32_1 = arith.constant 0 : i32
    return %c0_i32, %c0_i32_0 : i32, i32
  }
  func.func @transform_6(%arg0: i32) -> (i32, i32) {
    %c0_i32 = arith.constant 0 : i32
    %c0_i32_0 = arith.constant 0 : i32
    %c0_i32_1 = arith.constant 0 : i32
    return %c0_i32, %c0_i32_0 : i32, i32
  }
  func.func @transform_7(%arg0: i32) -> (i32, i32) {
    %c0_i32 = arith.constant 0 : i32
    %c0_i32_0 = arith.constant 0 : i32
    %c0_i32_1 = arith.constant 0 : i32
    return %c0_i32, %c0_i32_0 : i32, i32
  }
  func.func @transform_8(%arg0: i32) -> (i32, i32) {
    %c0_i32 = arith.constant 0 : i32
    %c0_i32_0 = arith.constant 0 : i32
    %c0_i32_1 = arith.constant 0 : i32
    return %c0_i32, %c0_i32_0 : i32, i32
  }
  func.func @transform_9(%arg0: i32) -> (i32, i32) {
    %c0_i32 = arith.constant 0 : i32
    %c0_i32_0 = arith.constant 0 : i32
    %c0_i32_1 = arith.constant 0 : i32
    return %c0_i32, %c0_i32_0 : i32, i32
  }
  func.func @transform_10(%arg0: i32) -> (i32, i32) {
    %c0_i32 = arith.constant 0 : i32
    %c0_i32_0 = arith.constant 0 : i32
    %c0_i32_1 = arith.constant 0 : i32
    return %c0_i32, %c0_i32_0 : i32, i32
  }
  func.func @transform_11(%arg0: i32) -> (i32, i32) {
    %c0_i32 = arith.constant 0 : i32
    %c0_i32_0 = arith.constant 0 : i32
    %c0_i32_1 = arith.constant 0 : i32
    return %c0_i32, %c0_i32_0 : i32, i32
  }
  func.func @transform_12(%arg0: i32) -> (i32, i32) {
    %c0_i32 = arith.constant 0 : i32
    %c0_i32_0 = arith.constant 0 : i32
    %c0_i32_1 = arith.constant 0 : i32
    return %c0_i32, %c0_i32_0 : i32, i32
  }
  func.func @transform_13(%arg0: i32) -> (i32, i32) {
    %c0_i32 = arith.constant 0 : i32
    %c0_i32_0 = arith.constant 0 : i32
    %c0_i32_1 = arith.constant 0 : i32
    return %c0_i32, %c0_i32_0 : i32, i32
  }
  func.func @transform_14(%arg0: i32) -> (i32, i32, i32) {
    %c0_i32 = arith.constant 0 : i32
    %c0_i32_0 = arith.constant 0 : i32
    %c0_i32_1 = arith.constant 0 : i32
    return %arg0, %c0_i32, %c0_i32_0 : i32, i32, i32
  }
}

</mosaic_0001>

<bundles_post_ra>
// kernel: tpu_custom_call.1
= control target key start
LH: loop header
LB: loop body
LE: loop exit
PB: predicated region body
PF: predicated region fallthrough
CT: control target
= control target key end

     0   :  { %s14457_s0 = inlined_call_operand.vmem [shape: f32[2,257,64], index: 0, kind: input, shape index: {}]   ;;  %s14458_s1 = inlined_call_operand.vmem [shape: bf16[256,256], index: 1, kind: input, shape index: {}]   ;;  %s14459_s2 = inlined_call_operand.vmem [shape: bf16[64,256], index: 2, kind: input, shape index: {}]   ;;  %s14460_s3 = inlined_call_operand.vmem [shape: f32[1,256], index: 3, kind: input, shape index: {}]   ;;  %s14461_s4 = inlined_call_operand.vmem [shape: f32[1,256], index: 4, kind: input, shape index: {}]   ;;  %s14462_s5 = inlined_call_operand.vmem [shape: f32[1,256], index: 5, kind: input, shape index: {}]   ;;  %s14463_s6 = inlined_call_operand.vmem [shape: bf16[256,512], index: 6, kind: input, shape index: {}]   ;;  %s14464_s7 = inlined_call_operand.hbm [shape: f32[256,512], index: 7, kind: input, shape index: {}]   ;;  %s14465_s8 = inlined_call_operand.hbm [shape: bf16[256,256], index: 8, kind: input, shape index: {}]   ;;  %s14466_s9 = inlined_call_operand.vmem [shape: f32[1,256], index: 9, kind: input, shape index: {}]   ;;  %s14467_s10 = inlined_call_operand.vmem [shape: f32[1,256], index: 10, kind: input, shape index: {}]   ;;  %s14468_s11 = inlined_call_operand.vmem [shape: f32[1,256], index: 11, kind: input, shape index: {}]   ;;  %s14469_s12 = inlined_call_operand.hbm [shape: bf16[256,256], index: 12, kind: input, shape index: {}]   ;;  %s14470_s13 = inlined_call_operand.vmem [shape: f32[1,256], index: 13, kind: input, shape index: {}]   ;;  %s14471_s14 = inlined_call_operand.hbm [shape: f32[2,256,256], index: 14, kind: output, shape index: {}]  }
   0x1   :  { %14598 = sst [smem:[#allocation64_spill]] %s14464_s7 }
   0x2   :  { %14599 = sst [smem:[#allocation65_spill]] %s14465_s8 }
   0x3   :  { %19 = vsyncpa [#allocation3], 0 }
   0x4   :  { %20 = vsyncpa [#allocation6], 0 }
   0x5   :  { %21 = vsyncpa [#allocation4], 0 }
   0x6   :  { %23 = vsyncpa [#allocation4 + $0x1], 0  ;;  %s9455_s29 = smov 0   ;;  %s9457_s30 = smov 0  }
   0x7   :  { %s9459_s15 = smov 0   ;;  %s9461_s16 = smov 0  }
   0x8 LB: > { %14600 = sst [smem:[#allocation12_spill]] %s9356_s29  ;;  %s9476_s17 = sadd.s32 4294967295, %s9368_s16   ;;  %s9368_s16 = sphi %s9461_s16, %s14901_s16   ;;  %s9364_s15 = sphi %s9459_s15, %s14903_s15   ;;  %s9360_s30 = sphi %s9457_s30, %s14905_s30   ;;  %s9356_s29 = sphi %s9455_s29, %s14904_s29  }
   0x9   : > { %14601 = sst [smem:[#allocation13_spill]] %s9364_s15  ;;  %s7710_s18 = sadd.s32 4294967294, %s9368_s16  }
   0xa   : > { %14602 = sst [smem:[#allocation14_spill]] %s9368_s16  ;;  %s9480_s19 = sadd.s32 1, %s9368_s16  }
   0xb   : > { %14603 = sst [smem:[#allocation15_spill]] %s9480_s19  ;;  %s335_s20 = sadd.s32 1, %s9364_s15 }
   0xc   : > { %s332_s21 = ssub.s32 %s9368_s16, %s9480_s19  ;;  %p345_p0 = scmp.ne.s32.totalorder %s9364_s15, %s9360_s30 }
   0xd   : > { %p333_p1 = scmp.eq.s32.totalorder %s332_s21, 0  ;;  %p346_p2 = scmp.eq.s32.totalorder %s9476_s17, 1 }
   0xe   : > { %p351_p3 = scmp.ne.s32.totalorder %s9360_s30, %s9356_s29  ;;  %p352_p4 = scmp.eq.s32.totalorder %s7710_s18, 1 }
   0xf   : > { %s9491_s22 = scalar_select %p333_p1, %s9364_s15, %s335_s20  }
  0x10   : > { %p9493_p5 = por %p346_p2, %p345_p0  ;;  %p9497_p6 = por %p352_p4, %p351_p3 }
  0x11   : > { %14604 = sst [smem:[#allocation16_spill]] %s9491_s22  ;;  %p7711_p7 = scmp.ge.s32.totalorder %s9368_s16, 1 }
  0x12   : > { %s14605_s23 = scalar_select %p9493_p5, 1, 0 }
  0x13   : > { %s14607_s24 = scalar_select %p9497_p6, 1, 0 }
  0x14   : > { %14606 = sst [smem:[#allocation17_spill]] %s14605_s23  ;;  %p359_p8 = scmp.lt.s32.totalorder %s9368_s16, 3 }
  0x15   : > { %14608 = sst [smem:[#allocation18_spill]] %s14607_s24  ;;  %p8645_p9 = scmp.eq.s32.totalorder %s9476_s17, 0 }
  0x16   : > { %p9504_p10 = pnand %p7711_p7, %p359_p8  ;;  %s14610_s8 = sld [smem:[#allocation65_spill]] }
  0x17   : > { %s9370_s18 = smov [#allocation5]   ;;  %s14612_s7 = sld [smem:[#allocation64_spill]] }
  0x18   : > { %p8631_p11 = pneg %p9504_p10  ;;  %s404_s20 = sshll.u32 %s9370_s18, 4  ;;  %s405_s20 = int_to_ptr.vmem [resolvable:$true] %s404_s20 }
  0x19   : > { %s9371_s26 = smov 128   ;;  %s9372_s27 = smov 8  }
  0x1a   : > { %p9515_p12 = pnand %p8645_p9, %p8631_p11  ;;  %s9374_s24 = smov 512  }
  0x1b   : > { %s9375_s29 = smov 32   ;;  %s425_s15 = sshll.u32 %s14469_s12, 4  ;;  %s426_s15 = int_to_ptr.hbm [resolvable:$true] %s425_s15 }
  0x1c   : > { %s402_s28 = sshll.u32 %s14610_s8, 4  ;;  %s9373_s8 = smov [#allocation2]   ;;  %s403_s28 = int_to_ptr.hbm [resolvable:$true] %s402_s28 }
  0x1d   : > { %s388_s19 = sshll.u32 %s14612_s7, 4  ;;  %s390_s18 = sshll.u32 %s9373_s8, 4  ;;  %s389_s19 = int_to_ptr.hbm [resolvable:$true] %s388_s19  ;;  %s391_s18 = int_to_ptr.vmem [resolvable:$true] %s390_s18 }
  0x1e   : > { %8637 = dma.hbm_to_vmem [thread:$0]  (!%p9515_p12), %s403_s28, 4096, %s405_s20, [#allocation6], %s9371_s26, %s9371_s26, %s9372_s27  }
  0x1f   : > { %8634 = dma.hbm_to_vmem [thread:$0]  (!%p9515_p12), %s389_s19, 16384, %s391_s18, [#allocation3], %s9374_s24, %s9374_s24, %s9375_s29  }
  0x20   : > { %s9376_s22 = smov [#allocation7]   ;;  %454 = sbr.rel (%p9504_p10) target bundleno = 3470 (0xd8e), region = 76 }
  0x21   : > { %s427_s7 = sshll.u32 %s9376_s22, 4  ;;  %s428_s7 = int_to_ptr.vmem [resolvable:$true] %s427_s7 }
  0x22   : > { %8640 = dma.hbm_to_vmem [thread:$0]  (!%p9515_p12), %s426_s15, 4096, %s428_s7, [#allocation6], %s9371_s26, %s9371_s26, %s9372_s27  }
  0x25   : > { %9343 = dma.done.wait (%p8645_p9), [#allocation3], 16384  }
  0x26   : > { %9345 = vsyncadd (%p8645_p9), [#allocation3], 4294950912 }
  0x27   : > { %9347 = dma.done.wait (%p8645_p9), [#allocation6], 8192  }
  0x28   : > { %9349 = vsyncadd (%p8645_p9), [#allocation6], 4294959104  ;;  %p511_p13 = scmp.lt.s32.totalorder %s9476_s17, 1  ;;  %v7748_v0 = vld [vmem:[%s14459_s2 + $0x30] sm:$0xf]  ;;  %vm619_vm0 = vcmask 523264  }
  0x29   : > { %v8438_v1 = vld [vmem:[%s14459_s2 + $0x34] sm:$0xf0]  ;;  %v8437_v2 = vld [vmem:[%s14459_s2 + $0x34] sm:$0xf]  ;;  %v7750_v4 = vld [vmem:[%s14459_s2 + $0x38] sm:$0xf0] }
  0x2a   : > { %s9543_s8 = scalar_select %p511_p13, %s9476_s17, 1  ;;  %v7749_v3 = vor.u32 %v8438_v1, %v7748_v0  ;;  %v7740_v5 = vld [vmem:[%s14459_s2 + $0x20] sm:$0xf]  ;;  %v8436_v6 = vld [vmem:[%s14459_s2 + $0x24] sm:$0xf0]  ;;  %v7753_v7 = vor.u32 %v8437_v2, %v7750_v4 }
  0x2b   : > { %v8435_v8 = vld [vmem:[%s14459_s2 + $0x24] sm:$0xf]  ;;  %v7742_v9 = vld [vmem:[%s14459_s2 + $0x28] sm:$0xf0]  ;;  %v7741_v10 = vor.u32 %v8436_v6, %v7740_v5  ;;  %v7732_v12 = vld [vmem:[%s14459_s2 + $0x10] sm:$0xf] }
  0x2c   : > { %672 = vmatpush.bf16.msra.mxu0 %v7749_v3  ;;  %8600 = vmatpush.bf16.msra.mxu2 %v7749_v3  ;;  %v7745_v11 = vor.u32 %v8435_v8, %v7742_v9  ;;  %v8434_v13 = vld [vmem:[%s14459_s2 + $0x14] sm:$0xf0]  ;;  %s8616_s24 = smul.u32 264, %s9543_s8  ;;  %v8433_v14 = vld [vmem:[%s14459_s2 + $0x14] sm:$0xf]  ;;  %s508_s28 = sand.u32 1, %s9360_s30  }
  0x2d   : > { %761 = vmatpush.bf16.msra.mxu1 %v7753_v7  ;;  %8604 = vmatpush.bf16.msra.mxu3 %v7753_v7  ;;  %v7734_v15 = vld [vmem:[%s14459_s2 + $0x18] sm:$0xf0]  ;;  %v7733_v16 = vor.u32 %v8434_v13, %v7732_v12  ;;  %v7724_v18 = vld [vmem:[%s14459_s2] sm:$0xf]  ;;  %v8432_v19 = vld [vmem:[%s14459_s2 + $0x4] sm:$0xf0] }
  0x2e   : > { %v7737_v17 = vor.u32 %v8433_v14, %v7734_v15  ;;  %s9591_s7 = scalar_lea.vmem %s14457_s0, %s8616_s24  ;;  %v8431_v20 = vld [vmem:[%s14459_s2 + $0x4] sm:$0xf]  ;;  %v7726_v21 = vld [vmem:[%s14459_s2 + $0x8] sm:$0xf0]  ;;  %v7725_v22 = vor.u32 %v8432_v19, %v7724_v18  ;;  %v573_v45 = vld [vmem:[%s14460_s3] sm:$0x3] }
  0x2f   : > { %v517_v23 = vld [vmem:[%s9591_s7 + $0x1] sm:$0xff]  ;;  %v518_v24 = vld [vmem:[%s9591_s7 + $0x9] sm:$0xff]  ;;  %v7729_v25 = vor.u32 %v8431_v20, %v7726_v21  ;;  %v519_v27 = vld [vmem:[%s9591_s7 + $0x11] sm:$0xff]  ;;  %v9630_v46 = vperm.slane %v573_v45, 0  ;;  %v9632_v47 = vperm.slane %v573_v45, 1  ;;  %s13903_s20 = sshll.u32 %s508_s28, 9 }
  0x30   : > { %673 = vmatpush.bf16.msra.mxu0 %v7741_v10  ;;  %8601 = vmatpush.bf16.msra.mxu2 %v7741_v10  ;;  %v549_v26 = vpack.c.bf16 %v518_v24, %v517_v23  ;;  %v520_v28 = vld [vmem:[%s9591_s7 + $0x19] sm:$0xff]  ;;  %v521_v30 = vld [vmem:[%s9591_s7 + $0x21] sm:$0xff]  ;;  %v522_v31 = vld [vmem:[%s9591_s7 + $0x29] sm:$0xff]  ;;  %s13932_s21 = scalar_lea.vmem [#allocation8], %s13903_s20  ;;  %s8599_s26 = sshll.u32 %s9476_s17, 9 }
  0x31   : > { %762 = vmatpush.bf16.msra.mxu1 %v7745_v11  ;;  %8605 = vmatpush.bf16.msra.mxu3 %v7745_v11  ;;  %v550_v29 = vpack.c.bf16 %v520_v28, %v519_v27  ;;  %v551_v32 = vpack.c.bf16 %v522_v31, %v521_v30  ;;  %v523_v33 = vld [vmem:[%s9591_s7 + $0x31] sm:$0xff]  ;;  %v524_v34 = vld [vmem:[%s9591_s7 + $0x39] sm:$0xff]  ;;  %v525_v36 = vld [vmem:[%s9591_s7 + $0x41] sm:$0xff]  ;;  %s7613_s8 = scalar_lea.hbm %s14471_s14, %s8599_s26  ;;  %s7614_s22 = sshll.u32 %s13932_s21, 4  ;;  %s7615_s22 = int_to_ptr.vmem [resolvable:$true] %s7614_s22 }
  0x32   : > { %v552_v35 = vpack.c.bf16 %v524_v34, %v523_v33  ;;  %v526_v37 = vld [vmem:[%s9591_s7 + $0x49] sm:$0xff]  ;;  %v527_v39 = vld [vmem:[%s9591_s7 + $0x51] sm:$0xff]  ;;  %v528_v40 = vld [vmem:[%s9591_s7 + $0x59] sm:$0xff]  ;;  %s7616_s29 = sshll.u32 %s7613_s8, 4  ;;  %s7602_s16 = scalar_lea.sflag [#allocation4], %s508_s28  ;;  %s7617_s29 = int_to_ptr.hbm [resolvable:$true] %s7616_s29 }
  0x33   : > { %v553_v38 = vpack.c.bf16 %v526_v37, %v525_v36  ;;  %v554_v41 = vpack.c.bf16 %v528_v40, %v527_v39  ;;  %v529_v42 = vld [vmem:[%s9591_s7 + $0x61] sm:$0xff]  ;;  %v530_v43 = vld [vmem:[%s9591_s7 + $0x69] sm:$0xff]  ;;  %v531_v58 = vld [vmem:[%s9591_s7 + $0x71] sm:$0xff]  ;;  %s9312_s17 = sshra.s32 %s7617_s29, 4  ;;  %s9318_s24 = scalar_lea.hbm %s14471_s14, 1024  ;;  %s9313_s17 = int_to_ptr.hbm [resolvable:$true] %s9312_s17 }
  0x34   : > { %674 = vmatpush.bf16.msra.mxu0 %v7733_v16  ;;  %8602 = vmatpush.bf16.msra.mxu2 %v7733_v16  ;;  %v555_v44 = vpack.c.bf16 %v530_v43, %v529_v42  ;;  %v532_v59 = vld [vmem:[%s9591_s7 + $0x79] sm:$0xff]  ;;  %v533_v2 = vld [vmem:[%s9591_s7 + $0x81] sm:$0xff]  ;;  %v534_v3 = vld [vmem:[%s9591_s7 + $0x89] sm:$0xff]  ;;  %s9314_s19 = scalar_lea.hbm %s9313_s17, 512  ;;  %p9319_p3 = scmp.lt.s32.totalorder %s9313_s17, %s14471_s14 }
  0x35   : > { %763 = vmatpush.bf16.msra.mxu1 %v7737_v17  ;;  %8606 = vmatpush.bf16.msra.mxu3 %v7737_v17  ;;  %v556_v60 = vpack.c.bf16 %v532_v59, %v531_v58  ;;  %v557_v5 = vpack.c.bf16 %v534_v3, %v533_v2  ;;  %v535_v15 = vld [vmem:[%s9591_s7 + $0x91] sm:$0xff]  ;;  %v536_v16 = vld [vmem:[%s9591_s7 + $0x99] sm:$0xff]  ;;  %v537_v42 = vld [vmem:[%s9591_s7 + $0xa1] sm:$0xff]  ;;  %p9315_p0 = scmp.ne.s32.totalorder %s9313_s17, %s9314_s19  ;;  %p9320_p4 = scmp.lt.s32.totalorder %s9318_s24, %s9314_s19 }
  0x36   : > { %v558_v17 = vpack.c.bf16 %v536_v16, %v535_v15  ;;  %v538_v43 = vld [vmem:[%s9591_s7 + $0xa9] sm:$0xff]  ;;  %v539_v59 = vld [vmem:[%s9591_s7 + $0xb1] sm:$0xff] }
  0x37   : > { %p9316_p1 = pnand %p9315_p0, %p9493_p5  ;;  %p9321_p7 = por %p9320_p4, %p9319_p3 }
  0x38   : > { %675 = vmatpush.bf16.msra.mxu0 %v7725_v22  ;;  %8603 = vmatpush.bf16.msra.mxu2 %v7725_v22 }
  0x39   : > { %764 = vmatpush.bf16.msra.mxu1 %v7729_v25  ;;  %8607 = vmatpush.bf16.msra.mxu3 %v7729_v25  ;;  %p9317_p2 = pneg %p9316_p1 }
  0x3b   : > { %7754 = vmatmul.msk.bf16.vlgmr.msra.gmra.mxu0 %vm619_vm0, %v549_v26  ;;  %7763 = vmatmul.msk.bf16.vlgmr.msra.gmra.mxu2 %vm619_vm0, %v558_v17  ;;  %p9322_p8 = pnand %p9321_p7, %p9317_p2 }
  0x3c   : > { %7770 = vmatmul.msk.bf16.vlgmr.msra.gmra.mxu1 %vm619_vm0, %v549_v26  ;;  %7778 = vmatmul.msk.bf16.vlgmr.msra.gmra.mxu3 %vm619_vm0, %v557_v5 }
  0x4b   : > { %7755 = vmatmul.msk.bf16.gmra.mxu0 %vm619_vm0, %v550_v29 }
  0x4c   : > { %7771 = vmatmul.msk.bf16.gmra.mxu1 %vm619_vm0, %v550_v29  ;;  %7779 = vmatmul.msk.bf16.gmra.mxu3 %vm619_vm0, %v558_v17 }
  0x5b   : > { %7756 = vmatmul.msk.bf16.gmra.mxu0 %vm619_vm0, %v551_v32 }
  0x5c   : > { %7772 = vmatmul.msk.bf16.gmra.mxu1 %vm619_vm0, %v551_v32 }
  0x6b   : > { %7757 = vmatmul.msk.bf16.gmra.mxu0 %vm619_vm0, %v552_v35 }
  0x6c   : > { %7773 = vmatmul.msk.bf16.gmra.mxu1 %vm619_vm0, %v552_v35 }
  0x7b   : > { %7758 = vmatmul.msk.bf16.gmra.mxu0 %vm619_vm0, %v553_v38 }
  0x7c   : > { %7774 = vmatmul.msk.bf16.gmra.mxu1 %vm619_vm0, %v553_v38  ;;  %v9377_v38 = vmov 256.0  }
  0x7d   : > { %8694 = vrcp.f32 %v9377_v38 }
  0x83   : > { %v8695_v39 = vpop.eup %8694 }
  0x84   : > { %v945_v40 = vmul.f32 256.0, %v8695_v39  ;;  %vm949_vm1 = vweird.f32 %v8695_v39 }
  0x8b   : > { %7759 = vmatmul.msk.bf16.gmra.mxu0 %vm619_vm0, %v554_v41 }
  0x8c   : > { %7775 = vmatmul.msk.bf16.gmra.mxu1 %vm619_vm0, %v554_v41  ;;  %v946_v41 = vsub.f32 1.0, %v945_v40  ;;  %v542_v40 = vld [vmem:[%s9591_s7 + $0xc9] sm:$0xff] }
  0x8e   : > { %v947_v45 = vmul.f32 %v8695_v39, %v946_v41 }
  0x9b   : > { %7760 = vmatmul.msk.bf16.gmra.mxu0 %vm619_vm0, %v555_v44 }
  0x9c   : > { %7776 = vmatmul.msk.bf16.gmra.mxu1 %vm619_vm0, %v555_v44  ;;  %v559_v44 = vpack.c.bf16 %v538_v43, %v537_v42 }
  0x9e   : > { %7764 = vmatmul.msk.bf16.gmra.mxu2 %vm619_vm0, %v559_v44  ;;  %7780 = vmatmul.msk.bf16.gmra.mxu3 %vm619_vm0, %v559_v44 }
  0xab   : > { %7761 = vmatmul.msk.bf16.gmra.mxu0 %vm619_vm0, %v556_v60 }
  0xac   : > { %7777 = vmatmul.msk.bf16.gmra.mxu1 %vm619_vm0, %v556_v60  ;;  %v540_v60 = vld [vmem:[%s9591_s7 + $0xb9] sm:$0xff] }
  0xb8   : > { %v677_v48 = vpop.f32.mrf.mxu0 }
  0xb9   : > { %v9635_v49 = vadd.f32 %v677_v48, %v9630_v46  ;;  %v766_v50 = vpop.f32.mrf.mxu1 }
  0xba   : > { %v9638_v51 = vadd.f32 %v766_v50, %v9632_v47  ;;  %v948_v50 = vadd.f32 %v8695_v39, %v947_v45 }
  0xbb   : > { %7762 = vmatmul.msk.bf16.gmra.mxu0 %vm619_vm0, %v557_v5 }
  0xbc   : > { %v848_v52 = vadd.f32 %v9638_v51, %v9635_v49 }
  0xbe   : > { %849 = vadd.xlane.f32.xlu0 %v848_v52 }
  0xc0   : > { %v679_v53 = vpop.f32.mrf.mxu0 }
  0xc1   : > { %v9643_v54 = vadd.f32 %v679_v53, %v9630_v46  ;;  %v768_v55 = vpop.f32.mrf.mxu1  ;;  %v9722_v53 = vsel %vm949_vm1, %v8695_v39, %v948_v50  ;;  %v541_v39 = vld [vmem:[%s9591_s7 + $0xc1] sm:$0xff] }
  0xc2   : > { %v9646_v56 = vadd.f32 %v768_v55, %v9632_v47  ;;  %14613 = vst [vmem:[#allocation19_spill] sm:$0xff] %v9722_v53  ;;  %v561_v44 = vpack.c.bf16 %v542_v40, %v541_v39 }
  0xc4   : > { %v851_v57 = vadd.f32 %v9646_v56, %v9643_v54 }
  0xc6   : > { %852 = vadd.xlane.f32.xlu0 %v851_v57 }
  0xc8   : > { %v682_v61 = vpop.f32.mrf.mxu0 }
  0xc9   : > { %v9655_v62 = vadd.f32 %v682_v61, %v9630_v46  ;;  %v771_v63 = vpop.f32.mrf.mxu1 }
  0xca   : > { %v9658_v0 = vadd.f32 %v771_v63, %v9632_v47 }
  0xcc   : > { %v854_v1 = vadd.f32 %v9658_v0, %v9655_v62 }
  0xce   : > { %855 = vadd.xlane.f32.xlu1 %v854_v1  ;;  %v560_v1 = vpack.c.bf16 %v540_v60, %v539_v59 }
  0xd0   : > { %v684_v4 = vpop.f32.mrf.mxu0  ;;  %7765 = vmatmul.msk.bf16.gmra.mxu2 %vm619_vm0, %v560_v1  ;;  %7781 = vmatmul.msk.bf16.gmra.mxu3 %vm619_vm0, %v560_v1 }
  0xd1   : > { %v9665_v6 = vadd.f32 %v684_v4, %v9630_v46  ;;  %v773_v7 = vpop.f32.mrf.mxu1 }
  0xd2   : > { %v9668_v8 = vadd.f32 %v773_v7, %v9632_v47 }
  0xd4   : > { %v857_v9 = vadd.f32 %v9668_v8, %v9665_v6 }
  0xd6   : > { %858 = vadd.xlane.f32.xlu1 %v857_v9 }
  0xd8   : > { %v687_v10 = vpop.f32.mrf.mxu0 }
  0xd9   : > { %v9675_v11 = vadd.f32 %v687_v10, %v9630_v46  ;;  %v776_v12 = vpop.f32.mrf.mxu1 }
  0xda   : > { %v9678_v13 = vadd.f32 %v776_v12, %v9632_v47 }
  0xdc   : > { %v860_v14 = vadd.f32 %v9678_v13, %v9675_v11 }
  0xde   : > { %861 = vadd.xlane.f32.xlu2 %v860_v14 }
  0xe0   : > { %v689_v18 = vpop.f32.mrf.mxu0  ;;  %7766 = vmatmul.msk.bf16.gmra.mxu2 %vm619_vm0, %v561_v44  ;;  %7782 = vmatmul.msk.bf16.gmra.mxu3 %vm619_vm0, %v561_v44 }
  0xe1   : > { %v9685_v19 = vadd.f32 %v689_v18, %v9630_v46  ;;  %v778_v20 = vpop.f32.mrf.mxu1 }
  0xe2   : > { %v9689_v21 = vadd.f32 %v778_v20, %v9632_v47 }
  0xe4   : > { %v863_v22 = vadd.f32 %v9689_v21, %v9685_v19 }
  0xe6   : > { %864 = vadd.xlane.f32.xlu2 %v863_v22 }
  0xe8   : > { %v692_v23 = vpop.f32.mrf.mxu0 }
  0xe9   : > { %v9695_v24 = vadd.f32 %v692_v23, %v9630_v46  ;;  %v781_v25 = vpop.f32.mrf.mxu1 }
  0xea   : > { %v9698_v26 = vadd.f32 %v781_v25, %v9632_v47 }
  0xec   : > { %v866_v27 = vadd.f32 %v9698_v26, %v9695_v24 }
  0xee   : > { %867 = vadd.xlane.f32.xlu0 %v866_v27 }
  0xf0   : > { %v694_v28 = vpop.f32.mrf.mxu0 }
  0xf1   : > { %v9703_v29 = vadd.f32 %v694_v28, %v9630_v46  ;;  %v783_v30 = vpop.f32.mrf.mxu1 }
  0xf2   : > { %v9706_v31 = vadd.f32 %v783_v30, %v9632_v47 }
  0xf4   : > { %v869_v32 = vadd.f32 %v9706_v31, %v9703_v29 }
  0xf6   : > { %870 = vadd.xlane.f32.xlu1 %v869_v32 }
  0xf8   : > { %v697_v33 = vpop.f32.mrf.mxu0 }
  0xf9   : > { %v9711_v34 = vadd.f32 %v697_v33, %v9630_v46  ;;  %v786_v35 = vpop.f32.mrf.mxu1 }
  0xfa   : > { %v9714_v36 = vadd.f32 %v786_v35, %v9632_v47 }
  0xfc   : > { %v872_v37 = vadd.f32 %v9714_v36, %v9711_v34 }
  0xfe   : > { %873 = vadd.xlane.f32.xlu1 %v872_v37 }
 0x100   : > { %v699_v48 = vpop.f32.mrf.mxu0 }
 0x101   : > { %v788_v52 = vpop.f32.mrf.mxu1 }
 0x102   : > { %v9744_v9 = vadd.f32 %v788_v52, %v9632_v47 }
 0x108   : > { %v702_v58 = vpop.f32.mrf.mxu0 }
 0x109   : > { %v791_v4 = vpop.f32.mrf.mxu1  ;;  %v9759_v23 = vadd.f32 %v702_v58, %v9630_v46 }
 0x110   : > { %v704_v14 = vpop.f32.mrf.mxu0 }
 0x111   : > { %v793_v22 = vpop.f32.mrf.mxu1 }
 0x112   : > { %v9784_v41 = vadd.f32 %v793_v22, %v9632_v47 }
 0x118   : > { %v707_v33 = vpop.f32.mrf.mxu0 }
 0x131   : > { %v850_v55 = vpop.xlane.xlu0 %849 }
 0x132   : > { %v951_v57 = vmul.f32 %v9722_v53, %v850_v55  ;;  %v709_v55 = vpop.f32.mrf.mxu0 }
 0x134   : > { %v9728_v61 = vsub.f32 %v9635_v49, %v951_v57  ;;  %v9731_v63 = vsub.f32 %v9638_v51, %v951_v57  ;;  %v9741_v51 = vadd.f32 %v699_v48, %v9630_v46 }
 0x136   : > { %v1047_v2 = vmul.f32 %v9728_v61, %v9728_v61  ;;  %v1048_v3 = vmul.f32 %v9731_v63, %v9731_v63  ;;  %v875_v17 = vadd.f32 %v9744_v9, %v9741_v51 }
 0x138   : > { %v1111_v5 = vadd.f32 %v1048_v3, %v1047_v2 }
 0x139   : > { %v853_v7 = vpop.xlane.xlu0 %852 }
 0x13a   : > { %v952_v49 = vmul.f32 %v9722_v53, %v853_v7  ;;  %1112 = vadd.xlane.f32.xlu2 %v1111_v5 }
 0x13c   : > { %v9747_v10 = vsub.f32 %v9643_v54, %v952_v49  ;;  %v9750_v12 = vsub.f32 %v9646_v56, %v952_v49  ;;  %v9762_v54 = vadd.f32 %v791_v4, %v9632_v47  ;;  %v712_v49 = vpop.f32.mrf.mxu0 }
 0x13e   : > { %v1049_v15 = vmul.f32 %v9747_v10, %v9747_v10  ;;  %v1050_v16 = vmul.f32 %v9750_v12, %v9750_v12  ;;  %v878_v28 = vadd.f32 %v9762_v54, %v9759_v23 }
 0x140   : > { %v1114_v18 = vadd.f32 %v1050_v16, %v1049_v15  ;;  %v9823_v16 = vadd.f32 %v709_v55, %v9630_v46  ;;  %v546_v55 = vld [vmem:[%s9591_s7 + $0xe9] sm:$0xff] }
 0x141   : > { %v856_v20 = vpop.xlane.xlu1 %855 }
 0x142   : > { %v953_v56 = vmul.f32 %v9722_v53, %v856_v20  ;;  %876 = vadd.xlane.f32.xlu2 %v875_v17  ;;  %1115 = vadd.xlane.f32.xlu0 %v1114_v18 }
 0x144   : > { %v9766_v25 = vsub.f32 %v9655_v62, %v953_v56  ;;  %v9769_v27 = vsub.f32 %v9658_v0, %v953_v56  ;;  %v9779_v62 = vadd.f32 %v704_v14, %v9630_v46  ;;  %v796_v0 = vpop.f32.mrf.mxu1 }
 0x145   : > { %v9804_v57 = vadd.f32 %v796_v0, %v9632_v47 }
 0x146   : > { %v1051_v30 = vmul.f32 %v9766_v25, %v9766_v25  ;;  %v1052_v32 = vmul.f32 %v9769_v27, %v9769_v27  ;;  %v881_v52 = vadd.f32 %v9784_v41, %v9779_v62 }
 0x148   : > { %v1117_v35 = vadd.f32 %v1052_v32, %v1051_v30 }
 0x149   : > { %v859_v37 = vpop.xlane.xlu1 %858 }
 0x14a   : > { %v954_v38 = vmul.f32 %v9722_v53, %v859_v37  ;;  %879 = vadd.xlane.f32.xlu2 %v878_v28  ;;  %1118 = vadd.xlane.f32.xlu0 %v1117_v35  ;;  %v714_v37 = vpop.f32.mrf.mxu0 }
 0x14c   : > { %v9787_v42 = vsub.f32 %v9665_v6, %v954_v38  ;;  %v9790_v43 = vsub.f32 %v9668_v8, %v954_v38  ;;  %v9801_v8 = vadd.f32 %v707_v33, %v9630_v46  ;;  %v798_v1 = vpop.f32.mrf.mxu1 }
 0x14d   : > { %v9826_v17 = vadd.f32 %v798_v1, %v9632_v47 }
 0x14e   : > { %v1053_v45 = vmul.f32 %v9787_v42, %v9787_v42  ;;  %v1054_v48 = vmul.f32 %v9790_v43, %v9790_v43  ;;  %v884_v4 = vadd.f32 %v9804_v57, %v9801_v8 }
 0x14f   : > { %v887_v30 = vadd.f32 %v9826_v17, %v9823_v16 }
 0x150   : > { %v1120_v50 = vadd.f32 %v1054_v48, %v1053_v45 }
 0x151   : > { %v862_v6 = vpop.xlane.xlu2 %861 }
 0x152   : > { %v955_v58 = vmul.f32 %v9722_v53, %v862_v6  ;;  %1121 = vadd.xlane.f32.xlu1 %v1120_v50  ;;  %882 = vadd.xlane.f32.xlu0 %v881_v52  ;;  %v545_v6 = vld [vmem:[%s9591_s7 + $0xe1] sm:$0xff] }
 0x153   : > { %v563_v1 = vpack.c.bf16 %v546_v55, %v545_v6  ;;  %v8028_v6 = vld [vmem:[%s14463_s6 + $0x1e0] sm:$0xf] }
 0x154   : > { %v9808_v59 = vsub.f32 %v9675_v11, %v955_v58  ;;  %v9811_v60 = vsub.f32 %v9678_v13, %v955_v58  ;;  %v543_v11 = vld [vmem:[%s9591_s7 + $0xd1] sm:$0xff]  ;;  %v544_v13 = vld [vmem:[%s9591_s7 + $0xd9] sm:$0xff]  ;;  %v801_v22 = vpop.f32.mrf.mxu1  ;;  %v806_v58 = vpop.f32.mrf.mxu3 }
 0x155   : > { %v562_v15 = vpack.c.bf16 %v544_v13, %v543_v11  ;;  %v9847_v35 = vadd.f32 %v801_v22, %v9632_v47  ;;  %v9889_v13 = vadd.f32 %v806_v58, %v9632_v47  ;;  %v8501_v58 = vld [vmem:[%s14463_s6 + $0x1ec] sm:$0xf0] }
 0x156   : > { %v1055_v2 = vmul.f32 %v9808_v59, %v9808_v59  ;;  %v1056_v3 = vmul.f32 %v9811_v60, %v9811_v60 }
 0x157   : > { %7767 = vmatmul.msk.bf16.gmra.mxu2 %vm619_vm0, %v562_v15  ;;  %7783 = vmatmul.msk.bf16.gmra.mxu3 %vm619_vm0, %v562_v15 }
 0x158   : > { %v1123_v5 = vadd.f32 %v1056_v3, %v1055_v2 }
 0x159   : > { %v865_v7 = vpop.xlane.xlu2 %864 }
 0x15a   : > { %v956_v14 = vmul.f32 %v9722_v53, %v865_v7  ;;  %1124 = vadd.xlane.f32.xlu1 %v1123_v5  ;;  %885 = vadd.xlane.f32.xlu0 %v884_v4  ;;  %v717_v4 = vpop.f32.mrf.mxu0 }
 0x15c   : > { %v9829_v18 = vsub.f32 %v9685_v19, %v956_v14  ;;  %v9832_v20 = vsub.f32 %v9689_v21, %v956_v14  ;;  %v9844_v21 = vadd.f32 %v712_v49, %v9630_v46  ;;  %v803_v45 = vpop.f32.mrf.mxu1 }
 0x15e   : > { %v1057_v56 = vmul.f32 %v9829_v18, %v9829_v18  ;;  %v1058_v28 = vmul.f32 %v9832_v20, %v9832_v20  ;;  %v890_v39 = vadd.f32 %v9847_v35, %v9844_v21 }
 0x160   : > { %v1126_v32 = vadd.f32 %v1058_v28, %v1057_v56  ;;  %v808_v56 = vpop.f32.mrf.mxu3 }
 0x161   : > { %v868_v19 = vpop.xlane.xlu0 %867 }
 0x162   : > { %v957_v33 = vmul.f32 %v9722_v53, %v868_v19  ;;  %888 = vadd.xlane.f32.xlu1 %v887_v30  ;;  %1127 = vadd.xlane.f32.xlu2 %v1126_v32  ;;  %v719_v19 = vpop.f32.mrf.mxu0 }
 0x164   : > { %v9850_v38 = vsub.f32 %v9695_v24, %v957_v33  ;;  %v9853_v0 = vsub.f32 %v9698_v26, %v957_v33  ;;  %v9863_v24 = vadd.f32 %v714_v37, %v9630_v46  ;;  %v9866_v26 = vadd.f32 %v803_v45, %v9632_v47 }
 0x166   : > { %v1059_v40 = vmul.f32 %v9850_v38, %v9850_v38  ;;  %v1060_v44 = vmul.f32 %v9853_v0, %v9853_v0  ;;  %v893_v49 = vadd.f32 %v9866_v26, %v9863_v24 }
 0x167   : > { %7768 = vmatmul.msk.bf16.gmra.mxu2 %vm619_vm0, %v563_v1  ;;  %7784 = vmatmul.msk.bf16.gmra.mxu3 %vm619_vm0, %v563_v1  ;;  %v8467_v1 = vld [vmem:[%s14463_s6 + $0xe4] sm:$0xf] }
 0x168   : > { %v1129_v48 = vadd.f32 %v1060_v44, %v1059_v40  ;;  %v811_v40 = vpop.f32.mrf.mxu3 }
 0x169   : > { %v871_v50 = vpop.xlane.xlu1 %870  ;;  %v9915_v45 = vadd.f32 %v811_v40, %v9632_v47  ;;  %v8495_v40 = vld [vmem:[%s14463_s6 + $0x1c4] sm:$0xf] }
 0x16a   : > { %v958_v52 = vmul.f32 %v9722_v53, %v871_v50  ;;  %891 = vadd.xlane.f32.xlu1 %v890_v39  ;;  %1130 = vadd.xlane.f32.xlu2 %v1129_v48  ;;  %v722_v39 = vpop.f32.mrf.mxu2  ;;  %v7900_v50 = vld [vmem:[%s14463_s6 + $0xe0] sm:$0xf] }
 0x16b   : > { %v9912_v44 = vadd.f32 %v722_v39, %v9630_v46 }
 0x16c   : > { %v9871_v2 = vsub.f32 %v9703_v29, %v958_v52  ;;  %v9874_v3 = vsub.f32 %v9706_v31, %v958_v52  ;;  %v9886_v31 = vadd.f32 %v717_v4, %v9630_v46  ;;  %v8469_v52 = vld [vmem:[%s14463_s6 + $0xec] sm:$0xf0]  ;;  %v7902_v4 = vld [vmem:[%s14463_s6 + $0xf0] sm:$0xf0] }
 0x16d   : > { %v902_v48 = vadd.f32 %v9915_v45, %v9912_v44  ;;  %v7901_v55 = vor.u32 %v8469_v52, %v7900_v50  ;;  %v7868_v52 = vld [vmem:[%s14463_s6 + $0xa0] sm:$0xf] }
 0x16e   : > { %v1061_v5 = vmul.f32 %v9871_v2, %v9871_v2  ;;  %v1062_v7 = vmul.f32 %v9874_v3, %v9874_v3  ;;  %v896_v32 = vadd.f32 %v9889_v13, %v9886_v31 }
 0x16f   : > { %2337 = vmatpush.bf16.msrb.mxu2 %v7901_v55  ;;  %v7996_v55 = vld [vmem:[%s14463_s6 + $0x1a0] sm:$0xf] }
 0x170   : > { %v1132_v14 = vadd.f32 %v1062_v7, %v1061_v5  ;;  %v8029_v5 = vor.u32 %v8501_v58, %v8028_v6  ;;  %v7905_v7 = vor.u32 %v8467_v1, %v7902_v4  ;;  %v8461_v6 = vld [vmem:[%s14463_s6 + $0xac] sm:$0xf0]  ;;  %v8459_v4 = vld [vmem:[%s14463_s6 + $0xa4] sm:$0xf] }
 0x171   : > { %v874_v29 = vpop.xlane.xlu1 %873  ;;  %v7869_v58 = vor.u32 %v8461_v6, %v7868_v52  ;;  %v8493_v1 = vld [vmem:[%s14463_s6 + $0x1ac] sm:$0xf0] }
 0x172   : > { %v959_v11 = vmul.f32 %v9722_v53, %v874_v29  ;;  %1133 = vadd.xlane.f32.xlu0 %v1132_v14  ;;  %894 = vadd.xlane.f32.xlu2 %v893_v49  ;;  %v8499_v49 = vld [vmem:[%s14463_s6 + $0x1e4] sm:$0xf]  ;;  %v8030_v14 = vld [vmem:[%s14463_s6 + $0x1f0] sm:$0xf0] }
 0x173   : > { %v8033_v29 = vor.u32 %v8499_v49, %v8030_v14  ;;  %2426 = vmatpush.bf16.msrb.mxu3 %v8029_v5  ;;  %2515 = vmatpush.bf16.msrb.mxu0 %v7905_v7  ;;  %v7870_v5 = vld [vmem:[%s14463_s6 + $0xb0] sm:$0xf0]  ;;  %v7997_v7 = vor.u32 %v8493_v1, %v7996_v55  ;;  %v8491_v14 = vld [vmem:[%s14463_s6 + $0x1a4] sm:$0xf]  ;;  %v548_v55 = vld [vmem:[%s9591_s7 + $0xf9] sm:$0xff] }
 0x174   : > { %v9892_v15 = vsub.f32 %v9711_v34, %v959_v11  ;;  %v9895_v22 = vsub.f32 %v9714_v36, %v959_v11  ;;  %v9904_v34 = vadd.f32 %v719_v19, %v9630_v46  ;;  %v9907_v36 = vadd.f32 %v808_v56, %v9632_v47  ;;  %v7884_v11 = vld [vmem:[%s14463_s6 + $0xc0] sm:$0xf]  ;;  %v8465_v56 = vld [vmem:[%s14463_s6 + $0xcc] sm:$0xf0]  ;;  %v8463_v19 = vld [vmem:[%s14463_s6 + $0xc4] sm:$0xf] }
 0x175   : > { %2604 = vmatpush.bf16.msrb.mxu1 %v8033_v29  ;;  %v7873_v49 = vor.u32 %v8459_v4, %v7870_v5  ;;  %v7998_v29 = vld [vmem:[%s14463_s6 + $0x1b0] sm:$0xf0]  ;;  %v7836_v1 = vld [vmem:[%s14463_s6 + $0x60] sm:$0xf]  ;;  %v8453_v4 = vld [vmem:[%s14463_s6 + $0x6c] sm:$0xf0] }
 0x176   : > { %14614 = vst [vmem:[#allocation20_spill] sm:$0xff] %v9895_v22  ;;  %v1063_v28 = vmul.f32 %v9892_v15, %v9892_v15  ;;  %v1064_v30 = vmul.f32 %v9895_v22, %v9895_v22  ;;  %v899_v37 = vadd.f32 %v9907_v36, %v9904_v34  ;;  %v547_v6 = vld [vmem:[%s9591_s7 + $0xf1] sm:$0xff]  ;;  %v7964_v5 = vld [vmem:[%s14463_s6 + $0x160] sm:$0xf] }
 0x178   : > { %v1135_v33 = vadd.f32 %v1064_v30, %v1063_v28  ;;  %v8012_v28 = vld [vmem:[%s14463_s6 + $0x1c0] sm:$0xf]  ;;  %v7885_v30 = vor.u32 %v8465_v56, %v7884_v11  ;;  %v8001_v11 = vor.u32 %v8491_v14, %v7998_v29  ;;  %v8451_v14 = vld [vmem:[%s14463_s6 + $0x64] sm:$0xf]  ;;  %v7838_v29 = vld [vmem:[%s14463_s6 + $0x70] sm:$0xf0] }
 0x179   : > { %v7852_v56 = vld [vmem:[%s14463_s6 + $0x80] sm:$0xf] }
 0x17a   : > { %1136 = vadd.xlane.f32.xlu0 %v1135_v33  ;;  %897 = vadd.xlane.f32.xlu2 %v896_v32  ;;  %v8497_v32 = vld [vmem:[%s14463_s6 + $0x1cc] sm:$0xf0]  ;;  %v7886_v33 = vld [vmem:[%s14463_s6 + $0xd0] sm:$0xf0] }
 0x17b   : > { %v7889_v39 = vor.u32 %v8463_v19, %v7886_v33  ;;  %2338 = vmatpush.bf16.msrb.mxu2 %v7885_v30  ;;  %v7980_v30 = vld [vmem:[%s14463_s6 + $0x180] sm:$0xf]  ;;  %v8489_v19 = vld [vmem:[%s14463_s6 + $0x18c] sm:$0xf0]  ;;  %v8455_v33 = vld [vmem:[%s14463_s6 + $0x84] sm:$0xf] }
 0x17d   : > { %2516 = vmatpush.bf16.msrb.mxu0 %v7889_v39  ;;  %v7981_v39 = vor.u32 %v8489_v19, %v7980_v30  ;;  %v7966_v30 = vld [vmem:[%s14463_s6 + $0x170] sm:$0xf0]  ;;  %v7820_v19 = vld [vmem:[%s14463_s6 + $0x40] sm:$0xf] }
 0x17f   : > { %2339 = vmatpush.bf16.msrb.mxu2 %v7869_v58  ;;  %v564_v58 = vpack.c.bf16 %v548_v55, %v547_v6  ;;  %v8479_v55 = vld [vmem:[%s14463_s6 + $0x144] sm:$0xf] }
 0x181   : > { %2517 = vmatpush.bf16.msrb.mxu0 %v7873_v49  ;;  %v8485_v49 = vld [vmem:[%s14463_s6 + $0x16c] sm:$0xf0]  ;;  %7769 = vmatmul.msk.bf16.gmra.mxu2 %vm619_vm0, %v564_v58 }
 0x182   : > { %900 = vadd.xlane.f32.xlu0 %v899_v37  ;;  %v8013_v37 = vor.u32 %v8497_v32, %v8012_v28  ;;  %v8457_v28 = vld [vmem:[%s14463_s6 + $0x8c] sm:$0xf0]  ;;  %7785 = vmatmul.msk.bf16.gmra.mxu3 %vm619_vm0, %v564_v58  ;;  %v7950_v58 = vld [vmem:[%s14463_s6 + $0x150] sm:$0xf0] }
 0x183   : > { %v7853_v32 = vor.u32 %v8457_v28, %v7852_v56  ;;  %v7841_v56 = vor.u32 %v8451_v14, %v7838_v29  ;;  %v8483_v28 = vld [vmem:[%s14463_s6 + $0x164] sm:$0xf]  ;;  %v8477_v14 = vld [vmem:[%s14463_s6 + $0x12c] sm:$0xf0] }
 0x184   : > { %2427 = vmatpush.bf16.msrb.mxu3 %v8013_v37  ;;  %v7854_v37 = vld [vmem:[%s14463_s6 + $0x90] sm:$0xf0]  ;;  %v8443_v29 = vld [vmem:[%s14463_s6 + $0x24] sm:$0xf] }
 0x185   : > { %2340 = vmatpush.bf16.msrb.mxu2 %v7853_v32  ;;  %v7969_v32 = vor.u32 %v8483_v28, %v7966_v30  ;;  %v8475_v30 = vld [vmem:[%s14463_s6 + $0x124] sm:$0xf] }
 0x188   : > { %2428 = vmatpush.bf16.msrb.mxu3 %v7997_v7  ;;  %v7837_v7 = vor.u32 %v8453_v4, %v7836_v1  ;;  %v7953_v1 = vor.u32 %v8479_v55, %v7950_v58  ;;  %v7804_v4 = vld [vmem:[%s14463_s6 + $0x20] sm:$0xf]  ;;  %v7790_v55 = vld [vmem:[%s14463_s6 + $0x10] sm:$0xf0] }
 0x18a   : > { %903 = vadd.xlane.f32.xlu0 %v902_v48  ;;  %v8014_v48 = vld [vmem:[%s14463_s6 + $0x1d0] sm:$0xf0]  ;;  %2341 = vmatpush.bf16.msrb.mxu2 %v7837_v7  ;;  %v7932_v7 = vld [vmem:[%s14463_s6 + $0x120] sm:$0xf] }
 0x18b   : > { %v8017_v50 = vor.u32 %v8495_v40, %v8014_v48  ;;  %v7857_v40 = vor.u32 %v8455_v33, %v7854_v37  ;;  %v8487_v48 = vld [vmem:[%s14463_s6 + $0x184] sm:$0xf]  ;;  %v8449_v33 = vld [vmem:[%s14463_s6 + $0x4c] sm:$0xf0]  ;;  %v7948_v37 = vld [vmem:[%s14463_s6 + $0x140] sm:$0xf] }
 0x18c   : > { %2429 = vmatpush.bf16.msrb.mxu3 %v7981_v39  ;;  %v7821_v39 = vor.u32 %v8449_v33, %v7820_v19 }
 0x18d   : > { %2605 = vmatpush.bf16.msrb.mxu1 %v8017_v50  ;;  %v7982_v50 = vld [vmem:[%s14463_s6 + $0x190] sm:$0xf0]  ;;  %2518 = vmatpush.bf16.msrb.mxu0 %v7857_v40  ;;  %v8481_v40 = vld [vmem:[%s14463_s6 + $0x14c] sm:$0xf0] }
 0x18e   : > { %v7985_v52 = vor.u32 %v8487_v48, %v7982_v50  ;;  %v8447_v48 = vld [vmem:[%s14463_s6 + $0x44] sm:$0xf]  ;;  %v7822_v50 = vld [vmem:[%s14463_s6 + $0x50] sm:$0xf0]  ;;  %2342 = vmatpush.bf16.msrb.mxu2 %v7821_v39  ;;  %v7788_v39 = vld [vmem:[%s14463_s6] sm:$0xf] }
 0x18f   : > { %v7825_v6 = vor.u32 %v8447_v48, %v7822_v50  ;;  %v7916_v48 = vld [vmem:[%s14463_s6 + $0x100] sm:$0xf] }
 0x191   : > { %2606 = vmatpush.bf16.msrb.mxu1 %v8001_v11  ;;  %v7965_v11 = vor.u32 %v8485_v49, %v7964_v5  ;;  %2519 = vmatpush.bf16.msrb.mxu0 %v7841_v56  ;;  %v8445_v5 = vld [vmem:[%s14463_s6 + $0x2c] sm:$0xf0]  ;;  %v7933_v56 = vor.u32 %v8477_v14, %v7932_v7  ;;  %v7918_v7 = vld [vmem:[%s14463_s6 + $0x110] sm:$0xf0]  ;;  %v724_v14 = vpop.f32.mrf.mxu2 }
 0x192   : > { %v7805_v49 = vor.u32 %v8445_v5, %v7804_v4  ;;  %v8471_v5 = vld [vmem:[%s14463_s6 + $0x104] sm:$0xf] }
 0x193   : > { %2430 = vmatpush.bf16.msrb.mxu3 %v7965_v11  ;;  %v7806_v11 = vld [vmem:[%s14463_s6 + $0x30] sm:$0xf0] }
 0x194   : > { %v7809_v28 = vor.u32 %v8443_v29, %v7806_v11  ;;  %2343 = vmatpush.bf16.msrb.mxu2 %v7805_v49  ;;  %v7921_v49 = vor.u32 %v8471_v5, %v7918_v7  ;;  %v813_v29 = vpop.f32.mrf.mxu3 }
 0x195   : > { %2607 = vmatpush.bf16.msrb.mxu1 %v7985_v52  ;;  %v7949_v52 = vor.u32 %v8481_v40, %v7948_v37  ;;  %2520 = vmatpush.bf16.msrb.mxu0 %v7825_v6  ;;  %v8441_v40 = vld [vmem:[%s14463_s6 + $0xc] sm:$0xf0]  ;;  %v8439_v6 = vld [vmem:[%s14463_s6 + $0x4] sm:$0xf] }
 0x196   : > { %v7789_v50 = vor.u32 %v8441_v40, %v7788_v39  ;;  %v7793_v4 = vor.u32 %v8439_v6, %v7790_v55 }
 0x197   : > { %2431 = vmatpush.bf16.msrb.mxu3 %v7949_v52  ;;  %v8473_v52 = vld [vmem:[%s14463_s6 + $0x10c] sm:$0xf0] }
 0x198   : > { %2344 = vmatpush.bf16.msrb.mxu2 %v7789_v50 }
 0x199   : > { %2608 = vmatpush.bf16.msrb.mxu1 %v7969_v32  ;;  %v7934_v32 = vld [vmem:[%s14463_s6 + $0x130] sm:$0xf0]  ;;  %2521 = vmatpush.bf16.msrb.mxu0 %v7809_v28  ;;  %v727_v6 = vpop.f32.mrf.mxu2 }
 0x19a   : > { %v7937_v33 = vor.u32 %v8475_v30, %v7934_v32 }
 0x19b   : > { %2432 = vmatpush.bf16.msrb.mxu3 %v7933_v56 }
 0x19c   : > { %v816_v55 = vpop.f32.mrf.mxu3 }
 0x19d   : > { %2609 = vmatpush.bf16.msrb.mxu1 %v7953_v1  ;;  %v7917_v1 = vor.u32 %v8473_v52, %v7916_v48  ;;  %2522 = vmatpush.bf16.msrb.mxu0 %v7793_v4 }
 0x19f   : > { %2433 = vmatpush.bf16.msrb.mxu3 %v7917_v1 }
 0x1a1   : > { %2610 = vmatpush.bf16.msrb.mxu1 %v7937_v33 }
 0x1a5   : > { %2611 = vmatpush.bf16.msrb.mxu1 %v7921_v49 }
 0x1ad   : > { %v1113_v19 = vpop.xlane.xlu2 %1112 }
 0x1ae   : > { %v1207_v37 = vmul.f32 %v1113_v19, %v9722_v53 }
 0x1b0   : > { %v1239_v58 = vadd.f32 1e-12, %v1207_v37 }
 0x1b2   : > { %8696 = vrsqrt.f32 %v1239_v58  ;;  %vm1277_vm3 = vweird.f32 %v1239_v58 }
 0x1b5   : > { %v877_v11 = vpop.xlane.xlu2 %876  ;;  %v1116_v56 = vpop.xlane.xlu0 %1115 }
 0x1b6   : > { %v960_v28 = vmul.f32 %v9722_v53, %v877_v11  ;;  %v1208_v30 = vmul.f32 %v1116_v56, %v9722_v53 }
 0x1b8   : > { %v8697_v32 = vpop.eup %8696  ;;  %v10119_v19 = vsub.f32 %v9741_v51, %v960_v28  ;;  %v10122_v33 = vsub.f32 %v9744_v9, %v960_v28  ;;  %v1240_v37 = vadd.f32 1e-12, %v1208_v30 }
 0x1b9   : > { %v1272_v39 = vmul.f32 %v8697_v32, %v1239_v58  ;;  %vm1278_vm2 = vweird.f32 %v8697_v32  ;;  %v10150_v58 = vadd.f32 %v813_v29, %v9632_v47  ;;  %v10164_v29 = vadd.f32 %v727_v6, %v9630_v46 }
 0x1ba   : > { %14615 = vst [vmem:[#allocation21_spill] sm:$0xff] %v10119_v19  ;;  %8698 = vrsqrt.f32 %v1240_v37  ;;  %v1065_v40 = vmul.f32 %v10119_v19, %v10119_v19  ;;  %v1066_v48 = vmul.f32 %v10122_v33, %v10122_v33  ;;  %vm1279_vm4 = vmor %vm1277_vm3, %vm1278_vm2  ;;  %vm1287_vm6 = vweird.f32 %v1240_v37 }
 0x1bb   : > { %14616 = vst [vmem:[#allocation22_spill] sm:$0xff] %v10122_v33  ;;  %v1273_v50 = vmul.f32 %v8697_v32, %v1272_v39 }
 0x1bc   : > { %v1138_v52 = vadd.f32 %v1066_v48, %v1065_v40 }
 0x1bd   : > { %v1274_v1 = vmul.f32 0.5, %v1273_v50  ;;  %v880_v4 = vpop.xlane.xlu2 %879  ;;  %v1119_v51 = vpop.xlane.xlu0 %1118 }
 0x1be   : > { %v961_v5 = vmul.f32 %v9722_v53, %v880_v4  ;;  %v1209_v9 = vmul.f32 %v1119_v51, %v9722_v53  ;;  %1139 = vadd.xlane.f32.xlu1 %v1138_v52  ;;  %v10147_v4 = vadd.f32 %v724_v14, %v9630_v46 }
 0x1bf   : > { %v1275_v7 = vsub.f32 1.5, %v1274_v1 }
 0x1c0   : > { %v8699_v49 = vpop.eup %8698  ;;  %v10131_v11 = vsub.f32 %v9759_v23, %v961_v5  ;;  %v10134_v56 = vsub.f32 %v9762_v54, %v961_v5  ;;  %v10136_v28 = vadd.f32 1e-12, %v1209_v9  ;;  %v846_v23 = vld [vmem:[%s14461_s4] sm:$0x3] }
 0x1c1   : > { %v1276_v30 = vmul.f32 %v8697_v32, %v1275_v7  ;;  %v1282_v39 = vmul.f32 %v8699_v49, %v1240_v37  ;;  %vm1288_vm5 = vweird.f32 %v8699_v49 }
 0x1c2   : > { %14617 = vst [vmem:[#allocation23_spill] sm:$0xff] %v10131_v11  ;;  %8700 = vrsqrt.f32 %v10136_v28  ;;  %v1067_v40 = vmul.f32 %v10131_v11, %v10131_v11  ;;  %v1068_v48 = vmul.f32 %v10134_v56, %v10134_v56  ;;  %vm1289_vm7 = vmor %vm1287_vm6, %vm1288_vm5  ;;  %vm1297_vm9 = vweird.f32 %v10136_v28 }
 0x1c3   : > { %14618 = vst [vmem:[#allocation24_spill] sm:$0xff] %v10134_v56  ;;  %v1283_v50 = vmul.f32 %v8699_v49, %v1282_v39  ;;  %v1280_v54 = vsel %vm1279_vm4, %v8697_v32, %v1276_v30  ;;  %v10154_v39 = vpop.f32.mrf.mxu2  ;;  %v10156_v56 = vpop.f32.mrf.mxu3  ;;  %v10158_v32 = vperm.slane %v846_v23, 0  ;;  %v10160_v30 = vperm.slane %v846_v23, 1 }
 0x1c4   : > { %v1141_v52 = vadd.f32 %v1068_v48, %v1067_v40  ;;  %v1591_v14 = vmul.f32 %v1280_v54, %v9728_v61  ;;  %v847_v61 = vld [vmem:[%s14462_s5] sm:$0x3]  ;;  %v1592_v23 = vmul.f32 %v1280_v54, %v9731_v63  ;;  %v905_v54 = vadd.f32 %v10150_v58, %v10147_v4 }
 0x1c5   : > { %v1284_v1 = vmul.f32 0.5, %v1283_v50  ;;  %v1122_v51 = vpop.xlane.xlu1 %1121  ;;  %v883_v5 = vpop.xlane.xlu0 %882  ;;  %v10188_v11 = vperm.slane %v847_v61, 0 }
 0x1c6   : > { %v1210_v9 = vmul.f32 %v1122_v51, %v9722_v53  ;;  %v962_v7 = vmul.f32 %v9722_v53, %v883_v5  ;;  %1142 = vadd.xlane.f32.xlu1 %v1141_v52  ;;  %v10175_v5 = vadd.f32 %v816_v55, %v9632_v47  ;;  %v1661_v22 = vmul.f32 %v10160_v30, %v1592_v23 }
 0x1c7   : > { %v1285_v40 = vsub.f32 1.5, %v1284_v1 }
 0x1c8   : > { %v8701_v48 = vpop.eup %8700  ;;  %v10166_v50 = vadd.f32 1e-12, %v1210_v9  ;;  %v10169_v52 = vsub.f32 %v9779_v62, %v962_v7  ;;  %v10172_v51 = vsub.f32 %v9784_v41, %v962_v7  ;;  %v1660_v7 = vmul.f32 %v10158_v32, %v1591_v14 }
 0x1c9   : > { %v1286_v6 = vmul.f32 %v8699_v49, %v1285_v40  ;;  %v1292_v1 = vmul.f32 %v8701_v48, %v10136_v28  ;;  %vm1298_vm8 = vweird.f32 %v8701_v48 }
 0x1ca   : > { %14619 = vst [vmem:[#allocation25_spill] sm:$0xff] %v10169_v52  ;;  %8702 = vrsqrt.f32 %v10166_v50  ;;  %v1069_v62 = vmul.f32 %v10169_v52, %v10169_v52  ;;  %v1070_v41 = vmul.f32 %v10172_v51, %v10172_v51  ;;  %vm1299_vm10 = vmor %vm1297_vm9, %vm1298_vm8  ;;  %vm1307_vm12 = vweird.f32 %v10166_v50 }
 0x1cb   : > { %14620 = vst [vmem:[#allocation26_spill] sm:$0xff] %v10172_v51  ;;  %v1290_v55 = vsel %vm1289_vm7, %v8699_v49, %v1286_v6  ;;  %v1293_v9 = vmul.f32 %v8701_v48, %v1292_v1  ;;  %v10195_v51 = vperm.slane %v847_v61, 1  ;;  %v908_v49 = vadd.f32 %v10175_v5, %v10164_v29 }
 0x1cc   : > { %v1593_v63 = vmul.f32 %v1290_v55, %v9747_v10  ;;  %v1594_v37 = vmul.f32 %v1290_v55, %v9750_v12  ;;  %v1144_v40 = vadd.f32 %v1070_v41, %v1069_v62  ;;  %v1729_v1 = vadd.f32 %v10188_v11, %v1660_v7  ;;  %v732_v55 = vpop.f32.mrf.mxu2 }
 0x1cd   : > { %v1294_v33 = vmul.f32 0.5, %v1293_v9  ;;  %v1125_v19 = vpop.xlane.xlu1 %1124  ;;  %v886_v52 = vpop.xlane.xlu0 %885  ;;  %v1730_v7 = vadd.f32 %v10195_v51, %v1661_v22 }
 0x1ce   : > { %v1211_v14 = vmul.f32 %v1125_v19, %v9722_v53  ;;  %v963_v10 = vmul.f32 %v9722_v53, %v886_v52  ;;  %906 = vadd.xlane.f32.xlu1 %v905_v54  ;;  %1145 = vadd.xlane.f32.xlu2 %v1144_v40  ;;  %v1662_v12 = vmul.f32 %v10158_v32, %v1593_v63  ;;  %v10213_v9 = vpop.f32.mrf.mxu3 }
 0x1cf   : > { %v1295_v6 = vsub.f32 1.5, %v1294_v33  ;;  %v1663_v62 = vmul.f32 %v10160_v30, %v1594_v37 }
 0x1d0   : > { %v8703_v23 = vpop.eup %8702  ;;  %v10204_v61 = vadd.f32 1e-12, %v1211_v14  ;;  %v10207_v41 = vsub.f32 %v9801_v8, %v963_v10  ;;  %v10210_v19 = vsub.f32 %v9804_v57, %v963_v10  ;;  %v1731_v52 = vadd.f32 %v10188_v11, %v1662_v12 }
 0x1d1   : > { %v1296_v33 = vmul.f32 %v8701_v48, %v1295_v6  ;;  %v1302_v63 = vmul.f32 %v8703_v23, %v10166_v50  ;;  %v1732_v37 = vadd.f32 %v10195_v51, %v1663_v62  ;;  %vm1308_vm11 = vweird.f32 %v8703_v23 }
 0x1d2   : > { %8704 = vrsqrt.f32 %v10204_v61  ;;  %v10220_v8 = vpack.c.bf16 %v1731_v52, %v1729_v1  ;;  %v1071_v57 = vmul.f32 %v10207_v41, %v10207_v41  ;;  %v1072_v14 = vmul.f32 %v10210_v19, %v10210_v19  ;;  %vm1309_vm13 = vmor %vm1307_vm12, %vm1308_vm11 }
 0x1d3   : > { %v1303_v54 = vmul.f32 %v8703_v23, %v1302_v63  ;;  %v10225_v40 = vpack.c.bf16 %v1732_v37, %v1730_v7  ;;  %v1300_v22 = vsel %vm1299_vm10, %v8701_v48, %v1296_v33  ;;  %v10238_v33 = vadd.f32 %v10154_v39, %v9630_v46 }
 0x1d4   : > { %14621 = vst [vmem:[#allocation27_spill] sm:$0xff] %v10220_v8  ;;  %2345 = vmatmul.bf16.vlgmr.msrb.gmra.mxu2 %v10220_v8  ;;  %2523 = vmatmul.bf16.vlgmr.msrb.gmra.mxu0 %v10220_v8  ;;  %v1147_v6 = vadd.f32 %v1072_v14, %v1071_v57  ;;  %v1595_v52 = vmul.f32 %v1300_v22, %v9766_v25  ;;  %vm1317_vm15 = vweird.f32 %v10204_v61 }
 0x1d5   : > { %14622 = vst [vmem:[#allocation28_spill] sm:$0xff] %v10225_v40  ;;  %v1304_v28 = vmul.f32 0.5, %v1303_v54  ;;  %2434 = vmatmul.bf16.vlgmr.msrb.gmra.mxu3 %v10225_v40  ;;  %2612 = vmatmul.bf16.vlgmr.msrb.gmra.mxu1 %v10225_v40  ;;  %v889_v10 = vpop.xlane.xlu1 %888  ;;  %v1128_v12 = vpop.xlane.xlu2 %1127  ;;  %v10242_v7 = vadd.f32 %v10156_v56, %v9632_v47  ;;  %v1596_v25 = vmul.f32 %v1300_v22, %v9769_v27 }
 0x1d6   : > { %v964_v1 = vmul.f32 %v9722_v53, %v889_v10  ;;  %v1212_v62 = vmul.f32 %v1128_v12, %v9722_v53  ;;  %909 = vadd.xlane.f32.xlu1 %v908_v49  ;;  %1148 = vadd.xlane.f32.xlu2 %v1147_v6  ;;  %v823_v14 = vpop.f32.mrf.mxu3  ;;  %v1664_v27 = vmul.f32 %v10158_v32, %v1595_v52 }
 0x1d7   : > { %v1305_v48 = vsub.f32 1.5, %v1304_v28  ;;  %v911_v40 = vadd.f32 %v10242_v7, %v10238_v33  ;;  %v1665_v8 = vmul.f32 %v10160_v30, %v1596_v25 }
 0x1d8   : > { %v8705_v63 = vpop.eup %8704  ;;  %v10245_v37 = vsub.f32 %v9823_v16, %v964_v1  ;;  %v10248_v57 = vsub.f32 %v9826_v17, %v964_v1  ;;  %v10250_v49 = vadd.f32 1e-12, %v1212_v62  ;;  %v734_v17 = vpop.f32.mrf.mxu2  ;;  %v10264_v1 = vadd.f32 %v732_v55, %v9630_v46 }
 0x1d9   : > { %v1306_v54 = vmul.f32 %v8703_v23, %v1305_v48  ;;  %v1312_v39 = vmul.f32 %v8705_v63, %v10204_v61  ;;  %vm1318_vm14 = vweird.f32 %v8705_v63  ;;  %v10275_v55 = vadd.f32 %v10213_v9, %v9632_v47 }
 0x1da   : > { %8706 = vrsqrt.f32 %v10250_v49  ;;  %v1073_v56 = vmul.f32 %v10245_v37, %v10245_v37  ;;  %v1074_v16 = vmul.f32 %v10248_v57, %v10248_v57  ;;  %v1734_v9 = vadd.f32 %v10195_v51, %v1665_v8  ;;  %vm1319_vm0 = vmor %vm1317_vm15, %vm1318_vm14 }
 0x1db   : > { %v1310_v28 = vsel %vm1309_vm13, %v8703_v23, %v1306_v54  ;;  %v1313_v10 = vmul.f32 %v8705_v63, %v1312_v39  ;;  %v1733_v39 = vadd.f32 %v10188_v11, %v1664_v27  ;;  %v914_v61 = vadd.f32 %v10275_v55, %v10264_v1 }
 0x1dc   : > { %v1597_v22 = vmul.f32 %v1310_v28, %v9787_v42  ;;  %v1598_v50 = vmul.f32 %v1310_v28, %v9790_v43  ;;  %v1150_v12 = vadd.f32 %v1074_v16, %v1073_v56  ;;  %vm1327_vm2 = vweird.f32 %v10250_v49 }
 0x1dd   : > { %v1314_v6 = vmul.f32 0.5, %v1313_v10  ;;  %v892_v62 = vpop.xlane.xlu1 %891  ;;  %v1131_v48 = vpop.xlane.xlu2 %1130 }
 0x1de   : > { %v965_v23 = vmul.f32 %v9722_v53, %v892_v62  ;;  %v1213_v52 = vmul.f32 %v1131_v48, %v9722_v53  ;;  %1151 = vadd.xlane.f32.xlu0 %v1150_v12  ;;  %v1666_v42 = vmul.f32 %v10158_v32, %v1597_v22  ;;  %v1667_v43 = vmul.f32 %v10160_v30, %v1598_v50  ;;  %v826_v12 = vpop.f32.mrf.mxu3 }
 0x1df   : > { %v1315_v54 = vsub.f32 1.5, %v1314_v6  ;;  %912 = vadd.xlane.f32.xlu2 %v911_v40 }
 0x1e0   : > { %v8707_v56 = vpop.eup %8706  ;;  %v10279_v25 = vsub.f32 %v9844_v21, %v965_v23  ;;  %v10282_v16 = vsub.f32 %v9847_v35, %v965_v23  ;;  %v10284_v28 = vadd.f32 1e-12, %v1213_v52  ;;  %v1735_v10 = vadd.f32 %v10188_v11, %v1666_v42  ;;  %v737_v27 = vpop.f32.mrf.mxu2 }
 0x1e1   : > { %v1316_v22 = vmul.f32 %v8705_v63, %v1315_v54  ;;  %v1322_v50 = vmul.f32 %v8707_v56, %v10250_v49  ;;  %v1736_v40 = vadd.f32 %v10195_v51, %v1667_v43  ;;  %vm1328_vm1 = vweird.f32 %v8707_v56 }
 0x1e2   : > { %8708 = vrsqrt.f32 %v10284_v28  ;;  %v10292_v21 = vpack.c.bf16 %v1735_v10, %v1733_v39  ;;  %v1075_v35 = vmul.f32 %v10279_v25, %v10279_v25  ;;  %v1076_v8 = vmul.f32 %v10282_v16, %v10282_v16  ;;  %vm1329_vm3 = vmor %vm1327_vm2, %vm1328_vm1 }
 0x1e3   : > { %v1323_v6 = vmul.f32 %v8707_v56, %v1322_v50  ;;  %v10297_v62 = vpack.c.bf16 %v1736_v40, %v1734_v9  ;;  %v1320_v48 = vsel %vm1319_vm0, %v8705_v63, %v1316_v22  ;;  %v10311_v63 = vadd.f32 %v734_v17, %v9630_v46 }
 0x1e4   : > { %14623 = vst [vmem:[#allocation29_spill] sm:$0xff] %v10292_v21  ;;  %2350 = vmatmul.bf16.gmra.mxu2 %v10292_v21  ;;  %2528 = vmatmul.bf16.gmra.mxu0 %v10292_v21  ;;  %v1153_v43 = vadd.f32 %v1076_v8, %v1075_v35  ;;  %v1599_v10 = vmul.f32 %v1320_v48, %v9808_v59  ;;  %vm1337_vm5 = vweird.f32 %v10284_v28 }
 0x1e5   : > { %14624 = vst [vmem:[#allocation30_spill] sm:$0xff] %v10297_v62  ;;  %v1324_v23 = vmul.f32 0.5, %v1323_v6  ;;  %2439 = vmatmul.bf16.gmra.mxu3 %v10297_v62  ;;  %2617 = vmatmul.bf16.gmra.mxu1 %v10297_v62  ;;  %v895_v52 = vpop.xlane.xlu2 %894  ;;  %v1134_v42 = vpop.xlane.xlu0 %1133  ;;  %v10314_v9 = vadd.f32 %v823_v14, %v9632_v47  ;;  %v1600_v59 = vmul.f32 %v1320_v48, %v9811_v60 }
 0x1e6   : > { %v966_v54 = vmul.f32 %v9722_v53, %v895_v52  ;;  %v1214_v39 = vmul.f32 %v1134_v42, %v9722_v53  ;;  %1154 = vadd.xlane.f32.xlu0 %v1153_v43  ;;  %v828_v42 = vpop.f32.mrf.mxu3 }
 0x1e7   : > { %v1325_v50 = vsub.f32 1.5, %v1324_v23  ;;  %915 = vadd.xlane.f32.xlu2 %v914_v61  ;;  %v1668_v23 = vmul.f32 %v10158_v32, %v1599_v10  ;;  %v1669_v62 = vmul.f32 %v10160_v30, %v1600_v59 }
 0x1e8   : > { %v8709_v22 = vpop.eup %8708  ;;  %v10317_v40 = vsub.f32 %v9863_v24, %v966_v54  ;;  %v10320_v35 = vsub.f32 %v9866_v26, %v966_v54  ;;  %v10322_v6 = vadd.f32 1e-12, %v1214_v39  ;;  %v739_v52 = vpop.f32.mrf.mxu2 }
 0x1e9   : > { %v1326_v8 = vmul.f32 %v8707_v56, %v1325_v50  ;;  %v1332_v17 = vmul.f32 %v8709_v22, %v10284_v28  ;;  %v917_v50 = vadd.f32 %v10314_v9, %v10311_v63  ;;  %vm1338_vm4 = vweird.f32 %v8709_v22 }
 0x1ea   : > { %8710 = vrsqrt.f32 %v10322_v6  ;;  %v1077_v14 = vmul.f32 %v10317_v40, %v10317_v40  ;;  %v1078_v24 = vmul.f32 %v10320_v35, %v10320_v35  ;;  %vm1339_vm6 = vmor %vm1337_vm5, %vm1338_vm4  ;;  %vm1347_vm8 = vweird.f32 %v10322_v6 }
 0x1eb   : > { %v1330_v26 = vsel %vm1329_vm3, %v8707_v56, %v1326_v8  ;;  %v1333_v61 = vmul.f32 %v8709_v22, %v1332_v17  ;;  %v10344_v8 = vadd.f32 %v737_v27, %v9630_v46  ;;  %v10347_v17 = vadd.f32 %v826_v12, %v9632_v47 }
 0x1ec   : > { %v1601_v60 = vmul.f32 %v1330_v26, %v9829_v18  ;;  %v1602_v48 = vmul.f32 %v1330_v26, %v9832_v20  ;;  %v1156_v49 = vadd.f32 %v1078_v24, %v1077_v14  ;;  %v1737_v14 = vadd.f32 %v10188_v11, %v1668_v23 }
 0x1ed   : > { %v1334_v43 = vmul.f32 0.5, %v1333_v61  ;;  %v898_v54 = vpop.xlane.xlu2 %897  ;;  %v10335_v39 = vpop.xlane.xlu0 %1136  ;;  %v1738_v27 = vadd.f32 %v10195_v51, %v1669_v62 }
 0x1ee   : > { %v967_v56 = vmul.f32 %v9722_v53, %v898_v54  ;;  %1157 = vadd.xlane.f32.xlu1 %v1156_v49  ;;  %v1670_v10 = vmul.f32 %v10158_v32, %v1601_v60  ;;  %v1671_v18 = vmul.f32 %v10160_v30, %v1602_v48  ;;  %918 = vadd.xlane.f32.xlu0 %v917_v50 }
 0x1ef   : > { %v1335_v20 = vsub.f32 1.5, %v1334_v43  ;;  %v920_v43 = vadd.f32 %v10347_v17, %v10344_v8 }
 0x1f0   : > { %v8711_v24 = vpop.eup %8710  ;;  %v10351_v59 = vsub.f32 %v9886_v31, %v967_v56  ;;  %v10354_v26 = vsub.f32 %v9889_v13, %v967_v56  ;;  %v1739_v61 = vadd.f32 %v10188_v11, %v1670_v10  ;;  %v1740_v12 = vadd.f32 %v10195_v51, %v1671_v18 }
 0x1f1   : > { %v1336_v60 = vmul.f32 %v8709_v22, %v1335_v20  ;;  %v1342_v48 = vmul.f32 %v8711_v24, %v10322_v6  ;;  %v10377_v18 = vadd.f32 %v739_v52, %v9630_v46  ;;  %v10380_v20 = vadd.f32 %v828_v42, %v9632_v47 }
 0x1f2   : > { %v10361_v23 = vpack.c.bf16 %v1739_v61, %v1737_v14  ;;  %v1079_v31 = vmul.f32 %v10351_v59, %v10351_v59  ;;  %v10365_v13 = vpack.c.bf16 %v1740_v12, %v1738_v27  ;;  %v1080_v54 = vmul.f32 %v10354_v26, %v10354_v26 }
 0x1f3   : > { %v1343_v49 = vmul.f32 %v8711_v24, %v1342_v48  ;;  %v1340_v62 = vsel %vm1339_vm6, %v8709_v22, %v1336_v60  ;;  %vm1348_vm7 = vweird.f32 %v8711_v24  ;;  %v742_v60 = vpop.f32.mrf.mxu2  ;;  %v831_v48 = vpop.f32.mrf.mxu3 }
 0x1f4   : > { %14625 = vst [vmem:[#allocation31_spill] sm:$0xff] %v10361_v23  ;;  %2355 = vmatmul.bf16.gmra.mxu2 %v10361_v23  ;;  %2533 = vmatmul.bf16.gmra.mxu0 %v10361_v23  ;;  %v1159_v56 = vadd.f32 %v1080_v54, %v1079_v31  ;;  %v1603_v22 = vmul.f32 %v1340_v62, %v9850_v38  ;;  %vm1349_vm9 = vmor %vm1347_vm8, %vm1348_vm7 }
 0x1f5   : > { %14626 = vst [vmem:[#allocation32_spill] sm:$0xff] %v10365_v13  ;;  %v1344_v28 = vmul.f32 0.5, %v1343_v49  ;;  %2444 = vmatmul.bf16.gmra.mxu3 %v10365_v13  ;;  %2622 = vmatmul.bf16.gmra.mxu1 %v10365_v13  ;;  %v901_v50 = vpop.xlane.xlu0 %900  ;;  %v1604_v14 = vmul.f32 %v1340_v62, %v9853_v0  ;;  %v923_v31 = vadd.f32 %v10380_v20, %v10377_v18 }
 0x1f6   : > { %v968_v10 = vmul.f32 %v9722_v53, %v901_v50  ;;  %921 = vadd.xlane.f32.xlu0 %v920_v43  ;;  %1160 = vadd.xlane.f32.xlu1 %v1159_v56  ;;  %v10405_v50 = vadd.f32 %v742_v60, %v9630_v46  ;;  %v10408_v56 = vadd.f32 %v831_v48, %v9632_v47 }
 0x1f7   : > { %v1345_v61 = vsub.f32 1.5, %v1344_v28  ;;  %v1673_v49 = vmul.f32 %v10160_v30, %v1604_v14 }
 0x1f8   : > { %v10385_v27 = vsub.f32 %v9904_v34, %v968_v10  ;;  %v10388_v12 = vsub.f32 %v9907_v36, %v968_v10  ;;  %v1672_v34 = vmul.f32 %v10158_v32, %v1603_v22 }
 0x1f9   : > { %v1346_v52 = vmul.f32 %v8711_v24, %v1345_v61 }
 0x1fa   : > { %v1081_v38 = vmul.f32 %v10385_v27, %v10385_v27  ;;  %v1082_v0 = vmul.f32 %v10388_v12, %v10388_v12 }
 0x1fb   : > { %v1350_v42 = vsel %vm1349_vm9, %v8711_v24, %v1346_v52  ;;  %v744_v52 = vpop.f32.mrf.mxu2  ;;  %v833_v60 = vpop.f32.mrf.mxu3 }
 0x1fc   : > { %v1605_v36 = vmul.f32 %v1350_v42, %v9871_v2  ;;  %v1606_v43 = vmul.f32 %v1350_v42, %v9874_v3  ;;  %v1162_v6 = vadd.f32 %v1082_v0, %v1081_v38  ;;  %v1741_v2 = vadd.f32 %v10188_v11, %v1672_v34 }
 0x1fd   : > { %v904_v54 = vpop.xlane.xlu0 %903  ;;  %v1742_v3 = vadd.f32 %v10195_v51, %v1673_v49  ;;  %v10438_v34 = vadd.f32 %v833_v60, %v9632_v47 }
 0x1fe   : > { %v969_v62 = vmul.f32 %v9722_v53, %v904_v54  ;;  %1163 = vadd.xlane.f32.xlu2 %v1162_v6  ;;  %v1674_v28 = vmul.f32 %v10158_v32, %v1605_v36  ;;  %v1675_v24 = vmul.f32 %v10160_v30, %v1606_v43  ;;  %924 = vadd.xlane.f32.xlu1 %v923_v31 }
 0x1ff   : > { %v10435_v31 = vadd.f32 %v744_v52, %v9630_v46 }
 0x200   : > { %v10413_v10 = vsub.f32 %v9912_v44, %v969_v62  ;;  %v10416_v22 = vsub.f32 %v9915_v45, %v969_v62  ;;  %v1743_v14 = vadd.f32 %v10188_v11, %v1674_v28  ;;  %v1744_v61 = vadd.f32 %v10195_v51, %v1675_v24 }
 0x201   : > { %v926_v45 = vadd.f32 %v10408_v56, %v10405_v50  ;;  %v929_v49 = vadd.f32 %v10438_v34, %v10435_v31  ;;  %v1215_v28 = vmul.f32 %v10335_v39, %v9722_v53 }
 0x202   : > { %14627 = vst [vmem:[#allocation33_spill] sm:$0xff] %v10413_v10  ;;  %v10420_v38 = vpack.c.bf16 %v1743_v14, %v1741_v2  ;;  %v10422_v48 = vpack.c.bf16 %v1744_v61, %v1742_v3  ;;  %v1083_v0 = vmul.f32 %v10413_v10, %v10413_v10  ;;  %v1084_v44 = vmul.f32 %v10416_v22, %v10416_v22 }
 0x203   : > { %14628 = vst [vmem:[#allocation34_spill] sm:$0xff] %v10416_v22  ;;  %v747_v36 = vpop.f32.mrf.mxu2  ;;  %v836_v43 = vpop.f32.mrf.mxu3  ;;  %v1247_v24 = vadd.f32 1e-12, %v1215_v28 }
 0x204   : > { %14629 = vst [vmem:[#allocation35_spill] sm:$0xff] %v10420_v38  ;;  %2360 = vmatmul.bf16.gmra.mxu2 %v10420_v38  ;;  %2538 = vmatmul.bf16.gmra.mxu0 %v10420_v38  ;;  %v1165_v42 = vadd.f32 %v1084_v44, %v1083_v0  ;;  %v10443_v6 = vadd.f32 %v747_v36, %v9630_v46 }
 0x205   : > { %14630 = vst [vmem:[#allocation36_spill] sm:$0xff] %v10422_v48  ;;  %2449 = vmatmul.bf16.gmra.mxu3 %v10422_v48  ;;  %2627 = vmatmul.bf16.gmra.mxu1 %v10422_v48  ;;  %v10446_v54 = vadd.f32 %v836_v43, %v9632_v47  ;;  %8712 = vrsqrt.f32 %v1247_v24  ;;  %vm1357_vm11 = vweird.f32 %v1247_v24 }
 0x206   : > { %1166 = vadd.xlane.f32.xlu2 %v1165_v42  ;;  %927 = vadd.xlane.f32.xlu1 %v926_v45 }
 0x207   : > { %14631 = vst [vmem:[#allocation37_spill] sm:$0xff] %v10446_v54  ;;  %v932_v62 = vadd.f32 %v10446_v54, %v10443_v6 }
 0x20b   : > { %v8713_v2 = vpop.eup %8712  ;;  %v10453_v42 = vpop.f32.mrf.mxu2 }
 0x20c   : > { %v1352_v3 = vmul.f32 %v8713_v2, %v1247_v24  ;;  %v10456_v36 = vpop.f32.mrf.mxu3  ;;  %vm1358_vm10 = vweird.f32 %v8713_v2 }
 0x20d   : > { %vm1359_vm12 = vmor %vm1357_vm11, %vm1358_vm10 }
 0x20e   : > { %930 = vadd.xlane.f32.xlu2 %v929_v49  ;;  %v1353_v14 = vmul.f32 %v8713_v2, %v1352_v3 }
 0x210   : > { %v1354_v60 = vmul.f32 0.5, %v1353_v14 }
 0x212   : > { %v1355_v44 = vsub.f32 1.5, %v1354_v60 }
 0x213   : > { %v10465_v23 = vpop.f32.mrf.mxu2 }
 0x214   : > { %v1356_v43 = vmul.f32 %v8713_v2, %v1355_v44  ;;  %v14632_v44 = vld [vmem:[#allocation20_spill] sm:$0xff] }
 0x216   : > { %933 = vadd.xlane.f32.xlu2 %v932_v62  ;;  %v1360_v14 = vsel %vm1359_vm12, %v8713_v2, %v1356_v43 }
 0x217   : > { %v1607_v38 = vmul.f32 %v1360_v14, %v9892_v15  ;;  %v1608_v13 = vmul.f32 %v1360_v14, %v14632_v44  ;;  %v14636_v44 = vld [vmem:[#allocation22_spill] sm:$0xff] }
 0x231   : > { %v1140_v61 = vpop.xlane.xlu1 %1139 }
 0x232   : > { %v1216_v52 = vmul.f32 %v1140_v61, %v9722_v53 }
 0x234   : > { %v1248_v0 = vadd.f32 1e-12, %v1216_v52 }
 0x236   : > { %8714 = vrsqrt.f32 %v1248_v0  ;;  %vm1367_vm14 = vweird.f32 %v1248_v0 }
 0x239   : > { %v1143_v45 = vpop.xlane.xlu1 %1142 }
 0x23a   : > { %v1217_v49 = vmul.f32 %v1143_v45, %v9722_v53 }
 0x23c   : > { %v8715_v39 = vpop.eup %8714  ;;  %v10458_v62 = vadd.f32 1e-12, %v1217_v49 }
 0x23d   : > { %v1362_v28 = vmul.f32 %v8715_v39, %v1248_v0  ;;  %vm1368_vm13 = vweird.f32 %v8715_v39  ;;  %v14635_v0 = vld [vmem:[#allocation21_spill] sm:$0xff] }
 0x23e   : > { %8716 = vrsqrt.f32 %v10458_v62  ;;  %vm1369_vm15 = vmor %vm1367_vm14, %vm1368_vm13  ;;  %vm1377_vm1 = vweird.f32 %v10458_v62 }
 0x23f   : > { %v1363_v3 = vmul.f32 %v8715_v39, %v1362_v28 }
 0x241   : > { %v1364_v61 = vmul.f32 0.5, %v1363_v3  ;;  %v907_v52 = vpop.xlane.xlu1 %906  ;;  %v1146_v60 = vpop.xlane.xlu2 %1145 }
 0x242   : > { %v970_v48 = vmul.f32 %v9722_v53, %v907_v52  ;;  %v1218_v45 = vmul.f32 %v1146_v60, %v9722_v53  ;;  %v10477_v3 = vpop.f32.mrf.mxu3  ;;  %v1677_v60 = vmul.f32 %v10160_v30, %v1608_v13 }
 0x243   : > { %v1365_v49 = vsub.f32 1.5, %v1364_v61  ;;  %v1676_v61 = vmul.f32 %v10158_v32, %v1607_v38 }
 0x244   : > { %v10467_v24 = vpop.eup %8716  ;;  %v10470_v28 = vsub.f32 %v10147_v4, %v970_v48  ;;  %v10473_v2 = vsub.f32 %v10150_v58, %v970_v48  ;;  %v10475_v43 = vadd.f32 1e-12, %v1218_v45 }
 0x245   : > { %v1366_v52 = vmul.f32 %v8715_v39, %v1365_v49  ;;  %v1372_v15 = vmul.f32 %v10467_v24, %v10458_v62  ;;  %v1745_v13 = vadd.f32 %v10188_v11, %v1676_v61  ;;  %vm1378_vm0 = vweird.f32 %v10467_v24 }
 0x246   : > { %14633 = vst [vmem:[#allocation20_spill] sm:$0xff] %v10470_v28  ;;  %8718 = vrsqrt.f32 %v10475_v43  ;;  %v1085_v14 = vmul.f32 %v10470_v28, %v10470_v28  ;;  %v1086_v4 = vmul.f32 %v10473_v2, %v10473_v2  ;;  %vm1379_vm2 = vmor %vm1377_vm1, %vm1378_vm0  ;;  %vm1387_vm4 = vweird.f32 %v10475_v43 }
 0x247   : > { %14634 = vst [vmem:[#allocation38_spill] sm:$0xff] %v10473_v2  ;;  %v1370_v58 = vsel %vm1369_vm15, %v8715_v39, %v1366_v52  ;;  %v1373_v48 = vmul.f32 %v10467_v24, %v1372_v15  ;;  %v1746_v15 = vadd.f32 %v10195_v51, %v1677_v60 }
 0x248   : > { %v1609_v45 = vmul.f32 %v1370_v58, %v14635_v0  ;;  %v1610_v49 = vmul.f32 %v1370_v58, %v14636_v44  ;;  %v1168_v21 = vadd.f32 %v1086_v4, %v1085_v14 }
 0x249   : > { %v1374_v22 = vmul.f32 0.5, %v1373_v48  ;;  %v910_v10 = vpop.xlane.xlu1 %909  ;;  %v1149_v28 = vpop.xlane.xlu2 %1148 }
 0x24a   : > { %v971_v54 = vmul.f32 %v9722_v53, %v910_v10  ;;  %1169 = vadd.xlane.f32.xlu0 %v1168_v21  ;;  %v1678_v2 = vmul.f32 %v10158_v32, %v1609_v45  ;;  %v1679_v39 = vmul.f32 %v10160_v30, %v1610_v49  ;;  %v1219_v38 = vmul.f32 %v1149_v28, %v9722_v53  ;;  %v10508_v28 = vpop.f32.mrf.mxu2  ;;  %v10510_v48 = vpop.f32.mrf.mxu3  ;;  %v1890_v45 = vld [vmem:[#allocation2 + $0x8] sm:$0xff] }
 0x24b   : > { %v1375_v52 = vsub.f32 1.5, %v1374_v22 }
 0x24c   : > { %v8719_v0 = vpop.eup %8718  ;;  %v10498_v14 = vsub.f32 %v10164_v29, %v971_v54  ;;  %v10501_v4 = vsub.f32 %v10175_v5, %v971_v54  ;;  %v1747_v21 = vadd.f32 %v10188_v11, %v1678_v2  ;;  %v1748_v10 = vadd.f32 %v10195_v51, %v1679_v39 }
 0x24d   : > { %v1382_v58 = vmul.f32 %v8719_v0, %v10475_v43  ;;  %v10506_v22 = vadd.f32 1e-12, %v1219_v38  ;;  %v1376_v54 = vmul.f32 %v10467_v24, %v1375_v52  ;;  %v10530_v38 = vadd.f32 %v10453_v42, %v9630_v46 }
 0x24e   : > { %14637 = vst [vmem:[#allocation21_spill] sm:$0xff] %v10498_v14  ;;  %v10512_v61 = vpack.c.bf16 %v1747_v21, %v1745_v13  ;;  %v10514_v60 = vpack.c.bf16 %v1748_v10, %v1746_v15  ;;  %v1087_v29 = vmul.f32 %v10498_v14, %v10498_v14  ;;  %v1088_v5 = vmul.f32 %v10501_v4, %v10501_v4 }
 0x24f   : > { %14638 = vst [vmem:[#allocation22_spill] sm:$0xff] %v10501_v4  ;;  %v1383_v2 = vmul.f32 %v8719_v0, %v1382_v58  ;;  %8720 = vrsqrt.f32 %v10506_v22  ;;  %v10534_v13 = vadd.f32 %v10456_v36, %v9632_v47  ;;  %v1380_v58 = vsel %vm1379_vm2, %v10467_v24, %v1376_v54  ;;  %v14645_v24 = vld [vmem:[#allocation23_spill] sm:$0xff] }
 0x250   : > { %14639 = vst [vmem:[#allocation39_spill] sm:$0xff] %v10512_v61  ;;  %2365 = vmatmul.bf16.gmra.mxu2 %v10512_v61  ;;  %2454 = vmatmul.bf16.gmra.mxu3 %v10514_v60  ;;  %v1171_v44 = vadd.f32 %v1088_v5, %v1087_v29  ;;  %vm1388_vm3 = vweird.f32 %v8719_v0  ;;  %v1611_v54 = vmul.f32 %v1380_v58, %v14645_v24  ;;  %vm1397_vm7 = vweird.f32 %v10506_v22 }
 0x251   : > { %14640 = vst [vmem:[#allocation40_spill] sm:$0xff] %v10514_v60  ;;  %v1384_v49 = vmul.f32 0.5, %v1383_v2  ;;  %2543 = vmatmul.bf16.gmra.mxu0 %v10512_v61  ;;  %2632 = vmatmul.bf16.gmra.mxu1 %v10514_v60  ;;  %v2524_v39 = vpop.f32.mrf.mxu0  ;;  %v1152_v52 = vpop.xlane.xlu0 %1151  ;;  %vm1389_vm5 = vmor %vm1387_vm4, %vm1388_vm3 }
 0x252   : > { %14641 = vst [vmem:[#allocation41_spill] sm:$0xff] %v10530_v38  ;;  %v2525_v15 = vadd.f32 %v2524_v39, %v1890_v45  ;;  %v2613_v21 = vpop.f32.mrf.mxu1  ;;  %v913_v10 = vpop.xlane.xlu2 %912  ;;  %v1220_v62 = vmul.f32 %v1152_v52, %v9722_v53  ;;  %1172 = vadd.xlane.f32.xlu0 %v1171_v44  ;;  %v1889_v44 = vld [vmem:[#allocation2] sm:$0xff]  ;;  %v935_v39 = vadd.f32 %v10534_v13, %v10530_v38  ;;  %v14646_v52 = vld [vmem:[#allocation24_spill] sm:$0xff] }
 0x253   : > { %14642 = vst [vmem:[#allocation42_spill] sm:$0xff] %v10534_v13  ;;  %v1385_v29 = vsub.f32 1.5, %v1384_v49  ;;  %v972_v5 = vmul.f32 %v9722_v53, %v913_v10  ;;  %v1612_v43 = vmul.f32 %v1380_v58, %v14646_v52  ;;  %v14647_v10 = vld [vmem:[#allocation25_spill] sm:$0xff]  ;;  %v10566_v13 = vadd.f32 %v10465_v23, %v9630_v46 }
 0x254   : > { %v2614_v2 = vadd.f32 %v2613_v21, %v2525_v15  ;;  %v10539_v60 = vadd.f32 1e-12, %v1220_v62 }
 0x255   : > { %v10541_v42 = vpop.eup %8720  ;;  %v1386_v61 = vmul.f32 %v8719_v0, %v1385_v29  ;;  %v10545_v36 = vsub.f32 %v10238_v33, %v972_v5  ;;  %v10548_v45 = vsub.f32 %v10242_v7, %v972_v5  ;;  %v14648_v29 = vld [vmem:[#allocation26_spill] sm:$0xff] }
 0x256   : > { %v1392_v49 = vmul.f32 %v10541_v42, %v10506_v22  ;;  %8722 = vrsqrt.f32 %v10539_v60  ;;  %vm1398_vm6 = vweird.f32 %v10541_v42  ;;  %vm1407_vm10 = vweird.f32 %v10539_v60 }
 0x257   : > { %14643 = vst [vmem:[#allocation43_spill] sm:$0xff] %v10545_v36  ;;  %v1390_v15 = vsel %vm1389_vm5, %v8719_v0, %v1386_v61  ;;  %v2346_v33 = vpop.f32.mrf.mxu2  ;;  %v1089_v7 = vmul.f32 %v10545_v36, %v10545_v36  ;;  %v1090_v21 = vmul.f32 %v10548_v45, %v10548_v45  ;;  %v10570_v0 = vadd.f32 %v10477_v3, %v9632_v47  ;;  %v1894_v36 = vld [vmem:[#allocation2 + $0x28] sm:$0xff]  ;;  %vm1399_vm8 = vmor %vm1397_vm7, %vm1398_vm6 }
 0x258   : > { %14644 = vst [vmem:[#allocation44_spill] sm:$0xff] %v10548_v45  ;;  %v1613_v62 = vmul.f32 %v1390_v15, %v14647_v10  ;;  %v1614_v5 = vmul.f32 %v1390_v15, %v14648_v29  ;;  %v1393_v24 = vmul.f32 %v10541_v42, %v1392_v49  ;;  %v2347_v4 = vadd.f32 %v2346_v33, %v1889_v44  ;;  %v2435_v14 = vpop.f32.mrf.mxu3 }
 0x259   : > { %14649 = vst [vmem:[#allocation23_spill] sm:$0xff] %v10570_v0  ;;  %v2526_v61 = vpop.f32.mrf.mxu0  ;;  %v1174_v58 = vadd.f32 %v1090_v21, %v1089_v7  ;;  %v1680_v49 = vmul.f32 %v10158_v32, %v1611_v54  ;;  %v1155_v15 = vpop.xlane.xlu0 %1154  ;;  %v1893_v21 = vld [vmem:[#allocation2 + $0x20] sm:$0xff] }
 0x25a   : > { %v1394_v52 = vmul.f32 0.5, %v1393_v24  ;;  %v2436_v45 = vadd.f32 %v2435_v14, %v2347_v4  ;;  %v2615_v10 = vpop.f32.mrf.mxu1  ;;  %v916_v38 = vpop.xlane.xlu2 %915  ;;  %936 = vadd.xlane.f32.xlu0 %v935_v39  ;;  %v1682_v23 = vmul.f32 %v10158_v32, %v1613_v62  ;;  %v1683_v33 = vmul.f32 %v10160_v30, %v1614_v5 }
 0x25b   : > { %v973_v44 = vmul.f32 %v9722_v53, %v916_v38  ;;  %1175 = vadd.xlane.f32.xlu1 %v1174_v58  ;;  %v1221_v14 = vmul.f32 %v1155_v15, %v9722_v53  ;;  %v1681_v4 = vmul.f32 %v10160_v30, %v1612_v43  ;;  %v2527_v39 = vadd.f32 %v2526_v61, %v1894_v36  ;;  %v1898_v58 = vld [vmem:[#allocation2 + $0x48] sm:$0xff] }
 0x25c   : > { %v10576_v3 = vpop.eup %8722  ;;  %v1395_v29 = vsub.f32 1.5, %v1394_v52  ;;  %v10578_v7 = vpack.c.bf16 %v2614_v2, %v2436_v45  ;;  %v938_v62 = vadd.f32 %v10570_v0, %v10566_v13  ;;  %v1749_v43 = vadd.f32 %v10188_v11, %v1680_v49 }
 0x25d   : > { %v1402_v54 = vmul.f32 %v10576_v3, %v10539_v60  ;;  %v10585_v38 = vsub.f32 %v10264_v1, %v973_v44  ;;  %v10591_v2 = vsub.f32 %v10275_v55, %v973_v44  ;;  %v10593_v45 = vadd.f32 1e-12, %v1221_v14 }
 0x25e   : > { %v1396_v5 = vmul.f32 %v10541_v42, %v1395_v29  ;;  %v1751_v1 = vadd.f32 %v10188_v11, %v1682_v23  ;;  %v1752_v61 = vadd.f32 %v10195_v51, %v1683_v33  ;;  %v1750_v44 = vadd.f32 %v10195_v51, %v1681_v4 }
 0x25f   : > { %v1403_v36 = vmul.f32 %v10576_v3, %v1402_v54  ;;  %v2348_v24 = vpop.f32.mrf.mxu2  ;;  %8724 = vrsqrt.f32 %v10593_v45  ;;  %v2616_v49 = vadd.f32 %v2615_v10, %v2527_v39  ;;  %v1091_v23 = vmul.f32 %v10585_v38, %v10585_v38 }
 0x260   : > { %v2349_v55 = vadd.f32 %v2348_v24, %v1893_v21  ;;  %v2437_v52 = vpop.f32.mrf.mxu3  ;;  %v10603_v14 = vpack.c.bf16 %v1751_v1, %v1749_v43  ;;  %v10609_v22 = vpack.c.bf16 %v1752_v61, %v1750_v44  ;;  %v1400_v10 = vsel %vm1399_vm8, %v10541_v42, %v1396_v5 }
 0x261   : > { %v1404_v15 = vmul.f32 0.5, %v1403_v36  ;;  %v1158_v29 = vpop.xlane.xlu1 %1157  ;;  %v2529_v54 = vpop.f32.mrf.mxu0  ;;  %vm1408_vm9 = vweird.f32 %v10576_v3  ;;  %v1092_v43 = vmul.f32 %v10591_v2, %v10591_v2  ;;  %v10627_v1 = vadd.f32 %v10508_v28, %v9630_v46 }
 0x262   : > { %14650 = vst [vmem:[#allocation24_spill] sm:$0xff] %v10603_v14  ;;  %v2438_v33 = vadd.f32 %v2437_v52, %v2349_v55  ;;  %v1222_v21 = vmul.f32 %v1158_v29, %v9722_v53  ;;  %v2530_v24 = vadd.f32 %v2529_v54, %v1898_v58  ;;  %v2618_v0 = vpop.f32.mrf.mxu1  ;;  %939 = vadd.xlane.f32.xlu0 %v938_v62  ;;  %v919_v39 = vpop.xlane.xlu0 %918  ;;  %v1897_v55 = vld [vmem:[#allocation2 + $0x40] sm:$0xff]  ;;  %vm1409_vm11 = vmor %vm1407_vm10, %vm1408_vm9  ;;  %vm1417_vm13 = vweird.f32 %v10593_v45 }
 0x263   : > { %14651 = vst [vmem:[#allocation25_spill] sm:$0xff] %v10609_v22  ;;  %v1405_v4 = vsub.f32 1.5, %v1404_v15  ;;  %2370 = vmatmul.bf16.gmra.mxu2 %v10603_v14  ;;  %2548 = vmatmul.bf16.gmra.mxu0 %v10603_v14  ;;  %v974_v5 = vmul.f32 %v9722_v53, %v919_v39  ;;  %v1177_v58 = vadd.f32 %v1092_v43, %v1091_v23 }
 0x264   : > { %v10618_v36 = vpack.c.bf16 %v2616_v49, %v2438_v33  ;;  %2459 = vmatmul.bf16.gmra.mxu3 %v10609_v22  ;;  %2637 = vmatmul.bf16.gmra.mxu1 %v10609_v22  ;;  %v10622_v62 = vadd.f32 1e-12, %v1222_v21  ;;  %v2619_v42 = vadd.f32 %v2618_v0, %v2530_v24  ;;  %v10635_v44 = vadd.f32 %v10510_v48, %v9632_v47 }
 0x265   : > { %v1406_v61 = vmul.f32 %v10576_v3, %v1405_v4  ;;  %v10631_v52 = vpop.eup %8724  ;;  %v4397_v0 = vunpack.c.h.b16 %v10578_v7  ;;  %v1615_v28 = vmul.f32 %v1400_v10, %v10207_v41  ;;  %v10647_v49 = vsub.f32 %v10311_v63, %v974_v5  ;;  %1178 = vadd.xlane.f32.xlu1 %v1177_v58 }
 0x266   : > { %v4398_v46 = vunpack.c.h.b16 %v10618_v36  ;;  %8726 = vrsqrt.f32 %v10622_v62  ;;  %v1412_v15 = vmul.f32 %v10631_v52, %v10593_v45  ;;  %v10652_v54 = vsub.f32 %v10314_v9, %v974_v5 }
 0x267   : > { %v1410_v60 = vsel %vm1409_vm11, %v10576_v3, %v1406_v61  ;;  %v2351_v47 = vpop.f32.mrf.mxu2  ;;  %v1616_v41 = vmul.f32 %v1400_v10, %v10210_v19  ;;  %v1093_v63 = vmul.f32 %v10647_v49, %v10647_v49  ;;  %v1684_v5 = vmul.f32 %v10158_v32, %v1615_v28 }
 0x268   : > { %v1617_v48 = vmul.f32 %v1410_v60, %v10245_v37  ;;  %v1618_v29 = vmul.f32 %v1410_v60, %v10248_v57  ;;  %v2352_v23 = vadd.f32 %v2351_v47, %v1897_v55  ;;  %v2440_v33 = vpop.f32.mrf.mxu3  ;;  %v1413_v3 = vmul.f32 %v10631_v52, %v1412_v15 }
 0x269   : > { %v10656_v21 = vpop.f32.mrf.mxu0  ;;  %v10660_v24 = vpack.c.b16 %v4398_v46, %v4397_v0  ;;  %v1161_v37 = vpop.xlane.xlu1 %1160  ;;  %v941_v57 = vadd.f32 %v10635_v44, %v10627_v1  ;;  %v1094_v9 = vmul.f32 %v10652_v54, %v10652_v54  ;;  %vm1418_vm12 = vweird.f32 %v10631_v52 }
 0x26a   : > { %v2441_v4 = vadd.f32 %v2440_v33, %v2352_v23  ;;  %v10662_v39 = vpop.f32.mrf.mxu1  ;;  %v1414_v19 = vmul.f32 0.5, %v1413_v3  ;;  %v1223_v10 = vmul.f32 %v1161_v37, %v9722_v53  ;;  %v922_v43 = vpop.xlane.xlu0 %921  ;;  %v1686_v61 = vmul.f32 %v10158_v32, %v1617_v48  ;;  %vm1419_vm14 = vmor %vm1417_vm13, %vm1418_vm12 }
 0x26b   : > { %14652 = vst [vmem:[#allocation26_spill] sm:$0xff] %v10660_v24  ;;  %v975_v0 = vmul.f32 %v9722_v53, %v922_v43  ;;  %v1180_v46 = vadd.f32 %v1094_v9, %v1093_v63  ;;  %v1687_v60 = vmul.f32 %v10160_v30, %v1618_v29  ;;  %v1685_v33 = vmul.f32 %v10160_v30, %v1616_v41  ;;  %v1926_v24 = vld [vmem:[#allocation2 + $0x128] sm:$0xff] }
 0x26c   : > { %v8727_v58 = vpop.eup %8726  ;;  %v10671_v55 = vpack.c.bf16 %v2619_v42, %v2441_v4  ;;  %v1415_v15 = vsub.f32 1.5, %v1414_v19  ;;  %v10676_v23 = vadd.f32 1e-12, %v1223_v10  ;;  %v1753_v41 = vadd.f32 %v10188_v11, %v1684_v5 }
 0x26d   : > { %v1422_v47 = vmul.f32 %v8727_v58, %v10622_v62  ;;  %v10681_v28 = vsub.f32 %v10344_v8, %v975_v0  ;;  %v10684_v42 = vsub.f32 %v10347_v17, %v975_v0  ;;  %1181 = vadd.xlane.f32.xlu2 %v1180_v46  ;;  %942 = vadd.xlane.f32.xlu1 %v941_v57  ;;  %v1906_v17 = vld [vmem:[#allocation2 + $0x88] sm:$0xff]  ;;  %vm1428_vm15 = vweird.f32 %v8727_v58 }
 0x26e   : > { %v1416_v48 = vmul.f32 %v10631_v52, %v1415_v15  ;;  %8728 = vrsqrt.f32 %v10676_v23  ;;  %v1755_v8 = vadd.f32 %v10188_v11, %v1686_v61  ;;  %v1756_v4 = vadd.f32 %v10195_v51, %v1687_v60 }
 0x26f   : > { %v1423_v29 = vmul.f32 %v8727_v58, %v1422_v47  ;;  %v2353_v3 = vpop.f32.mrf.mxu2  ;;  %v1095_v37 = vmul.f32 %v10681_v28, %v10681_v28  ;;  %v1754_v9 = vadd.f32 %v10195_v51, %v1685_v33  ;;  %v1096_v10 = vmul.f32 %v10684_v42, %v10684_v42 }
 0x270   : > { %v10689_v63 = vpop.f32.mrf.mxu3  ;;  %v1420_v43 = vsel %vm1419_vm14, %v10631_v52, %v1416_v48  ;;  %v10702_v5 = vpack.c.bf16 %v1755_v8, %v1753_v41  ;;  %vm1427_vm0 = vweird.f32 %v10622_v62  ;;  %v1901_v48 = vld [vmem:[#allocation2 + $0x60] sm:$0xff]  ;;  %vm1437_vm2 = vweird.f32 %v10676_v23 }
 0x271   : > { %v1424_v45 = vmul.f32 0.5, %v1423_v29  ;;  %v2534_v57 = vpop.f32.mrf.mxu0  ;;  %v1164_v19 = vpop.xlane.xlu2 %1163  ;;  %v10704_v60 = vpack.c.bf16 %v1756_v4, %v1754_v9  ;;  %v1183_v29 = vadd.f32 %v1096_v10, %v1095_v37  ;;  %v1905_v4 = vld [vmem:[#allocation2 + $0x80] sm:$0xff]  ;;  %vm1429_vm1 = vmor %vm1427_vm0, %vm1428_vm15 }
 0x272   : > { %14653 = vst [vmem:[#allocation45_spill] sm:$0xff] %v10702_v5  ;;  %v925_v61 = vpop.xlane.xlu1 %924  ;;  %v2623_v0 = vpop.f32.mrf.mxu1  ;;  %v2535_v47 = vadd.f32 %v2534_v57, %v1906_v17  ;;  %v1224_v33 = vmul.f32 %v1164_v19, %v9722_v53  ;;  %v1619_v17 = vmul.f32 %v1420_v43, %v10279_v25  ;;  %v2354_v25 = vadd.f32 %v2353_v3, %v1901_v48 }
 0x273   : > { %v1425_v46 = vsub.f32 1.5, %v1424_v45  ;;  %14654 = vst [vmem:[#allocation46_spill] sm:$0xff] %v10704_v60  ;;  %v976_v15 = vmul.f32 %v9722_v53, %v925_v61  ;;  %2375 = vmatmul.bf16.gmra.mxu2 %v10702_v5  ;;  %2553 = vmatmul.bf16.gmra.mxu0 %v10702_v5  ;;  %v1902_v45 = vld [vmem:[#allocation2 + $0x68] sm:$0xff] }
 0x274   : > { %v10710_v22 = vpop.eup %8728  ;;  %2464 = vmatmul.bf16.gmra.mxu3 %v10704_v60  ;;  %2642 = vmatmul.bf16.gmra.mxu1 %v10704_v60  ;;  %v2624_v9 = vadd.f32 %v2623_v0, %v2535_v47  ;;  %v10725_v57 = vadd.f32 1e-12, %v1224_v33  ;;  %v2532_v33 = vadd.f32 %v10656_v21, %v1902_v45  ;;  %v1910_v60 = vld [vmem:[#allocation2 + $0xa8] sm:$0xff]  ;;  %v1688_v3 = vmul.f32 %v10158_v32, %v1619_v17 }
 0x275   : > { %v1426_v52 = vmul.f32 %v8727_v58, %v1425_v46  ;;  %v10716_v41 = vsub.f32 %v10377_v18, %v976_v15  ;;  %v10719_v8 = vsub.f32 %v10380_v20, %v976_v15  ;;  %v1432_v37 = vmul.f32 %v10710_v22, %v10676_v23  ;;  %1184 = vadd.xlane.f32.xlu2 %v1183_v29 }
 0x276   : > { %v1620_v15 = vmul.f32 %v1420_v43, %v10282_v16  ;;  %8730 = vrsqrt.f32 %v10725_v57  ;;  %v2443_v5 = vadd.f32 %v10689_v63, %v2354_v25  ;;  %vm1438_vm3 = vweird.f32 %v10710_v22  ;;  %v1914_v25 = vld [vmem:[#allocation2 + $0xc8] sm:$0xff] }
 0x277   : > { %v1430_v62 = vsel %vm1429_vm1, %v8727_v58, %v1426_v52  ;;  %v2356_v19 = vpop.f32.mrf.mxu2  ;;  %v1097_v18 = vmul.f32 %v10716_v41, %v10716_v41  ;;  %v1433_v10 = vmul.f32 %v10710_v22, %v1432_v37  ;;  %v1098_v0 = vmul.f32 %v10719_v8, %v10719_v8  ;;  %vm1439_vm4 = vmor %vm1437_vm2, %vm1438_vm3 }
 0x278   : > { %v1621_v20 = vmul.f32 %v1430_v62, %v10317_v40  ;;  %v2357_v61 = vadd.f32 %v2356_v19, %v1905_v4  ;;  %v2445_v46 = vpop.f32.mrf.mxu3  ;;  %v1622_v48 = vmul.f32 %v1430_v62, %v10320_v35  ;;  %v1689_v35 = vmul.f32 %v10160_v30, %v1620_v15 }
 0x279   : > { %v2536_v58 = vpop.f32.mrf.mxu0  ;;  %v10733_v29 = vpop.xlane.xlu2 %1166  ;;  %v1434_v47 = vmul.f32 0.5, %v1433_v10  ;;  %v1186_v43 = vadd.f32 %v1098_v0, %v1097_v18  ;;  %v1909_v10 = vld [vmem:[#allocation2 + $0xa0] sm:$0xff]  ;;  %v2621_v62 = vadd.f32 %v10662_v39, %v2532_v33  ;;  %v1757_v18 = vadd.f32 %v10188_v11, %v1688_v3 }
 0x27a   : > { %v2446_v52 = vadd.f32 %v2445_v46, %v2357_v61  ;;  %v928_v40 = vpop.xlane.xlu1 %927  ;;  %v2625_v37 = vpop.f32.mrf.mxu1  ;;  %v1690_v4 = vmul.f32 %v10158_v32, %v1621_v20  ;;  %v2537_v45 = vadd.f32 %v2536_v58, %v1910_v60  ;;  %vm1447_vm6 = vweird.f32 %v10725_v57 }
 0x27b   : > { %v977_v16 = vmul.f32 %v9722_v53, %v928_v40  ;;  %v1435_v19 = vsub.f32 1.5, %v1434_v47  ;;  %1187 = vadd.xlane.f32.xlu0 %v1186_v43  ;;  %v10759_v61 = vpack.c.bf16 %v2621_v62, %v2443_v5  ;;  %v1758_v47 = vadd.f32 %v10195_v51, %v1689_v35 }
 0x27c   : > { %v10743_v14 = vpack.c.bf16 %v2624_v9, %v2446_v52  ;;  %v1759_v17 = vadd.f32 %v10188_v11, %v1690_v4  ;;  %v8731_v20 = vpop.eup %8730  ;;  %v1691_v9 = vmul.f32 %v10160_v30, %v1622_v48  ;;  %v2626_v0 = vadd.f32 %v2625_v37, %v2537_v45 }
 0x27d   : > { %v10746_v21 = vsub.f32 %v10405_v50, %v977_v16  ;;  %v1436_v63 = vmul.f32 %v10710_v22, %v1435_v19  ;;  %v10756_v50 = vsub.f32 %v10408_v56, %v977_v16  ;;  %v1442_v46 = vmul.f32 %v8731_v20, %v10725_v57 }
 0x27e   : > { %v10762_v58 = vpack.c.bf16 %v1759_v17, %v1757_v18  ;;  %v1760_v33 = vadd.f32 %v10195_v51, %v1691_v9  ;;  %v4399_v35 = vunpack.c.h.b16 %v10671_v55  ;;  %vm1448_vm5 = vweird.f32 %v8731_v20 }
 0x27f   : > { %v2358_v60 = vpop.f32.mrf.mxu2  ;;  %v1099_v40 = vmul.f32 %v10746_v21, %v10746_v21  ;;  %v1443_v5 = vmul.f32 %v8731_v20, %v1442_v46  ;;  %v1440_v37 = vsel %vm1439_vm4, %v10710_v22, %v1436_v63  ;;  %v1100_v19 = vmul.f32 %v10756_v50, %v10756_v50  ;;  %v1913_v63 = vld [vmem:[#allocation2 + $0xc0] sm:$0xff]  ;;  %vm1449_vm7 = vmor %vm1447_vm6, %vm1448_vm5 }
 0x280   : > { %v2359_v15 = vadd.f32 %v2358_v60, %v1909_v10  ;;  %v2447_v39 = vpop.f32.mrf.mxu3  ;;  %14655 = vst [vmem:[#allocation47_spill] sm:$0xff] %v10762_v58  ;;  %v10774_v43 = vpack.c.bf16 %v1760_v33, %v1758_v47  ;;  %v4400_v22 = vunpack.c.h.b16 %v10759_v61  ;;  %v1624_v46 = vmul.f32 %v1440_v37, %v10354_v26 }
 0x281   : > { %v2539_v52 = vpop.f32.mrf.mxu0  ;;  %v931_v56 = vpop.xlane.xlu2 %930  ;;  %v1444_v45 = vmul.f32 0.5, %v1443_v5  ;;  %v1189_v18 = vadd.f32 %v1100_v19, %v1099_v40 }
 0x282   : > { %v2448_v3 = vadd.f32 %v2447_v39, %v2359_v15  ;;  %v2540_v48 = vadd.f32 %v2539_v52, %v1914_v25  ;;  %v978_v16 = vmul.f32 %v9722_v53, %v931_v56  ;;  %14656 = vst [vmem:[#allocation48_spill] sm:$0xff] %v10774_v43  ;;  %v2628_v4 = vpop.f32.mrf.mxu1  ;;  %v1623_v25 = vmul.f32 %v1440_v37, %v10351_v59  ;;  %v1918_v37 = vld [vmem:[#allocation2 + $0xe8] sm:$0xff] }
 0x283   : > { %2380 = vmatmul.bf16.gmra.mxu2 %v10762_v58  ;;  %2558 = vmatmul.bf16.gmra.mxu0 %v10762_v58  ;;  %v1445_v60 = vsub.f32 1.5, %v1444_v45  ;;  %v4401_v15 = vunpack.c.h.b16 %v10743_v14  ;;  %v10803_v59 = vpack.c.b16 %v4400_v22, %v4399_v35  ;;  %v1693_v19 = vmul.f32 %v10160_v30, %v1624_v46 }
 0x284   : > { %v10778_v10 = vpack.c.bf16 %v2626_v0, %v2448_v3  ;;  %v2629_v23 = vadd.f32 %v2628_v4, %v2540_v48  ;;  %v10783_v17 = vsub.f32 %v10435_v31, %v978_v16  ;;  %2469 = vmatmul.bf16.gmra.mxu3 %v10774_v43  ;;  %2647 = vmatmul.bf16.gmra.mxu1 %v10774_v43 }
 0x285   : > { %v10790_v62 = vsub.f32 %v10438_v34, %v978_v16  ;;  %1190 = vadd.xlane.f32.xlu1 %v1189_v18  ;;  %v1446_v0 = vmul.f32 %v8731_v20, %v1445_v60  ;;  %14658 = vst [vmem:[#allocation50_spill] sm:$0xff] %v10803_v59  ;;  %v1692_v57 = vmul.f32 %v10158_v32, %v1623_v25  ;;  %v1917_v18 = vld [vmem:[#allocation2 + $0xe0] sm:$0xff] }
 0x286   : > { %v4402_v9 = vunpack.c.h.b16 %v10778_v10  ;;  %v1101_v31 = vmul.f32 %v10783_v17, %v10783_v17  ;;  %v1762_v25 = vadd.f32 %v10195_v51, %v1693_v19 }
 0x287   : > { %v2361_v39 = vpop.f32.mrf.mxu2  ;;  %v1102_v34 = vmul.f32 %v10790_v62, %v10790_v62  ;;  %v1450_v26 = vsel %vm1449_vm7, %v8731_v20, %v1446_v0  ;;  %v14659_v20 = vld [vmem:[#allocation37_spill] sm:$0xff] }
 0x288   : > { %v2362_v47 = vadd.f32 %v2361_v39, %v1913_v63  ;;  %v2450_v33 = vpop.f32.mrf.mxu3  ;;  %v10801_v40 = vpack.c.b16 %v4402_v9, %v4401_v15  ;;  %v1625_v48 = vmul.f32 %v1450_v26, %v10385_v27  ;;  %v1626_v16 = vmul.f32 %v1450_v26, %v10388_v12 }
 0x289   : > { %v934_v52 = vpop.xlane.xlu2 %933  ;;  %v1192_v56 = vadd.f32 %v1102_v34, %v1101_v31  ;;  %v2541_v4 = vpop.f32.mrf.mxu0  ;;  %v1761_v31 = vadd.f32 %v10188_v11, %v1692_v57 }
 0x28a   : > { %14657 = vst [vmem:[#allocation49_spill] sm:$0xff] %v10801_v40  ;;  %v2451_v5 = vadd.f32 %v2450_v33, %v2362_v47  ;;  %v979_v3 = vmul.f32 %v9722_v53, %v934_v52  ;;  %v1694_v27 = vmul.f32 %v10158_v32, %v1625_v48  ;;  %v1695_v12 = vmul.f32 %v10160_v30, %v1626_v16  ;;  %v2630_v34 = vpop.f32.mrf.mxu1 }
 0x28b   : > { %1193 = vadd.xlane.f32.xlu2 %v1192_v56  ;;  %v2542_v63 = vadd.f32 %v2541_v4, %v1918_v37  ;;  %v1225_v16 = vmul.f32 %v10733_v29, %v9722_v53 }
 0x28c   : > { %v10810_v45 = vpack.c.bf16 %v2629_v23, %v2451_v5  ;;  %v10813_v35 = vsub.f32 %v10443_v6, %v979_v3  ;;  %v10816_v22 = vsub.f32 %v14659_v20, %v979_v3  ;;  %v1763_v6 = vadd.f32 %v10188_v11, %v1694_v27 }
 0x28d   : > { %v1764_v46 = vadd.f32 %v10195_v51, %v1695_v12  ;;  %v2631_v52 = vadd.f32 %v2630_v34, %v2542_v63  ;;  %v1257_v37 = vadd.f32 1e-12, %v1225_v16 }
 0x28e   : > { %v1103_v60 = vmul.f32 %v10813_v35, %v10813_v35  ;;  %v1104_v9 = vmul.f32 %v10816_v22, %v10816_v22  ;;  %v10828_v47 = vpack.c.bf16 %v1763_v6, %v1761_v31  ;;  %v4403_v5 = vunpack.c.h.b16 %v10810_v45 }
 0x28f   : > { %v2363_v23 = vpop.f32.mrf.mxu2  ;;  %v10830_v33 = vpack.c.bf16 %v1764_v46, %v1762_v25  ;;  %8732 = vrsqrt.f32 %v1257_v37  ;;  %vm1457_vm9 = vweird.f32 %v1257_v37 }
 0x290   : > { %v2364_v15 = vadd.f32 %v2363_v23, %v1917_v18  ;;  %v1195_v39 = vadd.f32 %v1104_v9, %v1103_v60  ;;  %v2452_v0 = vpop.f32.mrf.mxu3  ;;  %14660 = vst [vmem:[#allocation37_spill] sm:$0xff] %v10828_v47 }
 0x291   : > { %14661 = vst [vmem:[#allocation51_spill] sm:$0xff] %v10830_v33 }
 0x292   : > { %v2453_v56 = vadd.f32 %v2452_v0, %v2364_v15  ;;  %1196 = vadd.xlane.f32.xlu0 %v1195_v39  ;;  %v1922_v15 = vld [vmem:[#allocation2 + $0x108] sm:$0xff]  ;;  %v14663_v0 = vld [vmem:[#allocation33_spill] sm:$0xff] }
 0x293   : > { %2385 = vmatmul.bf16.gmra.mxu2 %v10828_v47  ;;  %2563 = vmatmul.bf16.gmra.mxu0 %v10828_v47 }
 0x294   : > { %v10832_v26 = vpack.c.bf16 %v2631_v52, %v2453_v56  ;;  %2474 = vmatmul.bf16.gmra.mxu3 %v10830_v33  ;;  %2652 = vmatmul.bf16.gmra.mxu1 %v10830_v33  ;;  %v14664_v56 = vld [vmem:[#allocation34_spill] sm:$0xff] }
 0x295   : > { %v8733_v4 = vpop.eup %8732 }
 0x296   : > { %v4404_v3 = vunpack.c.h.b16 %v10832_v26  ;;  %v1452_v57 = vmul.f32 %v8733_v4, %v1257_v37  ;;  %vm1458_vm8 = vweird.f32 %v8733_v4 }
 0x297   : > { %vm1459_vm10 = vmor %vm1457_vm9, %vm1458_vm8 }
 0x298   : > { %v10840_v48 = vpack.c.b16 %v4404_v3, %v4403_v5  ;;  %v1453_v19 = vmul.f32 %v8733_v4, %v1452_v57 }
 0x29a   : > { %14662 = vst [vmem:[#allocation52_spill] sm:$0xff] %v10840_v48  ;;  %v1454_v27 = vmul.f32 0.5, %v1453_v19 }
 0x29c   : > { %v1455_v63 = vsub.f32 1.5, %v1454_v27 }
 0x29e   : > { %v1456_v23 = vmul.f32 %v8733_v4, %v1455_v63 }
 0x2a0   : > { %v1460_v25 = vsel %vm1459_vm10, %v8733_v4, %v1456_v23  ;;  %v14665_v4 = vld [vmem:[#allocation41_spill] sm:$0xff] }
 0x2a1   : > { %v1627_v52 = vmul.f32 %v1460_v25, %v14663_v0  ;;  %v1628_v5 = vmul.f32 %v1460_v25, %v14664_v56 }
 0x2a3   : > { %v1696_v0 = vmul.f32 %v10158_v32, %v1627_v52 }
 0x2bd   : > { %v1170_v20 = vpop.xlane.xlu0 %1169 }
 0x2be   : > { %v1226_v18 = vmul.f32 %v1170_v20, %v9722_v53 }
 0x2c0   : > { %v1258_v12 = vadd.f32 1e-12, %v1226_v18 }
 0x2c2   : > { %8734 = vrsqrt.f32 %v1258_v12  ;;  %vm1467_vm12 = vweird.f32 %v1258_v12 }
 0x2c5   : > { %v1173_v60 = vpop.xlane.xlu0 %1172 }
 0x2c6   : > { %v1227_v9 = vmul.f32 %v1173_v60, %v9722_v53  ;;  %v14666_v60 = vld [vmem:[#allocation42_spill] sm:$0xff] }
 0x2c8   : > { %v8735_v31 = vpop.eup %8734  ;;  %v10846_v6 = vadd.f32 1e-12, %v1227_v9 }
 0x2c9   : > { %v1462_v29 = vmul.f32 %v8735_v31, %v1258_v12  ;;  %vm1468_vm11 = vweird.f32 %v8735_v31 }
 0x2ca   : > { %8736 = vrsqrt.f32 %v10846_v6  ;;  %vm1469_vm13 = vmor %vm1467_vm12, %vm1468_vm11  ;;  %vm1477_vm15 = vweird.f32 %v10846_v6 }
 0x2cb   : > { %v1463_v46 = vmul.f32 %v8735_v31, %v1462_v29 }
 0x2cd   : > { %v1464_v39 = vmul.f32 0.5, %v1463_v46  ;;  %v937_v34 = vpop.xlane.xlu0 %936  ;;  %v1921_v46 = vld [vmem:[#allocation2 + $0x100] sm:$0xff] }
 0x2ce   : > { %v1176_v3 = vpop.xlane.xlu1 %1175  ;;  %v2544_v16 = vpop.f32.mrf.mxu0  ;;  %v980_v57 = vmul.f32 %v9722_v53, %v937_v34 }
 0x2cf   : > { %v1465_v19 = vsub.f32 1.5, %v1464_v39  ;;  %v1228_v37 = vmul.f32 %v1176_v3, %v9722_v53  ;;  %v2545_v20 = vadd.f32 %v2544_v16, %v1922_v15  ;;  %v2633_v18 = vpop.f32.mrf.mxu1 }
 0x2d0   : > { %v8737_v27 = vpop.eup %8736  ;;  %v10854_v63 = vsub.f32 %v14665_v4, %v980_v57  ;;  %v10857_v9 = vsub.f32 %v14666_v60, %v980_v57  ;;  %v1697_v57 = vmul.f32 %v10160_v30, %v1628_v5  ;;  %v14669_v4 = vld [vmem:[#allocation38_spill] sm:$0xff] }
 0x2d1   : > { %v1466_v23 = vmul.f32 %v8735_v31, %v1465_v19  ;;  %v1472_v29 = vmul.f32 %v8737_v27, %v10846_v6  ;;  %v10860_v25 = vadd.f32 1e-12, %v1228_v37  ;;  %v2634_v39 = vadd.f32 %v2633_v18, %v2545_v20  ;;  %v14668_v19 = vld [vmem:[#allocation20_spill] sm:$0xff] }
 0x2d2   : > { %14667 = vst [vmem:[#allocation33_spill] sm:$0xff] %v10857_v9  ;;  %v1105_v15 = vmul.f32 %v10854_v63, %v10854_v63  ;;  %v1106_v34 = vmul.f32 %v10857_v9, %v10857_v9  ;;  %vm1478_vm14 = vweird.f32 %v8737_v27 }
 0x2d3   : > { %v1470_v56 = vsel %vm1469_vm13, %v8735_v31, %v1466_v23  ;;  %v1473_v3 = vmul.f32 %v8737_v27, %v1472_v29  ;;  %8738 = vrsqrt.f32 %v10860_v25  ;;  %v2366_v12 = vpop.f32.mrf.mxu2  ;;  %v2455_v16 = vpop.f32.mrf.mxu3  ;;  %vm1479_vm0 = vmor %vm1477_vm15, %vm1478_vm14  ;;  %vm1487_vm2 = vweird.f32 %v10860_v25 }
 0x2d4   : > { %v1629_v37 = vmul.f32 %v1470_v56, %v14668_v19  ;;  %v1630_v20 = vmul.f32 %v1470_v56, %v14669_v4  ;;  %v2367_v18 = vadd.f32 %v2366_v12, %v1921_v46  ;;  %v1198_v60 = vadd.f32 %v1106_v34, %v1105_v15  ;;  %v14671_v12 = vld [vmem:[#allocation23_spill] sm:$0xff] }
 0x2d5   : > { %v1474_v33 = vmul.f32 0.5, %v1473_v3  ;;  %v940_v47 = vpop.xlane.xlu0 %939  ;;  %v1765_v19 = vadd.f32 %v10188_v11, %v1696_v0  ;;  %v1766_v15 = vadd.f32 %v10195_v51, %v1697_v57 }
 0x2d6   : > { %v2456_v43 = vadd.f32 %v2455_v16, %v2367_v18  ;;  %v2546_v58 = vpop.f32.mrf.mxu0  ;;  %v981_v52 = vmul.f32 %v9722_v53, %v940_v47  ;;  %1199 = vadd.xlane.f32.xlu1 %v1198_v60  ;;  %v1698_v31 = vmul.f32 %v10158_v32, %v1629_v37  ;;  %v1699_v23 = vmul.f32 %v10160_v30, %v1630_v20 }
 0x2d7   : > { %v1475_v29 = vsub.f32 1.5, %v1474_v33  ;;  %v2635_v5 = vpop.f32.mrf.mxu1  ;;  %v1925_v33 = vld [vmem:[#allocation2 + $0x120] sm:$0xff]  ;;  %v2547_v0 = vadd.f32 %v2546_v58, %v1926_v24 }
 0x2d8   : > { %v10875_v56 = vpack.c.bf16 %v2634_v39, %v2456_v43  ;;  %v1767_v46 = vadd.f32 %v10188_v11, %v1698_v31  ;;  %v10880_v47 = vsub.f32 %v10566_v13, %v981_v52  ;;  %v10883_v16 = vsub.f32 %v14671_v12, %v981_v52  ;;  %v1179_v39 = vpop.xlane.xlu1 %1178 }
 0x2d9   : > { %v8739_v34 = vpop.eup %8738  ;;  %v1476_v3 = vmul.f32 %v8737_v27, %v1475_v29  ;;  %v1768_v37 = vadd.f32 %v10195_v51, %v1699_v23  ;;  %v1229_v57 = vmul.f32 %v1179_v39, %v9722_v53  ;;  %v2636_v29 = vadd.f32 %v2635_v5, %v2547_v0  ;;  %v7908_v0 = vld [vmem:[%s14463_s6 + $0xe8] sm:$0xf] }
 0x2da   : > { %14670 = vst [vmem:[#allocation34_spill] sm:$0xff] %v10880_v47  ;;  %v1482_v43 = vmul.f32 %v8739_v34, %v10860_v25  ;;  %v10889_v20 = vpack.c.bf16 %v1767_v46, %v1765_v19  ;;  %v1107_v24 = vmul.f32 %v10880_v47, %v10880_v47  ;;  %v1108_v58 = vmul.f32 %v10883_v16, %v10883_v16  ;;  %v1933_v47 = vld [vmem:[#allocation2 + $0x160] sm:$0xff] }
 0x2db   : > { %14672 = vst [vmem:[#allocation41_spill] sm:$0xff] %v10883_v16  ;;  %v2368_v4 = vpop.f32.mrf.mxu2  ;;  %v10891_v13 = vpack.c.bf16 %v1768_v37, %v1766_v15  ;;  %v1480_v18 = vsel %vm1479_vm0, %v8737_v27, %v1476_v3  ;;  %v10893_v31 = vadd.f32 1e-12, %v1229_v57  ;;  %v2457_v23 = vpop.f32.mrf.mxu3  ;;  %v14675_v27 = vld [vmem:[#allocation21_spill] sm:$0xff]  ;;  %v14676_v3 = vld [vmem:[#allocation22_spill] sm:$0xff]  ;;  %vm1488_vm1 = vweird.f32 %v8739_v34 }
 0x2dc   : > { %14673 = vst [vmem:[#allocation42_spill] sm:$0xff] %v10889_v20  ;;  %v1483_v60 = vmul.f32 %v8739_v34, %v1482_v43  ;;  %v2369_v52 = vadd.f32 %v2368_v4, %v1925_v33  ;;  %2390 = vmatmul.bf16.gmra.mxu2 %v10889_v20  ;;  %2568 = vmatmul.bf16.gmra.mxu0 %v10889_v20  ;;  %v8470_v57 = vld [vmem:[%s14463_s6 + $0xf4] sm:$0xf0]  ;;  %vm1489_vm3 = vmor %vm1487_vm2, %vm1488_vm1 }
 0x2dd   : > { %14674 = vst [vmem:[#allocation20_spill] sm:$0xff] %v10891_v13  ;;  %2479 = vmatmul.bf16.gmra.mxu3 %v10891_v13  ;;  %2657 = vmatmul.bf16.gmra.mxu1 %v10891_v13  ;;  %v1631_v46 = vmul.f32 %v1480_v18, %v14675_v27  ;;  %8740 = vrsqrt.f32 %v10893_v31  ;;  %v1201_v15 = vadd.f32 %v1108_v58, %v1107_v24  ;;  %v14679_v13 = vld [vmem:[#allocation44_spill] sm:$0xff]  ;;  %vm1497_vm5 = vweird.f32 %v10893_v31 }
 0x2de   : > { %v1484_v6 = vmul.f32 0.5, %v1483_v60  ;;  %v2458_v19 = vadd.f32 %v2457_v23, %v2369_v52  ;;  %v1632_v12 = vmul.f32 %v1480_v18, %v14676_v3  ;;  %v4405_v18 = vunpack.c.h.b16 %v10875_v56  ;;  %v14678_v3 = vld [vmem:[#allocation43_spill] sm:$0xff] }
 0x2df   : > { %1202 = vadd.xlane.f32.xlu2 %v1201_v15  ;;  %v1700_v24 = vmul.f32 %v10158_v32, %v1631_v46  ;;  %v7909_v58 = vor.u32 %v8470_v57, %v7908_v0  ;;  %v8466_v46 = vld [vmem:[%s14463_s6 + $0xd4] sm:$0xf0] }
 0x2e0   : > { %v1485_v33 = vsub.f32 1.5, %v1484_v6  ;;  %v10906_v37 = vpack.c.bf16 %v2636_v29, %v2458_v19  ;;  %v2549_v43 = vpop.f32.mrf.mxu0  ;;  %v1182_v39 = vpop.xlane.xlu2 %1181  ;;  %v1701_v19 = vmul.f32 %v10160_v30, %v1632_v12 }
 0x2e1   : > { %v10909_v5 = vpop.f32.mrf.mxu1  ;;  %v943_v52 = vpop.xlane.xlu1 %942  ;;  %v1230_v25 = vmul.f32 %v1182_v39, %v9722_v53  ;;  %2693 = vmatpush.bf16.msra.mxu2 %v7909_v58  ;;  %v1930_v58 = vld [vmem:[#allocation2 + $0x148] sm:$0xff]  ;;  %v1769_v40 = vadd.f32 %v10188_v11, %v1700_v24 }
 0x2e2   : > { %v1486_v4 = vmul.f32 %v8739_v34, %v1485_v33  ;;  %v4406_v60 = vunpack.c.h.b16 %v10906_v37  ;;  %v982_v23 = vmul.f32 %v9722_v53, %v943_v52 }
 0x2e3   : > { %v10922_v29 = vadd.f32 1e-12, %v1230_v25  ;;  %v10927_v15 = vpop.eup %8740 }
 0x2e4   : > { %v1490_v6 = vsel %vm1489_vm3, %v8739_v34, %v1486_v4  ;;  %v10925_v27 = vpack.c.b16 %v4406_v60, %v4405_v18  ;;  %v10932_v39 = vsub.f32 %v10627_v1, %v982_v23  ;;  %v10935_v52 = vsub.f32 %v10635_v44, %v982_v23  ;;  %v7892_v34 = vld [vmem:[%s14463_s6 + $0xc8] sm:$0xf]  ;;  %v1929_v1 = vld [vmem:[#allocation2 + $0x140] sm:$0xff] }
 0x2e5   : > { %v1633_v33 = vmul.f32 %v1490_v6, %v14678_v3  ;;  %v1634_v20 = vmul.f32 %v1490_v6, %v14679_v13  ;;  %v1492_v12 = vmul.f32 %v10927_v15, %v10893_v31  ;;  %8742 = vrsqrt.f32 %v10922_v29  ;;  %v8454_v31 = vld [vmem:[%s14463_s6 + $0x74] sm:$0xf0] }
 0x2e6   : > { %14677 = vst [vmem:[#allocation38_spill] sm:$0xff] %v10925_v27  ;;  %v2371_v13 = vpop.f32.mrf.mxu2  ;;  %v1109_v44 = vmul.f32 %v10932_v39, %v10932_v39  ;;  %v1110_v57 = vmul.f32 %v10935_v52, %v10935_v52  ;;  %v7893_v23 = vor.u32 %v8466_v46, %v7892_v34  ;;  %v1770_v27 = vadd.f32 %v10195_v51, %v1701_v19  ;;  %v1934_v46 = vld [vmem:[#allocation2 + $0x168] sm:$0xff] }
 0x2e7   : > { %14680 = vst [vmem:[#allocation23_spill] sm:$0xff] %v10932_v39  ;;  %v2460_v0 = vpop.f32.mrf.mxu3  ;;  %v1702_v4 = vmul.f32 %v10158_v32, %v1633_v33  ;;  %v1493_v18 = vmul.f32 %v10927_v15, %v1492_v12  ;;  %v1703_v25 = vmul.f32 %v10160_v30, %v1634_v20  ;;  %v7876_v33 = vld [vmem:[%s14463_s6 + $0xa8] sm:$0xf]  ;;  %v8462_v12 = vld [vmem:[%s14463_s6 + $0xb4] sm:$0xf0]  ;;  %v2372_v34 = vadd.f32 %v2371_v13, %v1929_v1 }
 0x2e8   : > { %14681 = vst [vmem:[#allocation21_spill] sm:$0xff] %v10935_v52  ;;  %v2551_v60 = vpop.f32.mrf.mxu0  ;;  %v1185_v3 = vpop.xlane.xlu2 %1184  ;;  %v1204_v59 = vadd.f32 %v1110_v57, %v1109_v44  ;;  %2694 = vmatpush.bf16.msra.mxu2 %v7893_v23  ;;  %v7877_v19 = vor.u32 %v8462_v12, %v7876_v33  ;;  %v2550_v39 = vadd.f32 %v2549_v43, %v1930_v58  ;;  %vm1498_vm4 = vweird.f32 %v10927_v15 }
 0x2e9   : > { %v2640_v6 = vpop.f32.mrf.mxu1  ;;  %v1771_v48 = vadd.f32 %v10188_v11, %v1702_v4  ;;  %v1494_v20 = vmul.f32 0.5, %v1493_v18  ;;  %v1231_v52 = vmul.f32 %v1185_v3, %v9722_v53  ;;  %v1772_v44 = vadd.f32 %v10195_v51, %v1703_v25  ;;  %vm1499_vm6 = vmor %vm1497_vm5, %vm1498_vm4 }
 0x2ea   : > { %1205 = vadd.xlane.f32.xlu0 %v1204_v59  ;;  %v2552_v1 = vadd.f32 %v2551_v60, %v1934_v46  ;;  %v8458_v59 = vld [vmem:[%s14463_s6 + $0x94] sm:$0xf0]  ;;  %v2461_v43 = vadd.f32 %v2460_v0, %v2372_v34  ;;  %v2639_v0 = vadd.f32 %v10909_v5, %v2550_v39  ;;  %vm1507_vm8 = vweird.f32 %v10922_v29 }
 0x2eb   : > { %v10964_v24 = vpack.c.bf16 %v1771_v48, %v1769_v40  ;;  %v8743_v57 = vpop.eup %8742  ;;  %v1495_v4 = vsub.f32 1.5, %v1494_v20  ;;  %v10966_v16 = vadd.f32 1e-12, %v1231_v52  ;;  %v10968_v9 = vpack.c.bf16 %v1772_v44, %v1770_v27  ;;  %v7860_v40 = vld [vmem:[%s14463_s6 + $0x88] sm:$0xf] }
 0x2ec   : > { %v1502_v13 = vmul.f32 %v8743_v57, %v10922_v29  ;;  %2695 = vmatpush.bf16.msra.mxu2 %v7877_v19  ;;  %v7861_v25 = vor.u32 %v8458_v59, %v7860_v40  ;;  %v2641_v33 = vadd.f32 %v2640_v6, %v2552_v1  ;;  %v10995_v34 = vpack.c.bf16 %v2639_v0, %v2461_v43  ;;  %v7828_v59 = vld [vmem:[%s14463_s6 + $0x48] sm:$0xf] }
 0x2ed   : > { %2395 = vmatmul.bf16.gmra.mxu2 %v10964_v24  ;;  %v1496_v48 = vmul.f32 %v10927_v15, %v1495_v4  ;;  %8744 = vrsqrt.f32 %v10966_v16  ;;  %2484 = vmatmul.bf16.gmra.mxu3 %v10968_v9  ;;  %vm1508_vm7 = vweird.f32 %v8743_v57  ;;  %vm1517_vm11 = vweird.f32 %v10966_v16 }
 0x2ee   : > { %v2373_v27 = vpop.f32.mrf.mxu2  ;;  %2573 = vmatmul.bf16.gmra.mxu0 %v10964_v24  ;;  %v1503_v52 = vmul.f32 %v8743_v57, %v1502_v13  ;;  %2662 = vmatmul.bf16.gmra.mxu1 %v10968_v9  ;;  %v1188_v23 = vpop.xlane.xlu0 %1187  ;;  %vm1509_vm9 = vmor %vm1507_vm8, %vm1508_vm7  ;;  %v4407_v43 = vunpack.c.h.b16 %v10995_v34 }
 0x2ef   : > { %v2374_v18 = vadd.f32 %v2373_v27, %v1933_v47  ;;  %v2462_v60 = vpop.f32.mrf.mxu3  ;;  %v1500_v58 = vsel %vm1499_vm6, %v10927_v15, %v1496_v48  ;;  %v7844_v47 = vld [vmem:[%s14463_s6 + $0x68] sm:$0xf]  ;;  %v1232_v5 = vmul.f32 %v1188_v23, %v9722_v53  ;;  %v8450_v48 = vld [vmem:[%s14463_s6 + $0x54] sm:$0xf0] }
 0x2f0   : > { %v1504_v3 = vmul.f32 0.5, %v1503_v52  ;;  %v2554_v20 = vpop.f32.mrf.mxu0  ;;  %2696 = vmatpush.bf16.msra.mxu2 %v7861_v25  ;;  %v7845_v6 = vor.u32 %v8454_v31, %v7844_v47  ;;  %v1635_v19 = vmul.f32 %v1500_v58, %v10585_v38  ;;  %v1636_v4 = vmul.f32 %v1500_v58, %v10591_v2  ;;  %v1938_v27 = vld [vmem:[#allocation2 + $0x188] sm:$0xff]  ;;  %v1937_v52 = vld [vmem:[#allocation2 + $0x180] sm:$0xff]  ;;  %v8446_v47 = vld [vmem:[%s14463_s6 + $0x34] sm:$0xf0] }
 0x2f1   : > { %v2463_v12 = vadd.f32 %v2462_v60, %v2374_v18  ;;  %v10997_v46 = vpop.f32.mrf.mxu1  ;;  %v11006_v13 = vadd.f32 1e-12, %v1232_v5  ;;  %v7829_v60 = vor.u32 %v8450_v48, %v7828_v59 }
 0x2f2   : > { %v1505_v39 = vsub.f32 1.5, %v1504_v3  ;;  %v1704_v58 = vmul.f32 %v10158_v32, %v1635_v19  ;;  %v1705_v3 = vmul.f32 %v10160_v30, %v1636_v4 }
 0x2f3   : > { %v11000_v15 = vpack.c.bf16 %v2641_v33, %v2463_v12  ;;  %v11002_v44 = vpop.eup %8744  ;;  %8746 = vrsqrt.f32 %v11006_v13  ;;  %v7812_v12 = vld [vmem:[%s14463_s6 + $0x28] sm:$0xf]  ;;  %vm1527_vm14 = vweird.f32 %v11006_v13 }
 0x2f4   : > { %v1506_v1 = vmul.f32 %v8743_v57, %v1505_v39  ;;  %v1512_v40 = vmul.f32 %v11002_v44, %v10966_v16  ;;  %2697 = vmatpush.bf16.msra.mxu2 %v7845_v6  ;;  %vm1518_vm10 = vweird.f32 %v11002_v44  ;;  %v7813_v59 = vor.u32 %v8446_v47, %v7812_v12  ;;  %v8502_v16 = vld [vmem:[%s14463_s6 + $0x1f4] sm:$0xf0] }
 0x2f5   : > { %v4408_v38 = vunpack.c.h.b16 %v11000_v15  ;;  %vm1519_vm12 = vmor %vm1517_vm11, %vm1518_vm10  ;;  %v8442_v47 = vld [vmem:[%s14463_s6 + $0x14] sm:$0xf0] }
 0x2f6   : > { %v1510_v2 = vsel %vm1509_vm9, %v8743_v57, %v1506_v1  ;;  %v1513_v29 = vmul.f32 %v11002_v44, %v1512_v40  ;;  %v2376_v18 = vpop.f32.mrf.mxu2  ;;  %v1942_v40 = vld [vmem:[#allocation2 + $0x1a8] sm:$0xff] }
 0x2f7   : > { %v1637_v25 = vmul.f32 %v1510_v2, %v10647_v49  ;;  %v1638_v0 = vmul.f32 %v1510_v2, %v10652_v54  ;;  %v2465_v23 = vpop.f32.mrf.mxu3  ;;  %v11031_v31 = vpack.c.b16 %v4408_v38, %v4407_v43  ;;  %v2555_v49 = vadd.f32 %v2554_v20, %v1938_v27 }
 0x2f8   : > { %v1514_v33 = vmul.f32 0.5, %v1513_v29  ;;  %v2556_v57 = vpop.f32.mrf.mxu0  ;;  %v2377_v5 = vadd.f32 %v2376_v18, %v1937_v52  ;;  %v1191_v54 = vpop.xlane.xlu1 %1190  ;;  %2698 = vmatpush.bf16.msra.mxu2 %v7829_v60  ;;  %v1773_v38 = vadd.f32 %v10188_v11, %v1704_v58  ;;  %v1774_v2 = vadd.f32 %v10195_v51, %v1705_v3  ;;  %v1941_v18 = vld [vmem:[#allocation2 + $0x1a0] sm:$0xff]  ;;  %v8036_v3 = vld [vmem:[%s14463_s6 + $0x1e8] sm:$0xf] }
 0x2f9   : > { %v2645_v39 = vpop.f32.mrf.mxu1  ;;  %v1706_v6 = vmul.f32 %v10158_v32, %v1637_v25  ;;  %v1707_v19 = vmul.f32 %v10160_v30, %v1638_v0  ;;  %v1233_v1 = vmul.f32 %v1191_v54, %v9722_v53  ;;  %v8747_v48 = vpop.eup %8746  ;;  %v2557_v25 = vadd.f32 %v2556_v57, %v1942_v40  ;;  %v7796_v57 = vld [vmem:[%s14463_s6 + $0x8] sm:$0xf] }
 0x2fa   : > { %v1515_v4 = vsub.f32 1.5, %v1514_v33  ;;  %v1522_v27 = vmul.f32 %v8747_v48, %v11006_v13  ;;  %v2466_v60 = vadd.f32 %v2465_v23, %v2377_v5  ;;  %v2644_v54 = vadd.f32 %v10997_v46, %v2555_v49  ;;  %v1946_v13 = vld [vmem:[#allocation2 + $0x1c8] sm:$0xff] }
 0x2fb   : > { %v1775_v20 = vadd.f32 %v10188_v11, %v1706_v6  ;;  %v1776_v43 = vadd.f32 %v10195_v51, %v1707_v19  ;;  %v11044_v52 = vadd.f32 1e-12, %v1233_v1  ;;  %vm1528_vm13 = vweird.f32 %v8747_v48 }
 0x2fc   : > { %v1516_v29 = vmul.f32 %v11002_v44, %v1515_v4  ;;  %v1523_v12 = vmul.f32 %v8747_v48, %v1522_v27  ;;  %2699 = vmatpush.bf16.msra.mxu2 %v7813_v59  ;;  %v8037_v59 = vor.u32 %v8502_v16, %v8036_v3  ;;  %vm1529_vm15 = vmor %vm1527_vm14, %vm1528_vm13 }
 0x2fd   : > { %v11046_v0 = vpack.c.bf16 %v1775_v20, %v1773_v38  ;;  %v11048_v58 = vpack.c.bf16 %v1776_v43, %v1774_v2  ;;  %8748 = vrsqrt.f32 %v11044_v52  ;;  %v7797_v38 = vor.u32 %v8442_v47, %v7796_v57 }
 0x2fe   : > { %v1194_v33 = vpop.xlane.xlu2 %1193  ;;  %v2378_v23 = vpop.f32.mrf.mxu2  ;;  %v1520_v5 = vsel %vm1519_vm12, %v11002_v44, %v1516_v29  ;;  %v1524_v4 = vmul.f32 0.5, %v1523_v12  ;;  %v11072_v20 = vpack.c.bf16 %v2644_v54, %v2466_v60  ;;  %v2646_v44 = vadd.f32 %v2645_v39, %v2557_v25  ;;  %2782 = vmatpush.bf16.msra.mxu3 %v8037_v59  ;;  %v1945_v60 = vld [vmem:[#allocation2 + $0x1c0] sm:$0xff] }
 0x2ff   : > { %14682 = vst [vmem:[#allocation22_spill] sm:$0xff] %v11046_v0  ;;  %v2379_v6 = vadd.f32 %v2378_v23, %v1941_v18  ;;  %v2467_v19 = vpop.f32.mrf.mxu3  ;;  %2400 = vmatmul.bf16.gmra.mxu2 %v11046_v0  ;;  %2489 = vmatmul.bf16.gmra.mxu3 %v11048_v58  ;;  %v1234_v40 = vmul.f32 %v1194_v33, %v9722_v53  ;;  %vm1537_vm1 = vweird.f32 %v11044_v52 }
 0x300   : > { %14683 = vst [vmem:[#allocation43_spill] sm:$0xff] %v11048_v58  ;;  %2578 = vmatmul.bf16.gmra.mxu0 %v11046_v0  ;;  %2667 = vmatmul.bf16.gmra.mxu1 %v11048_v58  ;;  %v2559_v1 = vpop.f32.mrf.mxu0  ;;  %v1639_v2 = vmul.f32 %v1520_v5, %v10681_v28  ;;  %v1525_v43 = vsub.f32 1.5, %v1524_v4  ;;  %v1640_v27 = vmul.f32 %v1520_v5, %v10684_v42  ;;  %v4409_v16 = vunpack.c.h.b16 %v11072_v20  ;;  %v1954_v58 = vld [vmem:[#allocation2 + $0x208] sm:$0xff] }
 0x301   : > { %v2468_v46 = vadd.f32 %v2467_v19, %v2379_v6  ;;  %v2648_v49 = vpop.f32.mrf.mxu1  ;;  %v11075_v29 = vadd.f32 1e-12, %v1234_v40  ;;  %2700 = vmatpush.bf16.msra.mxu2 %v7797_v38  ;;  %v2002_v0 = vld [vmem:[#allocation2 + $0x388] sm:$0xff] }
 0x302   : > { %v1526_v3 = vmul.f32 %v8747_v48, %v1525_v43  ;;  %v1708_v42 = vmul.f32 %v10158_v32, %v1639_v2  ;;  %v1709_v54 = vmul.f32 %v10160_v30, %v1640_v27  ;;  %v8020_v2 = vld [vmem:[%s14463_s6 + $0x1c8] sm:$0xf]  ;;  %v8498_v43 = vld [vmem:[%s14463_s6 + $0x1d4] sm:$0xf0] }
 0x303   : > { %v11078_v18 = vpack.c.bf16 %v2646_v44, %v2468_v46  ;;  %v8749_v33 = vpop.eup %8748  ;;  %8750 = vrsqrt.f32 %v11075_v29  ;;  %v2560_v44 = vadd.f32 %v2559_v1, %v1946_v13  ;;  %v1950_v46 = vld [vmem:[#allocation2 + $0x1e8] sm:$0xff]  ;;  %vm1547_vm4 = vweird.f32 %v11075_v29 }
 0x304   : > { %v1532_v39 = vmul.f32 %v8749_v33, %v11044_v52  ;;  %v1530_v25 = vsel %vm1529_vm15, %v8747_v48, %v1526_v3  ;;  %vm1538_vm0 = vweird.f32 %v8749_v33 }
 0x305   : > { %v4410_v28 = vunpack.c.h.b16 %v11078_v18  ;;  %v1641_v23 = vmul.f32 %v1530_v25, %v10716_v41  ;;  %v1642_v57 = vmul.f32 %v1530_v25, %v10719_v8  ;;  %v1777_v41 = vadd.f32 %v10188_v11, %v1708_v42  ;;  %vm1539_vm2 = vmor %vm1537_vm1, %vm1538_vm0 }
 0x306   : > { %v2381_v12 = vpop.f32.mrf.mxu2  ;;  %v1533_v47 = vmul.f32 %v8749_v33, %v1532_v39  ;;  %v1778_v39 = vadd.f32 %v10195_v51, %v1709_v54 }
 0x307   : > { %v2470_v5 = vpop.f32.mrf.mxu3  ;;  %v2382_v6 = vadd.f32 %v2381_v12, %v1945_v60  ;;  %v11089_v4 = vpack.c.b16 %v4410_v28, %v4409_v16  ;;  %v1710_v59 = vmul.f32 %v10158_v32, %v1641_v23  ;;  %v1711_v8 = vmul.f32 %v10160_v30, %v1642_v57  ;;  %v1949_v28 = vld [vmem:[#allocation2 + $0x1e0] sm:$0xff] }
 0x308   : > { %v2561_v19 = vpop.f32.mrf.mxu0  ;;  %v1534_v40 = vmul.f32 0.5, %v1533_v47  ;;  %v8021_v16 = vor.u32 %v8498_v43, %v8020_v2  ;;  %v2649_v57 = vadd.f32 %v2648_v49, %v2560_v44 }
 0x309   : > { %v2650_v48 = vpop.f32.mrf.mxu1  ;;  %v8751_v38 = vpop.eup %8750  ;;  %v2471_v1 = vadd.f32 %v2470_v5, %v2382_v6  ;;  %v1779_v60 = vadd.f32 %v10188_v11, %v1710_v59  ;;  %v1780_v25 = vadd.f32 %v10195_v51, %v1711_v8  ;;  %v2562_v23 = vadd.f32 %v2561_v19, %v1950_v46 }
 0x30a   : > { %v1535_v27 = vsub.f32 1.5, %v1534_v40  ;;  %v1542_v3 = vmul.f32 %v8751_v38, %v11075_v29  ;;  %2783 = vmatpush.bf16.msra.mxu3 %v8021_v16  ;;  %vm1548_vm3 = vweird.f32 %v8751_v38 }
 0x30b   : > { %v11105_v13 = vpack.c.bf16 %v1779_v60, %v1777_v41  ;;  %v11107_v40 = vpack.c.bf16 %v1780_v25, %v1778_v39  ;;  %v3063_v8 = vpack.c.bf16 %v2649_v57, %v2471_v1  ;;  %v2651_v49 = vadd.f32 %v2650_v48, %v2562_v23  ;;  %vm1549_vm5 = vmor %vm1547_vm4, %vm1548_vm3  ;;  %v1953_v1 = vld [vmem:[#allocation2 + $0x200] sm:$0xff] }
 0x30c   : > { %v1536_v12 = vmul.f32 %v8749_v33, %v1535_v27  ;;  %v1543_v42 = vmul.f32 %v8751_v38, %v1542_v3 }
 0x30d   : > { %14684 = vst [vmem:[#allocation44_spill] sm:$0xff] %v11105_v13  ;;  %v3287_v3 = vunpack.c.l.b16 %v3063_v8 }
 0x30e   : > { %v2383_v47 = vpop.f32.mrf.mxu2  ;;  %14685 = vst [vmem:[#allocation53_spill] sm:$0xff] %v11107_v40  ;;  %v1540_v5 = vsel %vm1539_vm2, %v8749_v33, %v1536_v12  ;;  %v1544_v54 = vmul.f32 0.5, %v1543_v42 }
 0x30f   : > { %v2384_v6 = vadd.f32 %v2383_v47, %v1949_v28  ;;  %v2472_v59 = vpop.f32.mrf.mxu3  ;;  %2405 = vmatmul.bf16.gmra.mxu2 %v11105_v13  ;;  %2494 = vmatmul.bf16.gmra.mxu3 %v11107_v40  ;;  %v1643_v33 = vmul.f32 %v1540_v5, %v10746_v21  ;;  %v1644_v46 = vmul.f32 %v1540_v5, %v10756_v50  ;;  %v4411_v28 = vunpack.c.h.b16 %v3063_v8 }
 0x310   : > { %v2564_v52 = vpop.f32.mrf.mxu0  ;;  %v1545_v19 = vsub.f32 1.5, %v1544_v54  ;;  %2583 = vmatmul.bf16.gmra.mxu0 %v11105_v13  ;;  %2672 = vmatmul.bf16.gmra.mxu1 %v11107_v40  ;;  %v3286_v8 = vunpack.c.l.b16 %v11078_v18  ;;  %v3283_v18 = vunpack.c.l.b16 %v10995_v34  ;;  %v3278_v34 = vunpack.c.l.b16 %v10778_v10  ;;  %v2006_v40 = vld [vmem:[#allocation2 + $0x3a8] sm:$0xff] }
 0x311   : > { %v2473_v44 = vadd.f32 %v2472_v59, %v2384_v6  ;;  %v2565_v41 = vadd.f32 %v2564_v52, %v1954_v58  ;;  %v2653_v27 = vpop.f32.mrf.mxu1  ;;  %v1712_v50 = vmul.f32 %v10158_v32, %v1643_v33  ;;  %v1713_v58 = vmul.f32 %v10160_v30, %v1644_v46 }
 0x312   : > { %v1546_v2 = vmul.f32 %v8751_v38, %v1545_v19  ;;  %v3284_v33 = vunpack.c.l.b16 %v11000_v15  ;;  %v3277_v15 = vunpack.c.l.b16 %v10743_v14  ;;  %v3275_v10 = vunpack.c.l.b16 %v10671_v55 }
 0x313   : > { %v3064_v43 = vpack.c.bf16 %v2651_v49, %v2473_v44  ;;  %v2654_v39 = vadd.f32 %v2653_v27, %v2565_v41  ;;  %v1782_v54 = vadd.f32 %v10195_v51, %v1713_v58  ;;  %v3285_v49 = vunpack.c.l.b16 %v11072_v20 }
 0x314   : > { %v1550_v48 = vsel %vm1549_vm5, %v8751_v38, %v1546_v2  ;;  %v3310_v46 = vpack.c.b16 %v3284_v33, %v3283_v18  ;;  %v3282_v41 = vunpack.c.l.b16 %v10906_v37  ;;  %v3281_v20 = vunpack.c.l.b16 %v10875_v56  ;;  %v1197_v2 = vpop.xlane.xlu0 %1196  ;;  %v8004_v56 = vld [vmem:[%s14463_s6 + $0x1a8] sm:$0xf]  ;;  %v8494_v37 = vld [vmem:[%s14463_s6 + $0x1b4] sm:$0xf0]  ;;  %v8038_v33 = vld [vmem:[%s14463_s6 + $0x1f8] sm:$0xf0] }
 0x315   : > { %v3288_v60 = vunpack.c.l.b16 %v3064_v43  ;;  %v4412_v25 = vunpack.c.h.b16 %v3064_v43  ;;  %v1645_v16 = vmul.f32 %v1550_v48, %v10783_v17  ;;  %v1646_v21 = vmul.f32 %v1550_v48, %v10790_v62  ;;  %v8464_v18 = vld [vmem:[%s14463_s6 + $0xcc] sm:$0xf] }
 0x316   : > { %v2386_v12 = vpop.f32.mrf.mxu2  ;;  %v1781_v17 = vadd.f32 %v10188_v11, %v1712_v50  ;;  %v3311_v44 = vpack.c.b16 %v3286_v8, %v3285_v49  ;;  %v3309_v43 = vpack.c.b16 %v3282_v41, %v3281_v20  ;;  %v1235_v27 = vmul.f32 %v1197_v2, %v9722_v53 }
 0x317   : > { %v2387_v29 = vadd.f32 %v2386_v12, %v1953_v1  ;;  %v3312_v42 = vpack.c.b16 %v3288_v60, %v3287_v3  ;;  %v11120_v23 = vpack.c.b16 %v4412_v25, %v4411_v28  ;;  %v2475_v57 = vpop.f32.mrf.mxu3  ;;  %v1714_v47 = vmul.f32 %v10158_v32, %v1645_v16 }
 0x318   : > { %v1715_v38 = vmul.f32 %v10160_v30, %v1646_v21  ;;  %v3280_v3 = vunpack.c.l.b16 %v10832_v26  ;;  %v1267_v1 = vadd.f32 1e-12, %v1235_v27  ;;  %v3307_v26 = vpack.c.b16 %v3278_v34, %v3277_v15  ;;  %v8496_v27 = vld [vmem:[%s14463_s6 + $0x1cc] sm:$0xf]  ;;  %v7988_v34 = vld [vmem:[%s14463_s6 + $0x188] sm:$0xf] }
 0x319   : > { %v2476_v5 = vadd.f32 %v2475_v57, %v2387_v29  ;;  %3337 = vmatpush.bf16.xpose.msrb.mxu2 %v3312_v42  ;;  %v1783_v62 = vadd.f32 %v10188_v11, %v1714_v47  ;;  %v8005_v60 = vor.u32 %v8494_v37, %v8004_v56  ;;  %v3276_v25 = vunpack.c.l.b16 %v10759_v61  ;;  %v11162_v61 = vpop.f32.mrf.mxu1  ;;  %v8490_v15 = vld [vmem:[%s14463_s6 + $0x194] sm:$0xf0] }
 0x31a   : > { %v1784_v6 = vadd.f32 %v10195_v51, %v1715_v38  ;;  %8752 = vrsqrt.f32 %v1267_v1  ;;  %v3274_v29 = vunpack.c.l.b16 %v10618_v36  ;;  %v3273_v42 = vunpack.c.l.b16 %v10578_v7  ;;  %v11160_v38 = vpop.f32.mrf.mxu0  ;;  %14690 = vst [vmem:[#allocation58_spill] sm:$0xff] %v11162_v61  ;;  %v8468_v36 = vld [vmem:[%s14463_s6 + $0xec] sm:$0xf]  ;;  %v7910_v7 = vld [vmem:[%s14463_s6 + $0xf8] sm:$0xf0] }
 0x31b   : > { %v11128_v59 = vpack.c.bf16 %v2654_v39, %v2476_v5  ;;  %v11131_v52 = vpack.c.bf16 %v1783_v62, %v1781_v17  ;;  %v3279_v39 = vunpack.c.l.b16 %v10810_v45  ;;  %2784 = vmatpush.bf16.msra.mxu3 %v8005_v60  ;;  %v3306_v14 = vpack.c.b16 %v3276_v25, %v3275_v10  ;;  %14689 = vst [vmem:[#allocation57_spill] sm:$0xff] %v11160_v38  ;;  %v1892_v61 = vld [vmem:[#allocation2 + $0x18] sm:$0xff] }
 0x31c   : > { %v11133_v19 = vpack.c.bf16 %v1784_v6, %v1782_v54  ;;  %v3305_v47 = vpack.c.b16 %v3274_v29, %v3273_v42  ;;  %vm1557_vm7 = vweird.f32 %v1267_v1  ;;  %v8500_v6 = vld [vmem:[%s14463_s6 + $0x1ec] sm:$0xf]  ;;  %v7989_v37 = vor.u32 %v8490_v15, %v7988_v34 }
 0x31d   : > { %14686 = vst [vmem:[#allocation54_spill] sm:$0xff] %v11128_v59  ;;  %v3308_v48 = vpack.c.b16 %v3280_v3, %v3279_v39  ;;  %v8041_v2 = vor.u32 %v8500_v6, %v8038_v33  ;;  %v8022_v3 = vld [vmem:[%s14463_s6 + $0x1d8] sm:$0xf0]  ;;  %v8456_v42 = vld [vmem:[%s14463_s6 + $0x8c] sm:$0xf] }
 0x31e   : > { %14687 = vst [vmem:[#allocation55_spill] sm:$0xff] %v11131_v52  ;;  %v11182_v41 = vpop.f32.mrf.mxu2  ;;  %v8025_v56 = vor.u32 %v8496_v27, %v8022_v3 }
 0x31f   : > { %14688 = vst [vmem:[#allocation56_spill] sm:$0xff] %v11133_v19  ;;  %2410 = vmatmul.bf16.gmra.mxu2 %v11131_v52  ;;  %2499 = vmatmul.bf16.gmra.mxu3 %v11133_v19  ;;  %v11184_v20 = vpop.f32.mrf.mxu3 }
 0x320   : > { %2588 = vmatmul.bf16.gmra.mxu0 %v11131_v52  ;;  %2677 = vmatmul.bf16.gmra.mxu1 %v11133_v19  ;;  %v8753_v28 = vpop.eup %8752  ;;  %14691 = vst [vmem:[#allocation59_spill] sm:$0xff] %v11182_v41 }
 0x321   : > { %3338 = vmatpush.bf16.xpose.msrb.mxu2 %v3311_v44  ;;  %v1552_v45 = vmul.f32 %v8753_v28, %v1267_v1  ;;  %vm1558_vm6 = vweird.f32 %v8753_v28  ;;  %v7913_v44 = vor.u32 %v8468_v36, %v7910_v7  ;;  %14692 = vst [vmem:[#allocation60_spill] sm:$0xff] %v11184_v20  ;;  %v1962_v1 = vld [vmem:[#allocation2 + $0x248] sm:$0xff]  ;;  %2960 = vmatpush.bf16.msra.mxu1 %v8041_v2 }
 0x322   : > { %vm1559_vm8 = vmor %vm1557_vm7, %vm1558_vm6  ;;  %2785 = vmatpush.bf16.msra.mxu3 %v7989_v37  ;;  %v7846_v37 = vld [vmem:[%s14463_s6 + $0x78] sm:$0xf0] }
 0x323   : > { %v1553_v16 = vmul.f32 %v8753_v28, %v1552_v45  ;;  %2871 = vmatpush.bf16.msra.mxu0 %v7913_v44 }
 0x325   : > { %v1554_v50 = vmul.f32 0.5, %v1553_v16  ;;  %v8492_v16 = vld [vmem:[%s14463_s6 + $0x1ac] sm:$0xf]  ;;  %2961 = vmatpush.bf16.msra.mxu1 %v8025_v56 }
 0x326   : > { %v8452_v56 = vld [vmem:[%s14463_s6 + $0x6c] sm:$0xf] }
 0x327   : > { %v1555_v57 = vsub.f32 1.5, %v1554_v50 }
 0x329   : > { %3339 = vmatpush.bf16.xpose.msrb.mxu2 %v3310_v46  ;;  %v1556_v5 = vmul.f32 %v8753_v28, %v1555_v57 }
 0x32b   : > { %v1560_v46 = vsel %vm1559_vm8, %v8753_v28, %v1556_v5  ;;  %v8460_v28 = vld [vmem:[%s14463_s6 + $0xac] sm:$0xf] }
 0x32c   : > { %v1647_v60 = vmul.f32 %v1560_v46, %v10813_v35  ;;  %v1961_v35 = vld [vmem:[#allocation2 + $0x240] sm:$0xff] }
 0x32e   : > { %v1716_v7 = vmul.f32 %v10158_v32, %v1647_v60 }
 0x331   : > { %3340 = vmatpush.bf16.xpose.msrb.mxu2 %v3309_v43  ;;  %v7894_v43 = vld [vmem:[%s14463_s6 + $0xd8] sm:$0xf0] }
 0x339   : > { %3341 = vmatpush.bf16.xpose.msrb.mxu2 %v3308_v48  ;;  %v7897_v48 = vor.u32 %v8464_v18, %v7894_v43 }
 0x33b   : > { %2872 = vmatpush.bf16.msra.mxu0 %v7897_v48 }
 0x341   : > { %3342 = vmatpush.bf16.xpose.msrb.mxu2 %v3307_v26  ;;  %v7878_v26 = vld [vmem:[%s14463_s6 + $0xb8] sm:$0xf0] }
 0x342   : > { %v7881_v29 = vor.u32 %v8460_v28, %v7878_v26 }
 0x344   : > { %2873 = vmatpush.bf16.msra.mxu0 %v7881_v29 }
 0x349   : > { %v1200_v21 = vpop.xlane.xlu1 %1199  ;;  %3343 = vmatpush.bf16.xpose.msrb.mxu2 %v3306_v14  ;;  %v8006_v14 = vld [vmem:[%s14463_s6 + $0x1b8] sm:$0xf0] }
 0x34a   : > { %v1236_v12 = vmul.f32 %v1200_v21, %v9722_v53  ;;  %v1648_v21 = vmul.f32 %v1560_v46, %v10816_v22  ;;  %v8009_v5 = vor.u32 %v8492_v16, %v8006_v14  ;;  %v7862_v22 = vld [vmem:[%s14463_s6 + $0x98] sm:$0xf0] }
 0x34c   : > { %v1268_v58 = vadd.f32 1e-12, %v1236_v12  ;;  %v1717_v2 = vmul.f32 %v10160_v30, %v1648_v21  ;;  %2962 = vmatpush.bf16.msra.mxu1 %v8009_v5 }
 0x34e   : > { %8754 = vrsqrt.f32 %v1268_v58  ;;  %vm1567_vm10 = vweird.f32 %v1268_v58  ;;  %v1786_v21 = vadd.f32 %v10195_v51, %v1717_v2 }
 0x351   : > { %3344 = vmatpush.bf16.xpose.msrb.mxu2 %v3305_v47 }
 0x352   : > { %v1203_v17 = vpop.xlane.xlu2 %1202 }
 0x353   : > { %v1237_v54 = vmul.f32 %v1203_v17, %v9722_v53  ;;  %v7990_v17 = vld [vmem:[%s14463_s6 + $0x198] sm:$0xf0] }
 0x354   : > { %v8755_v55 = vpop.eup %8754 }
 0x355   : > { %v1562_v62 = vmul.f32 %v8755_v55, %v1268_v58  ;;  %v11174_v49 = vadd.f32 1e-12, %v1237_v54  ;;  %vm1568_vm9 = vweird.f32 %v8755_v55  ;;  %v8488_v58 = vld [vmem:[%s14463_s6 + $0x18c] sm:$0xf] }
 0x356   : > { %vm1569_vm11 = vmor %vm1567_vm10, %vm1568_vm9  ;;  %v7993_v3 = vor.u32 %v8488_v58, %v7990_v17  ;;  %v8448_v17 = vld [vmem:[%s14463_s6 + $0x4c] sm:$0xf] }
 0x357   : > { %v1563_v8 = vmul.f32 %v8755_v55, %v1562_v62  ;;  %8756 = vrsqrt.f32 %v11174_v49  ;;  %vm1577_vm13 = vweird.f32 %v11174_v49 }
 0x358   : > { %2963 = vmatpush.bf16.msra.mxu1 %v7993_v3  ;;  %v8478_v3 = vld [vmem:[%s14463_s6 + $0x134] sm:$0xf0] }
 0x359   : > { %v1564_v39 = vmul.f32 0.5, %v1563_v8  ;;  %v2569_v25 = vpop.f32.mrf.mxu0  ;;  %v14693_v8 = vld [vmem:[#allocation33_spill] sm:$0xff] }
 0x35a   : > { %v2658_v10 = vpop.f32.mrf.mxu1  ;;  %v2570_v12 = vadd.f32 %v2569_v25, %v1962_v1  ;;  %v8484_v25 = vld [vmem:[%s14463_s6 + $0x16c] sm:$0xf] }
 0x35b   : > { %v1565_v45 = vsub.f32 1.5, %v1564_v39  ;;  %v7972_v39 = vld [vmem:[%s14463_s6 + $0x168] sm:$0xf] }
 0x35c   : > { %v2659_v57 = vadd.f32 %v2658_v10, %v2570_v12  ;;  %v7974_v10 = vld [vmem:[%s14463_s6 + $0x178] sm:$0xf0] }
 0x35d   : > { %v1566_v50 = vmul.f32 %v8755_v55, %v1565_v45  ;;  %v1206_v47 = vpop.xlane.xlu0 %1205  ;;  %v11229_v62 = vpop.eup %8756  ;;  %v1785_v45 = vadd.f32 %v10188_v11, %v1716_v7  ;;  %v7977_v58 = vor.u32 %v8484_v25, %v7974_v10  ;;  %v7958_v7 = vld [vmem:[%s14463_s6 + $0x158] sm:$0xf0]  ;;  %v8474_v25 = vld [vmem:[%s14463_s6 + $0x114] sm:$0xf0] }
 0x35e   : > { %v1238_v36 = vmul.f32 %v1206_v47, %v9722_v53  ;;  %v1572_v33 = vmul.f32 %v11229_v62, %v11174_v49  ;;  %vm1578_vm12 = vweird.f32 %v11229_v62  ;;  %v2014_v53 = vld [vmem:[#allocation2 + $0x3e8] sm:$0xff] }
 0x35f   : > { %v1570_v54 = vsel %vm1569_vm11, %v8755_v55, %v1566_v50  ;;  %v2391_v18 = vpop.f32.mrf.mxu2  ;;  %v7865_v55 = vor.u32 %v8456_v42, %v7862_v22  ;;  %v7956_v50 = vld [vmem:[%s14463_s6 + $0x148] sm:$0xf]  ;;  %v7849_v42 = vor.u32 %v8452_v56, %v7846_v37  ;;  %2964 = vmatpush.bf16.msra.mxu1 %v7977_v58  ;;  %vm1579_vm14 = vmor %vm1577_vm13, %vm1578_vm12  ;;  %v8476_v56 = vld [vmem:[%s14463_s6 + $0x12c] sm:$0xf] }
 0x360   : > { %v1649_v6 = vmul.f32 %v1570_v54, %v10854_v63  ;;  %v1650_v44 = vmul.f32 %v1570_v54, %v14693_v8  ;;  %v2480_v46 = vpop.f32.mrf.mxu3  ;;  %v11238_v43 = vadd.f32 1e-12, %v1238_v36  ;;  %v2392_v27 = vadd.f32 %v2391_v18, %v1961_v35  ;;  %v8486_v63 = vld [vmem:[%s14463_s6 + $0x174] sm:$0xf0]  ;;  %v7830_v36 = vld [vmem:[%s14463_s6 + $0x58] sm:$0xf0] }
 0x361   : > { %v1573_v1 = vmul.f32 %v11229_v62, %v1572_v33  ;;  %v7973_v15 = vor.u32 %v8486_v63, %v7972_v39  ;;  %v11256_v26 = vpop.f32.mrf.mxu0  ;;  %v8482_v35 = vld [vmem:[%s14463_s6 + $0x154] sm:$0xf0]  ;;  %2874 = vmatpush.bf16.msra.mxu0 %v7865_v55  ;;  %v1970_v18 = vld [vmem:[#allocation2 + $0x288] sm:$0xff]  ;;  %v7833_v2 = vor.u32 %v8448_v17, %v7830_v36  ;;  %v7942_v37 = vld [vmem:[%s14463_s6 + $0x138] sm:$0xf0] }
 0x362   : > { %v1718_v48 = vmul.f32 %v10158_v32, %v1649_v6  ;;  %v1719_v34 = vmul.f32 %v10160_v30, %v1650_v44  ;;  %8758 = vrsqrt.f32 %v11238_v43  ;;  %v2481_v28 = vadd.f32 %v2480_v46, %v2392_v27  ;;  %v11258_v60 = vpop.f32.mrf.mxu1  ;;  %v7940_v55 = vld [vmem:[%s14463_s6 + $0x128] sm:$0xf]  ;;  %v8444_v63 = vld [vmem:[%s14463_s6 + $0x2c] sm:$0xf]  ;;  %v14698_v58 = vld [vmem:[#allocation34_spill] sm:$0xff] }
 0x363   : > { %14694 = vst [vmem:[#allocation33_spill] sm:$0xff] %v11258_v60  ;;  %v1574_v16 = vmul.f32 0.5, %v1573_v1  ;;  %2786 = vmatpush.bf16.msra.mxu3 %v7973_v15  ;;  %v7957_v54 = vor.u32 %v8482_v35, %v7956_v50  ;;  %v7941_v49 = vor.u32 %v8478_v3, %v7940_v55  ;;  %v7814_v1 = vld [vmem:[%s14463_s6 + $0x38] sm:$0xf0]  ;;  %v8440_v50 = vld [vmem:[%s14463_s6 + $0xc] sm:$0xf]  ;;  %vm1587_vm0 = vweird.f32 %v11238_v43 }
 0x364   : > { %v1787_v14 = vadd.f32 %v10188_v11, %v1718_v48  ;;  %v1788_v12 = vadd.f32 %v10195_v51, %v1719_v34  ;;  %v11276_v29 = vpack.c.bf16 %v2659_v57, %v2481_v28  ;;  %v8480_v57 = vld [vmem:[%s14463_s6 + $0x14c] sm:$0xf]  ;;  %v7924_v28 = vld [vmem:[%s14463_s6 + $0x108] sm:$0xf]  ;;  %v1997_v60 = vld [vmem:[#allocation2 + $0x360] sm:$0xff] }
 0x365   : > { %v1575_v47 = vsub.f32 1.5, %v1574_v16  ;;  %2875 = vmatpush.bf16.msra.mxu0 %v7849_v42  ;;  %v7961_v27 = vor.u32 %v8480_v57, %v7958_v7  ;;  %v7925_v35 = vor.u32 %v8474_v25, %v7924_v28  ;;  %v8472_v42 = vld [vmem:[%s14463_s6 + $0x10c] sm:$0xf]  ;;  %v14699_v57 = vld [vmem:[#allocation41_spill] sm:$0xff] }
 0x366   : > { %14695 = vst [vmem:[#allocation61_spill] sm:$0xff] %v11276_v29  ;;  %v11278_v5 = vpack.c.bf16 %v1787_v14, %v1785_v45  ;;  %v11280_v22 = vpack.c.bf16 %v1788_v12, %v1786_v21  ;;  %v1969_v14 = vld [vmem:[#allocation2 + $0x280] sm:$0xff]  ;;  %v7817_v21 = vor.u32 %v8444_v63, %v7814_v1  ;;  %v7945_v12 = vor.u32 %v8476_v56, %v7942_v37 }
 0x367   : > { %v11295_v6 = vpop.f32.mrf.mxu2  ;;  %v1576_v33 = vmul.f32 %v11229_v62, %v1575_v47  ;;  %2787 = vmatpush.bf16.msra.mxu3 %v7957_v54  ;;  %2965 = vmatpush.bf16.msra.mxu1 %v7961_v27  ;;  %v7926_v47 = vld [vmem:[%s14463_s6 + $0x118] sm:$0xf0]  ;;  %v14700_v1 = vld [vmem:[#allocation23_spill] sm:$0xff] }
 0x368   : > { %14696 = vst [vmem:[#allocation62_spill] sm:$0xff] %v11278_v5  ;;  %v11297_v8 = vpop.f32.mrf.mxu3  ;;  %2415 = vmatmul.bf16.gmra.mxu2 %v11278_v5  ;;  %2504 = vmatmul.bf16.gmra.mxu3 %v11280_v22  ;;  %v8759_v44 = vpop.eup %8758  ;;  %v7929_v27 = vor.u32 %v8472_v42, %v7926_v47 }
 0x369   : > { %14697 = vst [vmem:[#allocation63_spill] sm:$0xff] %v11280_v22  ;;  %2593 = vmatmul.bf16.gmra.mxu0 %v11278_v5  ;;  %2682 = vmatmul.bf16.gmra.mxu1 %v11280_v22  ;;  %v1582_v46 = vmul.f32 %v8759_v44, %v11238_v43  ;;  %v1580_v45 = vsel %vm1579_vm14, %v11229_v62, %v1576_v33  ;;  %v7798_v62 = vld [vmem:[%s14463_s6 + $0x18] sm:$0xf0]  ;;  %vm1588_vm15 = vweird.f32 %v8759_v44  ;;  %v2013_v22 = vld [vmem:[#allocation2 + $0x3e0] sm:$0xff] }
 0x36a   : > { %2876 = vmatpush.bf16.msra.mxu0 %v7833_v2  ;;  %v1651_v17 = vmul.f32 %v1580_v45, %v14698_v58  ;;  %v1652_v7 = vmul.f32 %v1580_v45, %v14699_v57  ;;  %v7801_v2 = vor.u32 %v8440_v50, %v7798_v62  ;;  %vm1589_vm1 = vmor %vm1587_vm0, %vm1588_vm15  ;;  %v1978_v50 = vld [vmem:[#allocation2 + $0x2c8] sm:$0xff]  ;;  %v1977_v62 = vld [vmem:[#allocation2 + $0x2c0] sm:$0xff] }
 0x36b   : > { %v2574_v39 = vpop.f32.mrf.mxu0  ;;  %v1583_v48 = vmul.f32 %v8759_v44, %v1582_v46  ;;  %v2663_v15 = vpop.f32.mrf.mxu1  ;;  %2788 = vmatpush.bf16.msra.mxu3 %v7941_v49  ;;  %2966 = vmatpush.bf16.msra.mxu1 %v7945_v12  ;;  %v2001_v5 = vld [vmem:[#allocation2 + $0x380] sm:$0xff] }
 0x36c   : > { %v2575_v34 = vadd.f32 %v2574_v39, %v1970_v18  ;;  %v1720_v63 = vmul.f32 %v10158_v32, %v1651_v17  ;;  %v1721_v43 = vmul.f32 %v10160_v30, %v1652_v7 }
 0x36d   : > { %v1584_v10 = vmul.f32 0.5, %v1583_v48 }
 0x36e   : > { %v2664_v16 = vadd.f32 %v2663_v15, %v2575_v34  ;;  %2877 = vmatpush.bf16.msra.mxu0 %v7817_v21  ;;  %v14701_v34 = vld [vmem:[#allocation21_spill] sm:$0xff]  ;;  %v1789_v25 = vadd.f32 %v10188_v11, %v1720_v63  ;;  %v1985_v63 = vld [vmem:[#allocation2 + $0x300] sm:$0xff] }
 0x36f   : > { %v1585_v54 = vsub.f32 1.5, %v1584_v10  ;;  %2789 = vmatpush.bf16.msra.mxu3 %v7925_v35  ;;  %2967 = vmatpush.bf16.msra.mxu1 %v7929_v27 }
 0x370   : > { %v2396_v36 = vpop.f32.mrf.mxu2  ;;  %v2485_v18 = vpop.f32.mrf.mxu3 }
 0x371   : > { %v2397_v33 = vadd.f32 %v2396_v36, %v1969_v14  ;;  %v1586_v46 = vmul.f32 %v8759_v44, %v1585_v54  ;;  %v1790_v14 = vadd.f32 %v10195_v51, %v1721_v43 }
 0x372   : > { %2878 = vmatpush.bf16.msra.mxu0 %v7801_v2 }
 0x373   : > { %v2486_v55 = vadd.f32 %v2485_v18, %v2397_v33  ;;  %v1590_v3 = vsel %vm1589_vm1, %v8759_v44, %v1586_v46  ;;  %v11348_v39 = vpop.f32.mrf.mxu0  ;;  %v11350_v49 = vpop.f32.mrf.mxu1  ;;  %v14705_v33 = vld [vmem:[#allocation27_spill] sm:$0xff]  ;;  %v14706_v18 = vld [vmem:[#allocation28_spill] sm:$0xff] }
 0x374   : > { %v1653_v48 = vmul.f32 %v1590_v3, %v14700_v1  ;;  %v1654_v15 = vmul.f32 %v1590_v3, %v14701_v34  ;;  %v1986_v46 = vld [vmem:[#allocation2 + $0x308] sm:$0xff] }
 0x375   : > { %v11355_v56 = vpack.c.bf16 %v2664_v16, %v2486_v55 }
 0x376   : > { %v1722_v37 = vmul.f32 %v10158_v32, %v1653_v48  ;;  %v1723_v44 = vmul.f32 %v10160_v30, %v1654_v15 }
 0x377   : > { %14702 = vst [vmem:[#allocation34_spill] sm:$0xff] %v11355_v56 }
 0x378   : > { %v11360_v28 = vpop.f32.mrf.mxu2  ;;  %v11362_v45 = vpop.f32.mrf.mxu3  ;;  %v1791_v10 = vadd.f32 %v10188_v11, %v1722_v37  ;;  %v1792_v16 = vadd.f32 %v10195_v51, %v1723_v44  ;;  %v14707_v37 = vld [vmem:[#allocation29_spill] sm:$0xff]  ;;  %v14708_v44 = vld [vmem:[#allocation30_spill] sm:$0xff] }
 0x37a   : > { %v11368_v21 = vpack.c.bf16 %v1791_v10, %v1789_v25  ;;  %v11370_v12 = vpack.c.bf16 %v1792_v16, %v1790_v14  ;;  %v14710_v25 = vld [vmem:[#allocation31_spill] sm:$0xff]  ;;  %v14711_v10 = vld [vmem:[#allocation32_spill] sm:$0xff]  ;;  %v14713_v14 = vld [vmem:[#allocation49_spill] sm:$0xff] }
 0x37b   : > { %v14714_v16 = vld [vmem:[#allocation35_spill] sm:$0xff] }
 0x37c   : > { %14703 = vst [vmem:[#allocation41_spill] sm:$0xff] %v11368_v21  ;;  %2420 = vmatmul.bf16.gmra.mxu2 %v11368_v21  ;;  %2509 = vmatmul.bf16.gmra.mxu3 %v11370_v12 }
 0x37d   : > { %14704 = vst [vmem:[#allocation23_spill] sm:$0xff] %v11370_v12  ;;  %2598 = vmatmul.bf16.gmra.mxu0 %v11368_v21  ;;  %2687 = vmatmul.bf16.gmra.mxu1 %v11370_v12  ;;  %v2579_v32 = vpop.f32.mrf.mxu0  ;;  %v2668_v30 = vpop.f32.mrf.mxu1  ;;  %v2005_v21 = vld [vmem:[#allocation2 + $0x3a0] sm:$0xff] }
 0x37e   : > { %v2580_v11 = vadd.f32 %v2579_v32, %v1978_v50  ;;  %v14715_v50 = vld [vmem:[#allocation36_spill] sm:$0xff]  ;;  %v14717_v32 = vld [vmem:[#allocation26_spill] sm:$0xff] }
 0x380   : > { %v2669_v35 = vadd.f32 %v2668_v30, %v2580_v11 }
 0x382   : > { %v2401_v42 = vpop.f32.mrf.mxu2  ;;  %v2490_v51 = vpop.f32.mrf.mxu3 }
 0x383   : > { %v2402_v47 = vadd.f32 %v2401_v42, %v1977_v62  ;;  %v14719_v62 = vld [vmem:[#allocation40_spill] sm:$0xff] }
 0x385   : > { %v2491_v58 = vadd.f32 %v2490_v51, %v2402_v47  ;;  %v11376_v17 = vpop.f32.mrf.mxu0  ;;  %v11378_v54 = vpop.f32.mrf.mxu1 }
 0x387   : > { %v11380_v36 = vpack.c.bf16 %v2669_v35, %v2491_v58  ;;  %v14718_v35 = vld [vmem:[#allocation39_spill] sm:$0xff] }
 0x38a   : > { %v11382_v57 = vpop.f32.mrf.mxu2  ;;  %v11384_v7 = vpop.f32.mrf.mxu3 }
 0x38c   : > { %2701 = vmatmul.bf16.vlgmr.msra.gmra.mxu2 %v14705_v33  ;;  %2790 = vmatmul.bf16.vlgmr.msra.gmra.mxu3 %v14706_v18 }
 0x38d   : > { %2879 = vmatmul.bf16.vlgmr.msra.gmra.mxu0 %v14705_v33  ;;  %2968 = vmatmul.bf16.vlgmr.msra.gmra.mxu1 %v14706_v18  ;;  %v2584_v2 = vpop.f32.mrf.mxu0  ;;  %v2673_v55 = vpop.f32.mrf.mxu1 }
 0x38e   : > { %4461 = vmatpush.bf16.xpose.msra.mxu2 %v11120_v23  ;;  %v2585_v27 = vadd.f32 %v2584_v2, %v1986_v46  ;;  %v14709_v23 = vld [vmem:[#allocation38_spill] sm:$0xff]  ;;  %v14720_v46 = vld [vmem:[#allocation24_spill] sm:$0xff]  ;;  %v14721_v2 = vld [vmem:[#allocation25_spill] sm:$0xff] }
 0x390   : > { %v2674_v3 = vadd.f32 %v2673_v55, %v2585_v27 }
 0x392   : > { %v2406_v1 = vpop.f32.mrf.mxu2  ;;  %v2495_v34 = vpop.f32.mrf.mxu3 }
 0x393   : > { %v2407_v48 = vadd.f32 %v2406_v1, %v1985_v63 }
 0x395   : > { %v2496_v15 = vadd.f32 %v2495_v34, %v2407_v48  ;;  %v11412_v30 = vpop.f32.mrf.mxu0  ;;  %v11414_v11 = vpop.f32.mrf.mxu1 }
 0x396   : > { %4462 = vmatpush.bf16.xpose.msra.mxu2 %v11089_v4  ;;  %v14712_v4 = vld [vmem:[#allocation52_spill] sm:$0xff] }
 0x397   : > { %v11392_v43 = vpack.c.bf16 %v2674_v3, %v2496_v15 }
 0x39a   : > { %v11420_v42 = vpop.f32.mrf.mxu2  ;;  %v11422_v51 = vpop.f32.mrf.mxu3 }
 0x39c   : > { %2706 = vmatmul.bf16.gmra.mxu2 %v14707_v37  ;;  %2795 = vmatmul.bf16.gmra.mxu3 %v14708_v44 }
 0x39d   : > { %2884 = vmatmul.bf16.gmra.mxu0 %v14707_v37  ;;  %2973 = vmatmul.bf16.gmra.mxu1 %v14708_v44  ;;  %v11424_v47 = vpop.f32.mrf.mxu0  ;;  %v11426_v58 = vpop.f32.mrf.mxu1  ;;  %v14722_v37 = vld [vmem:[#allocation45_spill] sm:$0xff]  ;;  %v14723_v44 = vld [vmem:[#allocation46_spill] sm:$0xff] }
 0x39e   : > { %4463 = vmatpush.bf16.xpose.msra.mxu2 %v11031_v31  ;;  %v14716_v31 = vld [vmem:[#allocation50_spill] sm:$0xff] }
 0x3a2   : > { %v11428_v33 = vpop.f32.mrf.mxu2  ;;  %v11430_v18 = vpop.f32.mrf.mxu3 }
 0x3a5   : > { %v11436_v27 = vpop.f32.mrf.mxu0  ;;  %v11438_v55 = vpop.f32.mrf.mxu1 }
 0x3a6   : > { %4464 = vmatpush.bf16.xpose.msra.mxu2 %v14709_v23 }
 0x3aa   : > { %v11440_v3 = vpop.f32.mrf.mxu2  ;;  %v11442_v63 = vpop.f32.mrf.mxu3 }
 0x3ac   : > { %2711 = vmatmul.bf16.gmra.mxu2 %v14710_v25  ;;  %2800 = vmatmul.bf16.gmra.mxu3 %v14711_v10 }
 0x3ad   : > { %2889 = vmatmul.bf16.gmra.mxu0 %v14710_v25  ;;  %2978 = vmatmul.bf16.gmra.mxu1 %v14711_v10 }
 0x3ae   : > { %4465 = vmatpush.bf16.xpose.msra.mxu2 %v14712_v4 }
 0x3b6   : > { %4466 = vmatpush.bf16.xpose.msra.mxu2 %v14713_v14 }
 0x3bc   : > { %2716 = vmatmul.bf16.gmra.mxu2 %v14714_v16  ;;  %2805 = vmatmul.bf16.gmra.mxu3 %v14715_v50 }
 0x3bd   : > { %2894 = vmatmul.bf16.gmra.mxu0 %v14714_v16  ;;  %2983 = vmatmul.bf16.gmra.mxu1 %v14715_v50  ;;  %v14724_v50 = vld [vmem:[#allocation47_spill] sm:$0xff] }
 0x3be   : > { %4467 = vmatpush.bf16.xpose.msra.mxu2 %v14716_v31  ;;  %v14725_v31 = vld [vmem:[#allocation48_spill] sm:$0xff] }
 0x3c6   : > { %4468 = vmatpush.bf16.xpose.msra.mxu2 %v14717_v32  ;;  %v2009_v32 = vld [vmem:[#allocation2 + $0x3c0] sm:$0xff] }
 0x3cc   : > { %2721 = vmatmul.bf16.gmra.mxu2 %v14718_v35  ;;  %2810 = vmatmul.bf16.gmra.mxu3 %v14719_v62 }
 0x3cd   : > { %2899 = vmatmul.bf16.gmra.mxu0 %v14718_v35  ;;  %2988 = vmatmul.bf16.gmra.mxu1 %v14719_v62 }
 0x3dc   : > { %2726 = vmatmul.bf16.gmra.mxu2 %v14720_v46  ;;  %2815 = vmatmul.bf16.gmra.mxu3 %v14721_v2 }
 0x3dd   : > { %2904 = vmatmul.bf16.gmra.mxu0 %v14720_v46  ;;  %2993 = vmatmul.bf16.gmra.mxu1 %v14721_v2  ;;  %v2010_v46 = vld [vmem:[#allocation2 + $0x3c8] sm:$0xff] }
 0x3e6   : > { %v2594_v1 = vpop.f32.mrf.mxu0  ;;  %v11444_v48 = vpop.f32.mrf.mxu1 }
 0x3eb   : > { %v2416_v34 = vpop.f32.mrf.mxu2  ;;  %v2505_v15 = vpop.f32.mrf.mxu3 }
 0x3ec   : > { %2731 = vmatmul.bf16.gmra.mxu2 %v14722_v37  ;;  %2820 = vmatmul.bf16.gmra.mxu3 %v14723_v44  ;;  %v2417_v20 = vadd.f32 %v2416_v34, %v2001_v5 }
 0x3ed   : > { %2909 = vmatmul.bf16.gmra.mxu0 %v14722_v37  ;;  %2998 = vmatmul.bf16.gmra.mxu1 %v14723_v44 }
 0x3ee   : > { %v2596_v23 = vpop.f32.mrf.mxu0  ;;  %v2685_v25 = vpop.f32.mrf.mxu1 }
 0x3ef   : > { %v2597_v38 = vadd.f32 %v2596_v23, %v2006_v40  ;;  %v1891_v40 = vld [vmem:[#allocation2 + $0x10] sm:$0xff]  ;;  %v1896_v23 = vld [vmem:[#allocation2 + $0x38] sm:$0xff] }
 0x3f3   : > { %v2418_v10 = vpop.f32.mrf.mxu2  ;;  %v2507_v4 = vpop.f32.mrf.mxu3 }
 0x3fa   : > { %v2599_v14 = vpop.f32.mrf.mxu0  ;;  %v2688_v16 = vpop.f32.mrf.mxu1 }
 0x3fb   : > { %v2600_v12 = vadd.f32 %v2599_v14, %v2010_v46 }
 0x3fc   : > { %2736 = vmatmul.bf16.gmra.mxu2 %v14724_v50  ;;  %2825 = vmatmul.bf16.gmra.mxu3 %v14725_v31 }
 0x3fd   : > { %2914 = vmatmul.bf16.gmra.mxu0 %v14724_v50  ;;  %3003 = vmatmul.bf16.gmra.mxu1 %v14725_v31  ;;  %v2419_v50 = vadd.f32 %v2418_v10, %v2005_v21  ;;  %v2689_v29 = vadd.f32 %v2688_v16, %v2600_v12  ;;  %v14727_v21 = vld [vmem:[#allocation51_spill] sm:$0xff]  ;;  %v1994_v12 = vld [vmem:[#allocation2 + $0x348] sm:$0xff] }
 0x3ff   : > { %v2421_v35 = vpop.f32.mrf.mxu2  ;;  %v2510_v62 = vpop.f32.mrf.mxu3 }
 0x400   : > { %v2422_v2 = vadd.f32 %v2421_v35, %v2009_v32 }
 0x402   : > { %v2601_v37 = vpop.f32.mrf.mxu0  ;;  %v2690_v44 = vpop.f32.mrf.mxu1  ;;  %v2511_v19 = vadd.f32 %v2510_v62, %v2422_v2  ;;  %v2595_v62 = vadd.f32 %v2594_v1, %v2002_v0 }
 0x403   : > { %v2602_v52 = vadd.f32 %v2601_v37, %v2014_v53  ;;  %v2508_v53 = vadd.f32 %v2507_v4, %v2419_v50  ;;  %v14726_v37 = vld [vmem:[#allocation37_spill] sm:$0xff] }
 0x404   : > { %v11454_v32 = vpack.c.bf16 %v2689_v29, %v2511_v19  ;;  %v2686_v19 = vadd.f32 %v2685_v25, %v2597_v38  ;;  %v1998_v29 = vld [vmem:[#allocation2 + $0x368] sm:$0xff] }
 0x405   : > { %v2691_v35 = vadd.f32 %v2690_v44, %v2602_v52  ;;  %v1993_v52 = vld [vmem:[#allocation2 + $0x340] sm:$0xff]  ;;  %v2592_v38 = vadd.f32 %v11436_v27, %v1998_v29  ;;  %v1990_v27 = vld [vmem:[#allocation2 + $0x328] sm:$0xff] }
 0x406   : > { %v11466_v1 = vpack.c.bf16 %v2686_v19, %v2508_v53  ;;  %v1989_v44 = vld [vmem:[#allocation2 + $0x320] sm:$0xff] }
 0x407   : > { %v2423_v13 = vpop.f32.mrf.mxu2  ;;  %v2512_v59 = vpop.f32.mrf.mxu3  ;;  %v2409_v53 = vadd.f32 %v11420_v42, %v1989_v44  ;;  %v1981_v29 = vld [vmem:[#allocation2 + $0x2e0] sm:$0xff] }
 0x408   : > { %v2424_v31 = vadd.f32 %v2423_v13, %v2013_v22  ;;  %v3302_v50 = vunpack.c.l.b16 %v11466_v1 }
 0x40a   : > { %v2513_v41 = vadd.f32 %v2512_v59, %v2424_v31  ;;  %v2880_v14 = vpop.f32.mrf.mxu0  ;;  %v2969_v46 = vpop.f32.mrf.mxu1  ;;  %v2506_v59 = vadd.f32 %v2505_v15, %v2417_v20  ;;  %v2412_v20 = vadd.f32 %v11428_v33, %v1993_v52  ;;  %v1900_v52 = vld [vmem:[#allocation2 + $0x58] sm:$0xff] }
 0x40b   : > { %v2881_v56 = vadd.f32 %v2880_v14, %v1892_v61  ;;  %v3303_v61 = vunpack.c.l.b16 %v11454_v32  ;;  %v1895_v14 = vld [vmem:[#allocation2 + $0x30] sm:$0xff] }
 0x40c   : > { %v11456_v2 = vpack.c.bf16 %v2691_v35, %v2513_v41  ;;  %2741 = vmatmul.bf16.gmra.mxu2 %v14726_v37  ;;  %2830 = vmatmul.bf16.gmra.mxu3 %v14727_v21  ;;  %v2414_v41 = vadd.f32 %v11440_v3, %v1997_v60  ;;  %v2590_v60 = vadd.f32 %v11424_v47, %v1994_v12 }
 0x40d   : > { %v2970_v13 = vadd.f32 %v2969_v46, %v2881_v56  ;;  %2919 = vmatmul.bf16.gmra.mxu0 %v14726_v37  ;;  %3008 = vmatmul.bf16.gmra.mxu1 %v14727_v21  ;;  %v2684_v56 = vadd.f32 %v11444_v48, %v2595_v62  ;;  %v2501_v35 = vadd.f32 %v11430_v18, %v2412_v20 }
 0x40e   : > { %v3304_v0 = vunpack.c.l.b16 %v11456_v2  ;;  %v2503_v48 = vadd.f32 %v11442_v63, %v2414_v41  ;;  %v2681_v46 = vadd.f32 %v11438_v55, %v2592_v38  ;;  %v2679_v47 = vadd.f32 %v11426_v58, %v2590_v60  ;;  %v1982_v38 = vld [vmem:[#allocation2 + $0x2e8] sm:$0xff] }
 0x40f   : > { %v2702_v5 = vpop.f32.mrf.mxu2  ;;  %v2791_v22 = vpop.f32.mrf.mxu3  ;;  %v11470_v15 = vpack.c.bf16 %v2684_v56, %v2506_v59  ;;  %v2587_v18 = vadd.f32 %v11412_v30, %v1990_v27 }
 0x410   : > { %v2703_v34 = vadd.f32 %v2702_v5, %v1891_v40  ;;  %v3320_v10 = vpack.c.b16 %v3304_v0, %v3303_v61  ;;  %v11480_v40 = vpack.c.bf16 %v2681_v46, %v2503_v48  ;;  %v11483_v59 = vpack.c.bf16 %v2679_v47, %v2501_v35  ;;  %v14728_v5 = vld [vmem:[#allocation42_spill] sm:$0xff]  ;;  %v1973_v46 = vld [vmem:[#allocation2 + $0x2a0] sm:$0xff] }
 0x411   : > { %v3301_v62 = vunpack.c.l.b16 %v11470_v15  ;;  %v2498_v0 = vadd.f32 %v11422_v51, %v2409_v53  ;;  %v2676_v12 = vadd.f32 %v11414_v11, %v2587_v18  ;;  %v2582_v35 = vadd.f32 %v11376_v17, %v1982_v38 }
 0x412   : > { %v2792_v25 = vadd.f32 %v2791_v22, %v2703_v34  ;;  %v2882_v4 = vpop.f32.mrf.mxu0  ;;  %v2971_v16 = vpop.f32.mrf.mxu1  ;;  %3426 = vmatpush.bf16.xpose.msrb.mxu3 %v3320_v10  ;;  %v3300_v58 = vunpack.c.l.b16 %v11480_v40  ;;  %v14729_v22 = vld [vmem:[#allocation20_spill] sm:$0xff]  ;;  %v3299_v30 = vunpack.c.l.b16 %v11483_v59  ;;  %v1899_v34 = vld [vmem:[#allocation2 + $0x50] sm:$0xff]  ;;  %v2399_v17 = vadd.f32 %v11360_v28, %v1973_v46 }
 0x413   : > { %v2883_v3 = vadd.f32 %v2882_v4, %v1896_v23  ;;  %v11494_v4 = vpack.c.bf16 %v2676_v12, %v2498_v0 }
 0x414   : > { %v3081_v31 = vpack.c.bf16 %v2970_v13, %v2792_v25  ;;  %v3319_v13 = vpack.c.b16 %v3302_v50, %v3301_v62  ;;  %v2404_v25 = vadd.f32 %v11382_v57, %v1981_v29  ;;  %v3318_v44 = vpack.c.b16 %v3300_v58, %v3299_v30 }
 0x415   : > { %v2972_v33 = vadd.f32 %v2971_v16, %v2883_v3  ;;  %v1904_v3 = vld [vmem:[#allocation2 + $0x78] sm:$0xff]  ;;  %v3298_v62 = vunpack.c.l.b16 %v11494_v4  ;;  %v3295_v30 = vunpack.c.l.b16 %v11380_v36 }
 0x416   : > { %v4059_v51 = vunpack.c.l.b16 %v3081_v31  ;;  %v5151_v23 = vunpack.c.h.b16 %v3081_v31  ;;  %v2493_v57 = vadd.f32 %v11384_v7, %v2404_v25 }
 0x417   : > { %v2704_v37 = vpop.f32.mrf.mxu2  ;;  %v2793_v21 = vpop.f32.mrf.mxu3 }
 0x418   : > { %v2705_v63 = vadd.f32 %v2704_v37, %v1895_v14  ;;  %v1903_v37 = vld [vmem:[#allocation2 + $0x70] sm:$0xff] }
 0x41a   : > { %v2794_v19 = vadd.f32 %v2793_v21, %v2705_v63  ;;  %v2885_v61 = vpop.f32.mrf.mxu0  ;;  %v2974_v55 = vpop.f32.mrf.mxu1  ;;  %3427 = vmatpush.bf16.xpose.msrb.mxu3 %v3319_v13  ;;  %v1974_v21 = vld [vmem:[#allocation2 + $0x2a8] sm:$0xff]  ;;  %v2671_v63 = vadd.f32 %v11378_v54, %v2582_v35 }
 0x41b   : > { %v2886_v42 = vadd.f32 %v2885_v61, %v1900_v52  ;;  %v3297_v52 = vunpack.c.l.b16 %v11392_v43  ;;  %v2577_v7 = vadd.f32 %v11348_v39, %v1974_v21  ;;  %v14731_v21 = vld [vmem:[#allocation34_spill] sm:$0xff] }
 0x41c   : > { %v3082_v41 = vpack.c.bf16 %v2972_v33, %v2794_v19  ;;  %2746 = vmatmul.bf16.gmra.mxu2 %v14728_v5  ;;  %2835 = vmatmul.bf16.gmra.mxu3 %v14729_v22  ;;  %v11506_v19 = vpack.c.bf16 %v2671_v63, %v2493_v57  ;;  %v3293_v63 = vunpack.c.l.b16 %v14731_v21 }
 0x41d   : > { %v2975_v56 = vadd.f32 %v2974_v55, %v2886_v42  ;;  %2924 = vmatmul.bf16.gmra.mxu0 %v14728_v5  ;;  %3013 = vmatmul.bf16.gmra.mxu1 %v14729_v22  ;;  %v1908_v55 = vld [vmem:[#allocation2 + $0x98] sm:$0xff]  ;;  %v3317_v0 = vpack.c.b16 %v3298_v62, %v3297_v52  ;;  %v1965_v5 = vld [vmem:[#allocation2 + $0x260] sm:$0xff]  ;;  %v2666_v12 = vadd.f32 %v11350_v49, %v2577_v7  ;;  %v1911_v62 = vld [vmem:[#allocation2 + $0xb0] sm:$0xff] }
 0x41e   : > { %v4060_v10 = vunpack.c.l.b16 %v3082_v41  ;;  %v5152_v20 = vunpack.c.h.b16 %v3082_v41  ;;  %v2488_v41 = vadd.f32 %v11362_v45, %v2399_v17  ;;  %v3296_v22 = vunpack.c.l.b16 %v11506_v19  ;;  %v14732_v52 = vld [vmem:[#allocation59_spill] sm:$0xff] }
 0x41f   : > { %v2707_v16 = vpop.f32.mrf.mxu2  ;;  %v2796_v60 = vpop.f32.mrf.mxu3 }
 0x420   : > { %v2708_v11 = vadd.f32 %v2707_v16, %v1899_v34  ;;  %v11496_v48 = vpack.c.b16 %v4060_v10, %v4059_v51  ;;  %v11498_v50 = vpack.c.b16 %v5152_v20, %v5151_v23  ;;  %v1966_v10 = vld [vmem:[#allocation2 + $0x268] sm:$0xff]  ;;  %v2394_v20 = vadd.f32 %v11295_v6, %v1965_v5 }
 0x421   : > { %v11518_v38 = vpack.c.bf16 %v2666_v12, %v2488_v41  ;;  %v14734_v41 = vld [vmem:[#allocation60_spill] sm:$0xff]  ;;  %v14735_v12 = vld [vmem:[#allocation22_spill] sm:$0xff] }
 0x422   : > { %v2797_v33 = vadd.f32 %v2796_v60, %v2708_v11  ;;  %v2887_v31 = vpop.f32.mrf.mxu0  ;;  %v2976_v14 = vpop.f32.mrf.mxu1  ;;  %3428 = vmatpush.bf16.xpose.msrb.mxu3 %v3318_v44  ;;  %v1912_v60 = vld [vmem:[#allocation2 + $0xb8] sm:$0xff]  ;;  %v3316_v11 = vpack.c.b16 %v3296_v22, %v3295_v30  ;;  %v2483_v6 = vadd.f32 %v11297_v8, %v2394_v20  ;;  %v14733_v8 = vld [vmem:[#allocation57_spill] sm:$0xff]  ;;  %v14736_v30 = vld [vmem:[#allocation43_spill] sm:$0xff] }
 0x423   : > { %v2888_v27 = vadd.f32 %v2887_v31, %v1904_v3 }
 0x424   : > { %v3083_v53 = vpack.c.bf16 %v2975_v56, %v2797_v33  ;;  %v1907_v56 = vld [vmem:[#allocation2 + $0x90] sm:$0xff] }
 0x425   : > { %v2977_v47 = vadd.f32 %v2976_v14, %v2888_v27  ;;  %v1957_v14 = vld [vmem:[#allocation2 + $0x220] sm:$0xff]  ;;  %v3294_v27 = vunpack.c.l.b16 %v11518_v38 }
 0x426   : > { %v4061_v45 = vunpack.c.l.b16 %v3083_v53  ;;  %v5153_v34 = vunpack.c.h.b16 %v3083_v53  ;;  %v1958_v53 = vld [vmem:[#allocation2 + $0x228] sm:$0xff] }
 0x427   : > { %v2709_v13 = vpop.f32.mrf.mxu2  ;;  %v2798_v18 = vpop.f32.mrf.mxu3  ;;  %v2567_v7 = vadd.f32 %v14733_v8, %v1958_v53  ;;  %v4428_v53 = vunpack.c.h.b16 %v11456_v2  ;;  %v14740_v2 = vld [vmem:[#allocation44_spill] sm:$0xff] }
 0x428   : > { %v2710_v61 = vadd.f32 %v2709_v13, %v1903_v37 }
 0x42a   : > { %v2799_v42 = vadd.f32 %v2798_v18, %v2710_v61  ;;  %v2890_v29 = vpop.f32.mrf.mxu0  ;;  %v2979_v58 = vpop.f32.mrf.mxu1  ;;  %3429 = vmatpush.bf16.xpose.msrb.mxu3 %v3317_v0  ;;  %v3315_v0 = vpack.c.b16 %v3294_v27, %v3293_v63  ;;  %v14739_v63 = vld [vmem:[#allocation54_spill] sm:$0xff] }
 0x42b   : > { %v2891_v54 = vadd.f32 %v2890_v29, %v1908_v55  ;;  %v1916_v55 = vld [vmem:[#allocation2 + $0xd8] sm:$0xff] }
 0x42c   : > { %v3084_v28 = vpack.c.bf16 %v2977_v47, %v2799_v42  ;;  %2751 = vmatmul.bf16.gmra.mxu2 %v10964_v24  ;;  %2840 = vmatmul.bf16.gmra.mxu3 %v10968_v9  ;;  %v14730_v47 = vld [vmem:[#allocation33_spill] sm:$0xff] }
 0x42d   : > { %v2980_v39 = vadd.f32 %v2979_v58, %v2891_v54  ;;  %2929 = vmatmul.bf16.gmra.mxu0 %v10964_v24  ;;  %3018 = vmatmul.bf16.gmra.mxu1 %v10968_v9  ;;  %v2572_v9 = vadd.f32 %v11256_v26, %v1966_v10  ;;  %v2389_v26 = vadd.f32 %v14732_v52, %v1957_v14  ;;  %v3289_v52 = vunpack.c.l.b16 %v14739_v63 }
 0x42e   : > { %v4062_v51 = vunpack.c.l.b16 %v3084_v28  ;;  %v5154_v23 = vunpack.c.h.b16 %v3084_v28 }
 0x42f   : > { %v2712_v25 = vpop.f32.mrf.mxu2  ;;  %v2801_v16 = vpop.f32.mrf.mxu3  ;;  %v2661_v37 = vadd.f32 %v14730_v47, %v2572_v9  ;;  %v2478_v54 = vadd.f32 %v14734_v41, %v2389_v26  ;;  %v4427_v26 = vunpack.c.h.b16 %v11454_v32 }
 0x430   : > { %v2713_v49 = vadd.f32 %v2712_v25, %v1907_v56  ;;  %v11520_v3 = vpack.c.b16 %v4062_v51, %v4061_v45  ;;  %v11522_v24 = vpack.c.b16 %v5154_v23, %v5153_v34  ;;  %v14738_v45 = vld [vmem:[#allocation61_spill] sm:$0xff] }
 0x431   : > { %v11530_v18 = vpack.c.bf16 %v2661_v37, %v2483_v6  ;;  %v3291_v34 = vunpack.c.l.b16 %v14738_v45  ;;  %v1915_v23 = vld [vmem:[#allocation2 + $0xd0] sm:$0xff]  ;;  %v4444_v8 = vpack.c.b16 %v4428_v53, %v4427_v26  ;;  %v4420_v26 = vunpack.c.h.b16 %v11506_v19 }
 0x432   : > { %v2802_v44 = vadd.f32 %v2801_v16, %v2713_v49  ;;  %v2892_v35 = vpop.f32.mrf.mxu0  ;;  %v2981_v33 = vpop.f32.mrf.mxu1  ;;  %3430 = vmatpush.bf16.xpose.msrb.mxu3 %v3316_v11  ;;  %v1919_v37 = vld [vmem:[#allocation2 + $0xf0] sm:$0xff] }
 0x433   : > { %v2893_v31 = vadd.f32 %v2892_v35, %v1912_v60  ;;  %v3292_v22 = vunpack.c.l.b16 %v11530_v18 }
 0x434   : > { %v3085_v46 = vpack.c.bf16 %v2980_v39, %v2802_v44  ;;  %v14737_v39 = vld [vmem:[#allocation58_spill] sm:$0xff] }
 0x435   : > { %v2982_v57 = vadd.f32 %v2981_v33, %v2893_v31  ;;  %v2656_v56 = vadd.f32 %v14737_v39, %v2567_v7  ;;  %v1920_v44 = vld [vmem:[#allocation2 + $0xf8] sm:$0xff]  ;;  %v3314_v35 = vpack.c.b16 %v3292_v22, %v3291_v34  ;;  %v1923_v22 = vld [vmem:[#allocation2 + $0x110] sm:$0xff] }
 0x436   : > { %v4063_v10 = vunpack.c.l.b16 %v3085_v46  ;;  %v5155_v20 = vunpack.c.h.b16 %v3085_v46 }
 0x437   : > { %v2714_v17 = vpop.f32.mrf.mxu2  ;;  %v2803_v13 = vpop.f32.mrf.mxu3  ;;  %v11541_v49 = vpack.c.bf16 %v2656_v56, %v2478_v54  ;;  %v14741_v54 = vld [vmem:[#allocation53_spill] sm:$0xff]  ;;  %v4425_v56 = vunpack.c.h.b16 %v11470_v15  ;;  %v4423_v15 = vunpack.c.h.b16 %v11483_v59 }
 0x438   : > { %v2715_v61 = vadd.f32 %v2714_v17, %v1911_v62 }
 0x439   : > { %v3290_v46 = vunpack.c.l.b16 %v11541_v49 }
 0x43a   : > { %v2804_v42 = vadd.f32 %v2803_v13, %v2715_v61  ;;  %v2895_v29 = vpop.f32.mrf.mxu0  ;;  %v2984_v58 = vpop.f32.mrf.mxu1  ;;  %3431 = vmatpush.bf16.xpose.msrb.mxu3 %v3315_v0 }
 0x43b   : > { %v2896_v5 = vadd.f32 %v2895_v29, %v1916_v55  ;;  %v1924_v55 = vld [vmem:[#allocation2 + $0x118] sm:$0xff]  ;;  %v3313_v0 = vpack.c.b16 %v3290_v46, %v3289_v52  ;;  %v14743_v46 = vld [vmem:[#allocation56_spill] sm:$0xff] }
 0x43c   : > { %v3086_v28 = vpack.c.bf16 %v2982_v57, %v2804_v42  ;;  %2756 = vmatmul.bf16.gmra.mxu2 %v14735_v12  ;;  %2845 = vmatmul.bf16.gmra.mxu3 %v14736_v30 }
 0x43d   : > { %v2985_v51 = vadd.f32 %v2984_v58, %v2896_v5  ;;  %2934 = vmatmul.bf16.gmra.mxu0 %v14735_v12  ;;  %3023 = vmatmul.bf16.gmra.mxu1 %v14736_v30  ;;  %v4426_v5 = vunpack.c.h.b16 %v11466_v1 }
 0x43e   : > { %v4064_v25 = vunpack.c.l.b16 %v3086_v28  ;;  %v5156_v16 = vunpack.c.h.b16 %v3086_v28 }
 0x43f   : > { %v2717_v60 = vpop.f32.mrf.mxu2  ;;  %v2806_v11 = vpop.f32.mrf.mxu3  ;;  %v4443_v1 = vpack.c.b16 %v4426_v5, %v4425_v56 }
 0x440   : > { %v2718_v9 = vadd.f32 %v2717_v60, %v1915_v23  ;;  %v11543_v33 = vpack.c.b16 %v4064_v25, %v4063_v10  ;;  %v11545_v31 = vpack.c.b16 %v5156_v16, %v5155_v20 }
 0x442   : > { %v2807_v14 = vadd.f32 %v2806_v11, %v2718_v9  ;;  %v2897_v6 = vpop.f32.mrf.mxu0  ;;  %v2986_v27 = vpop.f32.mrf.mxu1  ;;  %3432 = vmatpush.bf16.xpose.msrb.mxu3 %v3314_v35  ;;  %v4424_v9 = vunpack.c.h.b16 %v11480_v40  ;;  %v4421_v40 = vunpack.c.h.b16 %v11392_v43 }
 0x443   : > { %v2898_v57 = vadd.f32 %v2897_v6, %v1920_v44 }
 0x444   : > { %v3087_v62 = vpack.c.bf16 %v2985_v51, %v2807_v14  ;;  %v4442_v14 = vpack.c.b16 %v4424_v9, %v4423_v15 }
 0x445   : > { %v2987_v47 = vadd.f32 %v2986_v27, %v2898_v57  ;;  %v14742_v57 = vld [vmem:[#allocation55_spill] sm:$0xff] }
 0x446   : > { %v4065_v28 = vunpack.c.l.b16 %v3087_v62  ;;  %v5157_v12 = vunpack.c.h.b16 %v3087_v62  ;;  %v4422_v62 = vunpack.c.h.b16 %v11494_v4  ;;  %v4419_v4 = vunpack.c.h.b16 %v11380_v36 }
 0x447   : > { %v2719_v17 = vpop.f32.mrf.mxu2  ;;  %v2808_v13 = vpop.f32.mrf.mxu3  ;;  %v4417_v36 = vunpack.c.h.b16 %v14731_v21  ;;  %v4414_v21 = vunpack.c.h.b16 %v11541_v49  ;;  %v1935_v49 = vld [vmem:[#allocation2 + $0x170] sm:$0xff] }
 0x448   : > { %v2720_v61 = vadd.f32 %v2719_v17, %v1919_v37 }
 0x44a   : > { %v2809_v7 = vadd.f32 %v2808_v13, %v2720_v61  ;;  %v2900_v42 = vpop.f32.mrf.mxu0  ;;  %v2989_v29 = vpop.f32.mrf.mxu1  ;;  %3433 = vmatpush.bf16.xpose.msrb.mxu3 %v3313_v0  ;;  %v4440_v61 = vpack.c.b16 %v4420_v26, %v4419_v4  ;;  %v14744_v0 = vld [vmem:[#allocation62_spill] sm:$0xff]  ;;  %v1951_v26 = vld [vmem:[#allocation2 + $0x1f0] sm:$0xff]  ;;  %v8504_v4 = vld [vmem:[%s14458_s1 + $0x4] sm:$0xf0] }
 0x44b   : > { %v2901_v58 = vadd.f32 %v2900_v42, %v1924_v55 }
 0x44c   : > { %v3088_v41 = vpack.c.bf16 %v2987_v47, %v2809_v7  ;;  %2761 = vmatmul.bf16.gmra.mxu2 %v14740_v2  ;;  %2850 = vmatmul.bf16.gmra.mxu3 %v14741_v54  ;;  %v4441_v47 = vpack.c.b16 %v4422_v62, %v4421_v40  ;;  %v4418_v7 = vunpack.c.h.b16 %v11518_v38 }
 0x44d   : > { %v2990_v32 = vadd.f32 %v2989_v29, %v2901_v58  ;;  %2939 = vmatmul.bf16.gmra.mxu0 %v14740_v2  ;;  %3028 = vmatmul.bf16.gmra.mxu1 %v14741_v54  ;;  %v4416_v2 = vunpack.c.h.b16 %v11530_v18  ;;  %v4415_v54 = vunpack.c.h.b16 %v14738_v45  ;;  %v4413_v18 = vunpack.c.h.b16 %v14739_v63  ;;  %v8044_v63 = vld [vmem:[%s14458_s1] sm:$0xf] }
 0x44e   : > { %v4066_v30 = vunpack.c.l.b16 %v3088_v41  ;;  %v5158_v39 = vunpack.c.h.b16 %v3088_v41  ;;  %v4439_v29 = vpack.c.b16 %v4418_v7, %v4417_v36 }
 0x44f   : > { %v2722_v34 = vpop.f32.mrf.mxu2  ;;  %v2811_v51 = vpop.f32.mrf.mxu3 }
 0x450   : > { %v2723_v23 = vadd.f32 %v2722_v34, %v1923_v22  ;;  %v11557_v10 = vpack.c.b16 %v4066_v30, %v4065_v28  ;;  %v11559_v20 = vpack.c.b16 %v5158_v39, %v5157_v12  ;;  %v4438_v22 = vpack.c.b16 %v4416_v2, %v4415_v54  ;;  %v14746_v12 = vld [vmem:[#allocation41_spill] sm:$0xff]  ;;  %v14747_v30 = vld [vmem:[#allocation23_spill] sm:$0xff] }
 0x451   : > { %v1947_v39 = vld [vmem:[#allocation2 + $0x1d0] sm:$0xff] }
 0x452   : > { %4550 = vmatpush.bf16.xpose.msra.mxu3 %v4444_v8  ;;  %v2812_v25 = vadd.f32 %v2811_v51, %v2723_v23  ;;  %v11561_v16 = vpop.f32.mrf.mxu0  ;;  %v11563_v60 = vpop.f32.mrf.mxu1  ;;  %v14745_v8 = vld [vmem:[#allocation63_spill] sm:$0xff]  ;;  %v1943_v34 = vld [vmem:[#allocation2 + $0x1b0] sm:$0xff]  ;;  %v1948_v51 = vld [vmem:[#allocation2 + $0x1d8] sm:$0xff]  ;;  %v4437_v23 = vpack.c.b16 %v4414_v21, %v4413_v18  ;;  %v8045_v18 = vor.u32 %v8504_v4, %v8044_v63 }
 0x453   : > { %v1956_v21 = vld [vmem:[#allocation2 + $0x218] sm:$0xff] }
 0x454   : > { %v11565_v11 = vpack.c.bf16 %v2990_v32, %v2812_v25 }
 0x457   : > { %v11569_v44 = vpop.f32.mrf.mxu2  ;;  %v11571_v35 = vpop.f32.mrf.mxu3 }
 0x45a   : > { %4551 = vmatpush.bf16.xpose.msra.mxu3 %v4443_v1  ;;  %v11573_v6 = vpop.f32.mrf.mxu0  ;;  %v11575_v27 = vpop.f32.mrf.mxu1  ;;  %v1939_v1 = vld [vmem:[#allocation2 + $0x190] sm:$0xff] }
 0x45c   : > { %2766 = vmatmul.bf16.gmra.mxu2 %v14742_v57  ;;  %2855 = vmatmul.bf16.gmra.mxu3 %v14743_v46 }
 0x45d   : > { %2944 = vmatmul.bf16.gmra.mxu0 %v14742_v57  ;;  %3033 = vmatmul.bf16.gmra.mxu1 %v14743_v46  ;;  %v1952_v57 = vld [vmem:[#allocation2 + $0x1f8] sm:$0xff] }
 0x45e   : > { %v1940_v46 = vld [vmem:[#allocation2 + $0x198] sm:$0xff] }
 0x45f   : > { %v11583_v59 = vpop.f32.mrf.mxu2  ;;  %v11585_v53 = vpop.f32.mrf.mxu3 }
 0x462   : > { %4552 = vmatpush.bf16.xpose.msra.mxu3 %v4442_v14  ;;  %v11587_v37 = vpop.f32.mrf.mxu0  ;;  %v11589_v52 = vpop.f32.mrf.mxu1  ;;  %v1944_v14 = vld [vmem:[#allocation2 + $0x1b8] sm:$0xff] }
 0x467   : > { %v2729_v17 = vpop.f32.mrf.mxu2  ;;  %v11593_v13 = vpop.f32.mrf.mxu3 }
 0x46a   : > { %4553 = vmatpush.bf16.xpose.msra.mxu3 %v4441_v47  ;;  %v2910_v55 = vpop.f32.mrf.mxu0  ;;  %v11595_v43 = vpop.f32.mrf.mxu1 }
 0x46b   : > { %v2911_v2 = vadd.f32 %v2910_v55, %v1940_v46 }
 0x46c   : > { %2771 = vmatmul.bf16.gmra.mxu2 %v14744_v0  ;;  %2860 = vmatmul.bf16.gmra.mxu3 %v14745_v8 }
 0x46d   : > { %2949 = vmatmul.bf16.gmra.mxu0 %v14744_v0  ;;  %3038 = vmatmul.bf16.gmra.mxu1 %v14745_v8  ;;  %v1936_v0 = vld [vmem:[#allocation2 + $0x178] sm:$0xff] }
 0x46f   : > { %v2732_v19 = vpop.f32.mrf.mxu2  ;;  %v2821_v42 = vpop.f32.mrf.mxu3 }
 0x470   : > { %v2733_v47 = vadd.f32 %v2732_v19, %v1939_v1  ;;  %v1932_v19 = vld [vmem:[#allocation2 + $0x158] sm:$0xff] }
 0x472   : > { %4554 = vmatpush.bf16.xpose.msra.mxu3 %v4440_v61  ;;  %v2912_v58 = vpop.f32.mrf.mxu0  ;;  %v3001_v41 = vpop.f32.mrf.mxu1  ;;  %v1931_v61 = vld [vmem:[#allocation2 + $0x150] sm:$0xff] }
 0x473   : > { %v2913_v8 = vadd.f32 %v2912_v58, %v1944_v14 }
 0x475   : > { %v3002_v58 = vadd.f32 %v3001_v41, %v2913_v8 }
 0x477   : > { %v2734_v5 = vpop.f32.mrf.mxu2  ;;  %v2823_v32 = vpop.f32.mrf.mxu3 }
 0x478   : > { %v2735_v62 = vadd.f32 %v2734_v5, %v1943_v34  ;;  %v2822_v34 = vadd.f32 %v2821_v42, %v2733_v47 }
 0x47a   : > { %4555 = vmatpush.bf16.xpose.msra.mxu3 %v4439_v29  ;;  %v2915_v38 = vpop.f32.mrf.mxu0  ;;  %v3004_v28 = vpop.f32.mrf.mxu1  ;;  %v2730_v29 = vadd.f32 %v2729_v17, %v1935_v49 }
 0x47b   : > { %v2916_v40 = vadd.f32 %v2915_v38, %v1948_v51  ;;  %v2824_v38 = vadd.f32 %v2823_v32, %v2735_v62  ;;  %v1928_v51 = vld [vmem:[#allocation2 + $0x138] sm:$0xff]  ;;  %v2906_v32 = vadd.f32 %v11573_v6, %v1932_v19 }
 0x47c   : > { %2776 = vmatmul.bf16.gmra.mxu2 %v14746_v12  ;;  %2865 = vmatmul.bf16.gmra.mxu3 %v14747_v30  ;;  %v2903_v42 = vadd.f32 %v11561_v16, %v1928_v51 }
 0x47d   : > { %2954 = vmatmul.bf16.gmra.mxu0 %v14746_v12  ;;  %3043 = vmatmul.bf16.gmra.mxu1 %v14747_v30  ;;  %v3005_v12 = vadd.f32 %v3004_v28, %v2916_v40  ;;  %v2819_v28 = vadd.f32 %v11593_v13, %v2730_v29  ;;  %v11625_v14 = vpack.c.bf16 %v3002_v58, %v2824_v38 }
 0x47e   : > { %v2995_v46 = vadd.f32 %v11575_v27, %v2906_v32  ;;  %v1963_v32 = vld [vmem:[#allocation2 + $0x250] sm:$0xff] }
 0x47f   : > { %v2737_v45 = vpop.f32.mrf.mxu2  ;;  %v2826_v56 = vpop.f32.mrf.mxu3  ;;  %v4072_v16 = vunpack.c.l.b16 %v11625_v14 }
 0x480   : > { %v2738_v25 = vadd.f32 %v2737_v45, %v1947_v39  ;;  %v2728_v39 = vadd.f32 %v11583_v59, %v1931_v61  ;;  %v2908_v45 = vadd.f32 %v11587_v37, %v1936_v0  ;;  %v3000_v59 = vadd.f32 %v11595_v43, %v2911_v2  ;;  %v1959_v2 = vld [vmem:[#allocation2 + $0x230] sm:$0xff] }
 0x482   : > { %4556 = vmatpush.bf16.xpose.msra.mxu3 %v4438_v22  ;;  %v2917_v9 = vpop.f32.mrf.mxu0  ;;  %v3006_v15 = vpop.f32.mrf.mxu1  ;;  %v2827_v7 = vadd.f32 %v2826_v56, %v2738_v25  ;;  %v1927_v22 = vld [vmem:[#allocation2 + $0x130] sm:$0xff]  ;;  %v2817_v41 = vadd.f32 %v11585_v53, %v2728_v39  ;;  %v11632_v6 = vpack.c.bf16 %v3000_v59, %v2822_v34 }
 0x483   : > { %v2918_v36 = vadd.f32 %v2917_v9, %v1952_v57  ;;  %v2725_v25 = vadd.f32 %v11569_v44, %v1927_v22  ;;  %v1955_v57 = vld [vmem:[#allocation2 + $0x210] sm:$0xff]  ;;  %v2997_v44 = vadd.f32 %v11589_v52, %v2908_v45  ;;  %v2992_v52 = vadd.f32 %v11563_v60, %v2903_v42 }
 0x484   : > { %v11619_v56 = vpack.c.bf16 %v3005_v12, %v2827_v7  ;;  %v11642_v63 = vpack.c.bf16 %v2995_v46, %v2817_v41  ;;  %v4071_v4 = vunpack.c.l.b16 %v11632_v6  ;;  %v8048_v60 = vld [vmem:[%s14458_s1 + $0x10] sm:$0xf]  ;;  %v4067_v45 = vunpack.c.l.b16 %v11565_v11 }
 0x485   : > { %v3007_v17 = vadd.f32 %v3006_v15, %v2918_v36  ;;  %v2814_v49 = vadd.f32 %v11571_v35, %v2725_v25  ;;  %v11638_v47 = vpack.c.bf16 %v2997_v44, %v2819_v28  ;;  %v1960_v35 = vld [vmem:[#allocation2 + $0x238] sm:$0xff] }
 0x486   : > { %v4073_v13 = vunpack.c.l.b16 %v11619_v56  ;;  %v4097_v29 = vpack.c.b16 %v4072_v16, %v4071_v4  ;;  %v8508_v16 = vld [vmem:[%s14458_s1 + $0x24] sm:$0xf0] }
 0x487   : > { %v2739_v54 = vpop.f32.mrf.mxu2  ;;  %v2828_v5 = vpop.f32.mrf.mxu3  ;;  %v11645_v27 = vpack.c.bf16 %v2992_v52, %v2814_v49  ;;  %v4070_v7 = vunpack.c.l.b16 %v11638_v47  ;;  %v1972_v52 = vld [vmem:[#allocation2 + $0x298] sm:$0xff] }
 0x488   : > { %v2740_v30 = vadd.f32 %v2739_v54, %v1951_v26  ;;  %v8506_v54 = vld [vmem:[%s14458_s1 + $0x14] sm:$0xf0] }
 0x489   : > { %v4068_v12 = vunpack.c.l.b16 %v11645_v27  ;;  %v8049_v39 = vor.u32 %v8506_v54, %v8048_v60 }
 0x48a   : > { %4557 = vmatpush.bf16.xpose.msra.mxu3 %v4437_v23  ;;  %v2829_v55 = vadd.f32 %v2828_v5, %v2740_v30  ;;  %v2920_v23 = vpop.f32.mrf.mxu0  ;;  %v3009_v1 = vpop.f32.mrf.mxu1  ;;  %v4069_v5 = vunpack.c.l.b16 %v11642_v63 }
 0x48b   : > { %v2921_v9 = vadd.f32 %v2920_v23, %v1956_v21  ;;  %v1964_v21 = vld [vmem:[#allocation2 + $0x258] sm:$0xff] }
 0x48c   : > { %v11627_v37 = vpack.c.bf16 %v3007_v17, %v2829_v55  ;;  %3345 = vmatmul.bf16.vlgmr.msrb.gmra.mxu2 %v8045_v18  ;;  %3434 = vmatmul.bf16.vlgmr.msrb.gmra.mxu3 %v8045_v18  ;;  %v4096_v18 = vpack.c.b16 %v4070_v7, %v4069_v5  ;;  %v5164_v7 = vunpack.c.h.b16 %v11625_v14  ;;  %v5161_v14 = vunpack.c.h.b16 %v11642_v63  ;;  %v1980_v63 = vld [vmem:[#allocation2 + $0x2d8] sm:$0xff] }
 0x48d   : > { %v3010_v15 = vadd.f32 %v3009_v1, %v2921_v9  ;;  %v4095_v1 = vpack.c.b16 %v4068_v12, %v4067_v45  ;;  %v8056_v12 = vld [vmem:[%s14458_s1 + $0x30] sm:$0xf] }
 0x48e   : > { %v4074_v43 = vunpack.c.l.b16 %v11627_v37 }
 0x48f   : > { %v2742_v62 = vpop.f32.mrf.mxu2  ;;  %v2831_v40 = vpop.f32.mrf.mxu3 }
 0x490   : > { %v2743_v53 = vadd.f32 %v2742_v62, %v1955_v57  ;;  %v4098_v26 = vpack.c.b16 %v4074_v43, %v4073_v13 }
 0x492   : > { %v2832_v61 = vadd.f32 %v2831_v40, %v2743_v53  ;;  %v2922_v0 = vpop.f32.mrf.mxu0  ;;  %v3011_v8 = vpop.f32.mrf.mxu1  ;;  %4123 = vmatpush.bf16.msrb.mxu0 %v4098_v26  ;;  %v8052_v40 = vld [vmem:[%s14458_s1 + $0x20] sm:$0xf] }
 0x493   : > { %v2923_v22 = vadd.f32 %v2922_v0, %v1960_v35  ;;  %v8053_v4 = vor.u32 %v8508_v16, %v8052_v40  ;;  %v1987_v16 = vld [vmem:[#allocation2 + $0x310] sm:$0xff] }
 0x494   : > { %v3097_v36 = vpack.c.bf16 %v3010_v15, %v2832_v61 }
 0x495   : > { %v3012_v34 = vadd.f32 %v3011_v8, %v2923_v22  ;;  %v5165_v8 = vunpack.c.h.b16 %v11619_v56 }
 0x496   : > { %4124 = vmatpush.bf16.msrb.mxu0 %v4097_v29  ;;  %v4075_v28 = vunpack.c.l.b16 %v3097_v36  ;;  %v5167_v9 = vunpack.c.h.b16 %v3097_v36  ;;  %v1971_v36 = vld [vmem:[#allocation2 + $0x290] sm:$0xff] }
 0x497   : > { %v2744_v19 = vpop.f32.mrf.mxu2  ;;  %v2833_v38 = vpop.f32.mrf.mxu3 }
 0x498   : > { %v2745_v30 = vadd.f32 %v2744_v19, %v1959_v2  ;;  %v5163_v2 = vunpack.c.h.b16 %v11632_v6 }
 0x49a   : > { %v2834_v51 = vadd.f32 %v2833_v38, %v2745_v30  ;;  %v2925_v58 = vpop.f32.mrf.mxu0  ;;  %v3014_v17 = vpop.f32.mrf.mxu1  ;;  %4125 = vmatpush.bf16.msrb.mxu0 %v4096_v18  ;;  %v5189_v5 = vpack.c.b16 %v5164_v7, %v5163_v2  ;;  %v5159_v30 = vunpack.c.h.b16 %v11565_v11 }
 0x49b   : > { %v2926_v55 = vadd.f32 %v2925_v58, %v1964_v21 }
 0x49c   : > { %v3098_v23 = vpack.c.bf16 %v3012_v34, %v2834_v51  ;;  %3350 = vmatmul.bf16.gmra.mxu2 %v8049_v39  ;;  %3439 = vmatmul.bf16.gmra.mxu3 %v8049_v39 }
 0x49d   : > { %v3015_v25 = vadd.f32 %v3014_v17, %v2926_v55  ;;  %v1979_v17 = vld [vmem:[#allocation2 + $0x2d0] sm:$0xff] }
 0x49e   : > { %v4076_v59 = vunpack.c.l.b16 %v3098_v23  ;;  %v5168_v42 = vunpack.c.h.b16 %v3098_v23  ;;  %4126 = vmatpush.bf16.msrb.mxu0 %v4095_v1 }
 0x49f   : > { %v2747_v41 = vpop.f32.mrf.mxu2  ;;  %v2836_v15 = vpop.f32.mrf.mxu3 }
 0x4a0   : > { %v2748_v57 = vadd.f32 %v2747_v41, %v1963_v32  ;;  %v11657_v44 = vpack.c.b16 %v4076_v59, %v4075_v28  ;;  %v11659_v13 = vpack.c.b16 %v5168_v42, %v5167_v9  ;;  %v8060_v9 = vld [vmem:[%s14458_s1 + $0x40] sm:$0xf]  ;;  %v8512_v59 = vld [vmem:[%s14458_s1 + $0x44] sm:$0xf0]  ;;  %v1988_v41 = vld [vmem:[#allocation2 + $0x318] sm:$0xff] }
 0x4a2   : > { %14748 = vst [vmem:[#allocation21_spill] sm:$0xff] %v11657_v44  ;;  %v2837_v43 = vadd.f32 %v2836_v15, %v2748_v57  ;;  %v11661_v49 = vpop.f32.mrf.mxu0  ;;  %v11663_v46 = vpop.f32.mrf.mxu1  ;;  %4127 = vmatpush.bf16.msrb.mxu0 %v11557_v10  ;;  %v5166_v10 = vunpack.c.h.b16 %v11627_v37  ;;  %v8061_v15 = vor.u32 %v8512_v59, %v8060_v9  ;;  %v2016_v9 = vld [vmem:[#allocation2 + $0x3f8] sm:$0xff] }
 0x4a3   : > { %14749 = vst [vmem:[#allocation27_spill] sm:$0xff] %v11659_v13  ;;  %v1991_v13 = vld [vmem:[#allocation2 + $0x330] sm:$0xff]  ;;  %v1996_v44 = vld [vmem:[#allocation2 + $0x358] sm:$0xff] }
 0x4a4   : > { %v11666_v62 = vpack.c.bf16 %v3015_v25, %v2837_v43  ;;  %v5190_v29 = vpack.c.b16 %v5166_v10, %v5165_v8 }
 0x4a6   : > { %14750 = vst [vmem:[#allocation28_spill] sm:$0xff] %v11666_v62  ;;  %4128 = vmatpush.bf16.msrb.mxu0 %v11543_v33 }
 0x4a7   : > { %v11675_v53 = vpop.f32.mrf.mxu2  ;;  %v11677_v26 = vpop.f32.mrf.mxu3 }
 0x4aa   : > { %v2930_v61 = vpop.f32.mrf.mxu0  ;;  %v3019_v0 = vpop.f32.mrf.mxu1  ;;  %4129 = vmatpush.bf16.msrb.mxu0 %v11520_v3  ;;  %v5162_v3 = vunpack.c.h.b16 %v11638_v47  ;;  %v8510_v47 = vld [vmem:[%s14458_s1 + $0x34] sm:$0xf0] }
 0x4ab   : > { %v2931_v35 = vadd.f32 %v2930_v61, %v1972_v52  ;;  %v8057_v39 = vor.u32 %v8510_v47, %v8056_v12 }
 0x4ac   : > { %3355 = vmatmul.bf16.gmra.mxu2 %v8053_v4  ;;  %3444 = vmatmul.bf16.gmra.mxu3 %v8053_v4  ;;  %v5188_v6 = vpack.c.b16 %v5162_v3, %v5161_v14 }
 0x4ad   : > { %v3020_v33 = vadd.f32 %v3019_v0, %v2931_v35 }
 0x4ae   : > { %4130 = vmatpush.bf16.msrb.mxu0 %v11496_v48  ;;  %v5160_v48 = vunpack.c.h.b16 %v11645_v27 }
 0x4af   : > { %v2752_v60 = vpop.f32.mrf.mxu2  ;;  %v2841_v37 = vpop.f32.mrf.mxu3 }
 0x4b0   : > { %v2753_v54 = vadd.f32 %v2752_v60, %v1971_v36  ;;  %v5187_v45 = vpack.c.b16 %v5160_v48, %v5159_v30 }
 0x4b2   : > { %5215 = vmatpush.bf16.msra.mxu0 %v5190_v29  ;;  %v2842_v56 = vadd.f32 %v2841_v37, %v2753_v54  ;;  %v11686_v22 = vpop.f32.mrf.mxu0  ;;  %v11688_v19 = vpop.f32.mrf.mxu1 }
 0x4b4   : > { %v11691_v38 = vpack.c.bf16 %v3020_v33, %v2842_v56 }
 0x4b6   : > { %5216 = vmatpush.bf16.msra.mxu0 %v5189_v5  ;;  %14751 = vst [vmem:[#allocation29_spill] sm:$0xff] %v11691_v38 }
 0x4b7   : > { %v11701_v21 = vpop.f32.mrf.mxu2  ;;  %v11703_v18 = vpop.f32.mrf.mxu3 }
 0x4ba   : > { %5217 = vmatpush.bf16.msra.mxu0 %v5188_v6  ;;  %v2935_v27 = vpop.f32.mrf.mxu0  ;;  %v3024_v34 = vpop.f32.mrf.mxu1 }
 0x4bb   : > { %v2936_v51 = vadd.f32 %v2935_v27, %v1980_v63  ;;  %v8064_v63 = vld [vmem:[%s14458_s1 + $0x50] sm:$0xf] }
 0x4bc   : > { %3360 = vmatmul.bf16.gmra.mxu2 %v8057_v39  ;;  %3449 = vmatmul.bf16.gmra.mxu3 %v8057_v39  ;;  %v8514_v39 = vld [vmem:[%s14458_s1 + $0x54] sm:$0xf0] }
 0x4bd   : > { %v3025_v58 = vadd.f32 %v3024_v34, %v2936_v51  ;;  %v2011_v34 = vld [vmem:[#allocation2 + $0x3d0] sm:$0xff] }
 0x4be   : > { %5218 = vmatpush.bf16.msra.mxu0 %v5187_v45  ;;  %v8065_v45 = vor.u32 %v8514_v39, %v8064_v63 }
 0x4bf   : > { %v2757_v55 = vpop.f32.mrf.mxu2  ;;  %v2846_v23 = vpop.f32.mrf.mxu3 }
 0x4c0   : > { %v2758_v11 = vadd.f32 %v2757_v55, %v1979_v17  ;;  %v2007_v17 = vld [vmem:[#allocation2 + $0x3b0] sm:$0xff]  ;;  %v2012_v55 = vld [vmem:[#allocation2 + $0x3d8] sm:$0xff] }
 0x4c2   : > { %5219 = vmatpush.bf16.msra.mxu0 %v11559_v20  ;;  %v2847_v1 = vadd.f32 %v2846_v23, %v2758_v11  ;;  %v11706_v25 = vpop.f32.mrf.mxu0  ;;  %v11708_v32 = vpop.f32.mrf.mxu1  ;;  %v2003_v23 = vld [vmem:[#allocation2 + $0x390] sm:$0xff] }
 0x4c4   : > { %v11711_v28 = vpack.c.bf16 %v3025_v58, %v2847_v1  ;;  %v2008_v1 = vld [vmem:[#allocation2 + $0x3b8] sm:$0xff] }
 0x4c6   : > { %5220 = vmatpush.bf16.msra.mxu0 %v11545_v31  ;;  %14752 = vst [vmem:[#allocation30_spill] sm:$0xff] %v11711_v28 }
 0x4c7   : > { %v11719_v42 = vpop.f32.mrf.mxu2  ;;  %v11721_v20 = vpop.f32.mrf.mxu3 }
 0x4ca   : > { %5221 = vmatpush.bf16.msra.mxu0 %v11522_v24  ;;  %v2940_v57 = vpop.f32.mrf.mxu0  ;;  %v3029_v31 = vpop.f32.mrf.mxu1 }
 0x4cb   : > { %v2941_v43 = vadd.f32 %v2940_v57, %v1988_v41  ;;  %v1999_v41 = vld [vmem:[#allocation2 + $0x370] sm:$0xff] }
 0x4cc   : > { %3365 = vmatmul.bf16.gmra.mxu2 %v8061_v15  ;;  %3454 = vmatmul.bf16.gmra.mxu3 %v8061_v15 }
 0x4cd   : > { %v3030_v40 = vadd.f32 %v3029_v31, %v2941_v43  ;;  %v2004_v31 = vld [vmem:[#allocation2 + $0x398] sm:$0xff] }
 0x4ce   : > { %5222 = vmatpush.bf16.msra.mxu0 %v11498_v50 }
 0x4cf   : > { %v2762_v52 = vpop.f32.mrf.mxu2  ;;  %v2851_v4 = vpop.f32.mrf.mxu3 }
 0x4d0   : > { %v2763_v10 = vadd.f32 %v2762_v52, %v1987_v16  ;;  %v1995_v16 = vld [vmem:[#allocation2 + $0x350] sm:$0xff]  ;;  %v2000_v52 = vld [vmem:[#allocation2 + $0x378] sm:$0xff] }
 0x4d2   : > { %v2852_v61 = vadd.f32 %v2851_v4, %v2763_v10  ;;  %v11725_v0 = vpop.f32.mrf.mxu0  ;;  %v11727_v8 = vpop.f32.mrf.mxu1 }
 0x4d4   : > { %v11729_v24 = vpack.c.bf16 %v3030_v40, %v2852_v61  ;;  %v2015_v40 = vld [vmem:[#allocation2 + $0x3f0] sm:$0xff] }
 0x4d7   : > { %v11731_v35 = vpop.f32.mrf.mxu2  ;;  %v11733_v7 = vpop.f32.mrf.mxu3 }
 0x4da   : > { %v11735_v33 = vpop.f32.mrf.mxu0  ;;  %v11737_v50 = vpop.f32.mrf.mxu1 }
 0x4dc   : > { %3370 = vmatmul.bf16.gmra.mxu2 %v8065_v45  ;;  %3459 = vmatmul.bf16.gmra.mxu3 %v8065_v45 }
 0x4df   : > { %v2767_v36 = vpop.f32.mrf.mxu2  ;;  %v11739_v29 = vpop.f32.mrf.mxu3 }
 0x4e0   : > { %v2768_v28 = vadd.f32 %v2767_v36, %v1995_v16  ;;  %v2946_v36 = vadd.f32 %v11735_v33, %v1996_v44  ;;  %v1967_v16 = vld [vmem:[#allocation2 + $0x270] sm:$0xff] }
 0x4e2   : > { %v2947_v2 = vpop.f32.mrf.mxu0  ;;  %v11741_v60 = vpop.f32.mrf.mxu1 }
 0x4e7   : > { %v2769_v37 = vpop.f32.mrf.mxu2  ;;  %v2858_v54 = vpop.f32.mrf.mxu3 }
 0x4e8   : > { %v2770_v63 = vadd.f32 %v2769_v37, %v1999_v41  ;;  %v8068_v37 = vld [vmem:[%s14458_s1 + $0x60] sm:$0xf] }
 0x4ea   : > { %v2950_v3 = vpop.f32.mrf.mxu0  ;;  %v3039_v5 = vpop.f32.mrf.mxu1 }
 0x4ef   : > { %v2772_v56 = vpop.f32.mrf.mxu2  ;;  %v2861_v14 = vpop.f32.mrf.mxu3 }
 0x4f0   : > { %v2773_v43 = vadd.f32 %v2772_v56, %v2003_v23  ;;  %v1992_v56 = vld [vmem:[#allocation2 + $0x338] sm:$0xff] }
 0x4f2   : > { %v2952_v48 = vpop.f32.mrf.mxu0  ;;  %v3041_v6 = vpop.f32.mrf.mxu1 }
 0x4f3   : > { %v2953_v4 = vadd.f32 %v2952_v48, %v2008_v1  ;;  %v2857_v1 = vadd.f32 %v11739_v29, %v2768_v28  ;;  %v1975_v29 = vld [vmem:[#allocation2 + $0x2b0] sm:$0xff] }
 0x4f7   : > { %v2774_v12 = vpop.f32.mrf.mxu2  ;;  %v2863_v47 = vpop.f32.mrf.mxu3 }
 0x4f8   : > { %v2775_v15 = vadd.f32 %v2774_v12, %v2007_v17  ;;  %v2948_v12 = vadd.f32 %v2947_v2, %v2000_v52 }
 0x4fa   : > { %v2955_v30 = vpop.f32.mrf.mxu0  ;;  %v3044_v27 = vpop.f32.mrf.mxu1 }
 0x4fb   : > { %v2956_v57 = vadd.f32 %v2955_v30, %v2012_v55  ;;  %v2862_v30 = vadd.f32 %v2861_v14, %v2773_v43  ;;  %v3042_v55 = vadd.f32 %v3041_v6, %v2953_v4  ;;  %v1983_v14 = vld [vmem:[#allocation2 + $0x2f0] sm:$0xff]  ;;  %v1976_v43 = vld [vmem:[#allocation2 + $0x2b8] sm:$0xff] }
 0x4fc   : > { %v2760_v33 = vadd.f32 %v11719_v42, %v1983_v14 }
 0x4fd   : > { %v3045_v62 = vadd.f32 %v3044_v27, %v2956_v57  ;;  %v2859_v27 = vadd.f32 %v2858_v54, %v2770_v63 }
 0x4fe   : > { %v2849_v52 = vadd.f32 %v11721_v20, %v2760_v33 }
 0x4ff   : > { %v2777_v51 = vpop.f32.mrf.mxu2  ;;  %v2866_v58 = vpop.f32.mrf.mxu3 }
 0x500   : > { %v2778_v11 = vadd.f32 %v2777_v51, %v2011_v34  ;;  %v2951_v34 = vadd.f32 %v2950_v3, %v2004_v31  ;;  %v2864_v51 = vadd.f32 %v2863_v47, %v2775_v15  ;;  %v8516_v3 = vld [vmem:[%s14458_s1 + $0x64] sm:$0xf0]  ;;  %v2765_v47 = vadd.f32 %v11731_v35, %v1991_v13  ;;  %v1984_v35 = vld [vmem:[#allocation2 + $0x2f8] sm:$0xff] }
 0x501   : > { %v8069_v2 = vor.u32 %v8516_v3, %v8068_v37  ;;  %v2938_v31 = vadd.f32 %v11706_v25, %v1984_v35  ;;  %v2933_v25 = vadd.f32 %v11686_v22, %v1976_v43  ;;  %v14753_v3 = vld [vmem:[#allocation30_spill] sm:$0xff]  ;;  %v14756_v43 = vld [vmem:[#allocation21_spill] sm:$0xff] }
 0x502   : > { %v2957_v59 = vpop.f32.mrf.mxu0  ;;  %v2867_v10 = vadd.f32 %v2866_v58, %v2778_v11  ;;  %v3046_v17 = vpop.f32.mrf.mxu1  ;;  %v3040_v6 = vadd.f32 %v3039_v5, %v2951_v34  ;;  %v2854_v54 = vadd.f32 %v11733_v7, %v2765_v47  ;;  %v3035_v5 = vadd.f32 %v11737_v50, %v2946_v36 }
 0x503   : > { %v2958_v61 = vadd.f32 %v2957_v59, %v2016_v9  ;;  %3375 = vmatmul.bf16.gmra.mxu2 %v8069_v2  ;;  %3464 = vmatmul.bf16.gmra.mxu3 %v8069_v2  ;;  %v3037_v9 = vadd.f32 %v11741_v60, %v2948_v12  ;;  %v4081_v47 = vunpack.c.l.b16 %v14753_v3 }
 0x504   : > { %v11749_v23 = vpack.c.bf16 %v3045_v62, %v2867_v10  ;;  %v11759_v62 = vpack.c.bf16 %v3042_v55, %v2864_v51  ;;  %v11766_v59 = vpack.c.bf16 %v3040_v6, %v2862_v30  ;;  %v11784_v7 = vpack.c.bf16 %v3035_v5, %v2857_v1  ;;  %v8518_v55 = vld [vmem:[%s14458_s1 + $0x74] sm:$0xf0] }
 0x505   : > { %v3047_v48 = vadd.f32 %v3046_v17, %v2958_v61  ;;  %v11777_v41 = vpack.c.bf16 %v3037_v9, %v2859_v27  ;;  %v3022_v17 = vadd.f32 %v11688_v19, %v2933_v25 }
 0x506   : > { %v4089_v44 = vunpack.c.l.b16 %v11749_v23  ;;  %v4088_v60 = vunpack.c.l.b16 %v11759_v62  ;;  %v4087_v50 = vunpack.c.l.b16 %v11766_v59  ;;  %v4085_v63 = vunpack.c.l.b16 %v11784_v7 }
 0x507   : > { %v2779_v39 = vpop.f32.mrf.mxu2  ;;  %v2868_v45 = vpop.f32.mrf.mxu3  ;;  %v4086_v10 = vunpack.c.l.b16 %v11777_v41 }
 0x508   : > { %v2780_v38 = vadd.f32 %v2779_v39, %v2015_v40  ;;  %v2755_v40 = vadd.f32 %v11701_v21, %v1975_v29  ;;  %v4105_v61 = vpack.c.b16 %v4088_v60, %v4087_v50  ;;  %v1968_v39 = vld [vmem:[#allocation2 + $0x278] sm:$0xff]  ;;  %v5181_v60 = vunpack.c.h.b16 %v11749_v23 }
 0x509   : > { %v4104_v30 = vpack.c.b16 %v4086_v10, %v4085_v63 }
 0x50a   : > { %v2869_v58 = vadd.f32 %v2868_v45, %v2780_v38  ;;  %v2943_v38 = vadd.f32 %v11725_v0, %v1992_v56  ;;  %v2750_v45 = vadd.f32 %v11675_v53, %v1967_v16  ;;  %v2844_v21 = vadd.f32 %v11703_v18, %v2755_v40  ;;  %v8072_v56 = vld [vmem:[%s14458_s1 + $0x70] sm:$0xf] }
 0x50b   : > { %v4083_v53 = vunpack.c.l.b16 %v11729_v24  ;;  %v8073_v19 = vor.u32 %v8518_v55, %v8072_v56 }
 0x50c   : > { %v11761_v11 = vpack.c.bf16 %v3047_v48, %v2869_v58  ;;  %v3032_v42 = vadd.f32 %v11727_v8, %v2943_v38  ;;  %v3027_v8 = vadd.f32 %v11708_v32, %v2938_v31  ;;  %v2928_v32 = vadd.f32 %v11661_v49, %v1968_v39  ;;  %v14754_v38 = vld [vmem:[#allocation29_spill] sm:$0xff] }
 0x50d   : > { %v2839_v18 = vadd.f32 %v11677_v26, %v2750_v45  ;;  %v11816_v48 = vpack.c.bf16 %v3022_v17, %v2844_v21  ;;  %v4079_v1 = vunpack.c.l.b16 %v14754_v38  ;;  %v8080_v39 = vld [vmem:[%s14458_s1 + $0x90] sm:$0xf]  ;;  %v5173_v21 = vunpack.c.h.b16 %v14753_v3 }
 0x50e   : > { %v4090_v13 = vunpack.c.l.b16 %v11761_v11  ;;  %v11789_v4 = vpack.c.bf16 %v3032_v42, %v2854_v54  ;;  %v11801_v51 = vpack.c.bf16 %v3027_v8, %v2849_v52  ;;  %v3017_v37 = vadd.f32 %v11663_v46, %v2928_v32 }
 0x50f   : > { %v11773_v0 = vpop.f32.mrf.mxu2  ;;  %v11775_v28 = vpop.f32.mrf.mxu3  ;;  %v4080_v14 = vunpack.c.l.b16 %v11816_v48  ;;  %v5182_v29 = vunpack.c.h.b16 %v11761_v11  ;;  %v5180_v42 = vunpack.c.h.b16 %v11759_v62  ;;  %v5179_v11 = vunpack.c.h.b16 %v11766_v59 }
 0x510   : > { %v4106_v15 = vpack.c.b16 %v4090_v13, %v4089_v44  ;;  %v3515_v57 = vmax.f32 %v11773_v0, %v11775_v28  ;;  %v4084_v12 = vunpack.c.l.b16 %v11789_v4  ;;  %v4082_v49 = vunpack.c.l.b16 %v11801_v51  ;;  %v14755_v44 = vld [vmem:[#allocation28_spill] sm:$0xff] }
 0x511   : > { %v11825_v2 = vpack.c.bf16 %v3017_v37, %v2839_v18  ;;  %v4101_v9 = vpack.c.b16 %v4080_v14, %v4079_v1  ;;  %v4077_v13 = vunpack.c.l.b16 %v14755_v44  ;;  %v5198_v50 = vpack.c.b16 %v5182_v29, %v5181_v60  ;;  %v8084_v29 = vld [vmem:[%s14458_s1 + $0xa0] sm:$0xf] }
 0x512   : > { %4212 = vmatpush.bf16.msrb.mxu1 %v4106_v15  ;;  %3516 = vmax.xlane.f32.xlu1 %v3515_v57  ;;  %v4103_v58 = vpack.c.b16 %v4084_v12, %v4083_v53  ;;  %v4102_v27 = vpack.c.b16 %v4082_v49, %v4081_v47  ;;  %v8076_v15 = vld [vmem:[%s14458_s1 + $0x80] sm:$0xf]  ;;  %v8520_v57 = vld [vmem:[%s14458_s1 + $0x84] sm:$0xf0]  ;;  %v5178_v52 = vunpack.c.h.b16 %v11777_v41  ;;  %v5197_v10 = vpack.c.b16 %v5180_v42, %v5179_v11  ;;  %v8522_v41 = vld [vmem:[%s14458_s1 + $0x94] sm:$0xf0] }
 0x513   : > { %3380 = vmatmul.bf16.gmra.mxu2 %v8073_v19  ;;  %3469 = vmatmul.bf16.gmra.mxu3 %v8073_v19  ;;  %v4078_v46 = vunpack.c.l.b16 %v11825_v2  ;;  %v8077_v31 = vor.u32 %v8520_v57, %v8076_v15  ;;  %v5177_v62 = vunpack.c.h.b16 %v11784_v7  ;;  %v5175_v59 = vunpack.c.h.b16 %v11729_v24  ;;  %v14757_v19 = vld [vmem:[#allocation27_spill] sm:$0xff] }
 0x514   : > { %v8081_v24 = vor.u32 %v8522_v41, %v8080_v39  ;;  %v5172_v12 = vunpack.c.h.b16 %v11816_v48  ;;  %v5170_v53 = vunpack.c.h.b16 %v11825_v2  ;;  %v5169_v56 = vunpack.c.h.b16 %v14755_v44  ;;  %v8088_v39 = vld [vmem:[%s14458_s1 + $0xb0] sm:$0xf]  ;;  %v8526_v41 = vld [vmem:[%s14458_s1 + $0xb4] sm:$0xf0] }
 0x515   : > { %v4100_v54 = vpack.c.b16 %v4078_v46, %v4077_v13  ;;  %v5196_v25 = vpack.c.b16 %v5178_v52, %v5177_v62 }
 0x516   : > { %4213 = vmatpush.bf16.msrb.mxu1 %v4105_v61  ;;  %v5176_v61 = vunpack.c.h.b16 %v11789_v4  ;;  %v5174_v4 = vunpack.c.h.b16 %v11801_v51  ;;  %v5192_v55 = vpack.c.b16 %v5170_v53, %v5169_v56 }
 0x517   : > { %v11797_v34 = vpop.f32.mrf.mxu2  ;;  %v11799_v20 = vpop.f32.mrf.mxu3 }
 0x518   : > { %v3518_v22 = vmax.f32 %v11797_v34, %v11799_v20  ;;  %v5195_v45 = vpack.c.b16 %v5176_v61, %v5175_v59 }
 0x51a   : > { %4214 = vmatpush.bf16.msrb.mxu1 %v4104_v30  ;;  %3519 = vmax.xlane.f32.xlu2 %v3518_v22  ;;  %v5194_v30 = vpack.c.b16 %v5174_v4, %v5173_v21  ;;  %v5171_v22 = vunpack.c.h.b16 %v14754_v38  ;;  %v8089_v21 = vor.u32 %v8526_v41, %v8088_v39 }
 0x51c   : > { %v5193_v18 = vpack.c.b16 %v5172_v12, %v5171_v22 }
 0x51e   : > { %4215 = vmatpush.bf16.msrb.mxu1 %v4103_v58 }
 0x51f   : > { %v11821_v26 = vpop.f32.mrf.mxu2  ;;  %v11823_v36 = vpop.f32.mrf.mxu3 }
 0x520   : > { %v3521_v6 = vmax.f32 %v11821_v26, %v11823_v36 }
 0x522   : > { %4216 = vmatpush.bf16.msrb.mxu1 %v4102_v27  ;;  %3522 = vmax.xlane.f32.xlu0 %v3521_v6 }
 0x523   : > { %3385 = vmatmul.bf16.gmra.mxu2 %v8077_v31  ;;  %3474 = vmatmul.bf16.gmra.mxu3 %v8077_v31 }
 0x526   : > { %4217 = vmatpush.bf16.msrb.mxu1 %v4101_v9 }
 0x527   : > { %v11833_v35 = vpop.f32.mrf.mxu2  ;;  %v11835_v33 = vpop.f32.mrf.mxu3 }
 0x528   : > { %v3524_v5 = vmax.f32 %v11833_v35, %v11835_v33 }
 0x52a   : > { %4218 = vmatpush.bf16.msrb.mxu1 %v4100_v54  ;;  %3525 = vmax.xlane.f32.xlu1 %v3524_v5 }
 0x52e   : > { %4219 = vmatpush.bf16.msrb.mxu1 %v14756_v43 }
 0x52f   : > { %v11850_v40 = vpop.f32.mrf.mxu2  ;;  %v11852_v23 = vpop.f32.mrf.mxu3 }
 0x530   : > { %v3527_v16 = vmax.f32 %v11850_v40, %v11852_v23 }
 0x532   : > { %5304 = vmatpush.bf16.msra.mxu1 %v5198_v50  ;;  %3528 = vmax.xlane.f32.xlu2 %v3527_v16 }
 0x533   : > { %3390 = vmatmul.bf16.gmra.mxu2 %v8081_v24  ;;  %3479 = vmatmul.bf16.gmra.mxu3 %v8081_v24 }
 0x536   : > { %5305 = vmatpush.bf16.msra.mxu1 %v5197_v10 }
 0x537   : > { %v11860_v8 = vpop.f32.mrf.mxu2  ;;  %v11862_v63 = vpop.f32.mrf.mxu3 }
 0x538   : > { %v3530_v7 = vmax.f32 %v11860_v8, %v11862_v63 }
 0x53a   : > { %5306 = vmatpush.bf16.msra.mxu1 %v5196_v25  ;;  %3531 = vmax.xlane.f32.xlu0 %v3530_v7 }
 0x53e   : > { %5307 = vmatpush.bf16.msra.mxu1 %v5195_v45 }
 0x53f   : > { %v11876_v32 = vpop.f32.mrf.mxu2  ;;  %v11878_v17 = vpop.f32.mrf.mxu3 }
 0x540   : > { %v3533_v51 = vmax.f32 %v11876_v32, %v11878_v17 }
 0x542   : > { %5308 = vmatpush.bf16.msra.mxu1 %v5194_v30  ;;  %3534 = vmax.xlane.f32.xlu1 %v3533_v51 }
 0x546   : > { %5309 = vmatpush.bf16.msra.mxu1 %v5193_v18 }
 0x547   : > { %v11884_v48 = vpop.f32.mrf.mxu2  ;;  %v11886_v49 = vpop.f32.mrf.mxu3 }
 0x548   : > { %v3536_v58 = vmax.f32 %v11884_v48, %v11886_v49 }
 0x54a   : > { %5310 = vmatpush.bf16.msra.mxu1 %v5192_v55  ;;  %3537 = vmax.xlane.f32.xlu2 %v3536_v58 }
 0x54e   : > { %5311 = vmatpush.bf16.msra.mxu1 %v14757_v19 }
 0x54f   : > { %v11891_v37 = vpop.f32.mrf.mxu2  ;;  %v11893_v3 = vpop.f32.mrf.mxu3 }
 0x550   : > { %v3539_v47 = vmax.f32 %v11891_v37, %v11893_v3 }
 0x552   : > { %3540 = vmax.xlane.f32.xlu2 %v3539_v47 }
 0x557   : > { %v11897_v2 = vpop.f32.mrf.mxu2  ;;  %v11899_v27 = vpop.f32.mrf.mxu3 }
 0x558   : > { %v3542_v25 = vmax.f32 %v11897_v2, %v11899_v27 }
 0x55f   : > { %v11905_v54 = vpop.f32.mrf.mxu2  ;;  %v11907_v5 = vpop.f32.mrf.mxu3 }
 0x560   : > { %v3545_v24 = vmax.f32 %v11905_v54, %v11907_v5 }
 0x567   : > { %v11925_v52 = vpop.f32.mrf.mxu2  ;;  %v11929_v62 = vpop.f32.mrf.mxu3 }
 0x568   : > { %v3548_v47 = vmax.f32 %v11925_v52, %v11929_v62 }
 0x585   : > { %v3517_v14 = vpop.xlane.xlu1 %3516 }
 0x586   : > { %v3611_v6 = vsub.f32 %v11773_v0, %v3517_v14  ;;  %v3612_v38 = vsub.f32 %v11775_v28, %v3517_v14  ;;  %v8524_v0 = vld [vmem:[%s14458_s1 + $0xa4] sm:$0xf0]  ;;  %v11953_v30 = vpop.f32.mrf.mxu3 }
 0x587   : > { %v8085_v57 = vor.u32 %v8524_v0, %v8084_v29 }
 0x588   : > { %v3675_v1 = vmul.f32 1.442695, %v3611_v6  ;;  %v3677_v46 = vmul.f32 1.442695, %v3612_v38 }
 0x589   : > { %3395 = vmatmul.bf16.gmra.mxu2 %v8085_v57  ;;  %3484 = vmatmul.bf16.gmra.mxu3 %v8085_v57 }
 0x58a   : > { %8760 = vpow2.f32 %v3675_v1 }
 0x58b   : > { %8762 = vpow2.f32 %v3677_v46 }
 0x58d   : > { %v3520_v9 = vpop.xlane.xlu2 %3519 }
 0x58e   : > { %v3613_v44 = vsub.f32 %v11797_v34, %v3520_v9  ;;  %v3614_v13 = vsub.f32 %v11799_v20, %v3520_v9  ;;  %v11973_v38 = vpop.f32.mrf.mxu3 }
 0x590   : > { %v11915_v28 = vpop.eup %8760  ;;  %v3679_v60 = vmul.f32 1.442695, %v3613_v44  ;;  %v3681_v15 = vmul.f32 1.442695, %v3614_v13 }
 0x591   : > { %v11917_v34 = vpop.eup %8762 }
 0x592   : > { %8764 = vpow2.f32 %v3679_v60  ;;  %v3803_v20 = vadd.f32 %v11917_v34, %v11915_v28 }
 0x593   : > { %8766 = vpow2.f32 %v3681_v15 }
 0x594   : > { %3804 = vadd.xlane.f32.xlu0 %v3803_v20 }
 0x595   : > { %v3523_v31 = vpop.xlane.xlu0 %3522 }
 0x596   : > { %v3615_v42 = vsub.f32 %v11821_v26, %v3523_v31  ;;  %v3616_v50 = vsub.f32 %v11823_v36, %v3523_v31  ;;  %v11989_v31 = vpop.f32.mrf.mxu3 }
 0x598   : > { %v11923_v43 = vpop.eup %8764  ;;  %v3683_v11 = vmul.f32 1.442695, %v3615_v42  ;;  %v3685_v16 = vmul.f32 1.442695, %v3616_v50 }
 0x599   : > { %v11927_v10 = vpop.eup %8766  ;;  %3400 = vmatmul.bf16.gmra.mxu2 %v8089_v21  ;;  %3489 = vmatmul.bf16.gmra.mxu3 %v8089_v21 }
 0x59a   : > { %8768 = vpow2.f32 %v3683_v11  ;;  %v3806_v61 = vadd.f32 %v11927_v10, %v11923_v43 }
 0x59b   : > { %8770 = vpow2.f32 %v3685_v16 }
 0x59c   : > { %3807 = vadd.xlane.f32.xlu1 %v3806_v61  ;;  %3543 = vmax.xlane.f32.xlu0 %v3542_v25 }
 0x59d   : > { %v3526_v26 = vpop.xlane.xlu1 %3525 }
 0x59e   : > { %v3617_v36 = vsub.f32 %v11833_v35, %v3526_v26  ;;  %v3618_v59 = vsub.f32 %v11835_v33, %v3526_v26  ;;  %v11951_v33 = vpop.f32.mrf.mxu2 }
 0x59f   : > { %v3551_v0 = vmax.f32 %v11951_v33, %v11953_v30 }
 0x5a0   : > { %v11943_v7 = vpop.eup %8768  ;;  %v3687_v4 = vmul.f32 1.442695, %v3617_v36  ;;  %v3689_v45 = vmul.f32 1.442695, %v3618_v59 }
 0x5a1   : > { %v11947_v12 = vpop.eup %8770 }
 0x5a2   : > { %8772 = vpow2.f32 %v3687_v4  ;;  %v3809_v35 = vadd.f32 %v11947_v12, %v11943_v7 }
 0x5a3   : > { %8774 = vpow2.f32 %v3689_v45 }
 0x5a4   : > { %3810 = vadd.xlane.f32.xlu1 %v3809_v35  ;;  %3546 = vmax.xlane.f32.xlu0 %v3545_v24 }
 0x5a5   : > { %v3529_v22 = vpop.xlane.xlu2 %3528 }
 0x5a6   : > { %v3619_v51 = vsub.f32 %v11850_v40, %v3529_v22  ;;  %v3620_v53 = vsub.f32 %v11852_v23, %v3529_v22  ;;  %v11965_v14 = vpop.f32.mrf.mxu2  ;;  %v8092_v40 = vld [vmem:[%s14458_s1 + $0xc0] sm:$0xf]  ;;  %v8528_v23 = vld [vmem:[%s14458_s1 + $0xc4] sm:$0xf0]  ;;  %v12015_v22 = vpop.f32.mrf.mxu3 }
 0x5a7   : > { %v8093_v9 = vor.u32 %v8528_v23, %v8092_v40  ;;  %v3554_v25 = vmax.f32 %v11965_v14, %v11973_v38 }
 0x5a8   : > { %v11957_v18 = vpop.eup %8772  ;;  %v3691_v56 = vmul.f32 1.442695, %v3619_v51  ;;  %v3693_v55 = vmul.f32 1.442695, %v3620_v53 }
 0x5a9   : > { %v11959_v58 = vpop.eup %8774  ;;  %3405 = vmatmul.bf16.gmra.mxu2 %v8093_v9  ;;  %3494 = vmatmul.bf16.gmra.mxu3 %v8093_v9 }
 0x5aa   : > { %8776 = vpow2.f32 %v3691_v56  ;;  %v3812_v19 = vadd.f32 %v11959_v58, %v11957_v18 }
 0x5ab   : > { %8778 = vpow2.f32 %v3693_v55 }
 0x5ac   : > { %3813 = vadd.xlane.f32.xlu2 %v3812_v19  ;;  %3549 = vmax.xlane.f32.xlu1 %v3548_v47 }
 0x5ad   : > { %v3532_v6 = vpop.xlane.xlu0 %3531 }
 0x5ae   : > { %v3621_v1 = vsub.f32 %v11860_v8, %v3532_v6  ;;  %v3622_v46 = vsub.f32 %v11862_v63, %v3532_v6  ;;  %v11987_v20 = vpop.f32.mrf.mxu2  ;;  %v12027_v23 = vpop.f32.mrf.mxu3 }
 0x5af   : > { %v3557_v24 = vmax.f32 %v11987_v20, %v11989_v31 }
 0x5b0   : > { %v11977_v44 = vpop.eup %8776  ;;  %v3695_v13 = vmul.f32 1.442695, %v3621_v1  ;;  %v3697_v29 = vmul.f32 1.442695, %v3622_v46 }
 0x5b1   : > { %v11981_v60 = vpop.eup %8778 }
 0x5b2   : > { %8780 = vpow2.f32 %v3695_v13  ;;  %v3815_v15 = vadd.f32 %v11981_v60, %v11977_v44 }
 0x5b3   : > { %8782 = vpow2.f32 %v3697_v29 }
 0x5b4   : > { %3816 = vadd.xlane.f32.xlu2 %v3815_v15  ;;  %3552 = vmax.xlane.f32.xlu1 %v3551_v0 }
 0x5b5   : > { %v3535_v8 = vpop.xlane.xlu1 %3534 }
 0x5b6   : > { %v3623_v63 = vsub.f32 %v11876_v32, %v3535_v8  ;;  %v3624_v57 = vsub.f32 %v11878_v17, %v3535_v8  ;;  %v8096_v32 = vld [vmem:[%s14458_s1 + $0xd0] sm:$0xf]  ;;  %v8530_v17 = vld [vmem:[%s14458_s1 + $0xd4] sm:$0xf0]  ;;  %v12013_v35 = vpop.f32.mrf.mxu2  ;;  %v12049_v8 = vpop.f32.mrf.mxu3 }
 0x5b7   : > { %v8097_v39 = vor.u32 %v8530_v17, %v8096_v32  ;;  %v3560_v1 = vmax.f32 %v12013_v35, %v12015_v22 }
 0x5b8   : > { %v11991_v42 = vpop.eup %8780  ;;  %v3699_v50 = vmul.f32 1.442695, %v3623_v63  ;;  %v3701_v11 = vmul.f32 1.442695, %v3624_v57 }
 0x5b9   : > { %v11993_v16 = vpop.eup %8782  ;;  %3410 = vmatmul.bf16.gmra.mxu2 %v8097_v39  ;;  %3499 = vmatmul.bf16.gmra.mxu3 %v8097_v39 }
 0x5ba   : > { %8784 = vpow2.f32 %v3699_v50  ;;  %v3818_v61 = vadd.f32 %v11993_v16, %v11991_v42 }
 0x5bb   : > { %8786 = vpow2.f32 %v3701_v11 }
 0x5bc   : > { %3819 = vadd.xlane.f32.xlu0 %v3818_v61  ;;  %3555 = vmax.xlane.f32.xlu2 %v3554_v25 }
 0x5bd   : > { %v3538_v26 = vpop.xlane.xlu2 %3537 }
 0x5be   : > { %v3625_v36 = vsub.f32 %v11884_v48, %v3538_v26  ;;  %v3626_v59 = vsub.f32 %v11886_v49, %v3538_v26  ;;  %v12025_v40 = vpop.f32.mrf.mxu2  ;;  %v12055_v50 = vpop.f32.mrf.mxu3 }
 0x5bf   : > { %v3563_v13 = vmax.f32 %v12025_v40, %v12027_v23 }
 0x5c0   : > { %v12007_v41 = vpop.eup %8784  ;;  %v3703_v4 = vmul.f32 1.442695, %v3625_v36  ;;  %v3705_v45 = vmul.f32 1.442695, %v3626_v59 }
 0x5c1   : > { %v12011_v21 = vpop.eup %8786 }
 0x5c2   : > { %8788 = vpow2.f32 %v3703_v4  ;;  %v3821_v48 = vadd.f32 %v12011_v21, %v12007_v41 }
 0x5c3   : > { %8790 = vpow2.f32 %v3705_v45 }
 0x5c4   : > { %3822 = vadd.xlane.f32.xlu0 %v3821_v48  ;;  %3558 = vmax.xlane.f32.xlu2 %v3557_v24 }
 0x5c5   : > { %v3541_v49 = vpop.xlane.xlu2 %3540 }
 0x5c6   : > { %v3627_v51 = vsub.f32 %v11891_v37, %v3541_v49  ;;  %v3628_v53 = vsub.f32 %v11893_v3, %v3541_v49  ;;  %v8100_v37 = vld [vmem:[%s14458_s1 + $0xe0] sm:$0xf]  ;;  %v8532_v3 = vld [vmem:[%s14458_s1 + $0xe4] sm:$0xf0]  ;;  %v12047_v15 = vpop.f32.mrf.mxu2  ;;  %v12063_v24 = vpop.f32.mrf.mxu3 }
 0x5c7   : > { %v8101_v46 = vor.u32 %v8532_v3, %v8100_v37  ;;  %v3566_v63 = vmax.f32 %v12047_v15, %v12049_v8 }
 0x5c8   : > { %v12021_v56 = vpop.eup %8788  ;;  %v3707_v55 = vmul.f32 1.442695, %v3627_v51  ;;  %v3709_v19 = vmul.f32 1.442695, %v3628_v53 }
 0x5c9   : > { %v12023_v47 = vpop.eup %8790  ;;  %3415 = vmatmul.bf16.gmra.mxu2 %v8101_v46  ;;  %3504 = vmatmul.bf16.gmra.mxu3 %v8101_v46 }
 0x5ca   : > { %8792 = vpow2.f32 %v3707_v55  ;;  %v3824_v6 = vadd.f32 %v12023_v47, %v12021_v56 }
 0x5cb   : > { %8794 = vpow2.f32 %v3709_v19 }
 0x5cc   : > { %3825 = vadd.xlane.f32.xlu1 %v3824_v6  ;;  %3561 = vmax.xlane.f32.xlu0 %v3560_v1 }
 0x5ce   : > { %v12053_v57 = vpop.f32.mrf.mxu2 }
 0x5cf   : > { %v3569_v11 = vmax.f32 %v12053_v57, %v12055_v50 }
 0x5d0   : > { %v12039_v9 = vpop.eup %8792 }
 0x5d1   : > { %v12043_v29 = vpop.eup %8794 }
 0x5d2   : > { %v3827_v0 = vadd.f32 %v12043_v29, %v12039_v9 }
 0x5d4   : > { %3828 = vadd.xlane.f32.xlu1 %v3827_v0  ;;  %3564 = vmax.xlane.f32.xlu0 %v3563_v13 }
 0x5d6   : > { %v12061_v45 = vpop.f32.mrf.mxu2 }
 0x5dc   : > { %3567 = vmax.xlane.f32.xlu1 %v3566_v63  ;;  %v8104_v63 = vld [vmem:[%s14458_s1 + $0xf0] sm:$0xf] }
 0x5e4   : > { %3570 = vmax.xlane.f32.xlu1 %v3569_v11  ;;  %v8534_v11 = vld [vmem:[%s14458_s1 + $0xf4] sm:$0xf0] }
 0x607   : > { %v3805_v61 = vpop.xlane.xlu0 %3804 }
 0x608   : > { %8796 = vrcp.f32 %v3805_v61  ;;  %v8105_v61 = vor.u32 %v8534_v11, %v8104_v63 }
 0x60a   : > { %3420 = vmatmul.bf16.gmra.mxu2 %v8105_v61  ;;  %3509 = vmatmul.bf16.gmra.mxu3 %v8105_v61 }
 0x60c   : > { %v12081_v0 = vpop.f32.mrf.mxu3 }
 0x60e   : > { %v8797_v39 = vpop.eup %8796 }
 0x60f   : > { %v3808_v25 = vpop.xlane.xlu1 %3807  ;;  %v3544_v32 = vpop.xlane.xlu0 %3543  ;;  %v3931_v48 = vmul.f32 %v8797_v39, %v11915_v28  ;;  %v3932_v49 = vmul.f32 %v8797_v39, %v11917_v34 }
 0x610   : > { %8798 = vrcp.f32 %v3808_v25  ;;  %v3629_v17 = vsub.f32 %v11897_v2, %v3544_v32  ;;  %v3630_v26 = vsub.f32 %v11899_v27, %v3544_v32 }
 0x612   : > { %v3711_v36 = vmul.f32 1.442695, %v3629_v17  ;;  %v3713_v59 = vmul.f32 1.442695, %v3630_v26 }
 0x614   : > { %8800 = vpow2.f32 %v3711_v36 }
 0x615   : > { %8802 = vpow2.f32 %v3713_v59 }
 0x616   : > { %v8799_v4 = vpop.eup %8798 }
 0x617   : > { %v3933_v51 = vmul.f32 %v8799_v4, %v11923_v43  ;;  %v3934_v2 = vmul.f32 %v8799_v4, %v11927_v10  ;;  %v3811_v53 = vpop.xlane.xlu1 %3810  ;;  %v3547_v27 = vpop.xlane.xlu0 %3546 }
 0x618   : > { %v3631_v55 = vsub.f32 %v11905_v54, %v3547_v27  ;;  %v3632_v19 = vsub.f32 %v11907_v5, %v3547_v27  ;;  %v12079_v10 = vpop.f32.mrf.mxu2 }
 0x619   : > { %v3995_v6 = vpack.c.bf16 %v3933_v51, %v3931_v48  ;;  %v3996_v1 = vpack.c.bf16 %v3934_v2, %v3932_v49  ;;  %v3575_v61 = vmax.f32 %v12079_v10, %v12081_v0 }
 0x61a   : > { %v12071_v37 = vpop.eup %8800  ;;  %v3715_v3 = vmul.f32 1.442695, %v3631_v55  ;;  %v3717_v46 = vmul.f32 1.442695, %v3632_v19 }
 0x61b   : > { %v12073_v13 = vpop.eup %8802  ;;  %4131 = vmatmul.bf16.vlgmr.msrb.gmra.mxu0 %v3995_v6  ;;  %4220 = vmatmul.bf16.vlgmr.msrb.gmra.mxu1 %v3996_v1 }
 0x61c   : > { %8804 = vpow2.f32 %v3715_v3  ;;  %v3830_v28 = vadd.f32 %v12073_v13, %v12071_v37 }
 0x61d   : > { %8806 = vpow2.f32 %v3717_v46  ;;  %v12105_v46 = vpop.f32.mrf.mxu3 }
 0x61e   : > { %8808 = vrcp.f32 %v3811_v53  ;;  %3831 = vadd.xlane.f32.xlu2 %v3830_v28 }
 0x61f   : > { %v3814_v54 = vpop.xlane.xlu2 %3813  ;;  %v3550_v34 = vpop.xlane.xlu1 %3549 }
 0x620   : > { %8810 = vrcp.f32 %v3814_v54  ;;  %v3633_v5 = vsub.f32 %v11925_v52, %v3550_v34  ;;  %v3634_v43 = vsub.f32 %v11929_v62, %v3550_v34  ;;  %v12103_v3 = vpop.f32.mrf.mxu2  ;;  %v8503_v54 = vld [vmem:[%s14458_s1 + $0x4] sm:$0xf]  ;;  %v8106_v34 = vld [vmem:[%s14458_s1 + $0x8] sm:$0xf0] }
 0x622   : > { %v12089_v25 = vpop.eup %8804  ;;  %v3719_v32 = vmul.f32 1.442695, %v3633_v5  ;;  %v3721_v17 = vmul.f32 1.442695, %v3634_v43  ;;  %v8109_v5 = vor.u32 %v8503_v54, %v8106_v34 }
 0x623   : > { %v12091_v52 = vpop.eup %8806 }
 0x624   : > { %v8809_v62 = vpop.eup %8808  ;;  %8812 = vpow2.f32 %v3719_v32  ;;  %v3833_v26 = vadd.f32 %v12091_v52, %v12089_v25  ;;  %4469 = vmatmul.bf16.vlgmr.msra.gmra.mxu2 %v8109_v5  ;;  %4558 = vmatmul.bf16.vlgmr.msra.gmra.mxu3 %v8109_v5 }
 0x625   : > { %8814 = vpow2.f32 %v3721_v17  ;;  %v3935_v4 = vmul.f32 %v8809_v62, %v11943_v7  ;;  %v3936_v49 = vmul.f32 %v8809_v62, %v11947_v12  ;;  %v12131_v62 = vpop.f32.mrf.mxu3 }
 0x626   : > { %v8811_v36 = vpop.eup %8810  ;;  %3834 = vadd.xlane.f32.xlu2 %v3833_v26 }
 0x627   : > { %v3817_v59 = vpop.xlane.xlu2 %3816  ;;  %v3553_v39 = vpop.xlane.xlu1 %3552  ;;  %v3937_v48 = vmul.f32 %v8811_v36, %v11957_v18  ;;  %v3938_v51 = vmul.f32 %v8811_v36, %v11959_v58 }
 0x628   : > { %v3635_v2 = vsub.f32 %v11951_v33, %v3553_v39  ;;  %v3636_v53 = vsub.f32 %v11953_v30, %v3553_v39  ;;  %v3572_v33 = vmax.f32 %v12061_v45, %v12063_v24  ;;  %v12129_v17 = vpop.f32.mrf.mxu2 }
 0x629   : > { %v3997_v27 = vpack.c.bf16 %v3937_v48, %v3935_v4  ;;  %v3998_v55 = vpack.c.bf16 %v3938_v51, %v3936_v49 }
 0x62a   : > { %v12101_v19 = vpop.eup %8812  ;;  %v3723_v6 = vmul.f32 1.442695, %v3635_v2  ;;  %v3725_v1 = vmul.f32 1.442695, %v3636_v53 }
 0x62b   : > { %v12107_v7 = vpop.eup %8814  ;;  %4136 = vmatmul.bf16.gmra.mxu0 %v3997_v27  ;;  %4225 = vmatmul.bf16.gmra.mxu1 %v3998_v55 }
 0x62c   : > { %8816 = vpow2.f32 %v3723_v6  ;;  %v3836_v12 = vadd.f32 %v12107_v7, %v12101_v19 }
 0x62d   : > { %8818 = vpow2.f32 %v3725_v1 }
 0x62e   : > { %8820 = vrcp.f32 %v3817_v59  ;;  %3837 = vadd.xlane.f32.xlu0 %v3836_v12  ;;  %3573 = vmax.xlane.f32.xlu2 %v3572_v33 }
 0x62f   : > { %v3820_v30 = vpop.xlane.xlu0 %3819  ;;  %v3556_v18 = vpop.xlane.xlu2 %3555 }
 0x630   : > { %8822 = vrcp.f32 %v3820_v30  ;;  %v3637_v58 = vsub.f32 %v11965_v14, %v3556_v18  ;;  %v3638_v28 = vsub.f32 %v11973_v38, %v3556_v18 }
 0x632   : > { %v12121_v43 = vpop.eup %8816  ;;  %v3727_v63 = vmul.f32 1.442695, %v3637_v58  ;;  %v3729_v11 = vmul.f32 1.442695, %v3638_v28 }
 0x633   : > { %v12125_v32 = vpop.eup %8818 }
 0x634   : > { %v8821_v14 = vpop.eup %8820  ;;  %8824 = vpow2.f32 %v3727_v63  ;;  %v3839_v38 = vadd.f32 %v12125_v32, %v12121_v43  ;;  %v3581_v63 = vmax.f32 %v12129_v17, %v12131_v62 }
 0x635   : > { %8826 = vpow2.f32 %v3729_v11  ;;  %v3939_v39 = vmul.f32 %v8821_v14, %v11977_v44  ;;  %v3940_v48 = vmul.f32 %v8821_v14, %v11981_v60  ;;  %v3578_v60 = vmax.f32 %v12103_v3, %v12105_v46 }
 0x636   : > { %v8823_v26 = vpop.eup %8822  ;;  %3840 = vadd.xlane.f32.xlu0 %v3839_v38  ;;  %3576 = vmax.xlane.f32.xlu2 %v3575_v61 }
 0x637   : > { %v3823_v36 = vpop.xlane.xlu0 %3822  ;;  %v3559_v59 = vpop.xlane.xlu2 %3558  ;;  %v3941_v4 = vmul.f32 %v8823_v26, %v11991_v42  ;;  %v3942_v49 = vmul.f32 %v8823_v26, %v11993_v16  ;;  %v8505_v42 = vld [vmem:[%s14458_s1 + $0x14] sm:$0xf]  ;;  %v8110_v16 = vld [vmem:[%s14458_s1 + $0x18] sm:$0xf0] }
 0x638   : > { %v3639_v51 = vsub.f32 %v11987_v20, %v3559_v59  ;;  %v3640_v2 = vsub.f32 %v11989_v31, %v3559_v59  ;;  %v12147_v20 = vpop.f32.mrf.mxu2  ;;  %v12149_v31 = vpop.f32.mrf.mxu3  ;;  %v8113_v18 = vor.u32 %v8505_v42, %v8110_v16 }
 0x639   : > { %v3999_v53 = vpack.c.bf16 %v3941_v4, %v3939_v39  ;;  %v4000_v27 = vpack.c.bf16 %v3942_v49, %v3940_v48 }
 0x63a   : > { %v12139_v55 = vpop.eup %8824  ;;  %v3731_v6 = vmul.f32 1.442695, %v3639_v51  ;;  %v3733_v1 = vmul.f32 1.442695, %v3640_v2  ;;  %4474 = vmatmul.bf16.gmra.mxu2 %v8113_v18  ;;  %4563 = vmatmul.bf16.gmra.mxu3 %v8113_v18 }
 0x63b   : > { %v12141_v12 = vpop.eup %8826  ;;  %4141 = vmatmul.bf16.gmra.mxu0 %v3999_v53  ;;  %4230 = vmatmul.bf16.gmra.mxu1 %v4000_v27 }
 0x63c   : > { %8828 = vpow2.f32 %v3731_v6  ;;  %v3842_v44 = vadd.f32 %v12141_v12, %v12139_v55 }
 0x63d   : > { %8830 = vpow2.f32 %v3733_v1 }
 0x63e   : > { %8832 = vrcp.f32 %v3823_v36  ;;  %3843 = vadd.xlane.f32.xlu1 %v3842_v44  ;;  %3579 = vmax.xlane.f32.xlu0 %v3578_v60 }
 0x63f   : > { %v3826_v33 = vpop.xlane.xlu1 %3825  ;;  %v3562_v30 = vpop.xlane.xlu0 %3561 }
 0x640   : > { %8834 = vrcp.f32 %v3826_v33  ;;  %v3641_v58 = vsub.f32 %v12013_v35, %v3562_v30  ;;  %v3642_v28 = vsub.f32 %v12015_v22, %v3562_v30  ;;  %v12175_v2 = vpop.f32.mrf.mxu2  ;;  %v12177_v53 = vpop.f32.mrf.mxu3 }
 0x641   : > { %v3587_v18 = vmax.f32 %v12175_v2, %v12177_v53 }
 0x642   : > { %v12159_v54 = vpop.eup %8828  ;;  %v3735_v34 = vmul.f32 1.442695, %v3641_v58  ;;  %v3737_v5 = vmul.f32 1.442695, %v3642_v28 }
 0x643   : > { %v12163_v11 = vpop.eup %8830 }
 0x644   : > { %v8833_v61 = vpop.eup %8832  ;;  %8836 = vpow2.f32 %v3735_v34  ;;  %v3845_v14 = vadd.f32 %v12163_v11, %v12159_v54 }
 0x645   : > { %8838 = vpow2.f32 %v3737_v5  ;;  %v3943_v26 = vmul.f32 %v8833_v61, %v12007_v41  ;;  %v3944_v59 = vmul.f32 %v8833_v61, %v12011_v21 }
 0x646   : > { %v8835_v35 = vpop.eup %8834  ;;  %3846 = vadd.xlane.f32.xlu1 %v3845_v14  ;;  %3582 = vmax.xlane.f32.xlu0 %v3581_v63 }
 0x647   : > { %v12167_v22 = vpop.xlane.xlu1 %3828  ;;  %v3565_v38 = vpop.xlane.xlu0 %3564  ;;  %v3945_v36 = vmul.f32 %v8835_v35, %v12021_v56  ;;  %v3946_v39 = vmul.f32 %v8835_v35, %v12023_v47  ;;  %v3584_v56 = vmax.f32 %v12147_v20, %v12149_v31  ;;  %v8507_v47 = vld [vmem:[%s14458_s1 + $0x24] sm:$0xf] }
 0x648   : > { %v3643_v4 = vsub.f32 %v12025_v40, %v3565_v38  ;;  %v3644_v48 = vsub.f32 %v12027_v23, %v3565_v38  ;;  %v8114_v40 = vld [vmem:[%s14458_s1 + $0x28] sm:$0xf0]  ;;  %v12201_v28 = vpop.f32.mrf.mxu2  ;;  %v12203_v34 = vpop.f32.mrf.mxu3 }
 0x649   : > { %v4001_v49 = vpack.c.bf16 %v3945_v36, %v3943_v26  ;;  %v4002_v51 = vpack.c.bf16 %v3946_v39, %v3944_v59  ;;  %v8117_v44 = vor.u32 %v8507_v47, %v8114_v40  ;;  %v3590_v39 = vmax.f32 %v12201_v28, %v12203_v34 }
 0x64a   : > { %v12179_v27 = vpop.eup %8836  ;;  %v3739_v6 = vmul.f32 1.442695, %v3643_v4  ;;  %v3741_v41 = vmul.f32 1.442695, %v3644_v48 }
 0x64b   : > { %v12181_v1 = vpop.eup %8838  ;;  %4146 = vmatmul.bf16.gmra.mxu0 %v4001_v49  ;;  %4235 = vmatmul.bf16.gmra.mxu1 %v4002_v51 }
 0x64c   : > { %8840 = vpow2.f32 %v3739_v6  ;;  %v3848_v21 = vadd.f32 %v12181_v1, %v12179_v27  ;;  %4479 = vmatmul.bf16.gmra.mxu2 %v8117_v44  ;;  %4568 = vmatmul.bf16.gmra.mxu3 %v8117_v44 }
 0x64d   : > { %8842 = vpow2.f32 %v3741_v41 }
 0x64e   : > { %3849 = vadd.xlane.f32.xlu2 %v3848_v21  ;;  %3585 = vmax.xlane.f32.xlu1 %v3584_v56 }
 0x64f   : > { %v3568_v23 = vpop.xlane.xlu1 %3567 }
 0x650   : > { %v3645_v60 = vsub.f32 %v12047_v15, %v3568_v23  ;;  %v3646_v42 = vsub.f32 %v12049_v8, %v3568_v23  ;;  %v12213_v26 = vpop.f32.mrf.mxu2  ;;  %v12215_v36 = vpop.f32.mrf.mxu3 }
 0x651   : > { %v3593_v49 = vmax.f32 %v12213_v26, %v12215_v36 }
 0x652   : > { %v12195_v16 = vpop.eup %8840  ;;  %v3743_v33 = vmul.f32 1.442695, %v3645_v60  ;;  %v3745_v30 = vmul.f32 1.442695, %v3646_v42 }
 0x653   : > { %v12199_v58 = vpop.eup %8842 }
 0x654   : > { %8844 = vpow2.f32 %v3743_v33  ;;  %v3851_v15 = vadd.f32 %v12199_v58, %v12195_v16 }
 0x655   : > { %8846 = vpow2.f32 %v3745_v30 }
 0x656   : > { %3852 = vadd.xlane.f32.xlu2 %v3851_v15  ;;  %3588 = vmax.xlane.f32.xlu1 %v3587_v18 }
 0x657   : > { %v3571_v8 = vpop.xlane.xlu1 %3570 }
 0x658   : > { %v3647_v5 = vsub.f32 %v12053_v57, %v3571_v8  ;;  %v3648_v63 = vsub.f32 %v12055_v50, %v3571_v8  ;;  %v8509_v57 = vld [vmem:[%s14458_s1 + $0x34] sm:$0xf]  ;;  %v8118_v50 = vld [vmem:[%s14458_s1 + $0x38] sm:$0xf0]  ;;  %v12235_v41 = vpop.f32.mrf.mxu2  ;;  %v12237_v21 = vpop.f32.mrf.mxu3 }
 0x659   : > { %v8121_v4 = vor.u32 %v8509_v57, %v8118_v50  ;;  %v3596_v56 = vmax.f32 %v12235_v41, %v12237_v21 }
 0x65a   : > { %v12209_v61 = vpop.eup %8844  ;;  %v3747_v14 = vmul.f32 1.442695, %v3647_v5  ;;  %v3749_v35 = vmul.f32 1.442695, %v3648_v63 }
 0x65b   : > { %v12211_v38 = vpop.eup %8846 }
 0x65c   : > { %8848 = vpow2.f32 %v3747_v14  ;;  %v3854_v59 = vadd.f32 %v12211_v38, %v12209_v61  ;;  %4484 = vmatmul.bf16.gmra.mxu2 %v8121_v4  ;;  %4573 = vmatmul.bf16.gmra.mxu3 %v8121_v4 }
 0x65d   : > { %8850 = vpow2.f32 %v3749_v35 }
 0x65e   : > { %3855 = vadd.xlane.f32.xlu0 %v3854_v59  ;;  %3591 = vmax.xlane.f32.xlu2 %v3590_v39  ;;  %8852 = vrcp.f32 %v12167_v22 }
 0x660   : > { %v12241_v47 = vpop.f32.mrf.mxu2  ;;  %v12243_v40 = vpop.f32.mrf.mxu3 }
 0x661   : > { %v3599_v23 = vmax.f32 %v12241_v47, %v12243_v40 }
 0x662   : > { %v12227_v48 = vpop.eup %8848 }
 0x663   : > { %v12231_v51 = vpop.eup %8850 }
 0x664   : > { %v3857_v6 = vadd.f32 %v12231_v51, %v12227_v48  ;;  %v8853_v60 = vpop.eup %8852 }
 0x665   : > { %v3947_v18 = vmul.f32 %v8853_v60, %v12039_v9  ;;  %v3948_v63 = vmul.f32 %v8853_v60, %v12043_v29 }
 0x666   : > { %3858 = vadd.xlane.f32.xlu0 %v3857_v6  ;;  %3594 = vmax.xlane.f32.xlu2 %v3593_v49 }
 0x668   : > { %v12262_v6 = vpop.f32.mrf.mxu3 }
 0x66e   : > { %3597 = vmax.xlane.f32.xlu0 %v3596_v56 }
 0x676   : > { %3600 = vmax.xlane.f32.xlu0 %v3599_v23 }
 0x691   : > { %v3832_v44 = vpop.xlane.xlu2 %3831 }
 0x692   : > { %8854 = vrcp.f32 %v3832_v44 }
 0x698   : > { %v8855_v42 = vpop.eup %8854  ;;  %v4132_v33 = vpop.f32.mrf.mxu0 }
 0x699   : > { %v4221_v30 = vpop.f32.mrf.mxu1  ;;  %v3835_v8 = vpop.xlane.xlu2 %3834  ;;  %v3949_v5 = vmul.f32 %v8855_v42, %v12071_v37  ;;  %v3950_v14 = vmul.f32 %v8855_v42, %v12073_v13 }
 0x69a   : > { %v12249_v15 = vadd.f32 %v4221_v30, %v4132_v33  ;;  %8856 = vrcp.f32 %v3835_v8  ;;  %v12260_v13 = vpop.f32.mrf.mxu2 }
 0x69b   : > { %v4003_v35 = vpack.c.bf16 %v3949_v5, %v3947_v18  ;;  %v4004_v59 = vpack.c.bf16 %v3950_v14, %v3948_v63 }
 0x69c   : > { %14758 = vst [vmem:[#allocation38_spill] sm:$0xff] %v12249_v15 }
 0x69d   : > { %4151 = vmatmul.bf16.gmra.mxu0 %v4003_v35  ;;  %4240 = vmatmul.bf16.gmra.mxu1 %v4004_v59 }
 0x6a0   : > { %v12254_v22 = vpop.f32.mrf.mxu0  ;;  %v8857_v49 = vpop.eup %8856 }
 0x6a1   : > { %v12256_v39 = vpop.f32.mrf.mxu1  ;;  %v3838_v57 = vpop.xlane.xlu0 %3837  ;;  %v3951_v60 = vmul.f32 %v8857_v49, %v12089_v25  ;;  %v3952_v30 = vmul.f32 %v8857_v49, %v12091_v52 }
 0x6a2   : > { %v3574_v9 = vpop.xlane.xlu2 %3573  ;;  %8858 = vrcp.f32 %v3838_v57  ;;  %v12292_v49 = vpop.f32.mrf.mxu3 }
 0x6a3   : > { %v3649_v50 = vsub.f32 %v12061_v45, %v3574_v9  ;;  %v3650_v37 = vsub.f32 %v12063_v24, %v3574_v9  ;;  %v8511_v9 = vld [vmem:[%s14458_s1 + $0x44] sm:$0xf] }
 0x6a5   : > { %v3751_v4 = vmul.f32 1.442695, %v3649_v50  ;;  %v3753_v29 = vmul.f32 1.442695, %v3650_v37  ;;  %v8122_v50 = vld [vmem:[%s14458_s1 + $0x48] sm:$0xf0] }
 0x6a7   : > { %8860 = vpow2.f32 %v3751_v4 }
 0x6a8   : > { %8862 = vpow2.f32 %v3753_v29  ;;  %v8859_v56 = vpop.eup %8858  ;;  %v4137_v23 = vpop.f32.mrf.mxu0 }
 0x6a9   : > { %v4226_v44 = vpop.f32.mrf.mxu1  ;;  %v3841_v33 = vpop.xlane.xlu0 %3840  ;;  %v3953_v24 = vmul.f32 %v8859_v56, %v12101_v19  ;;  %v3954_v18 = vmul.f32 %v8859_v56, %v12107_v7  ;;  %v8125_v56 = vor.u32 %v8511_v9, %v8122_v50 }
 0x6aa   : > { %v12265_v42 = vadd.f32 %v4226_v44, %v4137_v23  ;;  %v3577_v45 = vpop.xlane.xlu2 %3576  ;;  %8864 = vrcp.f32 %v3841_v33  ;;  %v12290_v29 = vpop.f32.mrf.mxu2 }
 0x6ab   : > { %v3651_v8 = vsub.f32 %v12079_v10, %v3577_v45  ;;  %v3652_v5 = vsub.f32 %v12081_v0, %v3577_v45  ;;  %v4005_v63 = vpack.c.bf16 %v3953_v24, %v3951_v60  ;;  %v4006_v14 = vpack.c.bf16 %v3954_v18, %v3952_v30  ;;  %4489 = vmatmul.bf16.gmra.mxu2 %v8125_v56 }
 0x6ac   : > { %14759 = vst [vmem:[#allocation31_spill] sm:$0xff] %v12265_v42  ;;  %4578 = vmatmul.bf16.gmra.mxu3 %v8125_v56  ;;  %v12312_v56 = vpop.f32.mrf.mxu3  ;;  %v8561_v42 = vld [vmem:[#allocation5 + $0xd4] sm:$0xf] }
 0x6ad   : > { %v12272_v35 = vpop.eup %8860  ;;  %v3755_v59 = vmul.f32 1.442695, %v3651_v8  ;;  %v3757_v25 = vmul.f32 1.442695, %v3652_v5  ;;  %4156 = vmatmul.bf16.gmra.mxu0 %v4005_v63  ;;  %4245 = vmatmul.bf16.gmra.mxu1 %v4006_v14 }
 0x6ae   : > { %v12274_v57 = vpop.eup %8862 }
 0x6af   : > { %8866 = vpow2.f32 %v3755_v59  ;;  %v3860_v52 = vadd.f32 %v12274_v57, %v12272_v35 }
 0x6b0   : > { %8868 = vpow2.f32 %v3757_v25  ;;  %v12278_v10 = vpop.f32.mrf.mxu0  ;;  %v8865_v23 = vpop.eup %8864 }
 0x6b1   : > { %3861 = vadd.xlane.f32.xlu1 %v3860_v52  ;;  %14760 = vst [vmem:[#allocation32_spill] sm:$0xff] %v12278_v10  ;;  %v12280_v0 = vpop.f32.mrf.mxu1  ;;  %v3844_v19 = vpop.xlane.xlu1 %3843  ;;  %v3955_v18 = vmul.f32 %v8865_v23, %v12121_v43  ;;  %v3956_v59 = vmul.f32 %v8865_v23, %v12125_v32  ;;  %v8214_v10 = vld [vmem:[#allocation5 + $0xd8] sm:$0xf0] }
 0x6b2   : > { %14761 = vst [vmem:[#allocation52_spill] sm:$0xff] %v12280_v0  ;;  %v3580_v7 = vpop.xlane.xlu0 %3579  ;;  %8870 = vrcp.f32 %v3844_v19  ;;  %v8217_v15 = vor.u32 %v8561_v42, %v8214_v10  ;;  %v8198_v42 = vld [vmem:[#allocation5 + $0xb8] sm:$0xf0] }
 0x6b3   : > { %v3653_v37 = vsub.f32 %v12103_v3, %v3580_v7  ;;  %v3654_v4 = vsub.f32 %v12105_v46, %v3580_v7 }
 0x6b5   : > { %v12294_v44 = vpop.eup %8866  ;;  %v3759_v60 = vmul.f32 1.442695, %v3653_v37  ;;  %v3761_v33 = vmul.f32 1.442695, %v3654_v4  ;;  %v12310_v4 = vpop.f32.mrf.mxu2 }
 0x6b6   : > { %v12296_v45 = vpop.eup %8868 }
 0x6b7   : > { %8872 = vpow2.f32 %v3759_v60  ;;  %v3863_v3 = vadd.f32 %v12296_v45, %v12294_v44 }
 0x6b8   : > { %8874 = vpow2.f32 %v3761_v33  ;;  %v8871_v46 = vpop.eup %8870  ;;  %v4142_v24 = vpop.f32.mrf.mxu0  ;;  %v8513_v33 = vld [vmem:[%s14458_s1 + $0x54] sm:$0xf] }
 0x6b9   : > { %3864 = vadd.xlane.f32.xlu1 %v3863_v3  ;;  %v4231_v30 = vpop.f32.mrf.mxu1  ;;  %v3847_v5 = vpop.xlane.xlu1 %3846  ;;  %v3957_v14 = vmul.f32 %v8871_v46, %v12139_v55  ;;  %v3958_v25 = vmul.f32 %v8871_v46, %v12141_v12  ;;  %v8126_v3 = vld [vmem:[%s14458_s1 + $0x58] sm:$0xf0] }
 0x6ba   : > { %v12301_v8 = vadd.f32 %v4231_v30, %v4142_v24  ;;  %v3583_v63 = vpop.xlane.xlu0 %3582  ;;  %8876 = vrcp.f32 %v3847_v5  ;;  %v8129_v30 = vor.u32 %v8513_v33, %v8126_v3 }
 0x6bb   : > { %v3655_v52 = vsub.f32 %v12129_v17, %v3583_v63  ;;  %v3656_v19 = vsub.f32 %v12131_v62, %v3583_v63  ;;  %v4007_v7 = vpack.c.bf16 %v3957_v14, %v3955_v18  ;;  %v4008_v9 = vpack.c.bf16 %v3958_v25, %v3956_v59 }
 0x6bc   : > { %14762 = vst [vmem:[#allocation49_spill] sm:$0xff] %v12301_v8  ;;  %v3602_v17 = vmax.f32 %v12260_v13, %v12262_v6  ;;  %v3605_v59 = vmax.f32 %v12290_v29, %v12292_v49  ;;  %4494 = vmatmul.bf16.gmra.mxu2 %v8129_v30  ;;  %4583 = vmatmul.bf16.gmra.mxu3 %v8129_v30 }
 0x6bd   : > { %v12308_v50 = vpop.eup %8872  ;;  %v3763_v37 = vmul.f32 1.442695, %v3655_v52  ;;  %v3765_v43 = vmul.f32 1.442695, %v3656_v19  ;;  %4161 = vmatmul.bf16.gmra.mxu0 %v4007_v7  ;;  %4250 = vmatmul.bf16.gmra.mxu1 %v4008_v9 }
 0x6be   : > { %v12314_v60 = vpop.eup %8874 }
 0x6bf   : > { %8878 = vpow2.f32 %v3763_v37  ;;  %v3866_v32 = vadd.f32 %v12314_v60, %v12308_v50 }
 0x6c0   : > { %8880 = vpow2.f32 %v3765_v43  ;;  %v12320_v62 = vpop.f32.mrf.mxu0  ;;  %v8877_v18 = vpop.eup %8876 }
 0x6c1   : > { %3867 = vadd.xlane.f32.xlu2 %v3866_v32  ;;  %3603 = vmax.xlane.f32.xlu1 %v3602_v17  ;;  %14763 = vst [vmem:[#allocation35_spill] sm:$0xff] %v12320_v62  ;;  %v12322_v55 = vpop.f32.mrf.mxu1  ;;  %v3850_v12 = vpop.xlane.xlu2 %3849  ;;  %v3959_v37 = vmul.f32 %v8877_v18, %v12159_v54  ;;  %v8562_v62 = vld [vmem:[#allocation5 + $0xd4] sm:$0xf0] }
 0x6c2   : > { %14764 = vst [vmem:[#allocation36_spill] sm:$0xff] %v12322_v55  ;;  %v3586_v23 = vpop.xlane.xlu1 %3585  ;;  %8882 = vrcp.f32 %v3850_v12 }
 0x6c3   : > { %v3657_v46 = vsub.f32 %v12147_v20, %v3586_v23  ;;  %v3658_v24 = vsub.f32 %v12149_v31, %v3586_v23  ;;  %v12340_v20 = vpop.f32.mrf.mxu2  ;;  %v12342_v31 = vpop.f32.mrf.mxu3  ;;  %v3960_v23 = vmul.f32 %v8877_v18, %v12163_v11  ;;  %v8130_v18 = vld [vmem:[%s14458_s1 + $0x68] sm:$0xf0] }
 0x6c5   : > { %v12332_v5 = vpop.eup %8878  ;;  %v3767_v63 = vmul.f32 1.442695, %v3657_v46  ;;  %v3769_v14 = vmul.f32 1.442695, %v3658_v24 }
 0x6c6   : > { %v12336_v25 = vpop.eup %8880 }
 0x6c7   : > { %8884 = vpow2.f32 %v3767_v63  ;;  %v3869_v52 = vadd.f32 %v12336_v25, %v12332_v5 }
 0x6c8   : > { %8886 = vpow2.f32 %v3769_v14  ;;  %v8883_v19 = vpop.eup %8882  ;;  %v4147_v7 = vpop.f32.mrf.mxu0 }
 0x6c9   : > { %3870 = vadd.xlane.f32.xlu2 %v3869_v52  ;;  %3606 = vmax.xlane.f32.xlu1 %v3605_v59  ;;  %v4236_v9 = vpop.f32.mrf.mxu1  ;;  %v3853_v32 = vpop.xlane.xlu2 %3852  ;;  %v3961_v12 = vmul.f32 %v8883_v19, %v12179_v27  ;;  %v3962_v33 = vmul.f32 %v8883_v19, %v12181_v1  ;;  %v3608_v27 = vmax.f32 %v12310_v4, %v12312_v56  ;;  %v8515_v1 = vld [vmem:[%s14458_s1 + $0x64] sm:$0xf] }
 0x6ca   : > { %v12345_v43 = vadd.f32 %v4236_v9, %v4147_v7  ;;  %v3589_v17 = vpop.xlane.xlu1 %3588  ;;  %v8133_v7 = vor.u32 %v8515_v1, %v8130_v18 }
 0x6cb   : > { %v3659_v3 = vsub.f32 %v12175_v2, %v3589_v17  ;;  %v3660_v46 = vsub.f32 %v12177_v53, %v3589_v17  ;;  %v4009_v24 = vpack.c.bf16 %v3961_v12, %v3959_v37  ;;  %v4010_v30 = vpack.c.bf16 %v3962_v33, %v3960_v23  ;;  %v12360_v2 = vpop.f32.mrf.mxu2  ;;  %v12362_v53 = vpop.f32.mrf.mxu3 }
 0x6cc   : > { %14765 = vst [vmem:[#allocation50_spill] sm:$0xff] %v12345_v43  ;;  %v4639_v23 = vmax.f32 %v12340_v20, %v12342_v31  ;;  %4499 = vmatmul.bf16.gmra.mxu2 %v8133_v7  ;;  %4588 = vmatmul.bf16.gmra.mxu3 %v8133_v7 }
 0x6cd   : > { %v12352_v63 = vpop.eup %8884  ;;  %v3771_v14 = vmul.f32 1.442695, %v3659_v3  ;;  %v3773_v54 = vmul.f32 1.442695, %v3660_v46  ;;  %4166 = vmatmul.bf16.gmra.mxu0 %v4009_v24  ;;  %4255 = vmatmul.bf16.gmra.mxu1 %v4010_v30 }
 0x6ce   : > { %v12354_v59 = vpop.eup %8886 }
 0x6cf   : > { %8888 = vpow2.f32 %v3771_v14  ;;  %v3872_v11 = vadd.f32 %v12354_v59, %v12352_v63 }
 0x6d0   : > { %8890 = vpow2.f32 %v3773_v54 }
 0x6d1   : > { %8892 = vrcp.f32 %v3853_v32  ;;  %3873 = vadd.xlane.f32.xlu0 %v3872_v11  ;;  %3609 = vmax.xlane.f32.xlu2 %v3608_v27  ;;  %v3856_v52 = vpop.xlane.xlu0 %3855  ;;  %v3592_v19 = vpop.xlane.xlu2 %3591 }
 0x6d2   : > { %8894 = vrcp.f32 %v3856_v52  ;;  %v3661_v9 = vsub.f32 %v12201_v28, %v3592_v19  ;;  %v3662_v37 = vsub.f32 %v12203_v34, %v3592_v19 }
 0x6d3   : > { %v12388_v19 = vpop.f32.mrf.mxu2  ;;  %v12390_v7 = vpop.f32.mrf.mxu3 }
 0x6d4   : > { %v3775_v17 = vmul.f32 1.442695, %v3661_v9  ;;  %v3777_v12 = vmul.f32 1.442695, %v3662_v37 }
 0x6d5   : > { %v12372_v32 = vpop.eup %8888 }
 0x6d6   : > { %v12376_v33 = vpop.eup %8890  ;;  %8896 = vpow2.f32 %v3775_v17 }
 0x6d7   : > { %v8893_v3 = vpop.eup %8892  ;;  %v3875_v46 = vadd.f32 %v12376_v33, %v12372_v32  ;;  %8898 = vpow2.f32 %v3777_v12 }
 0x6d8   : > { %v8895_v28 = vpop.eup %8894  ;;  %v3963_v30 = vmul.f32 %v8893_v3, %v12195_v16  ;;  %v3964_v54 = vmul.f32 %v8893_v3, %v12199_v58 }
 0x6d9   : > { %3876 = vadd.xlane.f32.xlu0 %v3875_v46  ;;  %4640 = vmax.xlane.f32.xlu2 %v4639_v23  ;;  %v12380_v34 = vpop.xlane.xlu0 %3858  ;;  %v3595_v24 = vpop.xlane.xlu2 %3594  ;;  %v3965_v14 = vmul.f32 %v8895_v28, %v12209_v61  ;;  %v3966_v11 = vmul.f32 %v8895_v28, %v12211_v38  ;;  %v4642_v61 = vmax.f32 %v12360_v2, %v12362_v53  ;;  %v8517_v38 = vld [vmem:[%s14458_s1 + $0x74] sm:$0xf] }
 0x6da   : > { %v3663_v27 = vsub.f32 %v12213_v26, %v3595_v24  ;;  %v3664_v1 = vsub.f32 %v12215_v36, %v3595_v24  ;;  %v8134_v26 = vld [vmem:[%s14458_s1 + $0x78] sm:$0xf0] }
 0x6db   : > { %v4011_v18 = vpack.c.bf16 %v3965_v14, %v3963_v30  ;;  %v4012_v52 = vpack.c.bf16 %v3966_v11, %v3964_v54  ;;  %v8137_v12 = vor.u32 %v8517_v38, %v8134_v26  ;;  %v4645_v30 = vmax.f32 %v12388_v19, %v12390_v7  ;;  %v12414_v54 = vpop.f32.mrf.mxu2  ;;  %v12416_v11 = vpop.f32.mrf.mxu3  ;;  %v8519_v38 = vld [vmem:[%s14458_s1 + $0x84] sm:$0xf] }
 0x6dc   : > { %v12392_v9 = vpop.eup %8896  ;;  %v3779_v37 = vmul.f32 1.442695, %v3663_v27  ;;  %v3781_v16 = vmul.f32 1.442695, %v3664_v1 }
 0x6dd   : > { %v12394_v17 = vpop.eup %8898  ;;  %4171 = vmatmul.bf16.gmra.mxu0 %v4011_v18  ;;  %4260 = vmatmul.bf16.gmra.mxu1 %v4012_v52 }
 0x6de   : > { %8900 = vpow2.f32 %v3779_v37  ;;  %v3878_v58 = vadd.f32 %v12394_v17, %v12392_v9  ;;  %4504 = vmatmul.bf16.gmra.mxu2 %v8137_v12  ;;  %4593 = vmatmul.bf16.gmra.mxu3 %v8137_v12 }
 0x6df   : > { %8902 = vpow2.f32 %v3781_v16 }
 0x6e0   : > { %3879 = vadd.xlane.f32.xlu1 %v3878_v58 }
 0x6e1   : > { %4643 = vmax.xlane.f32.xlu0 %v4642_v61  ;;  %v3598_v36 = vpop.xlane.xlu0 %3597 }
 0x6e2   : > { %v3665_v23 = vsub.f32 %v12235_v41, %v3598_v36  ;;  %v3666_v3 = vsub.f32 %v12237_v21, %v3598_v36 }
 0x6e3   : > { %v12426_v58 = vpop.f32.mrf.mxu2  ;;  %v12428_v61 = vpop.f32.mrf.mxu3 }
 0x6e4   : > { %v12408_v46 = vpop.eup %8900  ;;  %v3783_v28 = vmul.f32 1.442695, %v3665_v23  ;;  %v3785_v24 = vmul.f32 1.442695, %v3666_v3  ;;  %v4651_v23 = vmax.f32 %v12426_v58, %v12428_v61 }
 0x6e5   : > { %v12412_v14 = vpop.eup %8902 }
 0x6e6   : > { %8904 = vpow2.f32 %v3783_v28  ;;  %v3881_v41 = vadd.f32 %v12412_v14, %v12408_v46 }
 0x6e7   : > { %8906 = vpow2.f32 %v3785_v24 }
 0x6e8   : > { %3882 = vadd.xlane.f32.xlu1 %v3881_v41 }
 0x6e9   : > { %4646 = vmax.xlane.f32.xlu0 %v4645_v30  ;;  %v3601_v21 = vpop.xlane.xlu0 %3600 }
 0x6ea   : > { %v3667_v27 = vsub.f32 %v12241_v47, %v3601_v21  ;;  %v3668_v1 = vsub.f32 %v12243_v40, %v3601_v21  ;;  %v8138_v47 = vld [vmem:[%s14458_s1 + $0x88] sm:$0xf0]  ;;  %v4648_v40 = vmax.f32 %v12414_v54, %v12416_v11 }
 0x6eb   : > { %v8141_v36 = vor.u32 %v8519_v38, %v8138_v47  ;;  %v12448_v24 = vpop.f32.mrf.mxu2  ;;  %v12450_v30 = vpop.f32.mrf.mxu3 }
 0x6ec   : > { %v12422_v18 = vpop.eup %8904  ;;  %v3787_v52 = vmul.f32 1.442695, %v3667_v27  ;;  %v3789_v37 = vmul.f32 1.442695, %v3668_v1  ;;  %v4654_v41 = vmax.f32 %v12448_v24, %v12450_v30 }
 0x6ed   : > { %v12424_v16 = vpop.eup %8906 }
 0x6ee   : > { %8908 = vpow2.f32 %v3787_v52  ;;  %v3884_v26 = vadd.f32 %v12424_v16, %v12422_v18  ;;  %4509 = vmatmul.bf16.gmra.mxu2 %v8141_v36  ;;  %4598 = vmatmul.bf16.gmra.mxu3 %v8141_v36  ;;  %v12460_v52 = vpop.f32.mrf.mxu0 }
 0x6ef   : > { %8910 = vpow2.f32 %v3789_v37  ;;  %14766 = vst [vmem:[#allocation26_spill] sm:$0xff] %v12460_v52  ;;  %v12462_v37 = vpop.f32.mrf.mxu1 }
 0x6f0   : > { %4649 = vmax.xlane.f32.xlu1 %v4648_v40  ;;  %3885 = vadd.xlane.f32.xlu2 %v3884_v26  ;;  %14767 = vst [vmem:[#allocation39_spill] sm:$0xff] %v12462_v37  ;;  %8912 = vrcp.f32 %v12380_v34 }
 0x6f3   : > { %v12454_v21 = vpop.f32.mrf.mxu2  ;;  %v12456_v27 = vpop.f32.mrf.mxu3 }
 0x6f4   : > { %v12440_v12 = vpop.eup %8908  ;;  %v4657_v1 = vmax.f32 %v12454_v21, %v12456_v27 }
 0x6f5   : > { %v12444_v3 = vpop.eup %8910 }
 0x6f6   : > { %v3887_v28 = vadd.f32 %v12444_v3, %v12440_v12 }
 0x6f8   : > { %4652 = vmax.xlane.f32.xlu1 %v4651_v23  ;;  %3888 = vadd.xlane.f32.xlu2 %v3887_v28  ;;  %v8913_v28 = vpop.eup %8912 }
 0x6f9   : > { %v3967_v52 = vmul.f32 %v8913_v28, %v12227_v48 }
 0x700   : > { %4655 = vmax.xlane.f32.xlu2 %v4654_v41 }
 0x708   : > { %4658 = vmax.xlane.f32.xlu2 %v4657_v1 }
 0x71a   : > { %v4152_v38 = vpop.f32.mrf.mxu0  ;;  %v4241_v47 = vpop.f32.mrf.mxu1 }
 0x71b   : > { %v12464_v40 = vadd.f32 %v4241_v47, %v4152_v38  ;;  %v3968_v47 = vmul.f32 %v8913_v28, %v12231_v51 }
 0x71d   : > { %14768 = vst [vmem:[#allocation40_spill] sm:$0xff] %v12464_v40 }
 0x722   : > { %v12467_v26 = vpop.f32.mrf.mxu0  ;;  %v12469_v36 = vpop.f32.mrf.mxu1 }
 0x723   : > { %14769 = vst [vmem:[#allocation24_spill] sm:$0xff] %v12467_v26 }
 0x724   : > { %14770 = vst [vmem:[#allocation25_spill] sm:$0xff] %v12469_v36  ;;  %v3862_v23 = vpop.xlane.xlu1 %3861 }
 0x725   : > { %8914 = vrcp.f32 %v3862_v23 }
 0x72a   : > { %v4157_v43 = vpop.f32.mrf.mxu0  ;;  %v4246_v1 = vpop.f32.mrf.mxu1 }
 0x72b   : > { %v8915_v41 = vpop.eup %8914  ;;  %v12472_v8 = vadd.f32 %v4246_v1, %v4157_v43 }
 0x72c   : > { %v3865_v37 = vpop.xlane.xlu1 %3864  ;;  %v3969_v38 = vmul.f32 %v8915_v41, %v12272_v35  ;;  %v3970_v34 = vmul.f32 %v8915_v41, %v12274_v57  ;;  %v12483_v57 = vpop.f32.mrf.mxu2 }
 0x72d   : > { %14771 = vst [vmem:[#allocation45_spill] sm:$0xff] %v12472_v8  ;;  %8916 = vrcp.f32 %v3865_v37 }
 0x72e   : > { %v4013_v40 = vpack.c.bf16 %v3969_v38, %v3967_v52  ;;  %v4014_v26 = vpack.c.bf16 %v3970_v34, %v3968_v47  ;;  %v12485_v52 = vpop.f32.mrf.mxu3 }
 0x730   : > { %4176 = vmatmul.bf16.gmra.mxu0 %v4013_v40  ;;  %4265 = vmatmul.bf16.gmra.mxu1 %v4014_v26 }
 0x732   : > { %v12477_v23 = vpop.f32.mrf.mxu0  ;;  %v12479_v36 = vpop.f32.mrf.mxu1 }
 0x733   : > { %14772 = vst [vmem:[#allocation46_spill] sm:$0xff] %v12477_v23  ;;  %v8917_v28 = vpop.eup %8916 }
 0x734   : > { %14773 = vst [vmem:[#allocation47_spill] sm:$0xff] %v12479_v36  ;;  %v3868_v55 = vpop.xlane.xlu2 %3867  ;;  %v3604_v48 = vpop.xlane.xlu1 %3603  ;;  %v3971_v41 = vmul.f32 %v8917_v28, %v12294_v44  ;;  %v3972_v47 = vmul.f32 %v8917_v28, %v12296_v45 }
 0x735   : > { %8918 = vrcp.f32 %v3868_v55  ;;  %v3669_v43 = vsub.f32 %v12260_v13, %v3604_v48  ;;  %v3670_v35 = vsub.f32 %v12262_v6, %v3604_v48 }
 0x737   : > { %v3791_v1 = vmul.f32 1.442695, %v3669_v43  ;;  %v3793_v51 = vmul.f32 1.442695, %v3670_v35 }
 0x739   : > { %8920 = vpow2.f32 %v3791_v1 }
 0x73a   : > { %8922 = vpow2.f32 %v3793_v51  ;;  %v4162_v40 = vpop.f32.mrf.mxu0  ;;  %v4251_v26 = vpop.f32.mrf.mxu1 }
 0x73b   : > { %v8919_v37 = vpop.eup %8918  ;;  %v12488_v38 = vadd.f32 %v4251_v26, %v4162_v40 }
 0x73c   : > { %v3871_v55 = vpop.xlane.xlu2 %3870  ;;  %v3607_v13 = vpop.xlane.xlu1 %3606  ;;  %v3973_v6 = vmul.f32 %v8919_v37, %v12308_v50  ;;  %v3974_v34 = vmul.f32 %v8919_v37, %v12314_v60  ;;  %v8521_v50 = vld [vmem:[%s14458_s1 + $0x94] sm:$0xf]  ;;  %v8142_v60 = vld [vmem:[%s14458_s1 + $0x98] sm:$0xf0] }
 0x73d   : > { %14774 = vst [vmem:[#allocation48_spill] sm:$0xff] %v12488_v38  ;;  %v3671_v48 = vsub.f32 %v12290_v29, %v3607_v13  ;;  %v3672_v43 = vsub.f32 %v12292_v49, %v3607_v13  ;;  %8924 = vrcp.f32 %v3871_v55  ;;  %v12513_v55 = vpop.f32.mrf.mxu2  ;;  %v12515_v13 = vpop.f32.mrf.mxu3 }
 0x73e   : > { %v4015_v35 = vpack.c.bf16 %v3973_v6, %v3971_v41  ;;  %v4016_v1 = vpack.c.bf16 %v3974_v34, %v3972_v47 }
 0x73f   : > { %v12495_v51 = vpop.eup %8920  ;;  %v3795_v8 = vmul.f32 1.442695, %v3671_v48  ;;  %v3797_v44 = vmul.f32 1.442695, %v3672_v43 }
 0x740   : > { %v12497_v40 = vpop.eup %8922  ;;  %4181 = vmatmul.bf16.gmra.mxu0 %v4015_v35  ;;  %4270 = vmatmul.bf16.gmra.mxu1 %v4016_v1 }
 0x741   : > { %8926 = vpow2.f32 %v3795_v8  ;;  %v3890_v45 = vadd.f32 %v12497_v40, %v12495_v51  ;;  %v8145_v8 = vor.u32 %v8521_v50, %v8142_v60 }
 0x742   : > { %8928 = vpow2.f32 %v3797_v44  ;;  %v12501_v29 = vpop.f32.mrf.mxu0  ;;  %v12503_v49 = vpop.f32.mrf.mxu1 }
 0x743   : > { %3891 = vadd.xlane.f32.xlu0 %v3890_v45  ;;  %14775 = vst [vmem:[#allocation37_spill] sm:$0xff] %v12501_v29  ;;  %v8925_v6 = vpop.eup %8924  ;;  %4514 = vmatmul.bf16.gmra.mxu2 %v8145_v8 }
 0x744   : > { %14776 = vst [vmem:[#allocation51_spill] sm:$0xff] %v12503_v49  ;;  %v3874_v28 = vpop.xlane.xlu0 %3873  ;;  %v3610_v37 = vpop.xlane.xlu2 %3609  ;;  %4603 = vmatmul.bf16.gmra.mxu3 %v8145_v8  ;;  %v3975_v44 = vmul.f32 %v8925_v6, %v12332_v5 }
 0x745   : > { %8930 = vrcp.f32 %v3874_v28  ;;  %v3673_v26 = vsub.f32 %v12310_v4, %v3610_v37  ;;  %v3674_v41 = vsub.f32 %v12312_v56, %v3610_v37  ;;  %v3976_v37 = vmul.f32 %v8925_v6, %v12336_v25 }
 0x746   : > { %v4660_v25 = vmax.f32 %v12483_v57, %v12485_v52 }
 0x747   : > { %v12517_v47 = vpop.eup %8926  ;;  %v3799_v34 = vmul.f32 1.442695, %v3673_v26  ;;  %v3801_v48 = vmul.f32 1.442695, %v3674_v41 }
 0x748   : > { %v12519_v43 = vpop.eup %8928 }
 0x749   : > { %8932 = vpow2.f32 %v3799_v34  ;;  %v3893_v35 = vadd.f32 %v12519_v43, %v12517_v47 }
 0x74a   : > { %8934 = vpow2.f32 %v3801_v48  ;;  %v4167_v56 = vpop.f32.mrf.mxu0  ;;  %v4256_v1 = vpop.f32.mrf.mxu1 }
 0x74b   : > { %v8931_v4 = vpop.eup %8930  ;;  %3894 = vadd.xlane.f32.xlu0 %v3893_v35  ;;  %v12524_v45 = vadd.f32 %v4256_v1, %v4167_v56  ;;  %v12533_v56 = vpop.f32.mrf.mxu2 }
 0x74c   : > { %v3877_v50 = vpop.xlane.xlu0 %3876  ;;  %v4641_v60 = vpop.xlane.xlu2 %4640  ;;  %v3977_v28 = vmul.f32 %v8931_v4, %v12352_v63  ;;  %v3978_v8 = vmul.f32 %v8931_v4, %v12354_v59  ;;  %v8523_v59 = vld [vmem:[%s14458_s1 + $0xa4] sm:$0xf] }
 0x74d   : > { %14777 = vst [vmem:[#allocation42_spill] sm:$0xff] %v12524_v45  ;;  %v4735_v26 = vsub.f32 %v12340_v20, %v4641_v60  ;;  %v4736_v41 = vsub.f32 %v12342_v31, %v4641_v60  ;;  %v12535_v1 = vpop.f32.mrf.mxu3  ;;  %8936 = vrcp.f32 %v3877_v50 }
 0x74e   : > { %v4017_v34 = vpack.c.bf16 %v3977_v28, %v3975_v44  ;;  %v4018_v48 = vpack.c.bf16 %v3978_v8, %v3976_v37 }
 0x74f   : > { %v12531_v35 = vpop.eup %8932  ;;  %v4799_v38 = vmul.f32 1.442695, %v4735_v26  ;;  %v4801_v5 = vmul.f32 1.442695, %v4736_v41  ;;  %v4663_v41 = vmax.f32 %v12513_v55, %v12515_v13 }
 0x750   : > { %v12537_v45 = vpop.eup %8934  ;;  %4186 = vmatmul.bf16.gmra.mxu0 %v4017_v34  ;;  %4275 = vmatmul.bf16.gmra.mxu1 %v4018_v48 }
 0x751   : > { %8938 = vpow2.f32 %v4799_v38  ;;  %v3896_v20 = vadd.f32 %v12537_v45, %v12531_v35  ;;  %v8146_v38 = vld [vmem:[%s14458_s1 + $0xa8] sm:$0xf0] }
 0x752   : > { %8940 = vpow2.f32 %v4801_v5  ;;  %v12543_v31 = vpop.f32.mrf.mxu0  ;;  %v12545_v63 = vpop.f32.mrf.mxu1  ;;  %v8149_v44 = vor.u32 %v8523_v59, %v8146_v38 }
 0x753   : > { %4661 = vmax.xlane.f32.xlu0 %v4660_v25  ;;  %3897 = vadd.xlane.f32.xlu1 %v3896_v20  ;;  %14778 = vst [vmem:[#allocation20_spill] sm:$0xff] %v12543_v31  ;;  %v3880_v6 = vpop.xlane.xlu1 %3879  ;;  %v8937_v28 = vpop.eup %8936 }
 0x754   : > { %14779 = vst [vmem:[#allocation33_spill] sm:$0xff] %v12545_v63  ;;  %v4644_v4 = vpop.xlane.xlu0 %4643  ;;  %8942 = vrcp.f32 %v3880_v6  ;;  %4519 = vmatmul.bf16.gmra.mxu2 %v8149_v44  ;;  %4608 = vmatmul.bf16.gmra.mxu3 %v8149_v44  ;;  %v12563_v5 = vpop.f32.mrf.mxu2  ;;  %v3979_v59 = vmul.f32 %v8937_v28, %v12372_v32 }
 0x755   : > { %v4737_v50 = vsub.f32 %v12360_v2, %v4644_v4  ;;  %v4738_v60 = vsub.f32 %v12362_v53, %v4644_v4  ;;  %v12565_v2 = vpop.f32.mrf.mxu3 }
 0x757   : > { %v12555_v37 = vpop.eup %8938  ;;  %v4803_v8 = vmul.f32 1.442695, %v4737_v50  ;;  %v4805_v26 = vmul.f32 1.442695, %v4738_v60  ;;  %v3980_v50 = vmul.f32 %v8937_v28, %v12376_v33 }
 0x758   : > { %v12559_v34 = vpop.eup %8940 }
 0x759   : > { %8944 = vpow2.f32 %v4803_v8  ;;  %v4927_v48 = vadd.f32 %v12559_v34, %v12555_v37 }
 0x75a   : > { %8946 = vpow2.f32 %v4805_v26  ;;  %v8943_v53 = vpop.eup %8942  ;;  %v4172_v25 = vpop.f32.mrf.mxu0 }
 0x75b   : > { %4664 = vmax.xlane.f32.xlu0 %v4663_v41  ;;  %4928 = vadd.xlane.f32.xlu1 %v4927_v48  ;;  %v4261_v20 = vpop.f32.mrf.mxu1  ;;  %v3883_v6 = vpop.xlane.xlu1 %3882  ;;  %v3981_v44 = vmul.f32 %v8943_v53, %v12392_v9  ;;  %v3982_v60 = vmul.f32 %v8943_v53, %v12394_v17  ;;  %v4666_v9 = vmax.f32 %v12533_v56, %v12535_v1  ;;  %v8525_v17 = vld [vmem:[%s14458_s1 + $0xb4] sm:$0xf] }
 0x75c   : > { %v12568_v38 = vadd.f32 %v4261_v20, %v4172_v25  ;;  %v4647_v4 = vpop.xlane.xlu0 %4646 }
 0x75d   : > { %v4739_v8 = vsub.f32 %v12388_v19, %v4647_v4  ;;  %v4740_v26 = vsub.f32 %v12390_v7, %v4647_v4  ;;  %v4019_v41 = vpack.c.bf16 %v3981_v44, %v3979_v59  ;;  %v4020_v48 = vpack.c.bf16 %v3982_v60, %v3980_v50  ;;  %v12583_v19 = vpop.f32.mrf.mxu2  ;;  %v12585_v7 = vpop.f32.mrf.mxu3 }
 0x75e   : > { %14780 = vst [vmem:[#allocation34_spill] sm:$0xff] %v12568_v38  ;;  %v4669_v60 = vmax.f32 %v12563_v5, %v12565_v2 }
 0x75f   : > { %v12575_v63 = vpop.eup %8944  ;;  %v4807_v31 = vmul.f32 1.442695, %v4739_v8  ;;  %v4809_v32 = vmul.f32 1.442695, %v4740_v26 }
 0x760   : > { %v12577_v25 = vpop.eup %8946  ;;  %4191 = vmatmul.bf16.gmra.mxu0 %v4019_v41  ;;  %4280 = vmatmul.bf16.gmra.mxu1 %v4020_v48 }
 0x761   : > { %8948 = vpow2.f32 %v4807_v31  ;;  %v4930_v33 = vadd.f32 %v12577_v25, %v12575_v63  ;;  %v8150_v31 = vld [vmem:[%s14458_s1 + $0xb8] sm:$0xf0] }
 0x762   : > { %8950 = vpow2.f32 %v4809_v32  ;;  %v8153_v20 = vor.u32 %v8525_v17, %v8150_v31 }
 0x763   : > { %8952 = vrcp.f32 %v3883_v6  ;;  %4931 = vadd.xlane.f32.xlu2 %v4930_v33  ;;  %4667 = vmax.xlane.f32.xlu1 %v4666_v9  ;;  %v4650_v28 = vpop.xlane.xlu1 %4649  ;;  %v3886_v53 = vpop.xlane.xlu2 %3885 }
 0x764   : > { %v4741_v59 = vsub.f32 %v12414_v54, %v4650_v28  ;;  %v4742_v6 = vsub.f32 %v12416_v11, %v4650_v28  ;;  %8954 = vrcp.f32 %v3886_v53  ;;  %4524 = vmatmul.bf16.gmra.mxu2 %v8153_v20  ;;  %4613 = vmatmul.bf16.gmra.mxu3 %v8153_v20 }
 0x766   : > { %v4811_v44 = vmul.f32 1.442695, %v4741_v59  ;;  %v4813_v50 = vmul.f32 1.442695, %v4742_v6  ;;  %v12611_v59 = vpop.f32.mrf.mxu2  ;;  %v12613_v6 = vpop.f32.mrf.mxu3 }
 0x767   : > { %v12595_v4 = vpop.eup %8948 }
 0x768   : > { %v12599_v8 = vpop.eup %8950  ;;  %8956 = vpow2.f32 %v4811_v44 }
 0x769   : > { %v8953_v26 = vpop.eup %8952  ;;  %v4933_v41 = vadd.f32 %v12599_v8, %v12595_v4  ;;  %8958 = vpow2.f32 %v4813_v50 }
 0x76a   : > { %v8955_v54 = vpop.eup %8954  ;;  %v3983_v32 = vmul.f32 %v8953_v26, %v12408_v46  ;;  %v3984_v9 = vmul.f32 %v8953_v26, %v12412_v14 }
 0x76b   : > { %4934 = vadd.xlane.f32.xlu2 %v4933_v41  ;;  %4670 = vmax.xlane.f32.xlu1 %v4669_v60  ;;  %v4653_v11 = vpop.xlane.xlu1 %4652  ;;  %v12603_v48 = vpop.xlane.xlu2 %3888  ;;  %v3985_v33 = vmul.f32 %v8955_v54, %v12422_v18  ;;  %v3986_v17 = vmul.f32 %v8955_v54, %v12424_v16  ;;  %v4672_v18 = vmax.f32 %v12583_v19, %v12585_v7  ;;  %v8527_v16 = vld [vmem:[%s14458_s1 + $0xc4] sm:$0xf] }
 0x76c   : > { %v4743_v31 = vsub.f32 %v12426_v58, %v4653_v11  ;;  %v4744_v28 = vsub.f32 %v12428_v61, %v4653_v11  ;;  %v8154_v58 = vld [vmem:[%s14458_s1 + $0xc8] sm:$0xf0] }
 0x76d   : > { %v4021_v53 = vpack.c.bf16 %v3985_v33, %v3983_v32  ;;  %v4022_v20 = vpack.c.bf16 %v3986_v17, %v3984_v9  ;;  %v8157_v26 = vor.u32 %v8527_v16, %v8154_v58  ;;  %v4675_v9 = vmax.f32 %v12611_v59, %v12613_v6  ;;  %v8158_v16 = vld [vmem:[%s14458_s1 + $0xd8] sm:$0xf0] }
 0x76e   : > { %v12615_v44 = vpop.eup %8956  ;;  %v4815_v50 = vmul.f32 1.442695, %v4743_v31  ;;  %v4817_v46 = vmul.f32 1.442695, %v4744_v28  ;;  %v12637_v31 = vpop.f32.mrf.mxu2 }
 0x76f   : > { %v12617_v60 = vpop.eup %8958  ;;  %v12639_v28 = vpop.f32.mrf.mxu3 }
 0x770   : > { %4196 = vmatmul.bf16.gmra.mxu0 %v4021_v53  ;;  %4285 = vmatmul.bf16.gmra.mxu1 %v4022_v20  ;;  %8960 = vpow2.f32 %v4815_v50  ;;  %v4936_v14 = vadd.f32 %v12617_v60, %v12615_v44  ;;  %v8529_v50 = vld [vmem:[%s14458_s1 + $0xd4] sm:$0xf] }
 0x771   : > { %8962 = vpow2.f32 %v4817_v46 }
 0x772   : > { %4937 = vadd.xlane.f32.xlu0 %v4936_v14 }
 0x773   : > { %4673 = vmax.xlane.f32.xlu2 %v4672_v18  ;;  %v4656_v61 = vpop.xlane.xlu2 %4655 }
 0x774   : > { %v4745_v41 = vsub.f32 %v12448_v24, %v4656_v61  ;;  %v4746_v54 = vsub.f32 %v12450_v30, %v4656_v61  ;;  %4529 = vmatmul.bf16.gmra.mxu2 %v8157_v26  ;;  %4618 = vmatmul.bf16.gmra.mxu3 %v8157_v26 }
 0x776   : > { %v12631_v11 = vpop.eup %8960  ;;  %v4819_v32 = vmul.f32 1.442695, %v4745_v41  ;;  %v4821_v33 = vmul.f32 1.442695, %v4746_v54  ;;  %v12655_v61 = vpop.f32.mrf.mxu2  ;;  %v8161_v41 = vor.u32 %v8529_v50, %v8158_v16 }
 0x777   : > { %v12635_v17 = vpop.eup %8962  ;;  %v12657_v26 = vpop.f32.mrf.mxu3 }
 0x778   : > { %8964 = vpow2.f32 %v4819_v32  ;;  %v4939_v24 = vadd.f32 %v12635_v17, %v12631_v11  ;;  %v4681_v32 = vmax.f32 %v12655_v61, %v12657_v26  ;;  %v12685_v16 = vpop.f32.mrf.mxu1 }
 0x779   : > { %8966 = vpow2.f32 %v4821_v33  ;;  %14782 = vst [vmem:[#allocation57_spill] sm:$0xff] %v12685_v16 }
 0x77a   : > { %4940 = vadd.xlane.f32.xlu0 %v4939_v24 }
 0x77b   : > { %4676 = vmax.xlane.f32.xlu2 %v4675_v9  ;;  %v4659_v30 = vpop.xlane.xlu2 %4658 }
 0x77c   : > { %v4747_v53 = vsub.f32 %v12454_v21, %v4659_v30  ;;  %v4748_v20 = vsub.f32 %v12456_v27, %v4659_v30  ;;  %v4678_v21 = vmax.f32 %v12637_v31, %v12639_v28 }
 0x77e   : > { %v12648_v46 = vpop.eup %8964  ;;  %v4823_v14 = vmul.f32 1.442695, %v4747_v53  ;;  %v4825_v18 = vmul.f32 1.442695, %v4748_v20  ;;  %v12671_v24 = vpop.f32.mrf.mxu2 }
 0x77f   : > { %v12653_v58 = vpop.eup %8966  ;;  %v12673_v30 = vpop.f32.mrf.mxu3 }
 0x780   : > { %8968 = vpow2.f32 %v4823_v14  ;;  %v4942_v27 = vadd.f32 %v12653_v58, %v12648_v46  ;;  %v4684_v53 = vmax.f32 %v12671_v24, %v12673_v30 }
 0x781   : > { %8970 = vpow2.f32 %v4825_v18  ;;  %v12683_v18 = vpop.f32.mrf.mxu0 }
 0x782   : > { %4679 = vmax.xlane.f32.xlu0 %v4678_v21  ;;  %4943 = vadd.xlane.f32.xlu1 %v4942_v27  ;;  %14781 = vst [vmem:[#allocation59_spill] sm:$0xff] %v12683_v18  ;;  %8972 = vrcp.f32 %v12603_v48 }
 0x784   : > { %4534 = vmatmul.bf16.gmra.mxu2 %v8161_v41  ;;  %4623 = vmatmul.bf16.gmra.mxu3 %v8161_v41 }
 0x786   : > { %v12663_v54 = vpop.eup %8968  ;;  %v12677_v20 = vpop.f32.mrf.mxu2 }
 0x787   : > { %v12667_v33 = vpop.eup %8970  ;;  %v12679_v50 = vpop.f32.mrf.mxu3 }
 0x788   : > { %v4945_v9 = vadd.f32 %v12667_v33, %v12663_v54  ;;  %v4687_v14 = vmax.f32 %v12677_v20, %v12679_v50  ;;  %v8973_v38 = vpop.eup %8972 }
 0x789   : > { %v3987_v18 = vmul.f32 %v8973_v38, %v12440_v12 }
 0x78a   : > { %4682 = vmax.xlane.f32.xlu0 %v4681_v32  ;;  %4946 = vadd.xlane.f32.xlu1 %v4945_v9 }
 0x792   : > { %4685 = vmax.xlane.f32.xlu1 %v4684_v53 }
 0x79a   : > { %4688 = vmax.xlane.f32.xlu1 %v4687_v14 }
 0x7ad   : > { %v4177_v21 = vpop.f32.mrf.mxu0  ;;  %v4266_v27 = vpop.f32.mrf.mxu1 }
 0x7ae   : > { %v12687_v41 = vadd.f32 %v4266_v27, %v4177_v21  ;;  %v3988_v27 = vmul.f32 %v8973_v38, %v12444_v3 }
 0x7b0   : > { %14783 = vst [vmem:[#allocation60_spill] sm:$0xff] %v12687_v41 }
 0x7b5   : > { %v12690_v32 = vpop.f32.mrf.mxu0  ;;  %v12692_v9 = vpop.f32.mrf.mxu1 }
 0x7b6   : > { %14784 = vst [vmem:[#allocation22_spill] sm:$0xff] %v12690_v32  ;;  %v3892_v53 = vpop.xlane.xlu0 %3891 }
 0x7b7   : > { %14785 = vst [vmem:[#allocation43_spill] sm:$0xff] %v12692_v9  ;;  %8974 = vrcp.f32 %v3892_v53 }
 0x7bd   : > { %v8975_v49 = vpop.eup %8974  ;;  %v4182_v29 = vpop.f32.mrf.mxu0 }
 0x7be   : > { %v4271_v14 = vpop.f32.mrf.mxu1  ;;  %v3895_v16 = vpop.xlane.xlu0 %3894  ;;  %v3989_v21 = vmul.f32 %v8975_v49, %v12495_v51  ;;  %v3990_v48 = vmul.f32 %v8975_v49, %v12497_v40 }
 0x7bf   : > { %v12695_v36 = vadd.f32 %v4271_v14, %v4182_v29  ;;  %8976 = vrcp.f32 %v3895_v16  ;;  %v12706_v40 = vpop.f32.mrf.mxu2  ;;  %v12708_v49 = vpop.f32.mrf.mxu3 }
 0x7c0   : > { %v4023_v41 = vpack.c.bf16 %v3989_v21, %v3987_v18  ;;  %v4024_v32 = vpack.c.bf16 %v3990_v48, %v3988_v27 }
 0x7c1   : > { %14786 = vst [vmem:[#allocation58_spill] sm:$0xff] %v12695_v36 }
 0x7c2   : > { %4201 = vmatmul.bf16.gmra.mxu0 %v4023_v41  ;;  %4290 = vmatmul.bf16.gmra.mxu1 %v4024_v32 }
 0x7c5   : > { %v12700_v53 = vpop.f32.mrf.mxu0  ;;  %v8977_v38 = vpop.eup %8976 }
 0x7c6   : > { %14787 = vst [vmem:[#allocation61_spill] sm:$0xff] %v12700_v53  ;;  %v12702_v9 = vpop.f32.mrf.mxu1  ;;  %v4662_v23 = vpop.xlane.xlu0 %4661  ;;  %v3991_v32 = vmul.f32 %v8977_v38, %v12517_v47  ;;  %v8212_v53 = vld [vmem:[#allocation5 + $0xd0] sm:$0xf] }
 0x7c7   : > { %14788 = vst [vmem:[#allocation54_spill] sm:$0xff] %v12702_v9  ;;  %v3898_v12 = vpop.xlane.xlu1 %3897  ;;  %v4749_v29 = vsub.f32 %v12483_v57, %v4662_v23  ;;  %v4750_v14 = vsub.f32 %v12485_v52, %v4662_v23  ;;  %v3992_v52 = vmul.f32 %v8977_v38, %v12519_v43  ;;  %v8213_v0 = vor.u32 %v8562_v62, %v8212_v53 }
 0x7c8   : > { %8978 = vrcp.f32 %v3898_v12 }
 0x7c9   : > { %v4827_v51 = vmul.f32 1.442695, %v4749_v29  ;;  %v4829_v3 = vmul.f32 1.442695, %v4750_v14 }
 0x7cb   : > { %8980 = vpow2.f32 %v4827_v51 }
 0x7cc   : > { %8982 = vpow2.f32 %v4829_v3 }
 0x7cd   : > { %v4187_v16 = vpop.f32.mrf.mxu0 }
 0x7ce   : > { %v8979_v18 = vpop.eup %8978  ;;  %v4276_v41 = vpop.f32.mrf.mxu1 }
 0x7cf   : > { %v12711_v21 = vadd.f32 %v4276_v41, %v4187_v16  ;;  %v4665_v57 = vpop.xlane.xlu0 %4664  ;;  %v4929_v27 = vpop.xlane.xlu1 %4928  ;;  %v3993_v23 = vmul.f32 %v8979_v18, %v12531_v35  ;;  %v3994_v48 = vmul.f32 %v8979_v18, %v12537_v45 }
 0x7d0   : > { %v4751_v12 = vsub.f32 %v12513_v55, %v4665_v57  ;;  %v4752_v29 = vsub.f32 %v12515_v13, %v4665_v57  ;;  %8984 = vrcp.f32 %v4929_v27  ;;  %v8531_v55 = vld [vmem:[%s14458_s1 + $0xe4] sm:$0xf]  ;;  %v8162_v13 = vld [vmem:[%s14458_s1 + $0xe8] sm:$0xf0]  ;;  %v12736_v57 = vpop.f32.mrf.mxu2  ;;  %v12738_v27 = vpop.f32.mrf.mxu3 }
 0x7d1   : > { %14789 = vst [vmem:[#allocation44_spill] sm:$0xff] %v12711_v21  ;;  %v4025_v14 = vpack.c.bf16 %v3993_v23, %v3991_v32  ;;  %v4026_v51 = vpack.c.bf16 %v3994_v48, %v3992_v52  ;;  %v12718_v3 = vpop.eup %8980  ;;  %v8165_v38 = vor.u32 %v8531_v55, %v8162_v13 }
 0x7d2   : > { %v4831_v36 = vmul.f32 1.442695, %v4751_v12  ;;  %v4833_v47 = vmul.f32 1.442695, %v4752_v29  ;;  %v12720_v16 = vpop.eup %8982 }
 0x7d3   : > { %4206 = vmatmul.bf16.gmra.mxu0 %v4025_v14  ;;  %4295 = vmatmul.bf16.gmra.mxu1 %v4026_v51  ;;  %v4948_v43 = vadd.f32 %v12720_v16, %v12718_v3 }
 0x7d4   : > { %8986 = vpow2.f32 %v4831_v36  ;;  %4539 = vmatmul.bf16.gmra.mxu2 %v8165_v38  ;;  %4628 = vmatmul.bf16.gmra.mxu3 %v8165_v38 }
 0x7d5   : > { %8988 = vpow2.f32 %v4833_v47  ;;  %4949 = vadd.xlane.f32.xlu2 %v4948_v43  ;;  %v12730_v45 = vpop.f32.mrf.mxu0 }
 0x7d6   : > { %14790 = vst [vmem:[#allocation53_spill] sm:$0xff] %v12730_v45  ;;  %v12732_v35 = vpop.f32.mrf.mxu1  ;;  %v4932_v36 = vpop.xlane.xlu2 %4931  ;;  %v8222_v45 = vld [vmem:[#allocation5 + $0xe8] sm:$0xf0] }
 0x7d7   : > { %14791 = vst [vmem:[#allocation55_spill] sm:$0xff] %v12732_v35  ;;  %v4668_v18 = vpop.xlane.xlu1 %4667  ;;  %8990 = vrcp.f32 %v4932_v36  ;;  %v8985_v23 = vpop.eup %8984 }
 0x7d8   : > { %v4753_v41 = vsub.f32 %v12533_v56, %v4668_v18  ;;  %v4754_v32 = vsub.f32 %v12535_v1, %v4668_v18  ;;  %v5055_v14 = vmul.f32 %v8985_v23, %v12555_v37  ;;  %v5056_v43 = vmul.f32 %v8985_v23, %v12559_v34  ;;  %v12756_v35 = vpop.f32.mrf.mxu2  ;;  %v12758_v34 = vpop.f32.mrf.mxu3  ;;  %v8166_v23 = vld [vmem:[%s14458_s1 + $0xf8] sm:$0xf0] }
 0x7da   : > { %v12740_v52 = vpop.eup %8986  ;;  %v4835_v48 = vmul.f32 1.442695, %v4753_v41  ;;  %v4837_v12 = vmul.f32 1.442695, %v4754_v32 }
 0x7db   : > { %v12742_v29 = vpop.eup %8988 }
 0x7dc   : > { %8992 = vpow2.f32 %v4835_v48  ;;  %v4951_v56 = vadd.f32 %v12742_v29, %v12740_v52 }
 0x7dd   : > { %8994 = vpow2.f32 %v4837_v12  ;;  %v8991_v1 = vpop.eup %8990  ;;  %v4192_v51 = vpop.f32.mrf.mxu0 }
 0x7de   : > { %4952 = vadd.xlane.f32.xlu2 %v4951_v56  ;;  %v4281_v47 = vpop.f32.mrf.mxu1  ;;  %v5057_v55 = vmul.f32 %v8991_v1, %v12575_v63  ;;  %v5058_v13 = vmul.f32 %v8991_v1, %v12577_v25  ;;  %v4935_v36 = vpop.xlane.xlu2 %4934  ;;  %v8533_v25 = vld [vmem:[%s14458_s1 + $0xf4] sm:$0xf] }
 0x7df   : > { %v12750_v38 = vadd.f32 %v4281_v47, %v4192_v51  ;;  %v4671_v18 = vpop.xlane.xlu1 %4670  ;;  %8996 = vrcp.f32 %v4935_v36  ;;  %v8169_v51 = vor.u32 %v8533_v25, %v8166_v23 }
 0x7e0   : > { %v4755_v41 = vsub.f32 %v12563_v5, %v4671_v18  ;;  %v4756_v32 = vsub.f32 %v12565_v2, %v4671_v18  ;;  %v5119_v48 = vpack.c.bf16 %v5057_v55, %v5055_v14  ;;  %v5120_v12 = vpack.c.bf16 %v5058_v13, %v5056_v43 }
 0x7e1   : > { %14792 = vst [vmem:[#allocation56_spill] sm:$0xff] %v12750_v38  ;;  %v4690_v5 = vmax.f32 %v12706_v40, %v12708_v49 }
 0x7e2   : > { %v12754_v37 = vpop.eup %8992  ;;  %v4839_v56 = vmul.f32 1.442695, %v4755_v41  ;;  %v4841_v21 = vmul.f32 1.442695, %v4756_v32  ;;  %v4693_v32 = vmax.f32 %v12736_v57, %v12738_v27 }
 0x7e3   : > { %v12760_v63 = vpop.eup %8994  ;;  %5223 = vmatmul.bf16.vlgmr.msra.gmra.mxu0 %v5119_v48  ;;  %5312 = vmatmul.bf16.vlgmr.msra.gmra.mxu1 %v5120_v12 }
 0x7e4   : > { %8998 = vpow2.f32 %v4839_v56  ;;  %v4954_v2 = vadd.f32 %v12760_v63, %v12754_v37  ;;  %4544 = vmatmul.bf16.gmra.mxu2 %v8169_v51  ;;  %4633 = vmatmul.bf16.gmra.mxu3 %v8169_v51  ;;  %v12786_v56 = vpop.f32.mrf.mxu2 }
 0x7e5   : > { %9000 = vpow2.f32 %v4841_v21  ;;  %v12772_v1 = vpop.f32.mrf.mxu0  ;;  %v4938_v47 = vpop.xlane.xlu0 %4937 }
 0x7e6   : > { %4691 = vmax.xlane.f32.xlu2 %v4690_v5  ;;  %4955 = vadd.xlane.f32.xlu0 %v4954_v2  ;;  %14793 = vst [vmem:[#allocation62_spill] sm:$0xff] %v12772_v1  ;;  %v12774_v14 = vpop.f32.mrf.mxu1  ;;  %v4674_v43 = vpop.xlane.xlu2 %4673  ;;  %9002 = vrcp.f32 %v4938_v47 }
 0x7e7   : > { %14794 = vst [vmem:[#allocation63_spill] sm:$0xff] %v12774_v14  ;;  %v4757_v21 = vsub.f32 %v12583_v19, %v4674_v43  ;;  %v4758_v55 = vsub.f32 %v12585_v7, %v4674_v43  ;;  %v8997_v13 = vpop.eup %8996  ;;  %v12788_v19 = vpop.f32.mrf.mxu3 }
 0x7e8   : > { %v5059_v25 = vmul.f32 %v8997_v13, %v12595_v4 }
 0x7e9   : > { %v4843_v36 = vmul.f32 1.442695, %v4757_v21  ;;  %v4845_v41 = vmul.f32 1.442695, %v4758_v55  ;;  %v5060_v21 = vmul.f32 %v8997_v13, %v12599_v8  ;;  %v4696_v8 = vmax.f32 %v12756_v35, %v12758_v34 }
 0x7ea   : > { %v12778_v18 = vpop.eup %8998 }
 0x7eb   : > { %v12782_v48 = vpop.eup %9000  ;;  %9004 = vpow2.f32 %v4843_v36 }
 0x7ec   : > { %v4957_v12 = vadd.f32 %v12782_v48, %v12778_v18  ;;  %9006 = vpow2.f32 %v4845_v41  ;;  %v9003_v7 = vpop.eup %9002 }
 0x7ed   : > { %v4197_v5 = vpop.f32.mrf.mxu0  ;;  %v4941_v23 = vpop.xlane.xlu0 %4940  ;;  %v5061_v43 = vmul.f32 %v9003_v7, %v12615_v44  ;;  %v5062_v55 = vmul.f32 %v9003_v7, %v12617_v60 }
 0x7ee   : > { %4694 = vmax.xlane.f32.xlu2 %v4693_v32  ;;  %4958 = vadd.xlane.f32.xlu0 %v4957_v12  ;;  %v4286_v2 = vpop.f32.mrf.mxu1  ;;  %v4677_v47 = vpop.xlane.xlu2 %4676 }
 0x7ef   : > { %v12791_v51 = vadd.f32 %v4286_v2, %v4197_v5  ;;  %v4759_v36 = vsub.f32 %v12611_v59, %v4677_v47  ;;  %v4760_v41 = vsub.f32 %v12613_v6, %v4677_v47  ;;  %v5121_v32 = vpack.c.bf16 %v5061_v43, %v5059_v25  ;;  %v12806_v59 = vpop.f32.mrf.mxu2  ;;  %v12808_v6 = vpop.f32.mrf.mxu3 }
 0x7f0   : > { %v5122_v12 = vpack.c.bf16 %v5062_v55, %v5060_v21 }
 0x7f1   : > { %14795 = vst [vmem:[#allocation41_spill] sm:$0xff] %v12791_v51  ;;  %v12798_v38 = vpop.eup %9004  ;;  %v4847_v14 = vmul.f32 1.442695, %v4759_v36  ;;  %v4849_v4 = vmul.f32 1.442695, %v4760_v41 }
 0x7f2   : > { %v12800_v1 = vpop.eup %9006  ;;  %v8563_v51 = vld [vmem:[#allocation5 + $0xe4] sm:$0xf] }
 0x7f3   : > { %5228 = vmatmul.bf16.gmra.mxu0 %v5121_v32  ;;  %5317 = vmatmul.bf16.gmra.mxu1 %v5122_v12  ;;  %9008 = vpow2.f32 %v4847_v14  ;;  %v4960_v44 = vadd.f32 %v12800_v1, %v12798_v38  ;;  %v8225_v9 = vor.u32 %v8563_v51, %v8222_v45  ;;  %v8206_v51 = vld [vmem:[#allocation5 + $0xc8] sm:$0xf0] }
 0x7f4   : > { %9010 = vpow2.f32 %v4849_v4 }
 0x7f5   : > { %9012 = vrcp.f32 %v4941_v23  ;;  %4961 = vadd.xlane.f32.xlu1 %v4960_v44  ;;  %v4680_v60 = vpop.xlane.xlu0 %4679  ;;  %v4944_v13 = vpop.xlane.xlu1 %4943  ;;  %v4699_v23 = vmax.f32 %v12786_v56, %v12788_v19 }
 0x7f6   : > { %4697 = vmax.xlane.f32.xlu0 %v4696_v8  ;;  %v4761_v7 = vsub.f32 %v12637_v31, %v4680_v60  ;;  %v4762_v14 = vsub.f32 %v12639_v28, %v4680_v60  ;;  %9014 = vrcp.f32 %v4944_v13 }
 0x7f7   : > { %v12828_v13 = vpop.f32.mrf.mxu2 }
 0x7f8   : > { %v4851_v2 = vmul.f32 1.442695, %v4761_v7  ;;  %v4853_v25 = vmul.f32 1.442695, %v4762_v14  ;;  %v12830_v7 = vpop.f32.mrf.mxu3 }
 0x7f9   : > { %v12812_v5 = vpop.eup %9008 }
 0x7fa   : > { %v12816_v47 = vpop.eup %9010  ;;  %9016 = vpow2.f32 %v4851_v2 }
 0x7fb   : > { %v9013_v43 = vpop.eup %9012  ;;  %v4963_v21 = vadd.f32 %v12816_v47, %v12812_v5  ;;  %9018 = vpow2.f32 %v4853_v25 }
 0x7fc   : > { %v9015_v55 = vpop.eup %9014  ;;  %v5063_v36 = vmul.f32 %v9013_v43, %v12631_v11  ;;  %v5064_v32 = vmul.f32 %v9013_v43, %v12635_v17  ;;  %v4702_v17 = vmax.f32 %v12806_v59, %v12808_v6 }
 0x7fd   : > { %4964 = vadd.xlane.f32.xlu1 %v4963_v21  ;;  %v4683_v31 = vpop.xlane.xlu0 %4682  ;;  %v12820_v28 = vpop.xlane.xlu1 %4946  ;;  %v5065_v41 = vmul.f32 %v9015_v55, %v12648_v46  ;;  %v5066_v12 = vmul.f32 %v9015_v55, %v12653_v58  ;;  %v4705_v55 = vmax.f32 %v12828_v13, %v12830_v7 }
 0x7fe   : > { %4700 = vmax.xlane.f32.xlu0 %v4699_v23  ;;  %v4763_v4 = vsub.f32 %v12655_v61, %v4683_v31  ;;  %v4764_v8 = vsub.f32 %v12657_v26, %v4683_v31 }
 0x7ff   : > { %v5123_v44 = vpack.c.bf16 %v5065_v41, %v5063_v36  ;;  %v5124_v60 = vpack.c.bf16 %v5066_v12, %v5064_v32  ;;  %v12848_v36 = vpop.f32.mrf.mxu2 }
 0x800   : > { %v12832_v14 = vpop.eup %9016  ;;  %v4855_v2 = vmul.f32 1.442695, %v4763_v4  ;;  %v4857_v11 = vmul.f32 1.442695, %v4764_v8  ;;  %v12850_v41 = vpop.f32.mrf.mxu3 }
 0x801   : > { %v12834_v25 = vpop.eup %9018 }
 0x802   : > { %9020 = vpow2.f32 %v4855_v2  ;;  %v4966_v46 = vadd.f32 %v12834_v25, %v12832_v14 }
 0x803   : > { %5233 = vmatmul.bf16.gmra.mxu0 %v5123_v44  ;;  %5322 = vmatmul.bf16.gmra.mxu1 %v5124_v60  ;;  %9022 = vpow2.f32 %v4857_v11 }
 0x804   : > { %4967 = vadd.xlane.f32.xlu2 %v4966_v46 }
 0x805   : > { %4703 = vmax.xlane.f32.xlu1 %v4702_v17  ;;  %v4686_v58 = vpop.xlane.xlu1 %4685  ;;  %v4708_v17 = vmax.f32 %v12848_v36, %v12850_v41 }
 0x806   : > { %v4765_v61 = vsub.f32 %v12671_v24, %v4686_v58  ;;  %v4766_v26 = vsub.f32 %v12673_v30, %v4686_v58 }
 0x807   : > { %v12860_v2 = vpop.f32.mrf.mxu2 }
 0x808   : > { %v12842_v23 = vpop.eup %9020  ;;  %v4859_v43 = vmul.f32 1.442695, %v4765_v61  ;;  %v4861_v21 = vmul.f32 1.442695, %v4766_v26  ;;  %v12862_v11 = vpop.f32.mrf.mxu3 }
 0x809   : > { %v12846_v31 = vpop.eup %9022 }
 0x80a   : > { %9024 = vpow2.f32 %v4859_v43  ;;  %v4969_v32 = vadd.f32 %v12846_v31, %v12842_v23 }
 0x80b   : > { %9026 = vpow2.f32 %v4861_v21 }
 0x80c   : > { %4970 = vadd.xlane.f32.xlu2 %v4969_v32 }
 0x80d   : > { %4706 = vmax.xlane.f32.xlu1 %v4705_v55  ;;  %v4689_v24 = vpop.xlane.xlu1 %4688 }
 0x80e   : > { %v4767_v30 = vsub.f32 %v12677_v20, %v4689_v24  ;;  %v4768_v12 = vsub.f32 %v12679_v50, %v4689_v24  ;;  %v4711_v50 = vmax.f32 %v12860_v2, %v12862_v11 }
 0x80f   : > { %v12876_v26 = vpop.f32.mrf.mxu2 }
 0x810   : > { %v12856_v4 = vpop.eup %9024  ;;  %v4863_v8 = vmul.f32 1.442695, %v4767_v30  ;;  %v4865_v44 = vmul.f32 1.442695, %v4768_v12  ;;  %v12878_v43 = vpop.f32.mrf.mxu3  ;;  %v8228_v30 = vld [vmem:[#allocation5 + $0xf0] sm:$0xf] }
 0x811   : > { %v12858_v60 = vpop.eup %9026  ;;  %v4714_v21 = vmax.f32 %v12876_v26, %v12878_v43  ;;  %v8566_v12 = vld [vmem:[#allocation5 + $0xf4] sm:$0xf0] }
 0x812   : > { %9028 = vpow2.f32 %v4863_v8  ;;  %v4972_v46 = vadd.f32 %v12858_v60, %v12856_v4  ;;  %v8565_v8 = vld [vmem:[#allocation5 + $0xf4] sm:$0xf] }
 0x813   : > { %9030 = vpow2.f32 %v4865_v44  ;;  %v8229_v44 = vor.u32 %v8566_v12, %v8228_v30  ;;  %v12888_v30 = vpop.f32.mrf.mxu0  ;;  %v12890_v12 = vpop.f32.mrf.mxu1 }
 0x814   : > { %4709 = vmax.xlane.f32.xlu2 %v4708_v17  ;;  %4973 = vadd.xlane.f32.xlu0 %v4972_v46  ;;  %v8230_v17 = vld [vmem:[#allocation5 + $0xf8] sm:$0xf0]  ;;  %14796 = vst [vmem:[#allocation23_spill] sm:$0xff] %v12888_v30  ;;  %9032 = vrcp.f32 %v12820_v28  ;;  %v8174_v30 = vld [vmem:[#allocation5 + $0x88] sm:$0xf0] }
 0x815   : > { %v8233_v46 = vor.u32 %v8565_v8, %v8230_v17  ;;  %5505 = vmatpush.bf16.msrb.mxu2 %v8229_v44  ;;  %14797 = vst [vmem:[#allocation30_spill] sm:$0xff] %v12890_v12  ;;  %v8560_v8 = vld [vmem:[#allocation5 + $0xc4] sm:$0xf0]  ;;  %v8559_v44 = vld [vmem:[#allocation5 + $0xc4] sm:$0xf] }
 0x816   : > { %v8209_v62 = vor.u32 %v8559_v44, %v8206_v51  ;;  %v8555_v12 = vld [vmem:[#allocation5 + $0xa4] sm:$0xf]  ;;  %v8180_v44 = vld [vmem:[#allocation5 + $0x90] sm:$0xf]  ;;  %v8554_v51 = vld [vmem:[#allocation5 + $0x94] sm:$0xf0] }
 0x817   : > { %v12882_v55 = vpop.f32.mrf.mxu2  ;;  %5594 = vmatpush.bf16.msrb.mxu3 %v8233_v46 }
 0x818   : > { %v12868_v20 = vpop.eup %9028  ;;  %v12884_v32 = vpop.f32.mrf.mxu3 }
 0x819   : > { %v12872_v58 = vpop.eup %9030  ;;  %v4717_v24 = vmax.f32 %v12882_v55, %v12884_v32 }
 0x81a   : > { %v4975_v61 = vadd.f32 %v12872_v58, %v12868_v20 }
 0x81b   : > { %5595 = vmatpush.bf16.msrb.mxu3 %v8225_v9  ;;  %v8557_v9 = vld [vmem:[#allocation5 + $0xb4] sm:$0xf] }
 0x81c   : > { %4712 = vmax.xlane.f32.xlu2 %v4711_v50  ;;  %4976 = vadd.xlane.f32.xlu0 %v4975_v61  ;;  %v8220_v50 = vld [vmem:[#allocation5 + $0xe0] sm:$0xf]  ;;  %v8564_v61 = vld [vmem:[#allocation5 + $0xe4] sm:$0xf0]  ;;  %v8201_v53 = vor.u32 %v8557_v9, %v8198_v42  ;;  %v9033_v9 = vpop.eup %9032 }
 0x81d   : > { %v8172_v42 = vld [vmem:[#allocation5 + $0x80] sm:$0xf] }
 0x81f   : > { %5596 = vmatpush.bf16.msrb.mxu3 %v8217_v15  ;;  %v8188_v15 = vld [vmem:[#allocation5 + $0xa0] sm:$0xf] }
 0x823   : > { %5597 = vmatpush.bf16.msrb.mxu3 %v8209_v62  ;;  %v8181_v62 = vor.u32 %v8554_v51, %v8180_v44 }
 0x824   : > { %4715 = vmax.xlane.f32.xlu0 %v4714_v21  ;;  %v8221_v21 = vor.u32 %v8564_v61, %v8220_v50  ;;  %v8196_v50 = vld [vmem:[#allocation5 + $0xb0] sm:$0xf]  ;;  %v8558_v61 = vld [vmem:[#allocation5 + $0xb4] sm:$0xf0] }
 0x825   : > { %v8197_v10 = vor.u32 %v8558_v61, %v8196_v50  ;;  %v8553_v50 = vld [vmem:[#allocation5 + $0x94] sm:$0xf]  ;;  %v8182_v61 = vld [vmem:[#allocation5 + $0x98] sm:$0xf0] }
 0x826   : > { %5506 = vmatpush.bf16.msrb.mxu2 %v8221_v21  ;;  %v8185_v28 = vor.u32 %v8553_v50, %v8182_v61 }
 0x827   : > { %5598 = vmatpush.bf16.msrb.mxu3 %v8201_v53  ;;  %v8551_v53 = vld [vmem:[#allocation5 + $0x84] sm:$0xf] }
 0x82a   : > { %5507 = vmatpush.bf16.msrb.mxu2 %v8213_v0  ;;  %v8556_v0 = vld [vmem:[#allocation5 + $0xa4] sm:$0xf0] }
 0x82c   : > { %4718 = vmax.xlane.f32.xlu0 %v4717_v24  ;;  %v8204_v24 = vld [vmem:[#allocation5 + $0xc0] sm:$0xf] }
 0x82d   : > { %v8205_v45 = vor.u32 %v8560_v8, %v8204_v24 }
 0x82f   : > { %5508 = vmatpush.bf16.msrb.mxu2 %v8205_v45 }
 0x833   : > { %5509 = vmatpush.bf16.msrb.mxu2 %v8197_v10  ;;  %v8552_v10 = vld [vmem:[#allocation5 + $0x84] sm:$0xf0] }
 0x83f   : > { %v4202_v17 = vpop.f32.mrf.mxu0  ;;  %v4291_v46 = vpop.f32.mrf.mxu1 }
 0x840   : > { %v12892_v21 = vadd.f32 %v4291_v46, %v4202_v17  ;;  %v8189_v17 = vor.u32 %v8556_v0, %v8188_v15  ;;  %v8190_v46 = vld [vmem:[#allocation5 + $0xa8] sm:$0xf0] }
 0x841   : > { %v8193_v45 = vor.u32 %v8555_v12, %v8190_v46  ;;  %v5068_v12 = vmul.f32 %v9033_v9, %v12667_v33  ;;  %v8173_v46 = vor.u32 %v8552_v10, %v8172_v42 }
 0x842   : > { %14798 = vst [vmem:[#allocation29_spill] sm:$0xff] %v12892_v21  ;;  %5510 = vmatpush.bf16.msrb.mxu2 %v8189_v17 }
 0x843   : > { %5599 = vmatpush.bf16.msrb.mxu3 %v8193_v45  ;;  %v8177_v45 = vor.u32 %v8551_v53, %v8174_v30 }
 0x846   : > { %5511 = vmatpush.bf16.msrb.mxu2 %v8181_v62 }
 0x847   : > { %v12895_v24 = vpop.f32.mrf.mxu0  ;;  %v12897_v8 = vpop.f32.mrf.mxu1  ;;  %5600 = vmatpush.bf16.msrb.mxu3 %v8185_v28 }
 0x848   : > { %14799 = vst [vmem:[#allocation28_spill] sm:$0xff] %v12895_v24  ;;  %v4950_v21 = vpop.xlane.xlu2 %4949  ;;  %v5067_v24 = vmul.f32 %v9033_v9, %v12663_v54 }
 0x849   : > { %14800 = vst [vmem:[#allocation21_spill] sm:$0xff] %v12897_v8  ;;  %9034 = vrcp.f32 %v4950_v21 }
 0x84a   : > { %5512 = vmatpush.bf16.msrb.mxu2 %v8173_v46 }
 0x84b   : > { %5601 = vmatpush.bf16.msrb.mxu3 %v8177_v45 }
 0x84f   : > { %v9035_v8 = vpop.eup %9034 }
 0x850   : > { %v4207_v15 = vpop.f32.mrf.mxu0  ;;  %v4296_v0 = vpop.f32.mrf.mxu1  ;;  %v5069_v44 = vmul.f32 %v9035_v8, %v12718_v3  ;;  %v5070_v51 = vmul.f32 %v9035_v8, %v12720_v16 }
 0x851   : > { %v12901_v21 = vadd.f32 %v4296_v0, %v4207_v15  ;;  %v4953_v17 = vpop.xlane.xlu2 %4952 }
 0x852   : > { %v5125_v50 = vpack.c.bf16 %v5069_v44, %v5067_v24  ;;  %v5126_v61 = vpack.c.bf16 %v5070_v51, %v5068_v12  ;;  %9036 = vrcp.f32 %v4953_v17 }
 0x854   : > { %5238 = vmatmul.bf16.gmra.mxu0 %v5125_v50  ;;  %5327 = vmatmul.bf16.gmra.mxu1 %v5126_v61 }
 0x858   : > { %v12905_v54 = vpop.f32.mrf.mxu0  ;;  %v12907_v33 = vpop.f32.mrf.mxu1 }
 0x859   : > { %v4956_v62 = vpop.xlane.xlu0 %4955  ;;  %v4692_v28 = vpop.xlane.xlu2 %4691 }
 0x85a   : > { %9038 = vrcp.f32 %v4956_v62  ;;  %v4769_v9 = vsub.f32 %v12706_v40, %v4692_v28  ;;  %v4770_v3 = vsub.f32 %v12708_v49, %v4692_v28  ;;  %v9037_v8 = vpop.eup %9036 }
 0x85b   : > { %v5071_v0 = vmul.f32 %v9037_v8, %v12740_v52  ;;  %v5072_v46 = vmul.f32 %v9037_v8, %v12742_v29  ;;  %v12923_v29 = vpop.f32.mrf.mxu2 }
 0x85c   : > { %v4867_v16 = vmul.f32 1.442695, %v4769_v9  ;;  %v4869_v30 = vmul.f32 1.442695, %v4770_v3 }
 0x85e   : > { %9040 = vpow2.f32 %v4867_v16 }
 0x85f   : > { %9042 = vpow2.f32 %v4869_v30 }
 0x860   : > { %v9039_v24 = vpop.eup %9038  ;;  %v5224_v42 = vpop.f32.mrf.mxu0 }
 0x861   : > { %v5313_v10 = vpop.f32.mrf.mxu1  ;;  %v4959_v53 = vpop.xlane.xlu0 %4958  ;;  %v5073_v12 = vmul.f32 %v9039_v24, %v12754_v37  ;;  %v5074_v40 = vmul.f32 %v9039_v24, %v12760_v63 }
 0x862   : > { %v4695_v15 = vpop.xlane.xlu2 %4694  ;;  %v5314_v63 = vadd.f32 %v5313_v10, %v5224_v42 }
 0x863   : > { %v4771_v49 = vsub.f32 %v12736_v57, %v4695_v15  ;;  %v4772_v17 = vsub.f32 %v12738_v27, %v4695_v15  ;;  %v5127_v44 = vpack.c.bf16 %v5073_v12, %v5071_v0  ;;  %v5128_v51 = vpack.c.bf16 %v5074_v40, %v5072_v46  ;;  %v12925_v57 = vpop.f32.mrf.mxu3 }
 0x864   : > { %v12917_v45 = vpop.eup %9040 }
 0x865   : > { %v4871_v50 = vmul.f32 1.442695, %v4771_v49  ;;  %v4873_v61 = vmul.f32 1.442695, %v4772_v17  ;;  %v12919_v62 = vpop.eup %9042  ;;  %5243 = vmatmul.bf16.gmra.mxu0 %v5127_v44  ;;  %5332 = vmatmul.bf16.gmra.mxu1 %v5128_v51 }
 0x866   : > { %v4978_v52 = vadd.f32 %v12919_v62, %v12917_v45 }
 0x867   : > { %9044 = vpow2.f32 %v4871_v50 }
 0x868   : > { %9046 = vpow2.f32 %v4873_v61  ;;  %4979 = vadd.xlane.f32.xlu1 %v4978_v52  ;;  %v5226_v27 = vpop.f32.mrf.mxu0  ;;  %v4962_v3 = vpop.xlane.xlu1 %4961 }
 0x869   : > { %9048 = vrcp.f32 %v4959_v53  ;;  %v5315_v37 = vpop.f32.mrf.mxu1  ;;  %v4698_v28 = vpop.xlane.xlu0 %4697 }
 0x86a   : > { %v5316_v9 = vadd.f32 %v5315_v37, %v5226_v27  ;;  %v4773_v16 = vsub.f32 %v12756_v35, %v4698_v28  ;;  %v4774_v30 = vsub.f32 %v12758_v34, %v4698_v28  ;;  %9050 = vrcp.f32 %v4962_v3  ;;  %v12941_v37 = vpop.f32.mrf.mxu2 }
 0x86c   : > { %v5393_v8 = vpack.c.bf16 %v5316_v9, %v5314_v63  ;;  %v4875_v15 = vmul.f32 1.442695, %v4773_v16  ;;  %v4877_v0 = vmul.f32 1.442695, %v4774_v30  ;;  %v12943_v63 = vpop.f32.mrf.mxu3 }
 0x86d   : > { %v12929_v24 = vpop.eup %9044 }
 0x86e   : > { %v12931_v12 = vpop.eup %9046  ;;  %5513 = vmatmul.bf16.vlgmr.msrb.gmra.mxu2 %v5393_v8  ;;  %5602 = vmatmul.bf16.vlgmr.msrb.gmra.mxu3 %v5393_v8  ;;  %9052 = vpow2.f32 %v4875_v15 }
 0x86f   : > { %v9049_v53 = vpop.eup %9048  ;;  %v4981_v42 = vadd.f32 %v12931_v12, %v12929_v24  ;;  %9054 = vpow2.f32 %v4877_v0 }
 0x870   : > { %v9051_v10 = vpop.eup %9050  ;;  %v5229_v35 = vpop.f32.mrf.mxu0  ;;  %v5075_v49 = vmul.f32 %v9049_v53, %v12778_v18  ;;  %v5076_v44 = vmul.f32 %v9049_v53, %v12782_v48 }
 0x871   : > { %4982 = vadd.xlane.f32.xlu1 %v4981_v42  ;;  %v5318_v34 = vpop.f32.mrf.mxu1  ;;  %v4701_v46 = vpop.xlane.xlu0 %4700  ;;  %v5077_v17 = vmul.f32 %v9051_v10, %v12798_v38  ;;  %v5078_v51 = vmul.f32 %v9051_v10, %v12800_v1  ;;  %v4720_v38 = vmax.f32 %v12923_v29, %v12925_v57 }
 0x872   : > { %v4965_v40 = vpop.xlane.xlu1 %4964  ;;  %v4775_v50 = vsub.f32 %v12786_v56, %v4701_v46  ;;  %v4776_v61 = vsub.f32 %v12788_v19, %v4701_v46  ;;  %v5319_v19 = vadd.f32 %v5318_v34, %v5229_v35  ;;  %v12961_v35 = vpop.f32.mrf.mxu2 }
 0x873   : > { %v5129_v52 = vpack.c.bf16 %v5077_v17, %v5075_v49  ;;  %v5130_v27 = vpack.c.bf16 %v5078_v51, %v5076_v44 }
 0x874   : > { %v12945_v28 = vpop.eup %9052  ;;  %v4879_v9 = vmul.f32 1.442695, %v4775_v50  ;;  %v4881_v18 = vmul.f32 1.442695, %v4776_v61  ;;  %v12963_v34 = vpop.f32.mrf.mxu3 }
 0x875   : > { %v12947_v3 = vpop.eup %9054  ;;  %5248 = vmatmul.bf16.gmra.mxu0 %v5129_v52  ;;  %5337 = vmatmul.bf16.gmra.mxu1 %v5130_v27 }
 0x876   : > { %9056 = vpow2.f32 %v4879_v9  ;;  %v4984_v1 = vadd.f32 %v12947_v3, %v12945_v28 }
 0x877   : > { %9058 = vpow2.f32 %v4881_v18  ;;  %v4968_v8 = vpop.xlane.xlu2 %4967 }
 0x878   : > { %9060 = vrcp.f32 %v4965_v40  ;;  %4985 = vadd.xlane.f32.xlu2 %v4984_v1  ;;  %v5231_v48 = vpop.f32.mrf.mxu0  ;;  %v4723_v40 = vmax.f32 %v12941_v37, %v12943_v63 }
 0x879   : > { %4721 = vmax.xlane.f32.xlu1 %v4720_v38  ;;  %v5320_v56 = vpop.f32.mrf.mxu1  ;;  %9062 = vrcp.f32 %v4968_v8 }
 0x87a   : > { %v5321_v16 = vadd.f32 %v5320_v56, %v5231_v48  ;;  %v4704_v30 = vpop.xlane.xlu1 %4703 }
 0x87b   : > { %v4777_v15 = vsub.f32 %v12806_v59, %v4704_v30  ;;  %v4778_v0 = vsub.f32 %v12808_v6, %v4704_v30 }
 0x87c   : > { %v5394_v53 = vpack.c.bf16 %v5321_v16, %v5319_v19  ;;  %v12955_v42 = vpop.eup %9056 }
 0x87d   : > { %v4883_v10 = vmul.f32 1.442695, %v4777_v15  ;;  %v4885_v46 = vmul.f32 1.442695, %v4778_v0  ;;  %v12959_v49 = vpop.eup %9058 }
 0x87e   : > { %5518 = vmatmul.bf16.gmra.mxu2 %v5394_v53  ;;  %5607 = vmatmul.bf16.gmra.mxu3 %v5394_v53  ;;  %v9061_v59 = vpop.eup %9060  ;;  %v4987_v6 = vadd.f32 %v12959_v49, %v12955_v42 }
 0x87f   : > { %9064 = vpow2.f32 %v4883_v10  ;;  %v9063_v17 = vpop.eup %9062  ;;  %v4971_v61 = vpop.xlane.xlu2 %4970  ;;  %v5079_v52 = vmul.f32 %v9061_v59, %v12812_v5  ;;  %v5080_v9 = vmul.f32 %v9061_v59, %v12816_v47  ;;  %v4726_v5 = vmax.f32 %v12961_v35, %v12963_v34 }
 0x880   : > { %9066 = vpow2.f32 %v4885_v46  ;;  %4988 = vadd.xlane.f32.xlu2 %v4987_v6  ;;  %v5234_v44 = vpop.f32.mrf.mxu0  ;;  %v5081_v27 = vmul.f32 %v9063_v17, %v12832_v14  ;;  %v5082_v18 = vmul.f32 %v9063_v17, %v12834_v25 }
 0x881   : > { %4724 = vmax.xlane.f32.xlu1 %v4723_v40  ;;  %v5323_v51 = vpop.f32.mrf.mxu1 }
 0x882   : > { %v4707_v50 = vpop.xlane.xlu1 %4706  ;;  %v5131_v48 = vpack.c.bf16 %v5081_v27, %v5079_v52  ;;  %v5132_v56 = vpack.c.bf16 %v5082_v18, %v5080_v9  ;;  %v5324_v15 = vadd.f32 %v5323_v51, %v5234_v44 }
 0x883   : > { %v4779_v38 = vsub.f32 %v12828_v13, %v4707_v50  ;;  %v4780_v1 = vsub.f32 %v12830_v7, %v4707_v50  ;;  %v12981_v13 = vpop.f32.mrf.mxu2  ;;  %v12983_v7 = vpop.f32.mrf.mxu3 }
 0x885   : > { %v12973_v19 = vpop.eup %9064  ;;  %v4887_v16 = vmul.f32 1.442695, %v4779_v38  ;;  %v4889_v30 = vmul.f32 1.442695, %v4780_v1  ;;  %5253 = vmatmul.bf16.gmra.mxu0 %v5131_v48  ;;  %5342 = vmatmul.bf16.gmra.mxu1 %v5132_v56 }
 0x886   : > { %v12975_v8 = vpop.eup %9066 }
 0x887   : > { %9068 = vpow2.f32 %v4887_v16  ;;  %v4990_v47 = vadd.f32 %v12975_v8, %v12973_v19  ;;  %v4974_v0 = vpop.xlane.xlu0 %4973  ;;  %v4710_v10 = vpop.xlane.xlu2 %4709 }
 0x888   : > { %9070 = vpow2.f32 %v4889_v30  ;;  %4727 = vmax.xlane.f32.xlu2 %v4726_v5  ;;  %v5236_v14 = vpop.f32.mrf.mxu0  ;;  %v4781_v46 = vsub.f32 %v12848_v36, %v4710_v10  ;;  %v4782_v40 = vsub.f32 %v12850_v41, %v4710_v10 }
 0x889   : > { %9072 = vrcp.f32 %v4971_v61  ;;  %4991 = vadd.xlane.f32.xlu0 %v4990_v47  ;;  %v5325_v25 = vpop.f32.mrf.mxu1  ;;  %v4729_v61 = vmax.f32 %v12981_v13, %v12983_v7 }
 0x88a   : > { %v5326_v53 = vadd.f32 %v5325_v25, %v5236_v14  ;;  %9074 = vrcp.f32 %v4974_v0  ;;  %v4891_v17 = vmul.f32 1.442695, %v4781_v46  ;;  %v4893_v50 = vmul.f32 1.442695, %v4782_v40 }
 0x88b   : > { %v13001_v16 = vpop.f32.mrf.mxu2  ;;  %v13003_v30 = vpop.f32.mrf.mxu3 }
 0x88c   : > { %v5395_v59 = vpack.c.bf16 %v5326_v53, %v5324_v15  ;;  %9076 = vpow2.f32 %v4891_v17 }
 0x88d   : > { %v12987_v6 = vpop.eup %9068  ;;  %9078 = vpow2.f32 %v4893_v50 }
 0x88e   : > { %v12991_v52 = vpop.eup %9070  ;;  %5523 = vmatmul.bf16.gmra.mxu2 %v5395_v59  ;;  %5612 = vmatmul.bf16.gmra.mxu3 %v5395_v59 }
 0x88f   : > { %v9073_v44 = vpop.eup %9072  ;;  %v4993_v51 = vadd.f32 %v12991_v52, %v12987_v6  ;;  %v4977_v41 = vpop.xlane.xlu0 %4976 }
 0x890   : > { %v9075_v36 = vpop.eup %9074  ;;  %4730 = vmax.xlane.f32.xlu2 %v4729_v61  ;;  %v4713_v27 = vpop.xlane.xlu2 %4712  ;;  %v5083_v9 = vmul.f32 %v9073_v44, %v12842_v23  ;;  %v5084_v38 = vmul.f32 %v9073_v44, %v12846_v31  ;;  %v4732_v31 = vmax.f32 %v13001_v16, %v13003_v30 }
 0x891   : > { %4994 = vadd.xlane.f32.xlu0 %v4993_v51  ;;  %v5085_v18 = vmul.f32 %v9075_v36, %v12856_v4  ;;  %v5086_v1 = vmul.f32 %v9075_v36, %v12858_v60  ;;  %v4783_v48 = vsub.f32 %v12860_v2, %v4713_v27  ;;  %v4784_v56 = vsub.f32 %v12862_v11, %v4713_v27 }
 0x892   : > { %v13005_v14 = vpop.eup %9076 }
 0x893   : > { %v5133_v5 = vpack.c.bf16 %v5085_v18, %v5083_v9  ;;  %v5134_v47 = vpack.c.bf16 %v5086_v1, %v5084_v38  ;;  %v4895_v25 = vmul.f32 1.442695, %v4783_v48  ;;  %v4897_v23 = vmul.f32 1.442695, %v4784_v56  ;;  %v13007_v15 = vpop.eup %9078 }
 0x894   : > { %v4996_v4 = vadd.f32 %v13007_v15, %v13005_v14 }
 0x895   : > { %5258 = vmatmul.bf16.gmra.mxu0 %v5133_v5  ;;  %5347 = vmatmul.bf16.gmra.mxu1 %v5134_v47  ;;  %9080 = vpow2.f32 %v4895_v25 }
 0x896   : > { %9082 = vpow2.f32 %v4897_v23  ;;  %4997 = vadd.xlane.f32.xlu1 %v4996_v4 }
 0x897   : > { %v4716_v60 = vpop.xlane.xlu0 %4715 }
 0x898   : > { %v4785_v2 = vsub.f32 %v12876_v26, %v4716_v60  ;;  %v4786_v11 = vsub.f32 %v12878_v43, %v4716_v60 }
 0x899   : > { %4733 = vmax.xlane.f32.xlu0 %v4732_v31 }
 0x89a   : > { %v4899_v53 = vmul.f32 1.442695, %v4785_v2  ;;  %v4901_v10 = vmul.f32 1.442695, %v4786_v11 }
 0x89b   : > { %v13015_v0 = vpop.eup %9080 }
 0x89c   : > { %v13017_v46 = vpop.eup %9082  ;;  %9084 = vpow2.f32 %v4899_v53 }
 0x89d   : > { %v4999_v40 = vadd.f32 %v13017_v46, %v13015_v0  ;;  %9086 = vpow2.f32 %v4901_v10 }
 0x89f   : > { %5000 = vadd.xlane.f32.xlu1 %v4999_v40  ;;  %v4719_v59 = vpop.xlane.xlu0 %4718 }
 0x8a0   : > { %v4787_v17 = vsub.f32 %v12882_v55, %v4719_v59  ;;  %v4788_v50 = vsub.f32 %v12884_v32, %v4719_v59 }
 0x8a2   : > { %v13023_v26 = vpop.eup %9084  ;;  %v4903_v43 = vmul.f32 1.442695, %v4787_v17  ;;  %v4905_v61 = vmul.f32 1.442695, %v4788_v50 }
 0x8a3   : > { %v13025_v44 = vpop.eup %9086 }
 0x8a4   : > { %9088 = vpow2.f32 %v4903_v43  ;;  %v5002_v51 = vadd.f32 %v13025_v44, %v13023_v26 }
 0x8a5   : > { %9090 = vpow2.f32 %v4905_v61 }
 0x8a6   : > { %5003 = vadd.xlane.f32.xlu2 %v5002_v51  ;;  %9092 = vrcp.f32 %v4977_v41 }
 0x8aa   : > { %v13029_v36 = vpop.eup %9088 }
 0x8ab   : > { %v13031_v27 = vpop.eup %9090 }
 0x8ac   : > { %v5005_v55 = vadd.f32 %v13031_v27, %v13029_v36  ;;  %v9093_v47 = vpop.eup %9092 }
 0x8ad   : > { %v5087_v60 = vmul.f32 %v9093_v47, %v12868_v20  ;;  %v5088_v41 = vmul.f32 %v9093_v47, %v12872_v58 }
 0x8ae   : > { %5006 = vadd.xlane.f32.xlu0 %v5005_v55 }
 0x8d1   : > { %v5239_v32 = vpop.f32.mrf.mxu0  ;;  %v5328_v9 = vpop.f32.mrf.mxu1 }
 0x8d2   : > { %v5329_v1 = vadd.f32 %v5328_v9, %v5239_v32 }
 0x8d9   : > { %v5241_v18 = vpop.f32.mrf.mxu0  ;;  %v5330_v38 = vpop.f32.mrf.mxu1 }
 0x8da   : > { %v5331_v48 = vadd.f32 %v5330_v38, %v5241_v18 }
 0x8db   : > { %v4980_v56 = vpop.xlane.xlu1 %4979 }
 0x8dc   : > { %9094 = vrcp.f32 %v4980_v56  ;;  %v5396_v5 = vpack.c.bf16 %v5331_v48, %v5329_v1 }
 0x8de   : > { %5528 = vmatmul.bf16.gmra.mxu2 %v5396_v5  ;;  %5617 = vmatmul.bf16.gmra.mxu3 %v5396_v5 }
 0x8e2   : > { %v9095_v25 = vpop.eup %9094  ;;  %v5244_v23 = vpop.f32.mrf.mxu0 }
 0x8e3   : > { %v5333_v31 = vpop.f32.mrf.mxu1  ;;  %v5089_v2 = vmul.f32 %v9095_v25, %v12917_v45  ;;  %v5090_v11 = vmul.f32 %v9095_v25, %v12919_v62 }
 0x8e4   : > { %v4983_v4 = vpop.xlane.xlu1 %4982  ;;  %v5334_v17 = vadd.f32 %v5333_v31, %v5244_v23 }
 0x8e5   : > { %v5135_v53 = vpack.c.bf16 %v5089_v2, %v5087_v60  ;;  %v5136_v10 = vpack.c.bf16 %v5090_v11, %v5088_v41  ;;  %9096 = vrcp.f32 %v4983_v4 }
 0x8e7   : > { %5263 = vmatmul.bf16.gmra.mxu0 %v5135_v53  ;;  %5352 = vmatmul.bf16.gmra.mxu1 %v5136_v10 }
 0x8ea   : > { %v5246_v40 = vpop.f32.mrf.mxu0 }
 0x8eb   : > { %v5335_v59 = vpop.f32.mrf.mxu1  ;;  %v4986_v61 = vpop.xlane.xlu2 %4985 }
 0x8ec   : > { %v5336_v50 = vadd.f32 %v5335_v59, %v5246_v40  ;;  %v4722_v43 = vpop.xlane.xlu1 %4721  ;;  %9098 = vrcp.f32 %v4986_v61  ;;  %v9097_v62 = vpop.eup %9096 }
 0x8ed   : > { %v4789_v51 = vsub.f32 %v12923_v29, %v4722_v43  ;;  %v4790_v20 = vsub.f32 %v12925_v57, %v4722_v43  ;;  %v5091_v48 = vmul.f32 %v9097_v62, %v12929_v24  ;;  %v5092_v57 = vmul.f32 %v9097_v62, %v12931_v12 }
 0x8ee   : > { %v5397_v45 = vpack.c.bf16 %v5336_v50, %v5334_v17 }
 0x8ef   : > { %v4907_v58 = vmul.f32 1.442695, %v4789_v51  ;;  %v4909_v55 = vmul.f32 1.442695, %v4790_v20 }
 0x8f0   : > { %5533 = vmatmul.bf16.gmra.mxu2 %v5397_v45  ;;  %5622 = vmatmul.bf16.gmra.mxu3 %v5397_v45 }
 0x8f1   : > { %9100 = vpow2.f32 %v4907_v58 }
 0x8f2   : > { %9102 = vpow2.f32 %v4909_v55  ;;  %v9099_v32 = vpop.eup %9098  ;;  %v5249_v9 = vpop.f32.mrf.mxu0 }
 0x8f3   : > { %v5338_v18 = vpop.f32.mrf.mxu1  ;;  %v4989_v1 = vpop.xlane.xlu2 %4988  ;;  %v5093_v29 = vmul.f32 %v9099_v32, %v12945_v28  ;;  %v5094_v56 = vmul.f32 %v9099_v32, %v12947_v3 }
 0x8f4   : > { %v4725_v38 = vpop.xlane.xlu1 %4724 }
 0x8f5   : > { %v4791_v5 = vsub.f32 %v12941_v37, %v4725_v38  ;;  %v4792_v47 = vsub.f32 %v12943_v63, %v4725_v38  ;;  %v5137_v25 = vpack.c.bf16 %v5093_v29, %v5091_v48  ;;  %v5138_v23 = vpack.c.bf16 %v5094_v56, %v5092_v57 }
 0x8f6   : > { %v5339_v63 = vadd.f32 %v5338_v18, %v5249_v9 }
 0x8f7   : > { %v13047_v31 = vpop.eup %9100  ;;  %v4911_v4 = vmul.f32 1.442695, %v4791_v5  ;;  %v4913_v60 = vmul.f32 1.442695, %v4792_v47  ;;  %5268 = vmatmul.bf16.gmra.mxu0 %v5137_v25  ;;  %5357 = vmatmul.bf16.gmra.mxu1 %v5138_v23  ;;  %v8549_v5 = vld [vmem:[#allocation5 + $0x74] sm:$0xf] }
 0x8f8   : > { %v13049_v2 = vpop.eup %9102  ;;  %v8548_v47 = vld [vmem:[#allocation5 + $0x64] sm:$0xf0]  ;;  %v8547_v23 = vld [vmem:[#allocation5 + $0x64] sm:$0xf] }
 0x8f9   : > { %9104 = vpow2.f32 %v4911_v4  ;;  %v5008_v24 = vadd.f32 %v13049_v2, %v13047_v31  ;;  %v8286_v4 = vld [vmem:[#allocation5 + $0x68] sm:$0xf0] }
 0x8fa   : > { %9106 = vpow2.f32 %v4913_v60  ;;  %v5251_v12 = vpop.f32.mrf.mxu0 }
 0x8fb   : > { %9108 = vrcp.f32 %v4989_v1  ;;  %5009 = vadd.xlane.f32.xlu1 %v5008_v24  ;;  %v5340_v37 = vpop.f32.mrf.mxu1  ;;  %v4728_v41 = vpop.xlane.xlu2 %4727 }
 0x8fc   : > { %v4992_v28 = vpop.xlane.xlu0 %4991  ;;  %v5341_v3 = vadd.f32 %v5340_v37, %v5251_v12  ;;  %v4793_v11 = vsub.f32 %v12961_v35, %v4728_v41  ;;  %v4794_v53 = vsub.f32 %v12963_v34, %v4728_v41 }
 0x8fd   : > { %9110 = vrcp.f32 %v4992_v28 }
 0x8fe   : > { %v5398_v10 = vpack.c.bf16 %v5341_v3, %v5339_v63  ;;  %v4915_v59 = vmul.f32 1.442695, %v4793_v11  ;;  %v4917_v17 = vmul.f32 1.442695, %v4794_v53  ;;  %v8289_v53 = vor.u32 %v8547_v23, %v8286_v4  ;;  %v8546_v23 = vld [vmem:[#allocation5 + $0x54] sm:$0xf0] }
 0x8ff   : > { %v13055_v40 = vpop.eup %9104  ;;  %v8545_v4 = vld [vmem:[#allocation5 + $0x54] sm:$0xf] }
 0x900   : > { %v13057_v50 = vpop.eup %9106  ;;  %5538 = vmatmul.bf16.gmra.mxu2 %v5398_v10  ;;  %5627 = vmatmul.bf16.gmra.mxu3 %v5398_v10  ;;  %9112 = vpow2.f32 %v4915_v59 }
 0x901   : > { %v9109_v43 = vpop.eup %9108  ;;  %v5011_v61 = vadd.f32 %v13057_v50, %v13055_v40  ;;  %9114 = vpow2.f32 %v4917_v17 }
 0x902   : > { %v5254_v35 = vpop.f32.mrf.mxu0  ;;  %v5095_v58 = vmul.f32 %v9109_v43, %v12955_v42  ;;  %v5096_v62 = vmul.f32 %v9109_v43, %v12959_v49  ;;  %v8292_v42 = vld [vmem:[#allocation5 + $0x70] sm:$0xf] }
 0x903   : > { %v9111_v51 = vpop.eup %9110  ;;  %5012 = vadd.xlane.f32.xlu2 %v5011_v61  ;;  %v5343_v20 = vpop.f32.mrf.mxu1 }
 0x904   : > { %v4995_v34 = vpop.xlane.xlu0 %4994  ;;  %v4731_v45 = vpop.xlane.xlu2 %4730  ;;  %v5097_v55 = vmul.f32 %v9111_v51, %v12973_v19  ;;  %v5098_v32 = vmul.f32 %v9111_v51, %v12975_v8  ;;  %v8550_v19 = vld [vmem:[#allocation5 + $0x74] sm:$0xf0]  ;;  %v5344_v37 = vadd.f32 %v5343_v20, %v5254_v35 }
 0x905   : > { %v4795_v9 = vsub.f32 %v12981_v13, %v4731_v45  ;;  %v4796_v18 = vsub.f32 %v12983_v7, %v4731_v45  ;;  %v8293_v8 = vor.u32 %v8550_v19, %v8292_v42  ;;  %v8294_v13 = vld [vmem:[#allocation5 + $0x78] sm:$0xf0]  ;;  %v8284_v7 = vld [vmem:[#allocation5 + $0x60] sm:$0xf] }
 0x906   : > { %v5139_v38 = vpack.c.bf16 %v5097_v55, %v5095_v58  ;;  %v5140_v1 = vpack.c.bf16 %v5098_v32, %v5096_v62  ;;  %v13067_v48 = vpop.eup %9112  ;;  %v8297_v25 = vor.u32 %v8549_v5, %v8294_v13  ;;  %v8285_v12 = vor.u32 %v8548_v47, %v8284_v7 }
 0x907   : > { %v4919_v29 = vmul.f32 1.442695, %v4795_v9  ;;  %v4921_v57 = vmul.f32 1.442695, %v4796_v18  ;;  %v13069_v56 = vpop.eup %9114  ;;  %5763 = vmatpush.bf16.msrb.mxu0 %v8293_v8 }
 0x908   : > { %5273 = vmatmul.bf16.gmra.mxu0 %v5139_v38  ;;  %5362 = vmatmul.bf16.gmra.mxu1 %v5140_v1  ;;  %v5014_v49 = vadd.f32 %v13069_v56, %v13067_v48 }
 0x909   : > { %9116 = vpow2.f32 %v4919_v29  ;;  %v4998_v3 = vpop.xlane.xlu1 %4997  ;;  %5852 = vmatpush.bf16.msrb.mxu1 %v8297_v25  ;;  %v8276_v25 = vld [vmem:[#allocation5 + $0x50] sm:$0xf] }
 0x90a   : > { %9118 = vpow2.f32 %v4921_v57  ;;  %5015 = vadd.xlane.f32.xlu0 %v5014_v49  ;;  %v5256_v60 = vpop.f32.mrf.mxu0 }
 0x90b   : > { %9120 = vrcp.f32 %v4995_v34  ;;  %v5345_v24 = vpop.f32.mrf.mxu1  ;;  %5764 = vmatpush.bf16.msrb.mxu0 %v8285_v12 }
 0x90c   : > { %v4734_v63 = vpop.xlane.xlu0 %4733  ;;  %v5346_v28 = vadd.f32 %v5345_v24, %v5256_v60  ;;  %9122 = vrcp.f32 %v4998_v3  ;;  %v8277_v60 = vor.u32 %v8546_v23, %v8276_v25  ;;  %v8278_v24 = vld [vmem:[#allocation5 + $0x58] sm:$0xf0]  ;;  %v8538_v25 = vld [vmem:[#allocation5 + $0x14] sm:$0xf0]  ;;  %v8537_v23 = vld [vmem:[#allocation5 + $0x14] sm:$0xf] }
 0x90d   : > { %v4797_v41 = vsub.f32 %v13001_v16, %v4734_v63  ;;  %v4798_v11 = vsub.f32 %v13003_v30, %v4734_v63  ;;  %5853 = vmatpush.bf16.msrb.mxu1 %v8289_v53  ;;  %v8281_v12 = vor.u32 %v8545_v4, %v8278_v24  ;;  %v8544_v53 = vld [vmem:[#allocation5 + $0x44] sm:$0xf0]  ;;  %v8246_v24 = vld [vmem:[#allocation5 + $0x18] sm:$0xf0] }
 0x90e   : > { %v5399_v10 = vpack.c.bf16 %v5346_v28, %v5344_v37 }
 0x90f   : > { %v13075_v59 = vpop.eup %9116  ;;  %v4923_v17 = vmul.f32 1.442695, %v4797_v41  ;;  %v4925_v43 = vmul.f32 1.442695, %v4798_v11  ;;  %5765 = vmatpush.bf16.msrb.mxu0 %v8277_v60  ;;  %v8268_v11 = vld [vmem:[#allocation5 + $0x40] sm:$0xf] }
 0x910   : > { %v13077_v61 = vpop.eup %9118  ;;  %5543 = vmatmul.bf16.gmra.mxu2 %v5399_v10  ;;  %5632 = vmatmul.bf16.gmra.mxu3 %v5399_v10  ;;  %v8543_v10 = vld [vmem:[#allocation5 + $0x44] sm:$0xf] }
 0x911   : > { %v9121_v51 = vpop.eup %9120  ;;  %9124 = vpow2.f32 %v4923_v17  ;;  %v5017_v35 = vadd.f32 %v13077_v61, %v13075_v59  ;;  %5854 = vmatpush.bf16.msrb.mxu1 %v8281_v12  ;;  %v8269_v17 = vor.u32 %v8544_v53, %v8268_v11  ;;  %v8249_v12 = vor.u32 %v8537_v23, %v8246_v24  ;;  %v8535_v11 = vld [vmem:[#allocation5 + $0x4] sm:$0xf]  ;;  %v14807_v24 = vld [vmem:[#allocation49_spill] sm:$0xff] }
 0x912   : > { %9126 = vpow2.f32 %v4925_v43  ;;  %v9123_v16 = vpop.eup %9122  ;;  %v5259_v30 = vpop.f32.mrf.mxu0  ;;  %v5099_v34 = vmul.f32 %v9121_v51, %v12987_v6  ;;  %v5100_v58 = vmul.f32 %v9121_v51, %v12991_v52  ;;  %v8270_v43 = vld [vmem:[#allocation5 + $0x48] sm:$0xf0]  ;;  %v14805_v23 = vld [vmem:[#allocation35_spill] sm:$0xff] }
 0x913   : > { %5018 = vadd.xlane.f32.xlu1 %v5017_v35  ;;  %v5348_v20 = vpop.f32.mrf.mxu1  ;;  %v5101_v45 = vmul.f32 %v9123_v16, %v13005_v14  ;;  %v5102_v55 = vmul.f32 %v9123_v16, %v13007_v15  ;;  %v5001_v38 = vpop.xlane.xlu1 %5000  ;;  %v8273_v51 = vor.u32 %v8543_v10, %v8270_v43  ;;  %5766 = vmatpush.bf16.msrb.mxu0 %v8269_v17  ;;  %v8238_v10 = vld [vmem:[#allocation5 + $0x8] sm:$0xf0] }
 0x914   : > { %9128 = vrcp.f32 %v5001_v38  ;;  %v5349_v29 = vadd.f32 %v5348_v20, %v5259_v30 }
 0x915   : > { %v5141_v62 = vpack.c.bf16 %v5101_v45, %v5099_v34  ;;  %v5142_v32 = vpack.c.bf16 %v5102_v55, %v5100_v58  ;;  %5855 = vmatpush.bf16.msrb.mxu1 %v8273_v51  ;;  %v8241_v51 = vor.u32 %v8535_v11, %v8238_v10  ;;  %v14815_v10 = vld [vmem:[#allocation47_spill] sm:$0xff] }
 0x917   : > { %v13085_v9 = vpop.eup %9124 }
 0x918   : > { %v13087_v18 = vpop.eup %9126  ;;  %5278 = vmatmul.bf16.gmra.mxu0 %v5141_v62  ;;  %5367 = vmatmul.bf16.gmra.mxu1 %v5142_v32 }
 0x919   : > { %v5020_v1 = vadd.f32 %v13087_v18, %v13085_v9  ;;  %v5004_v57 = vpop.xlane.xlu2 %5003 }
 0x91a   : > { %v5261_v6 = vpop.f32.mrf.mxu0  ;;  %9130 = vrcp.f32 %v5004_v57  ;;  %v9129_v42 = vpop.eup %9128 }
 0x91b   : > { %5021 = vadd.xlane.f32.xlu2 %v5020_v1  ;;  %v5350_v14 = vpop.f32.mrf.mxu1  ;;  %v5103_v5 = vmul.f32 %v9129_v42, %v13015_v0  ;;  %v5104_v8 = vmul.f32 %v9129_v42, %v13017_v46  ;;  %v8260_v1 = vld [vmem:[#allocation5 + $0x30] sm:$0xf] }
 0x91c   : > { %v5351_v52 = vadd.f32 %v5350_v14, %v5261_v6  ;;  %v8542_v6 = vld [vmem:[#allocation5 + $0x34] sm:$0xf0]  ;;  %v8541_v14 = vld [vmem:[#allocation5 + $0x34] sm:$0xf] }
 0x91e   : > { %v5400_v15 = vpack.c.bf16 %v5351_v52, %v5349_v29  ;;  %v8261_v29 = vor.u32 %v8542_v6, %v8260_v1  ;;  %v8262_v52 = vld [vmem:[#allocation5 + $0x38] sm:$0xf0] }
 0x91f   : > { %v8265_v57 = vor.u32 %v8541_v14, %v8262_v52 }
 0x920   : > { %5548 = vmatmul.bf16.gmra.mxu2 %v5400_v15  ;;  %5637 = vmatmul.bf16.gmra.mxu3 %v5400_v15  ;;  %v9131_v19 = vpop.eup %9130 }
 0x921   : > { %v5105_v49 = vmul.f32 %v9131_v19, %v13023_v26  ;;  %v5106_v13 = vmul.f32 %v9131_v19, %v13025_v44  ;;  %v5007_v63 = vpop.xlane.xlu0 %5006  ;;  %5767 = vmatpush.bf16.msrb.mxu0 %v8261_v29  ;;  %5856 = vmatpush.bf16.msrb.mxu1 %v8265_v57  ;;  %v8252_v19 = vld [vmem:[#allocation5 + $0x20] sm:$0xf] }
 0x922   : > { %9132 = vrcp.f32 %v5007_v63 }
 0x923   : > { %v5143_v7 = vpack.c.bf16 %v5105_v49, %v5103_v5  ;;  %v5144_v47 = vpack.c.bf16 %v5106_v13, %v5104_v8  ;;  %v8540_v5 = vld [vmem:[#allocation5 + $0x24] sm:$0xf0]  ;;  %v8539_v49 = vld [vmem:[#allocation5 + $0x24] sm:$0xf]  ;;  %v8254_v13 = vld [vmem:[#allocation5 + $0x28] sm:$0xf0] }
 0x924   : > { %v8253_v8 = vor.u32 %v8540_v5, %v8252_v19 }
 0x926   : > { %5768 = vmatpush.bf16.msrb.mxu0 %v8253_v8 }
 0x928   : > { %5283 = vmatmul.bf16.gmra.mxu0 %v5143_v7  ;;  %5372 = vmatmul.bf16.gmra.mxu1 %v5144_v47  ;;  %v9133_v35 = vpop.eup %9132  ;;  %v8257_v7 = vor.u32 %v8539_v49, %v8254_v13  ;;  %v8244_v47 = vld [vmem:[#allocation5 + $0x10] sm:$0xf] }
 0x929   : > { %v5107_v34 = vmul.f32 %v9133_v35, %v13029_v36  ;;  %v5108_v58 = vmul.f32 %v9133_v35, %v13031_v27  ;;  %v8245_v60 = vor.u32 %v8538_v25, %v8244_v47  ;;  %v14804_v47 = vld [vmem:[#allocation31_spill] sm:$0xff] }
 0x92a   : > { %5857 = vmatpush.bf16.msrb.mxu1 %v8257_v7 }
 0x92b   : > { %5769 = vmatpush.bf16.msrb.mxu0 %v8245_v60 }
 0x92e   : > { %5858 = vmatpush.bf16.msrb.mxu1 %v8249_v12 }
 0x932   : > { %5859 = vmatpush.bf16.msrb.mxu1 %v8241_v51 }
 0x964   : > { %v5264_v37 = vpop.f32.mrf.mxu0  ;;  %v5353_v0 = vpop.f32.mrf.mxu1 }
 0x965   : > { %v5354_v28 = vadd.f32 %v5353_v0, %v5264_v37 }
 0x96c   : > { %v5266_v26 = vpop.f32.mrf.mxu0  ;;  %v5355_v46 = vpop.f32.mrf.mxu1 }
 0x96d   : > { %v5356_v44 = vadd.f32 %v5355_v46, %v5266_v26 }
 0x96e   : > { %v5010_v3 = vpop.xlane.xlu1 %5009 }
 0x96f   : > { %9134 = vrcp.f32 %v5010_v3  ;;  %v5401_v41 = vpack.c.bf16 %v5356_v44, %v5354_v28  ;;  %v8236_v3 = vld [vmem:[#allocation5] sm:$0xf] }
 0x971   : > { %5553 = vmatmul.bf16.gmra.mxu2 %v5401_v41  ;;  %5642 = vmatmul.bf16.gmra.mxu3 %v5401_v41  ;;  %v8536_v41 = vld [vmem:[#allocation5 + $0x4] sm:$0xf0] }
 0x972   : > { %v8237_v53 = vor.u32 %v8536_v41, %v8236_v3  ;;  %v14813_v41 = vld [vmem:[#allocation40_spill] sm:$0xff] }
 0x974   : > { %v5269_v30 = vpop.f32.mrf.mxu0  ;;  %v5358_v20 = vpop.f32.mrf.mxu1  ;;  %5770 = vmatpush.bf16.msrb.mxu0 %v8237_v53  ;;  %v14814_v53 = vld [vmem:[#allocation46_spill] sm:$0xff] }
 0x975   : > { %v9135_v16 = vpop.eup %9134 }
 0x976   : > { %v5109_v45 = vmul.f32 %v9135_v16, %v13047_v31  ;;  %v5110_v55 = vmul.f32 %v9135_v16, %v13049_v2  ;;  %v5013_v38 = vpop.xlane.xlu2 %5012  ;;  %v5359_v31 = vadd.f32 %v5358_v20, %v5269_v30 }
 0x977   : > { %9136 = vrcp.f32 %v5013_v38 }
 0x978   : > { %v5145_v62 = vpack.c.bf16 %v5109_v45, %v5107_v34  ;;  %v5146_v32 = vpack.c.bf16 %v5110_v55, %v5108_v58 }
 0x97a   : > { %5288 = vmatmul.bf16.gmra.mxu0 %v5145_v62  ;;  %5377 = vmatmul.bf16.gmra.mxu1 %v5146_v32 }
 0x97c   : > { %v5271_v15 = vpop.f32.mrf.mxu0  ;;  %v5360_v36 = vpop.f32.mrf.mxu1 }
 0x97d   : > { %v5361_v42 = vadd.f32 %v5360_v36, %v5271_v15  ;;  %v5016_v27 = vpop.xlane.xlu0 %5015  ;;  %v9137_v4 = vpop.eup %9136 }
 0x97e   : > { %9138 = vrcp.f32 %v5016_v27  ;;  %v5111_v26 = vmul.f32 %v9137_v4, %v13055_v40  ;;  %v5112_v28 = vmul.f32 %v9137_v4, %v13057_v50  ;;  %v14806_v4 = vld [vmem:[#allocation36_spill] sm:$0xff] }
 0x97f   : > { %v5402_v2 = vpack.c.bf16 %v5361_v42, %v5359_v31  ;;  %v14801_v31 = vld [vmem:[#allocation38_spill] sm:$0xff]  ;;  %v13110_v42 = vpop.f32.mrf.mxu2  ;;  %v4234_v60 = vadd.f32 %v14806_v4, %v14805_v23 }
 0x981   : > { %5558 = vmatmul.bf16.gmra.mxu2 %v5402_v2  ;;  %5647 = vmatmul.bf16.gmra.mxu3 %v5402_v2  ;;  %v4303_v12 = vpack.c.bf16 %v4234_v60, %v14807_v24 }
 0x984   : > { %v9139_v37 = vpop.eup %9138 }
 0x985   : > { %v5274_v0 = vpop.f32.mrf.mxu0  ;;  %v5363_v63 = vpop.f32.mrf.mxu1  ;;  %v5113_v46 = vmul.f32 %v9139_v37, %v13067_v48  ;;  %v5114_v44 = vmul.f32 %v9139_v37, %v13069_v56  ;;  %v14808_v37 = vld [vmem:[#allocation26_spill] sm:$0xff] }
 0x986   : > { %v5019_v35 = vpop.xlane.xlu1 %5018  ;;  %v5364_v48 = vadd.f32 %v5363_v63, %v5274_v0  ;;  %v14809_v0 = vld [vmem:[#allocation39_spill] sm:$0xff] }
 0x987   : > { %v5147_v17 = vpack.c.bf16 %v5113_v46, %v5111_v26  ;;  %v5148_v43 = vpack.c.bf16 %v5114_v44, %v5112_v28  ;;  %9140 = vrcp.f32 %v5019_v35  ;;  %v13114_v8 = vpop.f32.mrf.mxu2  ;;  %v4239_v63 = vadd.f32 %v14809_v0, %v14808_v37  ;;  %v14810_v26 = vld [vmem:[#allocation50_spill] sm:$0xff]  ;;  %v14811_v28 = vld [vmem:[#allocation24_spill] sm:$0xff]  ;;  %v14812_v44 = vld [vmem:[#allocation25_spill] sm:$0xff] }
 0x988   : > { %v4244_v3 = vadd.f32 %v14812_v44, %v14811_v28  ;;  %v14823_v37 = vld [vmem:[#allocation59_spill] sm:$0xff]  ;;  %v14824_v0 = vld [vmem:[#allocation57_spill] sm:$0xff] }
 0x989   : > { %v4304_v46 = vpack.c.bf16 %v4239_v63, %v14810_v26  ;;  %v4264_v63 = vadd.f32 %v14824_v0, %v14823_v37 }
 0x98a   : > { %5293 = vmatmul.bf16.gmra.mxu0 %v5147_v17  ;;  %5382 = vmatmul.bf16.gmra.mxu1 %v5148_v43  ;;  %v4305_v11 = vpack.c.bf16 %v4244_v3, %v14813_v41  ;;  %v4249_v17 = vadd.f32 %v14815_v10, %v14814_v53 }
 0x98d   : > { %v5276_v40 = vpop.f32.mrf.mxu0  ;;  %v5365_v50 = vpop.f32.mrf.mxu1 }
 0x98e   : > { %v5366_v56 = vadd.f32 %v5365_v50, %v5276_v40  ;;  %v5022_v16 = vpop.xlane.xlu2 %5021  ;;  %v9141_v20 = vpop.eup %9140  ;;  %v14816_v50 = vld [vmem:[#allocation45_spill] sm:$0xff] }
 0x98f   : > { %9142 = vrcp.f32 %v5022_v16  ;;  %v5115_v55 = vmul.f32 %v9141_v20, %v13075_v59  ;;  %v5116_v32 = vmul.f32 %v9141_v20, %v13077_v61  ;;  %v4224_v59 = vadd.f32 %v12256_v39, %v12254_v22  ;;  %v14802_v22 = vld [vmem:[#allocation32_spill] sm:$0xff]  ;;  %v13132_v43 = vpop.f32.mrf.mxu2 }
 0x990   : > { %v5403_v30 = vpack.c.bf16 %v5366_v56, %v5364_v48  ;;  %v14803_v39 = vld [vmem:[#allocation52_spill] sm:$0xff]  ;;  %v4306_v48 = vpack.c.bf16 %v4249_v17, %v14816_v50 }
 0x991   : > { %v4301_v61 = vpack.c.bf16 %v4224_v59, %v14801_v31  ;;  %v4229_v7 = vadd.f32 %v14803_v39, %v14802_v22  ;;  %v14822_v22 = vld [vmem:[#allocation42_spill] sm:$0xff] }
 0x992   : > { %5563 = vmatmul.bf16.gmra.mxu2 %v5403_v30  ;;  %5652 = vmatmul.bf16.gmra.mxu3 %v5403_v30 }
 0x993   : > { %v4302_v25 = vpack.c.bf16 %v4229_v7, %v14804_v47 }
 0x995   : > { %v9143_v34 = vpop.eup %9142  ;;  %v5279_v45 = vpop.f32.mrf.mxu0 }
 0x996   : > { %v5368_v58 = vpop.f32.mrf.mxu1  ;;  %v5117_v62 = vmul.f32 %v9143_v34, %v13085_v9  ;;  %v5118_v38 = vmul.f32 %v9143_v34, %v13087_v18  ;;  %v13112_v18 = vpop.f32.mrf.mxu3 }
 0x997   : > { %v5369_v52 = vadd.f32 %v5368_v58, %v5279_v45  ;;  %v13137_v56 = vpop.f32.mrf.mxu2 }
 0x998   : > { %v5149_v1 = vpack.c.bf16 %v5117_v62, %v5115_v55  ;;  %v5150_v6 = vpack.c.bf16 %v5118_v38, %v5116_v32  ;;  %v14817_v55 = vld [vmem:[#allocation37_spill] sm:$0xff]  ;;  %v14818_v62 = vld [vmem:[#allocation51_spill] sm:$0xff] }
 0x999   : > { %v4254_v32 = vadd.f32 %v14818_v62, %v14817_v55 }
 0x99a   : > { %5298 = vmatmul.bf16.gmra.mxu0 %v5149_v1  ;;  %5387 = vmatmul.bf16.gmra.mxu1 %v5150_v6  ;;  %v14819_v6 = vld [vmem:[#allocation48_spill] sm:$0xff] }
 0x99d   : > { %v5281_v14 = vpop.f32.mrf.mxu0 }
 0x99e   : > { %v5370_v29 = vpop.f32.mrf.mxu1  ;;  %v13116_v13 = vpop.f32.mrf.mxu3 }
 0x99f   : > { %v5371_v57 = vadd.f32 %v5370_v29, %v5281_v14  ;;  %v4307_v14 = vpack.c.bf16 %v4254_v32, %v14819_v6  ;;  %v13144_v29 = vpop.f32.mrf.mxu2 }
 0x9a1   : > { %v5404_v15 = vpack.c.bf16 %v5371_v57, %v5369_v52 }
 0x9a3   : > { %5568 = vmatmul.bf16.gmra.mxu2 %v5404_v15  ;;  %5657 = vmatmul.bf16.gmra.mxu3 %v5404_v15 }
 0x9a5   : > { %v5284_v36 = vpop.f32.mrf.mxu0 }
 0x9a6   : > { %v5373_v9 = vpop.f32.mrf.mxu1  ;;  %v13134_v51 = vpop.f32.mrf.mxu3 }
 0x9a7   : > { %v5374_v19 = vadd.f32 %v5373_v9, %v5284_v36  ;;  %v13148_v9 = vpop.f32.mrf.mxu2 }
 0x9aa   : > { %5771 = vmatmul.bf16.vlgmr.msrb.gmra.mxu0 %v4301_v61  ;;  %5860 = vmatmul.bf16.vlgmr.msrb.gmra.mxu1 %v4301_v61 }
 0x9ad   : > { %v5286_v27 = vpop.f32.mrf.mxu0 }
 0x9ae   : > { %v5375_v2 = vpop.f32.mrf.mxu1  ;;  %v13139_v16 = vpop.f32.mrf.mxu3 }
 0x9af   : > { %v5376_v5 = vadd.f32 %v5375_v2, %v5286_v27  ;;  %v14820_v27 = vld [vmem:[#allocation20_spill] sm:$0xff]  ;;  %v14821_v2 = vld [vmem:[#allocation33_spill] sm:$0xff]  ;;  %v13155_v7 = vpop.f32.mrf.mxu2 }
 0x9b1   : > { %v5405_v49 = vpack.c.bf16 %v5376_v5, %v5374_v19  ;;  %v4259_v19 = vadd.f32 %v14821_v2, %v14820_v27  ;;  %v14829_v2 = vld [vmem:[#allocation61_spill] sm:$0xff] }
 0x9b3   : > { %5573 = vmatmul.bf16.gmra.mxu2 %v5405_v49  ;;  %5662 = vmatmul.bf16.gmra.mxu3 %v5405_v49  ;;  %v4308_v39 = vpack.c.bf16 %v4259_v19, %v14822_v22  ;;  %v14830_v19 = vld [vmem:[#allocation54_spill] sm:$0xff] }
 0x9b6   : > { %v13146_v52 = vpop.f32.mrf.mxu3 }
 0x9b7   : > { %v13164_v26 = vpop.f32.mrf.mxu2 }
 0x9ba   : > { %5776 = vmatmul.bf16.gmra.mxu0 %v4302_v25  ;;  %5865 = vmatmul.bf16.gmra.mxu1 %v4302_v25 }
 0x9be   : > { %v13150_v31 = vpop.f32.mrf.mxu3 }
 0x9c6   : > { %v13157_v47 = vpop.f32.mrf.mxu3 }
 0x9ca   : > { %5781 = vmatmul.bf16.gmra.mxu0 %v4303_v12  ;;  %5870 = vmatmul.bf16.gmra.mxu1 %v4303_v12  ;;  %v5941_v12 = vld [vmem:[%s14466_s9] sm:$0x3] }
 0x9cb   : > { %v13168_v28 = vperm.slane %v5941_v12, 0  ;;  %v13170_v44 = vperm.slane %v5941_v12, 1 }
 0x9da   : > { %5786 = vmatmul.bf16.gmra.mxu0 %v4304_v46  ;;  %5875 = vmatmul.bf16.gmra.mxu1 %v4304_v46  ;;  %v13166_v46 = vpop.f32.mrf.mxu3 }
 0x9ea   : > { %5791 = vmatmul.bf16.gmra.mxu0 %v4305_v11  ;;  %5880 = vmatmul.bf16.gmra.mxu1 %v4305_v11  ;;  %v14825_v11 = vld [vmem:[#allocation34_spill] sm:$0xff] }
 0x9eb   : > { %v4309_v53 = vpack.c.bf16 %v4264_v63, %v14825_v11 }
 0x9f7   : > { %v5289_v35 = vpop.f32.mrf.mxu0  ;;  %v5378_v40 = vpop.f32.mrf.mxu1 }
 0x9f8   : > { %v5379_v34 = vadd.f32 %v5378_v40, %v5289_v35 }
 0x9fa   : > { %5796 = vmatmul.bf16.gmra.mxu0 %v4306_v48  ;;  %5885 = vmatmul.bf16.gmra.mxu1 %v4306_v48 }
 0x9ff   : > { %v5291_v30 = vpop.f32.mrf.mxu0  ;;  %v5380_v20 = vpop.f32.mrf.mxu1 }
 0xa00   : > { %v5381_v45 = vadd.f32 %v5380_v20, %v5291_v30 }
 0xa02   : > { %v5406_v58 = vpack.c.bf16 %v5381_v45, %v5379_v34  ;;  %v14826_v45 = vld [vmem:[#allocation22_spill] sm:$0xff] }
 0xa04   : > { %5578 = vmatmul.bf16.gmra.mxu2 %v5406_v58  ;;  %5667 = vmatmul.bf16.gmra.mxu3 %v5406_v58  ;;  %v14827_v58 = vld [vmem:[#allocation43_spill] sm:$0xff] }
 0xa05   : > { %v4269_v55 = vadd.f32 %v14827_v58, %v14826_v45 }
 0xa07   : > { %v5294_v38 = vpop.f32.mrf.mxu0  ;;  %v5383_v1 = vpop.f32.mrf.mxu1 }
 0xa08   : > { %v5384_v59 = vadd.f32 %v5383_v1, %v5294_v38  ;;  %v14828_v1 = vld [vmem:[#allocation60_spill] sm:$0xff] }
 0xa09   : > { %v4310_v6 = vpack.c.bf16 %v4269_v55, %v14828_v1 }
 0xa0a   : > { %5801 = vmatmul.bf16.gmra.mxu0 %v4307_v14  ;;  %5890 = vmatmul.bf16.gmra.mxu1 %v4307_v14 }
 0xa0f   : > { %v5296_v57 = vpop.f32.mrf.mxu0  ;;  %v5385_v15 = vpop.f32.mrf.mxu1 }
 0xa10   : > { %v5386_v36 = vadd.f32 %v5385_v15, %v5296_v57 }
 0xa12   : > { %v5407_v61 = vpack.c.bf16 %v5386_v36, %v5384_v59 }
 0xa14   : > { %5583 = vmatmul.bf16.gmra.mxu2 %v5407_v61  ;;  %5672 = vmatmul.bf16.gmra.mxu3 %v5407_v61 }
 0xa17   : > { %v5299_v5 = vpop.f32.mrf.mxu0  ;;  %v5388_v49 = vpop.f32.mrf.mxu1 }
 0xa18   : > { %v5389_v4 = vadd.f32 %v5388_v49, %v5299_v5  ;;  %v4274_v5 = vadd.f32 %v14830_v19, %v14829_v2 }
 0xa1a   : > { %5806 = vmatmul.bf16.gmra.mxu0 %v4308_v39  ;;  %5895 = vmatmul.bf16.gmra.mxu1 %v4308_v39 }
 0xa1f   : > { %v5301_v25 = vpop.f32.mrf.mxu0  ;;  %v5390_v23 = vpop.f32.mrf.mxu1 }
 0xa20   : > { %v5391_v60 = vadd.f32 %v5390_v23, %v5301_v25  ;;  %v14831_v25 = vld [vmem:[#allocation58_spill] sm:$0xff] }
 0xa21   : > { %v4311_v23 = vpack.c.bf16 %v4274_v5, %v14831_v25  ;;  %v14838_v5 = vld [vmem:[#allocation23_spill] sm:$0xff] }
 0xa22   : > { %v5408_v24 = vpack.c.bf16 %v5391_v60, %v5389_v4 }
 0xa24   : > { %5588 = vmatmul.bf16.gmra.mxu2 %v5408_v24  ;;  %5677 = vmatmul.bf16.gmra.mxu3 %v5408_v24 }
 0xa27   : > { %v5772_v3 = vpop.f32.mrf.mxu0  ;;  %v5861_v41 = vpop.f32.mrf.mxu1 }
 0xa28   : > { %v5773_v10 = vadd.f32 %v5772_v3, %v13110_v42  ;;  %v5862_v17 = vadd.f32 %v5861_v41, %v13112_v18  ;;  %v14832_v3 = vld [vmem:[#allocation53_spill] sm:$0xff]  ;;  %v14833_v41 = vld [vmem:[#allocation55_spill] sm:$0xff] }
 0xa29   : > { %v4279_v11 = vadd.f32 %v14833_v41, %v14832_v3 }
 0xa2a   : > { %v13176_v35 = vadd.f32 %v13168_v28, %v5773_v10  ;;  %v13179_v40 = vadd.f32 %v13170_v44, %v5862_v17  ;;  %5811 = vmatmul.bf16.gmra.mxu0 %v4309_v53  ;;  %5900 = vmatmul.bf16.gmra.mxu1 %v4309_v53 }
 0xa2c   : > { %v6013_v50 = vadd.f32 %v13179_v40, %v13176_v35 }
 0xa2e   : > { %6014 = vadd.xlane.f32.xlu0 %v6013_v50  ;;  %v14834_v50 = vld [vmem:[#allocation44_spill] sm:$0xff] }
 0xa2f   : > { %v5774_v48 = vpop.f32.mrf.mxu0  ;;  %v5863_v30 = vpop.f32.mrf.mxu1 }
 0xa30   : > { %v5775_v20 = vadd.f32 %v5774_v48, %v13114_v8  ;;  %v5864_v42 = vadd.f32 %v5863_v30, %v13116_v13  ;;  %v4312_v48 = vpack.c.bf16 %v4279_v11, %v14834_v50 }
 0xa32   : > { %v13186_v18 = vadd.f32 %v13168_v28, %v5775_v20  ;;  %v13189_v34 = vadd.f32 %v13170_v44, %v5864_v42 }
 0xa34   : > { %v6016_v62 = vadd.f32 %v13189_v34, %v13186_v18 }
 0xa36   : > { %6017 = vadd.xlane.f32.xlu1 %v6016_v62 }
 0xa37   : > { %v5777_v32 = vpop.f32.mrf.mxu0  ;;  %v5866_v38 = vpop.f32.mrf.mxu1 }
 0xa38   : > { %v5778_v8 = vadd.f32 %v5777_v32, %v13132_v43  ;;  %v5867_v13 = vadd.f32 %v5866_v38, %v13134_v51  ;;  %v14835_v32 = vld [vmem:[#allocation62_spill] sm:$0xff]  ;;  %v14836_v38 = vld [vmem:[#allocation63_spill] sm:$0xff] }
 0xa39   : > { %v4284_v1 = vadd.f32 %v14836_v38, %v14835_v32 }
 0xa3a   : > { %v13199_v14 = vadd.f32 %v13168_v28, %v5778_v8  ;;  %v13202_v57 = vadd.f32 %v13170_v44, %v5867_v13  ;;  %5816 = vmatmul.bf16.gmra.mxu0 %v4310_v6  ;;  %5905 = vmatmul.bf16.gmra.mxu1 %v4310_v6  ;;  %v5534_v8 = vpop.f32.mrf.mxu2  ;;  %v5623_v13 = vpop.f32.mrf.mxu3 }
 0xa3c   : > { %v6019_v15 = vadd.f32 %v13202_v57, %v13199_v14 }
 0xa3e   : > { %6020 = vadd.xlane.f32.xlu2 %v6019_v15 }
 0xa3f   : > { %v5779_v59 = vpop.f32.mrf.mxu0  ;;  %v5868_v36 = vpop.f32.mrf.mxu1 }
 0xa40   : > { %v5780_v61 = vadd.f32 %v5779_v59, %v13137_v56  ;;  %v5869_v43 = vadd.f32 %v5868_v36, %v13139_v16 }
 0xa42   : > { %v13209_v51 = vadd.f32 %v13168_v28, %v5780_v61  ;;  %v13212_v27 = vadd.f32 %v13170_v44, %v5869_v43  ;;  %v5536_v3 = vpop.f32.mrf.mxu2  ;;  %v5625_v41 = vpop.f32.mrf.mxu3 }
 0xa44   : > { %v6022_v49 = vadd.f32 %v13212_v27, %v13209_v51 }
 0xa46   : > { %6023 = vadd.xlane.f32.xlu0 %v6022_v49  ;;  %v14839_v49 = vld [vmem:[#allocation30_spill] sm:$0xff] }
 0xa47   : > { %v5782_v22 = vpop.f32.mrf.mxu0  ;;  %v5871_v39 = vpop.f32.mrf.mxu1 }
 0xa48   : > { %v5783_v56 = vadd.f32 %v5782_v22, %v13144_v29  ;;  %v5872_v16 = vadd.f32 %v5871_v39, %v13146_v52  ;;  %v4289_v22 = vadd.f32 %v14839_v49, %v14838_v5  ;;  %v14840_v39 = vld [vmem:[#allocation41_spill] sm:$0xff] }
 0xa4a   : > { %v13222_v4 = vadd.f32 %v13168_v28, %v5783_v56  ;;  %v13225_v60 = vadd.f32 %v13170_v44, %v5872_v16  ;;  %5821 = vmatmul.bf16.gmra.mxu0 %v4311_v23  ;;  %5910 = vmatmul.bf16.gmra.mxu1 %v4311_v23  ;;  %v4314_v25 = vpack.c.bf16 %v4289_v22, %v14840_v39  ;;  %v14841_v23 = vld [vmem:[#allocation28_spill] sm:$0xff]  ;;  %v14842_v56 = vld [vmem:[#allocation21_spill] sm:$0xff]  ;;  %v5628_v50 = vpop.f32.mrf.mxu3 }
 0xa4b   : > { %v4294_v16 = vadd.f32 %v14842_v56, %v14841_v23 }
 0xa4c   : > { %v6025_v24 = vadd.f32 %v13225_v60, %v13222_v4 }
 0xa4e   : > { %6026 = vadd.xlane.f32.xlu1 %v6025_v24  ;;  %v14843_v24 = vld [vmem:[#allocation29_spill] sm:$0xff] }
 0xa4f   : > { %v5784_v12 = vpop.f32.mrf.mxu0  ;;  %v5873_v37 = vpop.f32.mrf.mxu1 }
 0xa50   : > { %v5785_v0 = vadd.f32 %v5784_v12, %v13148_v9  ;;  %v5874_v29 = vadd.f32 %v5873_v37, %v13150_v31  ;;  %v4315_v12 = vpack.c.bf16 %v4294_v16, %v14843_v24 }
 0xa52   : > { %v13232_v52 = vadd.f32 %v13168_v28, %v5785_v0  ;;  %v13235_v63 = vadd.f32 %v13170_v44, %v5874_v29  ;;  %v4299_v29 = vadd.f32 %v12907_v33, %v12905_v54 }
 0xa54   : > { %v6028_v53 = vadd.f32 %v13235_v63, %v13232_v52  ;;  %v4316_v11 = vpack.c.bf16 %v4299_v29, %v12901_v21 }
 0xa56   : > { %6029 = vadd.xlane.f32.xlu2 %v6028_v53 }
 0xa57   : > { %v5787_v10 = vpop.f32.mrf.mxu0  ;;  %v5876_v17 = vpop.f32.mrf.mxu1 }
 0xa58   : > { %v5788_v9 = vadd.f32 %v5787_v10, %v13155_v7  ;;  %v5877_v31 = vadd.f32 %v5876_v17, %v13157_v47  ;;  %v5539_v17 = vpop.f32.mrf.mxu2 }
 0xa5a   : > { %v13245_v30 = vadd.f32 %v13168_v28, %v5788_v9  ;;  %v13248_v20 = vadd.f32 %v13170_v44, %v5877_v31  ;;  %5826 = vmatmul.bf16.gmra.mxu0 %v4312_v48  ;;  %5915 = vmatmul.bf16.gmra.mxu1 %v4312_v48  ;;  %v14844_v9 = vld [vmem:[#allocation19_spill] sm:$0xff] }
 0xa5c   : > { %v6031_v42 = vadd.f32 %v13248_v20, %v13245_v30 }
 0xa5e   : > { %6032 = vadd.xlane.f32.xlu0 %v6031_v42 }
 0xa5f   : > { %v5789_v45 = vpop.f32.mrf.mxu0  ;;  %v5878_v58 = vpop.f32.mrf.mxu1 }
 0xa60   : > { %v5790_v55 = vadd.f32 %v5789_v45, %v13164_v26  ;;  %v5879_v7 = vadd.f32 %v5878_v58, %v13166_v46  ;;  %v14837_v26 = vld [vmem:[#allocation56_spill] sm:$0xff] }
 0xa61   : > { %v4313_v36 = vpack.c.bf16 %v4284_v1, %v14837_v26  ;;  %v5541_v1 = vpop.f32.mrf.mxu2 }
 0xa62   : > { %v13255_v47 = vadd.f32 %v13168_v28, %v5790_v55  ;;  %v13258_v62 = vadd.f32 %v13170_v44, %v5879_v7 }
 0xa64   : > { %v6034_v6 = vadd.f32 %v13258_v62, %v13255_v47 }
 0xa66   : > { %6035 = vadd.xlane.f32.xlu1 %v6034_v6 }
 0xa67   : > { %v5792_v15 = vpop.f32.mrf.mxu0  ;;  %v5881_v59 = vpop.f32.mrf.mxu1 }
 0xa68   : > { %v5793_v46 = vadd.f32 %v5792_v15, %v5534_v8  ;;  %v5882_v61 = vadd.f32 %v5881_v59, %v5623_v13 }
 0xa6a   : > { %v13266_v43 = vadd.f32 %v13168_v28, %v5793_v46  ;;  %v13269_v2 = vadd.f32 %v13170_v44, %v5882_v61  ;;  %5831 = vmatmul.bf16.gmra.mxu0 %v4313_v36  ;;  %5920 = vmatmul.bf16.gmra.mxu1 %v4313_v36 }
 0xa6c   : > { %v6037_v19 = vadd.f32 %v13269_v2, %v13266_v43 }
 0xa6e   : > { %6038 = vadd.xlane.f32.xlu1 %v6037_v19 }
 0xa6f   : > { %v5794_v37 = vpop.f32.mrf.mxu0  ;;  %v5883_v0 = vpop.f32.mrf.mxu1 }
 0xa70   : > { %v5795_v55 = vadd.f32 %v5794_v37, %v5536_v3  ;;  %v5884_v7 = vadd.f32 %v5883_v0, %v5625_v41 }
 0xa72   : > { %v13298_v8 = vadd.f32 %v13170_v44, %v5884_v7 }
 0xa77   : > { %v5797_v53 = vpop.f32.mrf.mxu0  ;;  %v5886_v10 = vpop.f32.mrf.mxu1 }
 0xa78   : > { %v5798_v36 = vadd.f32 %v5797_v53, %v5539_v17  ;;  %v5887_v46 = vadd.f32 %v5886_v10, %v5628_v50 }
 0xa7a   : > { %5836 = vmatmul.bf16.gmra.mxu0 %v4314_v25  ;;  %5925 = vmatmul.bf16.gmra.mxu1 %v4314_v25  ;;  %v13314_v39 = vadd.f32 %v13168_v28, %v5798_v36  ;;  %v13317_v25 = vadd.f32 %v13170_v44, %v5887_v46 }
 0xa7c   : > { %v6043_v3 = vadd.f32 %v13317_v25, %v13314_v39 }
 0xa7f   : > { %v5799_v54 = vpop.f32.mrf.mxu0  ;;  %v5888_v58 = vpop.f32.mrf.mxu1 }
 0xa80   : > { %v5800_v37 = vadd.f32 %v5799_v54, %v5541_v1 }
 0xa82   : > { %v13333_v53 = vadd.f32 %v13168_v28, %v5800_v37 }
 0xa87   : > { %v5802_v61 = vpop.f32.mrf.mxu0  ;;  %v5891_v49 = vpop.f32.mrf.mxu1 }
 0xa8a   : > { %5841 = vmatmul.bf16.gmra.mxu0 %v4315_v12  ;;  %5930 = vmatmul.bf16.gmra.mxu1 %v4315_v12 }
 0xa9a   : > { %5846 = vmatmul.bf16.gmra.mxu0 %v4316_v11  ;;  %5935 = vmatmul.bf16.gmra.mxu1 %v4316_v11  ;;  %v5804_v11 = vpop.f32.mrf.mxu0 }
 0xaa1   : > { %v6015_v48 = vpop.xlane.xlu0 %6014 }
 0xaa2   : > { %v6109_v31 = vmul.f32 %v6015_v48, %v14844_v9  ;;  %v5807_v1 = vpop.f32.mrf.mxu0 }
 0xaa4   : > { %v13284_v42 = vsub.f32 %v13176_v35, %v6109_v31  ;;  %v13287_v45 = vsub.f32 %v13179_v40, %v6109_v31  ;;  %v5630_v35 = vpop.f32.mrf.mxu3  ;;  %v13295_v40 = vadd.f32 %v13168_v28, %v5795_v55 }
 0xaa5   : > { %v5889_v0 = vadd.f32 %v5888_v58, %v5630_v35 }
 0xaa6   : > { %v6205_v33 = vmul.f32 %v13284_v42, %v13284_v42  ;;  %v6206_v21 = vmul.f32 %v13287_v45, %v13287_v45  ;;  %v6040_v5 = vadd.f32 %v13298_v8, %v13295_v40 }
 0xaa7   : > { %v13336_v10 = vadd.f32 %v13170_v44, %v5889_v0 }
 0xaa8   : > { %v6269_v32 = vadd.f32 %v6206_v21, %v6205_v33 }
 0xaa9   : > { %v6018_v38 = vpop.xlane.xlu1 %6017  ;;  %v6046_v55 = vadd.f32 %v13336_v10, %v13333_v53 }
 0xaaa   : > { %v6110_v6 = vmul.f32 %v6018_v38, %v14844_v9  ;;  %6270 = vadd.xlane.f32.xlu2 %v6269_v32 }
 0xaac   : > { %v13301_v13 = vsub.f32 %v13186_v18, %v6110_v6  ;;  %v13304_v15 = vsub.f32 %v13189_v34, %v6110_v6  ;;  %v5544_v34 = vpop.f32.mrf.mxu2  ;;  %v5633_v16 = vpop.f32.mrf.mxu3 }
 0xaad   : > { %v5803_v21 = vadd.f32 %v5802_v61, %v5544_v34  ;;  %v5892_v58 = vadd.f32 %v5891_v49, %v5633_v16 }
 0xaae   : > { %v6207_v59 = vmul.f32 %v13301_v13, %v13301_v13  ;;  %v6208_v26 = vmul.f32 %v13304_v15, %v13304_v15 }
 0xaaf   : > { %v13355_v38 = vadd.f32 %v13170_v44, %v5892_v58 }
 0xab0   : > { %v6272_v19 = vadd.f32 %v6208_v26, %v6207_v59 }
 0xab1   : > { %v6021_v22 = vpop.xlane.xlu2 %6020 }
 0xab2   : > { %v6111_v18 = vmul.f32 %v6021_v22, %v14844_v9  ;;  %6273 = vadd.xlane.f32.xlu0 %v6272_v19  ;;  %6041 = vadd.xlane.f32.xlu2 %v6040_v5 }
 0xab4   : > { %v13320_v23 = vsub.f32 %v13199_v14, %v6111_v18  ;;  %v13323_v56 = vsub.f32 %v13202_v57, %v6111_v18  ;;  %v5893_v57 = vpop.f32.mrf.mxu1  ;;  %v5546_v48 = vpop.f32.mrf.mxu2 }
 0xab5   : > { %v5635_v33 = vpop.f32.mrf.mxu3  ;;  %v5805_v61 = vadd.f32 %v5804_v11, %v5546_v48 }
 0xab6   : > { %v6209_v24 = vmul.f32 %v13320_v23, %v13320_v23  ;;  %v6210_v12 = vmul.f32 %v13323_v56, %v13323_v56  ;;  %v5894_v19 = vadd.f32 %v5893_v57, %v5635_v33 }
 0xab8   : > { %v6275_v29 = vadd.f32 %v6210_v12, %v6209_v24  ;;  %v13374_v34 = vadd.f32 %v13170_v44, %v5894_v19  ;;  %v5809_v12 = vpop.f32.mrf.mxu0 }
 0xab9   : > { %v6024_v41 = vpop.xlane.xlu0 %6023 }
 0xaba   : > { %v6112_v14 = vmul.f32 %v6024_v41, %v14844_v9  ;;  %6276 = vadd.xlane.f32.xlu0 %v6275_v29  ;;  %6044 = vadd.xlane.f32.xlu2 %v6043_v3 }
 0xabc   : > { %v13339_v17 = vsub.f32 %v13209_v51, %v6112_v14  ;;  %v13342_v50 = vsub.f32 %v13212_v27, %v6112_v14  ;;  %v13352_v27 = vadd.f32 %v13168_v28, %v5803_v21  ;;  %v5896_v59 = vpop.f32.mrf.mxu1  ;;  %v5549_v46 = vpop.f32.mrf.mxu2 }
 0xabd   : > { %v5638_v22 = vpop.f32.mrf.mxu3  ;;  %v5808_v3 = vadd.f32 %v5807_v1, %v5549_v46 }
 0xabe   : > { %v6211_v31 = vmul.f32 %v13339_v17, %v13339_v17  ;;  %v6212_v54 = vmul.f32 %v13342_v50, %v13342_v50  ;;  %v6049_v5 = vadd.f32 %v13355_v38, %v13352_v27  ;;  %v5897_v41 = vadd.f32 %v5896_v59, %v5638_v22 }
 0xac0   : > { %v6278_v7 = vadd.f32 %v6212_v54, %v6211_v31  ;;  %v13390_v31 = vadd.f32 %v13168_v28, %v5808_v3  ;;  %v13393_v54 = vadd.f32 %v13170_v44, %v5897_v41 }
 0xac1   : > { %v6027_v32 = vpop.xlane.xlu1 %6026 }
 0xac2   : > { %v6113_v51 = vmul.f32 %v6027_v32, %v14844_v9  ;;  %6047 = vadd.xlane.f32.xlu0 %v6046_v55  ;;  %6279 = vadd.xlane.f32.xlu1 %v6278_v7  ;;  %v6055_v1 = vadd.f32 %v13393_v54, %v13390_v31 }
 0xac4   : > { %v13358_v6 = vsub.f32 %v13222_v4, %v6113_v51  ;;  %v13361_v35 = vsub.f32 %v13225_v60, %v6113_v51  ;;  %v13371_v60 = vadd.f32 %v13168_v28, %v5805_v61  ;;  %v5898_v29 = vpop.f32.mrf.mxu1  ;;  %v5812_v51 = vpop.f32.mrf.mxu0 }
 0xac5   : > { %v5640_v48 = vpop.f32.mrf.mxu3 }
 0xac6   : > { %v6213_v26 = vmul.f32 %v13358_v6, %v13358_v6  ;;  %v6214_v36 = vmul.f32 %v13361_v35, %v13361_v35  ;;  %v6052_v14 = vadd.f32 %v13374_v34, %v13371_v60  ;;  %v5899_v32 = vadd.f32 %v5898_v29, %v5640_v48 }
 0xac8   : > { %v6281_v49 = vadd.f32 %v6214_v36, %v6213_v26  ;;  %v13412_v19 = vadd.f32 %v13170_v44, %v5899_v32 }
 0xac9   : > { %v6030_v4 = vpop.xlane.xlu2 %6029 }
 0xaca   : > { %v6114_v18 = vmul.f32 %v6030_v4, %v14844_v9  ;;  %6050 = vadd.xlane.f32.xlu0 %v6049_v5  ;;  %6282 = vadd.xlane.f32.xlu1 %v6281_v49 }
 0xacc   : > { %v13377_v16 = vsub.f32 %v13232_v52, %v6114_v18  ;;  %v13380_v24 = vsub.f32 %v13235_v63, %v6114_v18  ;;  %v5551_v63 = vpop.f32.mrf.mxu2  ;;  %v5901_v26 = vpop.f32.mrf.mxu1 }
 0xacd   : > { %v5810_v7 = vadd.f32 %v5809_v12, %v5551_v63  ;;  %v5643_v46 = vpop.f32.mrf.mxu3 }
 0xace   : > { %v6215_v37 = vmul.f32 %v13377_v16, %v13377_v16  ;;  %v6216_v0 = vmul.f32 %v13380_v24, %v13380_v24  ;;  %v5902_v12 = vadd.f32 %v5901_v26, %v5643_v46 }
 0xacf   : > { %v13409_v61 = vadd.f32 %v13168_v28, %v5810_v7 }
 0xad0   : > { %v6284_v11 = vadd.f32 %v6216_v0, %v6215_v37 }
 0xad1   : > { %v6033_v57 = vpop.xlane.xlu0 %6032  ;;  %v6058_v0 = vadd.f32 %v13412_v19, %v13409_v61 }
 0xad2   : > { %v6115_v52 = vmul.f32 %v6033_v57, %v14844_v9  ;;  %6285 = vadd.xlane.f32.xlu2 %v6284_v11  ;;  %6053 = vadd.xlane.f32.xlu1 %v6052_v14  ;;  %v13431_v11 = vadd.f32 %v13170_v44, %v5902_v12  ;;  %v8356_v12 = vld [vmem:[#allocation7 + $0x70] sm:$0xf] }
 0xad4   : > { %v13396_v33 = vsub.f32 %v13245_v30, %v6115_v52  ;;  %v13399_v21 = vsub.f32 %v13248_v20, %v6115_v52  ;;  %v5554_v20 = vpop.f32.mrf.mxu2 }
 0xad5   : > { %v5813_v18 = vadd.f32 %v5812_v51, %v5554_v20  ;;  %v5645_v63 = vpop.f32.mrf.mxu3 }
 0xad6   : > { %v6217_v58 = vmul.f32 %v13396_v33, %v13396_v33  ;;  %v6218_v55 = vmul.f32 %v13399_v21, %v13399_v21 }
 0xad7   : > { %v13428_v41 = vadd.f32 %v13168_v28, %v5813_v18 }
 0xad8   : > { %v6287_v59 = vadd.f32 %v6218_v55, %v6217_v58 }
 0xad9   : > { %v6036_v36 = vpop.xlane.xlu1 %6035  ;;  %v6061_v51 = vadd.f32 %v13431_v11, %v13428_v41 }
 0xada   : > { %v6116_v30 = vmul.f32 %v6036_v36, %v14844_v9  ;;  %6056 = vadd.xlane.f32.xlu1 %v6055_v1  ;;  %6288 = vadd.xlane.f32.xlu2 %v6287_v59 }
 0xadc   : > { %v13415_v5 = vsub.f32 %v13255_v47, %v6116_v30  ;;  %v13418_v49 = vsub.f32 %v13258_v62, %v6116_v30  ;;  %v5814_v47 = vpop.f32.mrf.mxu0  ;;  %v5903_v62 = vpop.f32.mrf.mxu1 }
 0xadd   : > { %v5556_v52 = vpop.f32.mrf.mxu2  ;;  %v5904_v7 = vadd.f32 %v5903_v62, %v5645_v63  ;;  %v5648_v36 = vpop.f32.mrf.mxu3  ;;  %v8358_v62 = vld [vmem:[#allocation7 + $0x78] sm:$0xf0] }
 0xade   : > { %14845 = vst [vmem:[#allocation27_spill] sm:$0xff] %v13415_v5  ;;  %v6219_v22 = vmul.f32 %v13415_v5, %v13415_v5  ;;  %v6220_v4 = vmul.f32 %v13418_v49, %v13418_v49  ;;  %v5815_v55 = vadd.f32 %v5814_v47, %v5556_v52  ;;  %v8581_v47 = vld [vmem:[#allocation7 + $0x74] sm:$0xf] }
 0xadf   : > { %14846 = vst [vmem:[#allocation38_spill] sm:$0xff] %v13418_v49  ;;  %v13461_v63 = vor.u32 %v8581_v47, %v8358_v62  ;;  %v8594_v47 = vld [vmem:[#allocation7 + $0xd4] sm:$0xf0]  ;;  %v8577_v62 = vld [vmem:[#allocation7 + $0x54] sm:$0xf] }
 0xae0   : > { %v6290_v37 = vadd.f32 %v6220_v4, %v6219_v22 }
 0xae1   : > { %v6039_v29 = vpop.xlane.xlu1 %6038  ;;  %7359 = vmatpush.bf16.msra.mxu0 %v13461_v63 }
 0xae2   : > { %v6117_v3 = vmul.f32 %v6039_v29, %v14844_v9  ;;  %6291 = vadd.xlane.f32.xlu0 %v6290_v37  ;;  %6059 = vadd.xlane.f32.xlu2 %v6058_v0  ;;  %v8582_v37 = vld [vmem:[#allocation7 + $0x74] sm:$0xf0]  ;;  %v8420_v0 = vld [vmem:[#allocation7 + $0xf0] sm:$0xf] }
 0xae3   : > { %v8357_v29 = vor.u32 %v8582_v37, %v8356_v12  ;;  %v8340_v37 = vld [vmem:[#allocation7 + $0x50] sm:$0xf] }
 0xae4   : > { %v13434_v14 = vsub.f32 %v13266_v43, %v6117_v3  ;;  %v13437_v57 = vsub.f32 %v13269_v2, %v6117_v3  ;;  %v13446_v43 = vadd.f32 %v13168_v28, %v5815_v55  ;;  %v13449_v2 = vadd.f32 %v13170_v44, %v5904_v7  ;;  %v5817_v1 = vpop.f32.mrf.mxu0  ;;  %v5906_v59 = vpop.f32.mrf.mxu1  ;;  %v8598_v3 = vld [vmem:[#allocation7 + $0xf4] sm:$0xf0]  ;;  %v8348_v7 = vld [vmem:[#allocation7 + $0x60] sm:$0xf] }
 0xae5   : > { %v5559_v26 = vpop.f32.mrf.mxu2  ;;  %v5907_v20 = vadd.f32 %v5906_v59, %v5648_v36  ;;  %v8421_v52 = vor.u32 %v8598_v3, %v8420_v0  ;;  %7181 = vmatpush.bf16.msra.mxu2 %v8357_v29  ;;  %v8596_v59 = vld [vmem:[#allocation7 + $0xe4] sm:$0xf0]  ;;  %v8350_v36 = vld [vmem:[#allocation7 + $0x68] sm:$0xf0]  ;;  %v8578_v0 = vld [vmem:[#allocation7 + $0x54] sm:$0xf0] }
 0xae6   : > { %14847 = vst [vmem:[#allocation32_spill] sm:$0xff] %v13434_v14  ;;  %v6221_v48 = vmul.f32 %v13434_v14, %v13434_v14  ;;  %v6222_v58 = vmul.f32 %v13437_v57, %v13437_v57  ;;  %v5818_v30 = vadd.f32 %v5817_v1, %v5559_v26  ;;  %v6064_v46 = vadd.f32 %v13449_v2, %v13446_v43  ;;  %v8579_v26 = vld [vmem:[#allocation7 + $0x64] sm:$0xf]  ;;  %v8404_v29 = vld [vmem:[#allocation7 + $0xd0] sm:$0xf] }
 0xae7   : > { %14848 = vst [vmem:[#allocation52_spill] sm:$0xff] %v13437_v57  ;;  %v13457_v4 = vadd.f32 %v13170_v44, %v5907_v20  ;;  %7270 = vmatpush.bf16.msra.mxu3 %v8421_v52  ;;  %v13464_v20 = vor.u32 %v8579_v26, %v8350_v36  ;;  %v8341_v3 = vor.u32 %v8578_v0, %v8340_v37  ;;  %v8342_v52 = vld [vmem:[#allocation7 + $0x58] sm:$0xf0]  ;;  %v8592_v36 = vld [vmem:[#allocation7 + $0xc4] sm:$0xf0] }
 0xae8   : > { %v6293_v32 = vadd.f32 %v6222_v58, %v6221_v48  ;;  %v13454_v22 = vadd.f32 %v13168_v28, %v5818_v30  ;;  %v8597_v48 = vld [vmem:[#allocation7 + $0xf4] sm:$0xf]  ;;  %v8422_v58 = vld [vmem:[#allocation7 + $0xf8] sm:$0xf0]  ;;  %v8591_v37 = vld [vmem:[#allocation7 + $0xc4] sm:$0xf] }
 0xae9   : > { %14850 = vst [vmem:[#allocation35_spill] sm:$0xff] %v13457_v4  ;;  %v8425_v55 = vor.u32 %v8597_v48, %v8422_v58  ;;  %7360 = vmatpush.bf16.msra.mxu0 %v13464_v20  ;;  %v8405_v48 = vor.u32 %v8594_v47, %v8404_v29  ;;  %v13467_v58 = vor.u32 %v8577_v62, %v8342_v52  ;;  %v8398_v0 = vld [vmem:[#allocation7 + $0xc8] sm:$0xf0]  ;;  %v8574_v47 = vld [vmem:[#allocation7 + $0x34] sm:$0xf0] }
 0xaea   : > { %6294 = vadd.xlane.f32.xlu0 %v6293_v32  ;;  %6062 = vadd.xlane.f32.xlu2 %v6061_v51  ;;  %14849 = vst [vmem:[#allocation31_spill] sm:$0xff] %v13454_v22  ;;  %v6067_v18 = vadd.f32 %v13457_v4, %v13454_v22  ;;  %v8580_v32 = vld [vmem:[#allocation7 + $0x64] sm:$0xf0]  ;;  %v8412_v51 = vld [vmem:[#allocation7 + $0xe0] sm:$0xf]  ;;  %v8401_v29 = vor.u32 %v8591_v37, %v8398_v0  ;;  %v5650_v22 = vpop.f32.mrf.mxu3 }
 0xaeb   : > { %7448 = vmatpush.bf16.msra.mxu1 %v8425_v55  ;;  %v8349_v1 = vor.u32 %v8580_v32, %v8348_v7  ;;  %v8413_v30 = vor.u32 %v8596_v59, %v8412_v51  ;;  %v8593_v55 = vld [vmem:[#allocation7 + $0xd4] sm:$0xf]  ;;  %v8406_v7 = vld [vmem:[#allocation7 + $0xd8] sm:$0xf0]  ;;  %v8332_v51 = vld [vmem:[#allocation7 + $0x40] sm:$0xf] }
 0xaec   : > { %v8409_v32 = vor.u32 %v8593_v55, %v8406_v7  ;;  %v8396_v59 = vld [vmem:[#allocation7 + $0xc0] sm:$0xf]  ;;  %v8388_v62 = vld [vmem:[#allocation7 + $0xb0] sm:$0xf]  ;;  %v8573_v55 = vld [vmem:[#allocation7 + $0x34] sm:$0xf] }
 0xaed   : > { %7182 = vmatpush.bf16.msra.mxu2 %v8349_v1  ;;  %7271 = vmatpush.bf16.msra.mxu3 %v8413_v30  ;;  %v8576_v1 = vld [vmem:[#allocation7 + $0x44] sm:$0xf0]  ;;  %v8575_v30 = vld [vmem:[#allocation7 + $0x44] sm:$0xf]  ;;  %v8326_v7 = vld [vmem:[#allocation7 + $0x38] sm:$0xf0] }
 0xaee   : > { %7361 = vmatpush.bf16.msra.mxu0 %v13467_v58  ;;  %v8333_v26 = vor.u32 %v8576_v1, %v8332_v51  ;;  %v13473_v51 = vor.u32 %v8573_v55, %v8326_v7  ;;  %v8589_v1 = vld [vmem:[#allocation7 + $0xb4] sm:$0xf]  ;;  %v8588_v37 = vld [vmem:[#allocation7 + $0xa4] sm:$0xf0]  ;;  %v8571_v0 = vld [vmem:[#allocation7 + $0x24] sm:$0xf] }
 0xaef   : > { %v8382_v55 = vld [vmem:[#allocation7 + $0xa8] sm:$0xf0]  ;;  %v8300_v57 = vld [vmem:[#allocation7] sm:$0xf]  ;;  %v8568_v14 = vld [vmem:[#allocation7 + $0x4] sm:$0xf0] }
 0xaf0   : > { %v8364_v4 = vld [vmem:[#allocation7 + $0x80] sm:$0xf] }
 0xaf1   : > { %7183 = vmatpush.bf16.msra.mxu2 %v8341_v3  ;;  %7272 = vmatpush.bf16.msra.mxu3 %v8405_v48  ;;  %v8324_v3 = vld [vmem:[#allocation7 + $0x30] sm:$0xf]  ;;  %v8590_v48 = vld [vmem:[#allocation7 + $0xb4] sm:$0xf0] }
 0xaf2   : > { %6065 = vadd.xlane.f32.xlu0 %v6064_v46  ;;  %v8595_v46 = vld [vmem:[#allocation7 + $0xe4] sm:$0xf]  ;;  %v8325_v52 = vor.u32 %v8574_v47, %v8324_v3 }
 0xaf5   : > { %7184 = vmatpush.bf16.msra.mxu2 %v8333_v26  ;;  %v8316_v26 = vld [vmem:[#allocation7 + $0x20] sm:$0xf] }
 0xaf9   : > { %7185 = vmatpush.bf16.msra.mxu2 %v8325_v52 }
 0xafa   : > { %6068 = vadd.xlane.f32.xlu0 %v6067_v18  ;;  %v8414_v18 = vld [vmem:[#allocation7 + $0xe8] sm:$0xf0] }
 0xafb   : > { %v8417_v12 = vor.u32 %v8595_v46, %v8414_v18  ;;  %v8334_v46 = vld [vmem:[#allocation7 + $0x48] sm:$0xf0]  ;;  %v8397_v18 = vor.u32 %v8592_v36, %v8396_v59  ;;  %v8390_v59 = vld [vmem:[#allocation7 + $0xb8] sm:$0xf0] }
 0xafc   : > { %v8393_v36 = vor.u32 %v8589_v1, %v8390_v59  ;;  %v8570_v1 = vld [vmem:[#allocation7 + $0x14] sm:$0xf0]  ;;  %v8372_v59 = vld [vmem:[#allocation7 + $0x90] sm:$0xf] }
 0xafd   : > { %7449 = vmatpush.bf16.msra.mxu1 %v8417_v12  ;;  %v13470_v12 = vor.u32 %v8575_v30, %v8334_v46  ;;  %7273 = vmatpush.bf16.msra.mxu3 %v8397_v18  ;;  %v8572_v30 = vld [vmem:[#allocation7 + $0x24] sm:$0xf0]  ;;  %v8380_v46 = vld [vmem:[#allocation7 + $0xa0] sm:$0xf] }
 0xafe   : > { %v8317_v18 = vor.u32 %v8572_v30, %v8316_v26  ;;  %v8381_v47 = vor.u32 %v8588_v37, %v8380_v46  ;;  %v13482_v26 = vpop.f32.mrf.mxu1  ;;  %v8586_v37 = vld [vmem:[#allocation7 + $0x94] sm:$0xf0] }
 0xaff   : > { %7362 = vmatpush.bf16.msra.mxu0 %v13470_v12 }
 0xb00   : > { %7186 = vmatpush.bf16.msra.mxu2 %v8317_v18  ;;  %v8585_v18 = vld [vmem:[#allocation7 + $0x94] sm:$0xf] }
 0xb01   : > { %7450 = vmatpush.bf16.msra.mxu1 %v8409_v32  ;;  %v8389_v32 = vor.u32 %v8590_v48, %v8388_v62  ;;  %v8587_v48 = vld [vmem:[#allocation7 + $0xa4] sm:$0xf] }
 0xb02   : > { %v8385_v7 = vor.u32 %v8587_v48, %v8382_v55  ;;  %v8374_v48 = vld [vmem:[#allocation7 + $0x98] sm:$0xf0] }
 0xb03   : > { %7274 = vmatpush.bf16.msra.mxu3 %v8389_v32  ;;  %7363 = vmatpush.bf16.msra.mxu0 %v13473_v51  ;;  %v8308_v32 = vld [vmem:[#allocation7 + $0x10] sm:$0xf]  ;;  %v8377_v55 = vor.u32 %v8585_v18, %v8374_v48 }
 0xb04   : > { %v8309_v46 = vor.u32 %v8570_v1, %v8308_v32  ;;  %v8584_v32 = vld [vmem:[#allocation7 + $0x84] sm:$0xf0]  ;;  %v8567_v1 = vld [vmem:[#allocation7 + $0x4] sm:$0xf] }
 0xb05   : > { %7451 = vmatpush.bf16.msra.mxu1 %v8401_v29  ;;  %v8318_v29 = vld [vmem:[#allocation7 + $0x28] sm:$0xf0]  ;;  %v8365_v5 = vor.u32 %v8584_v32, %v8364_v4 }
 0xb06   : > { %v13476_v62 = vor.u32 %v8571_v0, %v8318_v29  ;;  %v8569_v0 = vld [vmem:[#allocation7 + $0x14] sm:$0xf]  ;;  %v8373_v29 = vor.u32 %v8586_v37, %v8372_v59  ;;  %7187 = vmatpush.bf16.msra.mxu2 %v8309_v46  ;;  %v8302_v59 = vld [vmem:[#allocation7 + $0x8] sm:$0xf0] }
 0xb07   : > { %7275 = vmatpush.bf16.msra.mxu3 %v8381_v47  ;;  %v13490_v46 = vor.u32 %v8567_v1, %v8302_v59 }
 0xb08   : > { %7364 = vmatpush.bf16.msra.mxu0 %v13476_v62 }
 0xb09   : > { %7452 = vmatpush.bf16.msra.mxu1 %v8393_v36  ;;  %v13480_v36 = vpop.f32.mrf.mxu0 }
 0xb0b   : > { %7276 = vmatpush.bf16.msra.mxu3 %v8373_v29 }
 0xb0d   : > { %7453 = vmatpush.bf16.msra.mxu1 %v8385_v7  ;;  %v8301_v7 = vor.u32 %v8568_v14, %v8300_v57 }
 0xb0f   : > { %7188 = vmatpush.bf16.msra.mxu2 %v8301_v7  ;;  %7277 = vmatpush.bf16.msra.mxu3 %v8365_v5  ;;  %v5911_v7 = vpop.f32.mrf.mxu1 }
 0xb11   : > { %7454 = vmatpush.bf16.msra.mxu1 %v8377_v55 }
 0xb13   : > { %8608 = vmatpush.bf16.msrb.mxu2 %v13461_v63 }
 0xb17   : > { %8609 = vmatpush.bf16.msrb.mxu2 %v13464_v20 }
 0xb1b   : > { %8610 = vmatpush.bf16.msrb.mxu2 %v13467_v58 }
 0xb1d   : > { %v6271_v3 = vpop.xlane.xlu2 %6270 }
 0xb1e   : > { %v6365_v52 = vmul.f32 %v6271_v3, %v14844_v9  ;;  %v8310_v3 = vld [vmem:[#allocation7 + $0x18] sm:$0xf0] }
 0xb1f   : > { %v13487_v47 = vor.u32 %v8569_v0, %v8310_v3  ;;  %v8583_v0 = vld [vmem:[#allocation7 + $0x84] sm:$0xf]  ;;  %v8366_v3 = vld [vmem:[#allocation7 + $0x88] sm:$0xf0]  ;;  %8611 = vmatpush.bf16.msrb.mxu2 %v13470_v12 }
 0xb20   : > { %v13484_v30 = vadd.f32 1e-12, %v6365_v52  ;;  %v5561_v52 = vpop.f32.mrf.mxu2  ;;  %v8369_v48 = vor.u32 %v8583_v0, %v8366_v3  ;;  %v5653_v3 = vpop.f32.mrf.mxu3 }
 0xb21   : > { %7365 = vmatpush.bf16.msra.mxu0 %v13487_v47  ;;  %v5912_v12 = vadd.f32 %v5911_v7, %v5653_v3 }
 0xb22   : > { %9144 = vrsqrt.f32 %v13484_v30  ;;  %7455 = vmatpush.bf16.msra.mxu1 %v8369_v48  ;;  %vm6435_vm3 = vweird.f32 %v13484_v30 }
 0xb23   : > { %8612 = vmatpush.bf16.msrb.mxu2 %v13473_v51 }
 0xb25   : > { %v6042_v37 = vpop.xlane.xlu2 %6041  ;;  %v6274_v49 = vpop.xlane.xlu0 %6273  ;;  %7366 = vmatpush.bf16.msra.mxu0 %v13490_v46 }
 0xb26   : > { %v6118_v29 = vmul.f32 %v6042_v37, %v14844_v9  ;;  %v6366_v18 = vmul.f32 %v6274_v49, %v14844_v9  ;;  %v5822_v49 = vpop.f32.mrf.mxu0 }
 0xb27   : > { %8613 = vmatpush.bf16.msrb.mxu2 %v13476_v62 }
 0xb28   : > { %v9145_v14 = vpop.eup %9144  ;;  %v13496_v57 = vsub.f32 %v13295_v40, %v6118_v29  ;;  %v13499_v55 = vsub.f32 %v13298_v8, %v6118_v29  ;;  %v13501_v4 = vadd.f32 1e-12, %v6366_v18  ;;  %v5564_v0 = vpop.f32.mrf.mxu2 }
 0xb29   : > { %v6430_v32 = vmul.f32 %v9145_v14, %v13484_v30  ;;  %vm6436_vm2 = vweird.f32 %v9145_v14  ;;  %v5655_v7 = vpop.f32.mrf.mxu3 }
 0xb2a   : > { %14851 = vst [vmem:[#allocation36_spill] sm:$0xff] %v13496_v57  ;;  %v6223_v5 = vmul.f32 %v13496_v57, %v13496_v57  ;;  %v6224_v63 = vmul.f32 %v13499_v55, %v13499_v55  ;;  %9146 = vrsqrt.f32 %v13501_v4  ;;  %vm6437_vm4 = vmor %vm6435_vm3, %vm6436_vm2  ;;  %vm6445_vm6 = vweird.f32 %v13501_v4 }
 0xb2b   : > { %14852 = vst [vmem:[#allocation49_spill] sm:$0xff] %v13499_v55  ;;  %v6431_v40 = vmul.f32 %v9145_v14, %v6430_v32  ;;  %8614 = vmatpush.bf16.msrb.mxu2 %v13487_v47 }
 0xb2c   : > { %v6296_v8 = vadd.f32 %v6224_v63, %v6223_v5  ;;  %v5820_v63 = vadd.f32 %v13480_v36, %v5561_v52  ;;  %v13532_v52 = vpop.f32.mrf.mxu1 }
 0xb2d   : > { %v6432_v1 = vmul.f32 0.5, %v6431_v40  ;;  %v6045_v59 = vpop.xlane.xlu2 %6044  ;;  %v6277_v37 = vpop.xlane.xlu0 %6276  ;;  %v5909_v40 = vadd.f32 %v13482_v26, %v5650_v22  ;;  %v6011_v22 = vld [vmem:[%s14467_s10] sm:$0x3] }
 0xb2e   : > { %v6119_v29 = vmul.f32 %v6045_v59, %v14844_v9  ;;  %v6367_v18 = vmul.f32 %v6277_v37, %v14844_v9  ;;  %6297 = vadd.xlane.f32.xlu1 %v6296_v8  ;;  %v5824_v36 = vpop.f32.mrf.mxu0 }
 0xb2f   : > { %v6433_v48 = vsub.f32 1.5, %v6432_v1  ;;  %v13538_v1 = vadd.f32 %v13168_v28, %v5820_v63  ;;  %v13541_v37 = vadd.f32 %v13170_v44, %v5909_v40  ;;  %8615 = vmatpush.bf16.msrb.mxu2 %v13490_v46 }
 0xb30   : > { %v9147_v55 = vpop.eup %9146  ;;  %v13515_v32 = vsub.f32 %v13314_v39, %v6119_v29  ;;  %v13518_v20 = vsub.f32 %v13317_v25, %v6119_v29  ;;  %v13520_v5 = vadd.f32 1e-12, %v6367_v18 }
 0xb31   : > { %v6434_v59 = vmul.f32 %v9145_v14, %v6433_v48  ;;  %v6440_v8 = vmul.f32 %v9147_v55, %v13501_v4  ;;  %vm6446_vm5 = vweird.f32 %v9147_v55 }
 0xb32   : > { %14853 = vst [vmem:[#allocation26_spill] sm:$0xff] %v13515_v32  ;;  %v6225_v58 = vmul.f32 %v13515_v32, %v13515_v32  ;;  %v6226_v39 = vmul.f32 %v13518_v20, %v13518_v20  ;;  %9148 = vrsqrt.f32 %v13520_v5  ;;  %vm6447_vm7 = vmor %vm6445_vm6, %vm6446_vm5  ;;  %vm6455_vm9 = vweird.f32 %v13520_v5 }
 0xb33   : > { %14854 = vst [vmem:[#allocation39_spill] sm:$0xff] %v13518_v20  ;;  %v6441_v25 = vmul.f32 %v9147_v55, %v6440_v8  ;;  %v6438_v26 = vsel %vm6437_vm4, %v9145_v14, %v6434_v59  ;;  %v5823_v8 = vadd.f32 %v5822_v49, %v5564_v0  ;;  %v6012_v14 = vld [vmem:[%s14468_s11] sm:$0x3]  ;;  %v13548_v59 = vperm.slane %v6011_v22, 0  ;;  %v5566_v49 = vpop.f32.mrf.mxu2 }
 0xb34   : > { %v6299_v30 = vadd.f32 %v6226_v39, %v6225_v58  ;;  %v6749_v63 = vmul.f32 %v6438_v26, %v13284_v42  ;;  %v13554_v0 = vperm.slane %v6011_v22, 1  ;;  %v13591_v62 = vpop.f32.mrf.mxu1 }
 0xb35   : > { %v6442_v29 = vmul.f32 0.5, %v6441_v25  ;;  %v6280_v18 = vpop.xlane.xlu1 %6279  ;;  %v6048_v48 = vpop.xlane.xlu0 %6047  ;;  %v6750_v25 = vmul.f32 %v6438_v26, %v13287_v45  ;;  %v13584_v26 = vadd.f32 %v13170_v44, %v5912_v12 }
 0xb36   : > { %v6368_v20 = vmul.f32 %v6280_v18, %v14844_v9  ;;  %v6120_v32 = vmul.f32 %v6048_v48, %v14844_v9  ;;  %6300 = vadd.xlane.f32.xlu1 %v6299_v30  ;;  %v6818_v45 = vmul.f32 %v13548_v59, %v6749_v63 }
 0xb37   : > { %v6443_v40 = vsub.f32 1.5, %v6442_v29  ;;  %v13568_v29 = vperm.slane %v6012_v14, 0 }
 0xb38   : > { %v13552_v58 = vpop.eup %9148  ;;  %v13557_v3 = vadd.f32 1e-12, %v6368_v20  ;;  %v13560_v39 = vsub.f32 %v13333_v53, %v6120_v32  ;;  %v13566_v51 = vsub.f32 %v13336_v10, %v6120_v32  ;;  %v6070_v53 = vadd.f32 %v13541_v37, %v13538_v1 }
 0xb39   : > { %v6444_v42 = vmul.f32 %v9147_v55, %v6443_v40  ;;  %v6450_v30 = vmul.f32 %v13552_v58, %v13520_v5  ;;  %v13581_v32 = vadd.f32 %v13168_v28, %v5823_v8  ;;  %v13588_v40 = vperm.slane %v6012_v14, 1 }
 0xb3a   : > { %14855 = vst [vmem:[#allocation50_spill] sm:$0xff] %v13560_v39  ;;  %9150 = vrsqrt.f32 %v13557_v3  ;;  %v6227_v4 = vmul.f32 %v13560_v39, %v13560_v39  ;;  %v6228_v10 = vmul.f32 %v13566_v51, %v13566_v51  ;;  %v5827_v39 = vpop.f32.mrf.mxu0  ;;  %v6887_v14 = vadd.f32 %v13568_v29, %v6818_v45  ;;  %v5658_v45 = vpop.f32.mrf.mxu3 }
 0xb3b   : > { %14856 = vst [vmem:[#allocation24_spill] sm:$0xff] %v13566_v51  ;;  %v6448_v20 = vsel %vm6447_vm7, %v9147_v55, %v6444_v42  ;;  %v6451_v22 = vmul.f32 %v13552_v58, %v6450_v30  ;;  %v6819_v55 = vmul.f32 %v13554_v0, %v6750_v25  ;;  %vm6456_vm8 = vweird.f32 %v13552_v58  ;;  %v5569_v47 = vpop.f32.mrf.mxu2 }
 0xb3c   : > { %v6751_v18 = vmul.f32 %v6448_v20, %v13301_v13  ;;  %v6752_v48 = vmul.f32 %v6448_v20, %v13304_v15  ;;  %v6302_v51 = vadd.f32 %v6228_v10, %v6227_v4  ;;  %v5825_v15 = vadd.f32 %v5824_v36, %v5566_v49  ;;  %vm6457_vm10 = vmor %vm6455_vm9, %vm6456_vm8 }
 0xb3d   : > { %v6452_v63 = vmul.f32 0.5, %v6451_v22  ;;  %v6283_v42 = vpop.xlane.xlu1 %6282  ;;  %v6051_v30 = vpop.xlane.xlu0 %6050  ;;  %v6888_v36 = vadd.f32 %v13588_v40, %v6819_v55  ;;  %vm6465_vm12 = vweird.f32 %v13557_v3 }
 0xb3e   : > { %v6820_v8 = vmul.f32 %v13548_v59, %v6751_v18  ;;  %v6821_v12 = vmul.f32 %v13554_v0, %v6752_v48  ;;  %v6369_v57 = vmul.f32 %v6283_v42, %v14844_v9  ;;  %v6121_v13 = vmul.f32 %v6051_v30, %v14844_v9  ;;  %6071 = vadd.xlane.f32.xlu1 %v6070_v53 }
 0xb3f   : > { %v6453_v25 = vsub.f32 1.5, %v6452_v63  ;;  %6303 = vadd.xlane.f32.xlu2 %v6302_v51  ;;  %v5914_v48 = vadd.f32 %v13532_v52, %v5655_v7  ;;  %v6073_v42 = vadd.f32 %v13584_v26, %v13581_v32 }
 0xb40   : > { %v9151_v4 = vpop.eup %9150  ;;  %v6889_v20 = vadd.f32 %v13568_v29, %v6820_v8  ;;  %v6890_v22 = vadd.f32 %v13588_v40, %v6821_v12  ;;  %v13602_v10 = vadd.f32 1e-12, %v6369_v57  ;;  %v13605_v18 = vsub.f32 %v13352_v27, %v6121_v13 }
 0xb41   : > { %v6454_v49 = vmul.f32 %v13552_v58, %v6453_v25  ;;  %v6460_v53 = vmul.f32 %v9151_v4, %v13557_v3  ;;  %v13611_v51 = vsub.f32 %v13355_v38, %v6121_v13  ;;  %v13627_v12 = vadd.f32 %v13168_v28, %v5825_v15 }
 0xb42   : > { %9152 = vrsqrt.f32 %v13602_v10  ;;  %v6229_v57 = vmul.f32 %v13605_v18, %v13605_v18  ;;  %v6951_v27 = vpack.c.bf16 %v6889_v20, %v6887_v14  ;;  %v6952_v63 = vpack.c.bf16 %v6890_v22, %v6888_v36  ;;  %v5829_v36 = vpop.f32.mrf.mxu0 }
 0xb43   : > { %v6461_v55 = vmul.f32 %v9151_v4, %v6460_v53  ;;  %v6230_v38 = vmul.f32 %v13611_v51, %v13611_v51  ;;  %v6458_v5 = vsel %vm6457_vm10, %v13552_v58, %v6454_v49  ;;  %v13632_v58 = vadd.f32 %v13170_v44, %v5914_v48  ;;  %v5918_v49 = vpop.f32.mrf.mxu1 }
 0xb44   : > { %7189 = vmatmul.bf16.vlgmr.msra.gmra.mxu2 %v6951_v27  ;;  %7367 = vmatmul.bf16.vlgmr.msra.gmra.mxu0 %v6951_v27  ;;  %v6753_v14 = vmul.f32 %v6458_v5, %v13320_v23  ;;  %vm6466_vm11 = vweird.f32 %v9151_v4  ;;  %v5828_v22 = vadd.f32 %v5827_v39, %v5569_v47  ;;  %v6754_v27 = vmul.f32 %v6458_v5, %v13323_v56 }
 0xb45   : > { %v6462_v30 = vmul.f32 0.5, %v6461_v55  ;;  %7278 = vmatmul.bf16.vlgmr.msra.gmra.mxu3 %v6952_v63  ;;  %7456 = vmatmul.bf16.vlgmr.msra.gmra.mxu1 %v6952_v63  ;;  %v6286_v52 = vpop.xlane.xlu2 %6285  ;;  %v6054_v7 = vpop.xlane.xlu1 %6053  ;;  %v6305_v8 = vadd.f32 %v6230_v38, %v6229_v57  ;;  %vm6467_vm13 = vmor %vm6465_vm12, %vm6466_vm11  ;;  %v5917_v47 = vadd.f32 %v13591_v62, %v5658_v45  ;;  %v6076_v62 = vadd.f32 %v13632_v58, %v13627_v12 }
 0xb46   : > { %v6370_v13 = vmul.f32 %v6286_v52, %v14844_v9  ;;  %v6122_v46 = vmul.f32 %v6054_v7, %v14844_v9  ;;  %6074 = vadd.xlane.f32.xlu1 %v6073_v42  ;;  %v6822_v56 = vmul.f32 %v13548_v59, %v6753_v14  ;;  %v5571_v38 = vpop.f32.mrf.mxu2  ;;  %v5660_v63 = vpop.f32.mrf.mxu3  ;;  %vm6475_vm15 = vweird.f32 %v13602_v10 }
 0xb47   : > { %v6463_v25 = vsub.f32 1.5, %v6462_v30  ;;  %6306 = vadd.xlane.f32.xlu2 %v6305_v8  ;;  %v13656_v30 = vadd.f32 %v13168_v28, %v5828_v22 }
 0xb48   : > { %v9153_v20 = vpop.eup %9152  ;;  %v13635_v53 = vadd.f32 1e-12, %v6370_v13  ;;  %v13638_v15 = vsub.f32 %v13371_v60, %v6122_v46  ;;  %v13641_v57 = vsub.f32 %v13374_v34, %v6122_v46  ;;  %v13666_v46 = vadd.f32 %v13170_v44, %v5917_v47 }
 0xb49   : > { %v6464_v48 = vmul.f32 %v9151_v4, %v6463_v25  ;;  %v6470_v23 = vmul.f32 %v9153_v20, %v13602_v10  ;;  %vm6476_vm14 = vweird.f32 %v9153_v20  ;;  %v6891_v25 = vadd.f32 %v13568_v29, %v6822_v56 }
 0xb4a   : > { %9154 = vrsqrt.f32 %v13635_v53  ;;  %v6231_v39 = vmul.f32 %v13638_v15, %v13638_v15  ;;  %v6232_v60 = vmul.f32 %v13641_v57, %v13641_v57  ;;  %vm6477_vm0 = vmor %vm6475_vm15, %vm6476_vm14  ;;  %vm6485_vm2 = vweird.f32 %v13635_v53 }
 0xb4b   : > { %v6468_v34 = vsel %vm6467_vm13, %v9151_v4, %v6464_v48  ;;  %v6471_v55 = vmul.f32 %v9153_v20, %v6470_v23  ;;  %v6823_v4 = vmul.f32 %v13554_v0, %v6754_v27  ;;  %v5921_v56 = vpop.f32.mrf.mxu1 }
 0xb4c   : > { %v6755_v3 = vmul.f32 %v6468_v34, %v13339_v17  ;;  %v6756_v5 = vmul.f32 %v6468_v34, %v13342_v50  ;;  %v6308_v42 = vadd.f32 %v6232_v60, %v6231_v39 }
 0xb4d   : > { %v6472_v52 = vmul.f32 0.5, %v6471_v55  ;;  %v6057_v7 = vpop.xlane.xlu1 %6056  ;;  %v6289_v8 = vpop.xlane.xlu2 %6288  ;;  %v6892_v34 = vadd.f32 %v13588_v40, %v6823_v4 }
 0xb4e   : > { %v6123_v45 = vmul.f32 %v6057_v7, %v14844_v9  ;;  %v6371_v13 = vmul.f32 %v6289_v8, %v14844_v9  ;;  %6309 = vadd.xlane.f32.xlu0 %v6308_v42  ;;  %v6824_v17 = vmul.f32 %v13548_v59, %v6755_v3  ;;  %v6825_v50 = vmul.f32 %v13554_v0, %v6756_v5  ;;  %v5832_v3 = vpop.f32.mrf.mxu0 }
 0xb4f   : > { %v6473_v14 = vsub.f32 1.5, %v6472_v52  ;;  %6077 = vadd.xlane.f32.xlu2 %v6076_v62  ;;  %v5830_v5 = vadd.f32 %v5829_v36, %v5571_v38  ;;  %v5919_v8 = vadd.f32 %v5918_v49, %v5660_v63 }
 0xb50   : > { %v9155_v22 = vpop.eup %9154  ;;  %v13670_v27 = vsub.f32 %v13390_v31, %v6123_v45  ;;  %v13673_v48 = vsub.f32 %v13393_v54, %v6123_v45  ;;  %v13675_v23 = vadd.f32 1e-12, %v6371_v13  ;;  %v6893_v39 = vadd.f32 %v13568_v29, %v6824_v17 }
 0xb51   : > { %v6474_v60 = vmul.f32 %v9153_v20, %v6473_v14  ;;  %v6480_v47 = vmul.f32 %v9155_v22, %v13635_v53  ;;  %v6894_v55 = vadd.f32 %v13588_v40, %v6825_v50  ;;  %v6079_v17 = vadd.f32 %v13666_v46, %v13656_v30  ;;  %v5574_v50 = vpop.f32.mrf.mxu2  ;;  %v5663_v14 = vpop.f32.mrf.mxu3 }
 0xb52   : > { %v6233_v31 = vmul.f32 %v13670_v27, %v13670_v27  ;;  %v6234_v54 = vmul.f32 %v13673_v48, %v13673_v48  ;;  %9156 = vrsqrt.f32 %v13675_v23  ;;  %v6953_v52 = vpack.c.bf16 %v6893_v39, %v6891_v25 }
 0xb53   : > { %v6481_v42 = vmul.f32 %v9155_v22, %v6480_v47  ;;  %v6954_v7 = vpack.c.bf16 %v6894_v55, %v6892_v34  ;;  %v6478_v62 = vsel %vm6477_vm0, %v9153_v20, %v6474_v60  ;;  %v13693_v49 = vadd.f32 %v13168_v28, %v5830_v5 }
 0xb54   : > { %v6311_v4 = vadd.f32 %v6234_v54, %v6233_v31  ;;  %7194 = vmatmul.bf16.gmra.mxu2 %v6953_v52  ;;  %7372 = vmatmul.bf16.gmra.mxu0 %v6953_v52  ;;  %v6757_v20 = vmul.f32 %v6478_v62, %v13358_v6  ;;  %vm6486_vm1 = vweird.f32 %v9155_v22  ;;  %v13697_v39 = vadd.f32 %v13170_v44, %v5919_v8  ;;  %v5923_v8 = vpop.f32.mrf.mxu1 }
 0xb55   : > { %v6482_v45 = vmul.f32 0.5, %v6481_v42  ;;  %7283 = vmatmul.bf16.gmra.mxu3 %v6954_v7  ;;  %v6060_v10 = vpop.xlane.xlu2 %6059  ;;  %v6292_v13 = vpop.xlane.xlu0 %6291  ;;  %7461 = vmatmul.bf16.gmra.mxu1 %v6954_v7  ;;  %v6758_v55 = vmul.f32 %v6478_v62, %v13361_v35  ;;  %v5833_v54 = vadd.f32 %v5832_v3, %v5574_v50  ;;  %vm6487_vm3 = vmor %vm6485_vm2, %vm6486_vm1  ;;  %vm6495_vm5 = vweird.f32 %v13675_v23 }
 0xb56   : > { %v6124_v36 = vmul.f32 %v6060_v10, %v14844_v9  ;;  %v6372_v38 = vmul.f32 %v6292_v13, %v14844_v9  ;;  %6312 = vadd.xlane.f32.xlu0 %v6311_v4  ;;  %v6826_v35 = vmul.f32 %v13548_v59, %v6757_v20  ;;  %v5834_v7 = vpop.f32.mrf.mxu0  ;;  %v6082_v13 = vadd.f32 %v13697_v39, %v13693_v49 }
 0xb57   : > { %v6483_v63 = vsub.f32 1.5, %v6482_v45  ;;  %6080 = vadd.xlane.f32.xlu2 %v6079_v17 }
 0xb58   : > { %v9157_v25 = vpop.eup %9156  ;;  %v13700_v60 = vsub.f32 %v13409_v61, %v6124_v36  ;;  %v13703_v47 = vsub.f32 %v13412_v19, %v6124_v36  ;;  %v13705_v34 = vadd.f32 1e-12, %v6372_v38  ;;  %v5922_v19 = vadd.f32 %v5921_v56, %v5663_v14 }
 0xb59   : > { %v6484_v31 = vmul.f32 %v9155_v22, %v6483_v63  ;;  %v6490_v6 = vmul.f32 %v9157_v25, %v13675_v23  ;;  %v6827_v56 = vmul.f32 %v13554_v0, %v6758_v55  ;;  %v6895_v36 = vadd.f32 %v13568_v29, %v6826_v35  ;;  %v5576_v20 = vpop.f32.mrf.mxu2  ;;  %v5665_v63 = vpop.f32.mrf.mxu3 }
 0xb5a   : > { %v6235_v5 = vmul.f32 %v13700_v60, %v13700_v60  ;;  %v6236_v61 = vmul.f32 %v13703_v47, %v13703_v47  ;;  %9158 = vrsqrt.f32 %v13705_v34  ;;  %vm6496_vm4 = vweird.f32 %v9157_v25 }
 0xb5b   : > { %v6488_v42 = vsel %vm6487_vm3, %v9155_v22, %v6484_v31  ;;  %v6491_v52 = vmul.f32 %v9157_v25, %v6490_v6  ;;  %vm6497_vm6 = vmor %vm6495_vm5, %vm6496_vm4  ;;  %vm6505_vm8 = vweird.f32 %v13705_v34 }
 0xb5c   : > { %v6759_v53 = vmul.f32 %v6488_v42, %v13377_v16  ;;  %v6760_v3 = vmul.f32 %v6488_v42, %v13380_v24  ;;  %v6314_v62 = vadd.f32 %v6236_v61, %v6235_v5  ;;  %v13727_v16 = vadd.f32 %v13168_v28, %v5833_v54 }
 0xb5d   : > { %v6492_v4 = vmul.f32 0.5, %v6491_v52  ;;  %v6063_v45 = vpop.xlane.xlu2 %6062  ;;  %v13718_v10 = vpop.xlane.xlu0 %6294  ;;  %v13730_v24 = vadd.f32 %v13170_v44, %v5922_v19  ;;  %v6896_v61 = vadd.f32 %v13588_v40, %v6827_v56 }
 0xb5e   : > { %v6125_v22 = vmul.f32 %v6063_v45, %v14844_v9  ;;  %6315 = vadd.xlane.f32.xlu1 %v6314_v62  ;;  %v6828_v17 = vmul.f32 %v13548_v59, %v6759_v53  ;;  %v6829_v50 = vmul.f32 %v13554_v0, %v6760_v3  ;;  %6083 = vadd.xlane.f32.xlu0 %v6082_v13  ;;  %v5837_v56 = vpop.f32.mrf.mxu0 }
 0xb5f   : > { %v6493_v14 = vsub.f32 1.5, %v6492_v4  ;;  %v5835_v62 = vadd.f32 %v5834_v7, %v5576_v20  ;;  %v5924_v4 = vadd.f32 %v5923_v8, %v5665_v63  ;;  %v6085_v23 = vadd.f32 %v13730_v24, %v13727_v16 }
 0xb60   : > { %v9159_v38 = vpop.eup %9158  ;;  %v13734_v55 = vsub.f32 %v13428_v41, %v6125_v22  ;;  %v13737_v31 = vsub.f32 %v13431_v11, %v6125_v22  ;;  %v6897_v6 = vadd.f32 %v13568_v29, %v6828_v17  ;;  %v6898_v19 = vadd.f32 %v13588_v40, %v6829_v50  ;;  %v5926_v22 = vpop.f32.mrf.mxu1 }
 0xb61   : > { %v6494_v54 = vmul.f32 %v9157_v25, %v6493_v14  ;;  %v6500_v5 = vmul.f32 %v9159_v38, %v13705_v34  ;;  %vm6506_vm7 = vweird.f32 %v9159_v38  ;;  %v5579_v7 = vpop.f32.mrf.mxu2  ;;  %v5668_v8 = vpop.f32.mrf.mxu3  ;;  %v13760_v63 = vadd.f32 %v13168_v28, %v5835_v62 }
 0xb62   : > { %v6237_v42 = vmul.f32 %v13734_v55, %v13734_v55  ;;  %v6238_v41 = vmul.f32 %v13737_v31, %v13737_v31  ;;  %v6955_v52 = vpack.c.bf16 %v6897_v6, %v6895_v36  ;;  %v6956_v35 = vpack.c.bf16 %v6898_v19, %v6896_v61  ;;  %vm6507_vm9 = vmor %vm6505_vm8, %vm6506_vm7  ;;  %v14859_v61 = vld [vmem:[#allocation27_spill] sm:$0xff] }
 0xb63   : > { %v6501_v11 = vmul.f32 %v9159_v38, %v6500_v5  ;;  %v6498_v53 = vsel %vm6497_vm6, %v9157_v25, %v6494_v54  ;;  %v13763_v6 = vadd.f32 %v13170_v44, %v5924_v4 }
 0xb64   : > { %v6317_v3 = vadd.f32 %v6238_v41, %v6237_v42  ;;  %7199 = vmatmul.bf16.gmra.mxu2 %v6955_v52  ;;  %7377 = vmatmul.bf16.gmra.mxu0 %v6955_v52  ;;  %v6761_v50 = vmul.f32 %v6498_v53, %v13396_v33  ;;  %v6762_v25 = vmul.f32 %v6498_v53, %v13399_v21  ;;  %v14860_v42 = vld [vmem:[#allocation38_spill] sm:$0xff] }
 0xb65   : > { %v6502_v45 = vmul.f32 0.5, %v6501_v11  ;;  %7288 = vmatmul.bf16.gmra.mxu3 %v6956_v35  ;;  %v6066_v13 = vpop.xlane.xlu0 %6065  ;;  %7466 = vmatmul.bf16.gmra.mxu1 %v6956_v35  ;;  %v5838_v52 = vadd.f32 %v5837_v56, %v5579_v7  ;;  %v5927_v35 = vadd.f32 %v5926_v22, %v5668_v8  ;;  %v6088_v53 = vadd.f32 %v13763_v6, %v13760_v63  ;;  %v14861_v56 = vld [vmem:[#allocation31_spill] sm:$0xff] }
 0xb66   : > { %v6126_v17 = vmul.f32 %v6066_v13, %v14844_v9  ;;  %6086 = vadd.xlane.f32.xlu0 %v6085_v23  ;;  %6318 = vadd.xlane.f32.xlu1 %v6317_v3  ;;  %v6831_v5 = vmul.f32 %v13554_v0, %v6762_v25  ;;  %v5839_v13 = vpop.f32.mrf.mxu0 }
 0xb67   : > { %v6503_v14 = vsub.f32 1.5, %v6502_v45  ;;  %v13790_v7 = vadd.f32 %v13168_v28, %v5838_v52  ;;  %v13793_v8 = vadd.f32 %v13170_v44, %v5927_v35 }
 0xb68   : > { %v13754_v36 = vsub.f32 %v13446_v43, %v6126_v17  ;;  %v13757_v20 = vsub.f32 %v13449_v2, %v6126_v17  ;;  %v6830_v2 = vmul.f32 %v13548_v59, %v6761_v50  ;;  %v6900_v45 = vadd.f32 %v13588_v40, %v6831_v5  ;;  %v5928_v23 = vpop.f32.mrf.mxu1  ;;  %v14863_v17 = vld [vmem:[#allocation35_spill] sm:$0xff] }
 0xb69   : > { %v6504_v33 = vmul.f32 %v9159_v38, %v6503_v14 }
 0xb6a   : > { %14857 = vst [vmem:[#allocation25_spill] sm:$0xff] %v13754_v36  ;;  %v6239_v21 = vmul.f32 %v13754_v36, %v13754_v36  ;;  %v6240_v43 = vmul.f32 %v13757_v20, %v13757_v20  ;;  %v6899_v4 = vadd.f32 %v13568_v29, %v6830_v2 }
 0xb6b   : > { %14858 = vst [vmem:[#allocation40_spill] sm:$0xff] %v13757_v20  ;;  %v6508_v54 = vsel %vm6507_vm9, %v9159_v38, %v6504_v33  ;;  %v5581_v33 = vpop.f32.mrf.mxu2 }
 0xb6c   : > { %v6763_v19 = vmul.f32 %v6508_v54, %v14859_v61  ;;  %v6764_v41 = vmul.f32 %v6508_v54, %v14860_v42  ;;  %v6320_v11 = vadd.f32 %v6240_v43, %v6239_v21  ;;  %v5670_v21 = vpop.f32.mrf.mxu3 }
 0xb6d   : > { %v6069_v34 = vpop.xlane.xlu0 %6068  ;;  %v5929_v42 = vadd.f32 %v5928_v23, %v5670_v21 }
 0xb6e   : > { %v6127_v3 = vmul.f32 %v6069_v34, %v14844_v9  ;;  %6321 = vadd.xlane.f32.xlu2 %v6320_v11  ;;  %v6832_v38 = vmul.f32 %v13548_v59, %v6763_v19  ;;  %v6833_v62 = vmul.f32 %v13554_v0, %v6764_v41  ;;  %6089 = vadd.xlane.f32.xlu1 %v6088_v53  ;;  %v5842_v35 = vpop.f32.mrf.mxu0 }
 0xb6f   : > { %v5840_v19 = vadd.f32 %v5839_v13, %v5581_v33  ;;  %v6091_v41 = vadd.f32 %v13793_v8, %v13790_v7  ;;  %v13805_v52 = vadd.f32 %v13170_v44, %v5929_v42 }
 0xb70   : > { %v13782_v22 = vsub.f32 %v14861_v56, %v6127_v3  ;;  %v13785_v50 = vsub.f32 %v14863_v17, %v6127_v3  ;;  %v6901_v25 = vadd.f32 %v13568_v29, %v6832_v38  ;;  %v6902_v14 = vadd.f32 %v13588_v40, %v6833_v62  ;;  %v5931_v34 = vpop.f32.mrf.mxu1 }
 0xb71   : > { %v13802_v11 = vadd.f32 %v13168_v28, %v5840_v19  ;;  %v6373_v56 = vmul.f32 %v13718_v10, %v14844_v9 }
 0xb72   : > { %14862 = vst [vmem:[#allocation46_spill] sm:$0xff] %v13782_v22  ;;  %v6241_v43 = vmul.f32 %v13782_v22, %v13782_v22  ;;  %v6242_v54 = vmul.f32 %v13785_v50, %v13785_v50  ;;  %v6957_v2 = vpack.c.bf16 %v6901_v25, %v6899_v4  ;;  %v6958_v5 = vpack.c.bf16 %v6902_v14, %v6900_v45 }
 0xb73   : > { %14864 = vst [vmem:[#allocation47_spill] sm:$0xff] %v13785_v50  ;;  %v5584_v53 = vpop.f32.mrf.mxu2  ;;  %v6094_v4 = vadd.f32 %v13805_v52, %v13802_v11  ;;  %v6405_v17 = vadd.f32 1e-12, %v6373_v56  ;;  %v14868_v50 = vld [vmem:[#allocation52_spill] sm:$0xff] }
 0xb74   : > { %v6323_v61 = vadd.f32 %v6242_v54, %v6241_v43  ;;  %7204 = vmatmul.bf16.gmra.mxu2 %v6957_v2  ;;  %7382 = vmatmul.bf16.gmra.mxu0 %v6957_v2  ;;  %v5673_v3 = vpop.f32.mrf.mxu3  ;;  %v5843_v38 = vadd.f32 %v5842_v35, %v5584_v53 }
 0xb75   : > { %7293 = vmatmul.bf16.gmra.mxu3 %v6958_v5  ;;  %7471 = vmatmul.bf16.gmra.mxu1 %v6958_v5  ;;  %v5932_v62 = vadd.f32 %v5931_v34, %v5673_v3  ;;  %9160 = vrsqrt.f32 %v6405_v17  ;;  %vm6515_vm11 = vweird.f32 %v6405_v17 }
 0xb76   : > { %6092 = vadd.xlane.f32.xlu1 %v6091_v41  ;;  %6324 = vadd.xlane.f32.xlu2 %v6323_v61  ;;  %v13810_v45 = vadd.f32 %v13168_v28, %v5843_v38  ;;  %v5844_v5 = vpop.f32.mrf.mxu0 }
 0xb77   : > { %v13813_v13 = vadd.f32 %v13170_v44, %v5932_v62 }
 0xb78   : > { %14865 = vst [vmem:[#allocation45_spill] sm:$0xff] %v13810_v45  ;;  %v5933_v61 = vpop.f32.mrf.mxu1 }
 0xb79   : > { %14866 = vst [vmem:[#allocation37_spill] sm:$0xff] %v13813_v13  ;;  %v6097_v23 = vadd.f32 %v13813_v13, %v13810_v45 }
 0xb7b   : > { %v9161_v25 = vpop.eup %9160  ;;  %v5586_v35 = vpop.f32.mrf.mxu2 }
 0xb7c   : > { %v6510_v14 = vmul.f32 %v9161_v25, %v6405_v17  ;;  %v5675_v10 = vpop.f32.mrf.mxu3  ;;  %vm6516_vm10 = vweird.f32 %v9161_v25 }
 0xb7d   : > { %vm6517_vm12 = vmor %vm6515_vm11, %vm6516_vm10  ;;  %v5934_v13 = vadd.f32 %v5933_v61, %v5675_v10 }
 0xb7e   : > { %6095 = vadd.xlane.f32.xlu2 %v6094_v4  ;;  %v6511_v33 = vmul.f32 %v9161_v25, %v6510_v14  ;;  %v13824_v62 = vpop.f32.mrf.mxu0 }
 0xb80   : > { %v6512_v54 = vmul.f32 0.5, %v6511_v33 }
 0xb82   : > { %v6513_v19 = vsub.f32 1.5, %v6512_v54  ;;  %v14867_v54 = vld [vmem:[#allocation32_spill] sm:$0xff] }
 0xb84   : > { %v6514_v53 = vmul.f32 %v9161_v25, %v6513_v19 }
 0xb86   : > { %6098 = vadd.xlane.f32.xlu2 %v6097_v23  ;;  %v13826_v23 = vpop.f32.mrf.mxu1  ;;  %v6518_v56 = vsel %vm6517_vm12, %v9161_v25, %v6514_v53  ;;  %v13840_v53 = vpop.f32.mrf.mxu2 }
 0xb87   : > { %v6765_v19 = vmul.f32 %v6518_v56, %v14867_v54  ;;  %v6766_v22 = vmul.f32 %v6518_v56, %v14868_v50  ;;  %v5845_v54 = vadd.f32 %v5844_v5, %v5586_v35  ;;  %v13857_v61 = vpop.f32.mrf.mxu0 }
 0xba1   : > { %v6298_v21 = vpop.xlane.xlu1 %6297 }
 0xba2   : > { %v6374_v43 = vmul.f32 %v6298_v21, %v14844_v9 }
 0xba4   : > { %v6406_v2 = vadd.f32 1e-12, %v6374_v43 }
 0xba6   : > { %9162 = vrsqrt.f32 %v6406_v2  ;;  %vm6525_vm14 = vweird.f32 %v6406_v2 }
 0xba9   : > { %v6301_v42 = vpop.xlane.xlu1 %6300 }
 0xbaa   : > { %v6375_v41 = vmul.f32 %v6301_v42, %v14844_v9 }
 0xbac   : > { %v9163_v34 = vpop.eup %9162  ;;  %v13821_v3 = vadd.f32 1e-12, %v6375_v41 }
 0xbad   : > { %v6520_v38 = vmul.f32 %v9163_v34, %v6406_v2  ;;  %vm6526_vm13 = vweird.f32 %v9163_v34  ;;  %v6834_v2 = vmul.f32 %v13548_v59, %v6765_v19 }
 0xbae   : > { %9164 = vrsqrt.f32 %v13821_v3  ;;  %vm6527_vm15 = vmor %vm6525_vm14, %vm6526_vm13  ;;  %vm6535_vm1 = vweird.f32 %v13821_v3 }
 0xbaf   : > { %v6521_v4 = vmul.f32 %v9163_v34, %v6520_v38 }
 0xbb1   : > { %v6522_v14 = vmul.f32 0.5, %v6521_v4  ;;  %v6072_v33 = vpop.xlane.xlu1 %6071 }
 0xbb2   : > { %v6128_v21 = vmul.f32 %v6072_v33, %v14844_v9  ;;  %v6304_v43 = vpop.xlane.xlu2 %6303 }
 0xbb3   : > { %v6523_v42 = vsub.f32 1.5, %v6522_v14  ;;  %v6376_v17 = vmul.f32 %v6304_v43, %v14844_v9  ;;  %v13846_v43 = vpop.f32.mrf.mxu3 }
 0xbb4   : > { %v13831_v41 = vpop.eup %9164  ;;  %v13835_v38 = vsub.f32 %v13538_v1, %v6128_v21  ;;  %v13838_v25 = vsub.f32 %v13541_v37, %v6128_v21  ;;  %v14871_v21 = vld [vmem:[#allocation36_spill] sm:$0xff] }
 0xbb5   : > { %v6524_v4 = vmul.f32 %v9163_v34, %v6523_v42  ;;  %v6530_v14 = vmul.f32 %v13831_v41, %v13821_v3  ;;  %v13844_v33 = vadd.f32 1e-12, %v6376_v17  ;;  %v14872_v17 = vld [vmem:[#allocation49_spill] sm:$0xff]  ;;  %vm6536_vm0 = vweird.f32 %v13831_v41 }
 0xbb6   : > { %14869 = vst [vmem:[#allocation51_spill] sm:$0xff] %v13835_v38  ;;  %v6243_v1 = vmul.f32 %v13835_v38, %v13835_v38  ;;  %v6244_v37 = vmul.f32 %v13838_v25, %v13838_v25  ;;  %v6835_v38 = vmul.f32 %v13554_v0, %v6766_v22  ;;  %v13872_v22 = vadd.f32 %v13170_v44, %v5934_v13  ;;  %vm6537_vm2 = vmor %vm6535_vm1, %vm6536_vm0 }
 0xbb7   : > { %14870 = vst [vmem:[#allocation48_spill] sm:$0xff] %v13838_v25  ;;  %v6528_v50 = vsel %vm6527_vm15, %v9163_v34, %v6524_v4  ;;  %v6531_v56 = vmul.f32 %v13831_v41, %v6530_v14  ;;  %9166 = vrsqrt.f32 %v13844_v33  ;;  %v13861_v25 = vadd.f32 %v13168_v28, %v5845_v54  ;;  %v13863_v34 = vpop.f32.mrf.mxu1 }
 0xbb8   : > { %v6767_v42 = vmul.f32 %v6528_v50, %v14871_v21  ;;  %v6768_v45 = vmul.f32 %v6528_v50, %v14872_v17  ;;  %v6326_v5 = vadd.f32 %v6244_v37, %v6243_v1  ;;  %v7015_v37 = vld [vmem:[%s14470_s13] sm:$0x3]  ;;  %14874 = vst [vmem:[#allocation33_spill] sm:$0xff] %v13872_v22  ;;  %vm6545_vm4 = vweird.f32 %v13844_v33 }
 0xbb9   : > { %v6532_v35 = vmul.f32 0.5, %v6531_v56  ;;  %v6075_v10 = vpop.xlane.xlu1 %6074  ;;  %14873 = vst [vmem:[#allocation20_spill] sm:$0xff] %v13861_v25  ;;  %v6903_v56 = vadd.f32 %v13568_v29, %v6834_v2 }
 0xbba   : > { %v6129_v4 = vmul.f32 %v6075_v10, %v14844_v9  ;;  %v6307_v14 = vpop.xlane.xlu2 %6306  ;;  %6327 = vadd.xlane.f32.xlu0 %v6326_v5  ;;  %v6836_v19 = vmul.f32 %v13548_v59, %v6767_v42  ;;  %v6837_v1 = vmul.f32 %v13554_v0, %v6768_v45  ;;  %v13888_v10 = vperm.slane %v7015_v37, 1 }
 0xbbb   : > { %v6533_v54 = vsub.f32 1.5, %v6532_v35  ;;  %v6377_v50 = vmul.f32 %v6307_v14, %v14844_v9  ;;  %v6904_v35 = vadd.f32 %v13588_v40, %v6835_v38  ;;  %v5591_v14 = vpop.f32.mrf.mxu2 }
 0xbbc   : > { %v13877_v21 = vsub.f32 %v13581_v32, %v6129_v4  ;;  %v13880_v42 = vsub.f32 %v13584_v26, %v6129_v4  ;;  %v6905_v45 = vadd.f32 %v13568_v29, %v6836_v19  ;;  %v6906_v17 = vadd.f32 %v13588_v40, %v6837_v1  ;;  %v13898_v1 = vpop.f32.mrf.mxu3 }
 0xbbd   : > { %v9167_v5 = vpop.eup %9166  ;;  %v13885_v13 = vadd.f32 1e-12, %v6377_v50  ;;  %v6534_v32 = vmul.f32 %v13831_v41, %v6533_v54 }
 0xbbe   : > { %14875 = vst [vmem:[#allocation42_spill] sm:$0xff] %v13877_v21  ;;  %v6540_v26 = vmul.f32 %v9167_v5, %v13844_v33  ;;  %v6245_v2 = vmul.f32 %v13877_v21, %v13877_v21  ;;  %v6246_v4 = vmul.f32 %v13880_v42, %v13880_v42  ;;  %v6959_v19 = vpack.c.bf16 %v6905_v45, %v6903_v56 }
 0xbbf   : > { %14876 = vst [vmem:[#allocation59_spill] sm:$0xff] %v13880_v42  ;;  %9168 = vrsqrt.f32 %v13885_v13  ;;  %v6960_v50 = vpack.c.bf16 %v6906_v17, %v6904_v35  ;;  %v6100_v56 = vadd.f32 %v13872_v22, %v13861_v25  ;;  %v6538_v45 = vsel %vm6537_vm2, %v13831_v41, %v6534_v32  ;;  %v14877_v22 = vld [vmem:[#allocation26_spill] sm:$0xff] }
 0xbc0   : > { %v6541_v38 = vmul.f32 %v9167_v5, %v6540_v26  ;;  %7209 = vmatmul.bf16.gmra.mxu2 %v6959_v19  ;;  %7387 = vmatmul.bf16.gmra.mxu0 %v6959_v19  ;;  %v6329_v21 = vadd.f32 %v6246_v4, %v6245_v2  ;;  %v5848_v19 = vadd.f32 %v13824_v62, %v13840_v53  ;;  %v13917_v41 = vperm.slane %v7015_v37, 0  ;;  %v14880_v53 = vld [vmem:[#allocation39_spill] sm:$0xff] }
 0xbc1   : > { %v7368_v54 = vpop.f32.mrf.mxu0  ;;  %v6310_v42 = vpop.xlane.xlu0 %6309  ;;  %7298 = vmatmul.bf16.gmra.mxu3 %v6960_v50  ;;  %7476 = vmatmul.bf16.gmra.mxu1 %v6960_v50  ;;  %v5937_v2 = vadd.f32 %v13826_v23, %v13846_v43  ;;  %vm6546_vm3 = vweird.f32 %v9167_v5  ;;  %v6770_v43 = vmul.f32 %v6538_v45, %v14880_v53  ;;  %vm6555_vm7 = vweird.f32 %v13885_v13 }
 0xbc2   : > { %v6542_v20 = vmul.f32 0.5, %v6541_v38  ;;  %v7369_v3 = vadd.f32 %v7368_v54, %v13888_v10  ;;  %v7457_v17 = vpop.f32.mrf.mxu1  ;;  %v6078_v35 = vpop.xlane.xlu2 %6077  ;;  %v6378_v26 = vmul.f32 %v6310_v42, %v14844_v9  ;;  %6330 = vadd.xlane.f32.xlu0 %v6329_v21  ;;  %v6769_v42 = vmul.f32 %v6538_v45, %v14877_v22  ;;  %vm6547_vm5 = vmor %vm6545_vm4, %vm6546_vm3 }
 0xbc3   : > { %v6130_v4 = vmul.f32 %v6078_v35, %v14844_v9  ;;  %v13937_v22 = vadd.f32 %v13168_v28, %v5848_v19  ;;  %v13948_v45 = vadd.f32 %v13857_v61, %v5591_v14  ;;  %v14881_v19 = vld [vmem:[#allocation50_spill] sm:$0xff] }
 0xbc4   : > { %v6543_v32 = vsub.f32 1.5, %v6542_v20  ;;  %v7458_v38 = vadd.f32 %v7457_v17, %v7369_v3  ;;  %v13919_v50 = vadd.f32 1e-12, %v6378_v26 }
 0xbc5   : > { %v9169_v54 = vpop.eup %9168  ;;  %v13924_v62 = vsub.f32 %v13627_v12, %v6130_v4  ;;  %v13927_v23 = vsub.f32 %v13632_v58, %v6130_v4  ;;  %v13940_v12 = vadd.f32 %v13170_v44, %v5937_v2  ;;  %v14882_v4 = vld [vmem:[#allocation24_spill] sm:$0xff] }
 0xbc6   : > { %v6544_v37 = vmul.f32 %v9167_v5, %v6543_v32  ;;  %v6550_v20 = vmul.f32 %v9169_v54, %v13885_v13  ;;  %7538 = vst [vmem:[%s13932_s21 + $0x8] sm:$0xff] %v7458_v38  ;;  %9170 = vrsqrt.f32 %v13919_v50  ;;  %vm6556_vm6 = vweird.f32 %v9169_v54 }
 0xbc7   : > { %14878 = vst [vmem:[#allocation57_spill] sm:$0xff] %v13924_v62  ;;  %v6247_v58 = vmul.f32 %v13924_v62, %v13924_v62  ;;  %v6248_v33 = vmul.f32 %v13927_v23, %v13927_v23  ;;  %v7190_v21 = vpop.f32.mrf.mxu2  ;;  %v6838_v62 = vmul.f32 %v13548_v59, %v6769_v42  ;;  %vm6557_vm8 = vmor %vm6555_vm7, %vm6556_vm6  ;;  %vm6565_vm10 = vweird.f32 %v13919_v50 }
 0xbc8   : > { %14879 = vst [vmem:[#allocation34_spill] sm:$0xff] %v13927_v23  ;;  %v6548_v3 = vsel %vm6547_vm5, %v9167_v5, %v6544_v37  ;;  %v6551_v17 = vmul.f32 %v9169_v54, %v6550_v20  ;;  %v7191_v35 = vadd.f32 %v7190_v21, %v13917_v41  ;;  %v7279_v26 = vpop.f32.mrf.mxu3  ;;  %v6839_v5 = vmul.f32 %v13554_v0, %v6770_v43 }
 0xbc9   : > { %v6771_v2 = vmul.f32 %v6548_v3, %v14881_v19  ;;  %v6772_v32 = vmul.f32 %v6548_v3, %v14882_v4  ;;  %v7370_v38 = vpop.f32.mrf.mxu0  ;;  %v6332_v53 = vadd.f32 %v6248_v33, %v6247_v58  ;;  %v6313_v20 = vpop.xlane.xlu0 %6312 }
 0xbca   : > { %v6552_v25 = vmul.f32 0.5, %v6551_v17  ;;  %v7280_v23 = vadd.f32 %v7279_v26, %v7191_v35  ;;  %v7371_v36 = vadd.f32 %v7370_v38, %v13888_v10  ;;  %v7459_v61 = vpop.f32.mrf.mxu1  ;;  %v6081_v14 = vpop.xlane.xlu2 %6080  ;;  %6101 = vadd.xlane.f32.xlu0 %v6100_v56  ;;  %v6379_v17 = vmul.f32 %v6313_v20, %v14844_v9 }
 0xbcb   : > { %v6131_v37 = vmul.f32 %v6081_v14, %v14844_v9  ;;  %6333 = vadd.xlane.f32.xlu1 %v6332_v53  ;;  %v6840_v21 = vmul.f32 %v13548_v59, %v6771_v2  ;;  %v6841_v58 = vmul.f32 %v13554_v0, %v6772_v32  ;;  %v6908_v53 = vadd.f32 %v13588_v40, %v6839_v5 }
 0xbcc   : > { %v9171_v42 = vpop.eup %9170  ;;  %v6553_v33 = vsub.f32 1.5, %v6552_v25  ;;  %7537 = vst [vmem:[%s13932_s21] sm:$0xff] %v7280_v23  ;;  %v7460_v3 = vadd.f32 %v7459_v61, %v7371_v36  ;;  %v13970_v19 = vadd.f32 1e-12, %v6379_v17  ;;  %v5939_v61 = vadd.f32 %v13863_v34, %v13898_v1 }
 0xbcd   : > { %v6560_v43 = vmul.f32 %v9171_v42, %v13919_v50  ;;  %v13964_v35 = vsub.f32 %v13656_v30, %v6131_v37  ;;  %v13967_v56 = vsub.f32 %v13666_v46, %v6131_v37  ;;  %v6909_v25 = vadd.f32 %v13568_v29, %v6840_v21 }
 0xbce   : > { %v6554_v26 = vmul.f32 %v9169_v54, %v6553_v33  ;;  %7540 = vst [vmem:[%s13932_s21 + $0x18] sm:$0xff] %v7460_v3  ;;  %v6910_v36 = vadd.f32 %v13588_v40, %v6841_v58  ;;  %v6907_v46 = vadd.f32 %v13568_v29, %v6838_v62  ;;  %9172 = vrsqrt.f32 %v13970_v19 }
 0xbcf   : > { %v6561_v23 = vmul.f32 %v9171_v42, %v6560_v43  ;;  %v6249_v13 = vmul.f32 %v13964_v35, %v13964_v35  ;;  %v6250_v30 = vmul.f32 %v13967_v56, %v13967_v56  ;;  %v7192_v2 = vpop.f32.mrf.mxu2  ;;  %vm6566_vm9 = vweird.f32 %v9171_v42 }
 0xbd0   : > { %v6558_v4 = vsel %vm6557_vm8, %v9169_v54, %v6554_v26  ;;  %v7193_v32 = vadd.f32 %v7192_v2, %v13917_v41  ;;  %v7281_v38 = vpop.f32.mrf.mxu3  ;;  %v6961_v37 = vpack.c.bf16 %v6909_v25, %v6907_v46  ;;  %v6962_v58 = vpack.c.bf16 %v6910_v36, %v6908_v53  ;;  %vm6567_vm11 = vmor %vm6565_vm10, %vm6566_vm9 }
 0xbd1   : > { %v6562_v14 = vmul.f32 0.5, %v6561_v23  ;;  %v6316_v20 = vpop.xlane.xlu1 %6315  ;;  %v6335_v62 = vadd.f32 %v6250_v30, %v6249_v13  ;;  %v6773_v54 = vmul.f32 %v6558_v4, %v13605_v18  ;;  %v7373_v17 = vpop.f32.mrf.mxu0  ;;  %v6103_v34 = vadd.f32 %v13940_v12, %v13937_v22 }
 0xbd2   : > { %v7282_v21 = vadd.f32 %v7281_v38, %v7193_v32  ;;  %v6380_v33 = vmul.f32 %v6316_v20, %v14844_v9  ;;  %7214 = vmatmul.bf16.gmra.mxu2 %v6961_v37  ;;  %7392 = vmatmul.bf16.gmra.mxu0 %v6961_v37  ;;  %v7462_v5 = vpop.f32.mrf.mxu1  ;;  %v13990_v1 = vadd.f32 %v13168_v28, %v13948_v45  ;;  %v6084_v26 = vpop.xlane.xlu0 %6083  ;;  %vm6575_vm13 = vweird.f32 %v13970_v19 }
 0xbd3   : > { %v6563_v3 = vsub.f32 1.5, %v6562_v14  ;;  %7303 = vmatmul.bf16.gmra.mxu3 %v6962_v58  ;;  %7481 = vmatmul.bf16.gmra.mxu1 %v6962_v58  ;;  %v7374_v18 = vadd.f32 %v7373_v17, %v13888_v10  ;;  %v13997_v25 = vadd.f32 %v13170_v44, %v5939_v61  ;;  %v6132_v23 = vmul.f32 %v6084_v26, %v14844_v9 }
 0xbd4   : > { %7539 = vst [vmem:[%s13932_s21 + $0x10] sm:$0xff] %v7282_v21  ;;  %v13993_v43 = vadd.f32 1e-12, %v6380_v33  ;;  %6336 = vadd.xlane.f32.xlu1 %v6335_v62  ;;  %6104 = vadd.xlane.f32.xlu0 %v6103_v34  ;;  %v9173_v28 = vpop.eup %9172  ;;  %v6774_v45 = vmul.f32 %v6558_v4, %v13611_v51  ;;  %v6842_v50 = vmul.f32 %v13548_v59, %v6773_v54 }
 0xbd5   : > { %v6564_v36 = vmul.f32 %v9171_v42, %v6563_v3  ;;  %v7463_v13 = vadd.f32 %v7462_v5, %v7374_v18  ;;  %v6570_v44 = vmul.f32 %v9173_v28, %v13970_v19  ;;  %v14006_v2 = vsub.f32 %v13693_v49, %v6132_v23 }
 0xbd6   : > { %9174 = vrsqrt.f32 %v13993_v43  ;;  %v14013_v51 = vsub.f32 %v13697_v39, %v6132_v23  ;;  %v6106_v49 = vadd.f32 %v13997_v25, %v13990_v1  ;;  %v6843_v39 = vmul.f32 %v13554_v0, %v6774_v45 }
 0xbd7   : > { %v6568_v30 = vsel %vm6567_vm11, %v9171_v42, %v6564_v36  ;;  %7542 = vst [vmem:[%s13932_s21 + $0x28] sm:$0xff] %v7463_v13  ;;  %v7195_v4 = vpop.f32.mrf.mxu2  ;;  %v6571_v53 = vmul.f32 %v9173_v28, %v6570_v44  ;;  %v6251_v42 = vmul.f32 %v14006_v2, %v14006_v2  ;;  %v6911_v54 = vadd.f32 %v13568_v29, %v6842_v50 }
 0xbd8   : > { %v6775_v46 = vmul.f32 %v6568_v30, %v13638_v15  ;;  %v6776_v32 = vmul.f32 %v6568_v30, %v13641_v57  ;;  %v7284_v38 = vpop.f32.mrf.mxu3  ;;  %v7196_v61 = vadd.f32 %v7195_v4, %v13917_v41  ;;  %v6252_v15 = vmul.f32 %v14013_v51, %v14013_v51 }
 0xbd9   : > { %v6319_v14 = vpop.xlane.xlu1 %6318  ;;  %v6572_v20 = vmul.f32 0.5, %v6571_v53  ;;  %v7375_v33 = vpop.f32.mrf.mxu0  ;;  %vm6576_vm12 = vweird.f32 %v9173_v28  ;;  %v6912_v44 = vadd.f32 %v13588_v40, %v6843_v39  ;;  %vm6585_vm0 = vweird.f32 %v13993_v43 }
 0xbda   : > { %v6844_v57 = vmul.f32 %v13548_v59, %v6775_v46  ;;  %v6845_v37 = vmul.f32 %v13554_v0, %v6776_v32  ;;  %v7285_v21 = vadd.f32 %v7284_v38, %v7196_v61  ;;  %v6381_v58 = vmul.f32 %v6319_v14, %v14844_v9  ;;  %v7464_v62 = vpop.f32.mrf.mxu1  ;;  %v6087_v5 = vpop.xlane.xlu0 %6086  ;;  %vm6577_vm14 = vmor %vm6575_vm13, %vm6576_vm12 }
 0xbdb   : > { %v7376_v17 = vadd.f32 %v7375_v33, %v13888_v10  ;;  %v6338_v34 = vadd.f32 %v6252_v15, %v6251_v42  ;;  %v6573_v36 = vsub.f32 1.5, %v6572_v20  ;;  %v6133_v30 = vmul.f32 %v6087_v5, %v14844_v9 }
 0xbdc   : > { %v9175_v3 = vpop.eup %9174  ;;  %v6913_v18 = vadd.f32 %v13568_v29, %v6844_v57  ;;  %v6914_v26 = vadd.f32 %v13588_v40, %v6845_v37  ;;  %7541 = vst [vmem:[%s13932_s21 + $0x20] sm:$0xff] %v7285_v21  ;;  %v14032_v45 = vadd.f32 1e-12, %v6381_v58  ;;  %6107 = vadd.xlane.f32.xlu1 %v6106_v49 }
 0xbdd   : > { %v6580_v23 = vmul.f32 %v9175_v3, %v13993_v43  ;;  %v7465_v13 = vadd.f32 %v7464_v62, %v7376_v17  ;;  %6339 = vadd.xlane.f32.xlu2 %v6338_v34  ;;  %v6574_v50 = vmul.f32 %v9173_v28, %v6573_v36  ;;  %v14040_v4 = vsub.f32 %v13727_v16, %v6133_v30 }
 0xbde   : > { %9176 = vrsqrt.f32 %v14032_v45  ;;  %v6963_v32 = vpack.c.bf16 %v6913_v18, %v6911_v54  ;;  %v14043_v38 = vsub.f32 %v13730_v24, %v6133_v30  ;;  %v6964_v42 = vpack.c.bf16 %v6914_v26, %v6912_v44 }
 0xbdf   : > { %v6581_v46 = vmul.f32 %v9175_v3, %v6580_v23  ;;  %7544 = vst [vmem:[%s13932_s21 + $0x38] sm:$0xff] %v7465_v13  ;;  %v7197_v19 = vpop.f32.mrf.mxu2  ;;  %v6578_v61 = vsel %vm6577_vm14, %v9173_v28, %v6574_v50  ;;  %vm6586_vm15 = vweird.f32 %v9175_v3  ;;  %v6253_v57 = vmul.f32 %v14040_v4, %v14040_v4 }
 0xbe0   : > { %v7286_v53 = vpop.f32.mrf.mxu3  ;;  %v7198_v15 = vadd.f32 %v7197_v19, %v13917_v41  ;;  %v6254_v39 = vmul.f32 %v14043_v38, %v14043_v38  ;;  %v6777_v33 = vmul.f32 %v6578_v61, %v13670_v27  ;;  %v6778_v27 = vmul.f32 %v6578_v61, %v13673_v48  ;;  %vm6587_vm1 = vmor %vm6585_vm0, %vm6586_vm15 }
 0xbe1   : > { %v6582_v49 = vmul.f32 0.5, %v6581_v46  ;;  %v6322_v14 = vpop.xlane.xlu2 %6321  ;;  %v6090_v16 = vpop.xlane.xlu1 %6089  ;;  %vm6595_vm3 = vweird.f32 %v14032_v45 }
 0xbe2   : > { %v7287_v24 = vadd.f32 %v7286_v53, %v7198_v15  ;;  %7219 = vmatmul.bf16.gmra.mxu2 %v6963_v32  ;;  %7397 = vmatmul.bf16.gmra.mxu0 %v6963_v32  ;;  %v6134_v20 = vmul.f32 %v6090_v16, %v14844_v9  ;;  %v7378_v28 = vpop.f32.mrf.mxu0  ;;  %v7467_v21 = vpop.f32.mrf.mxu1  ;;  %v6382_v58 = vmul.f32 %v6322_v14, %v14844_v9 }
 0xbe3   : > { %v6583_v37 = vsub.f32 1.5, %v6582_v49  ;;  %7308 = vmatmul.bf16.gmra.mxu3 %v6964_v42  ;;  %7486 = vmatmul.bf16.gmra.mxu1 %v6964_v42  ;;  %v7379_v62 = vadd.f32 %v7378_v28, %v13888_v10  ;;  %v6341_v54 = vadd.f32 %v6254_v39, %v6253_v57 }
 0xbe4   : > { %v9177_v17 = vpop.eup %9176  ;;  %7543 = vst [vmem:[%s13932_s21 + $0x30] sm:$0xff] %v7287_v24  ;;  %v14057_v34 = vsub.f32 %v13760_v63, %v6134_v20  ;;  %v14060_v18 = vsub.f32 %v13763_v6, %v6134_v20  ;;  %v14062_v26 = vadd.f32 1e-12, %v6382_v58 }
 0xbe5   : > { %v6584_v5 = vmul.f32 %v9175_v3, %v6583_v37  ;;  %v6590_v43 = vmul.f32 %v9177_v17, %v14032_v45  ;;  %v7468_v36 = vadd.f32 %v7467_v21, %v7379_v62  ;;  %6342 = vadd.xlane.f32.xlu2 %v6341_v54  ;;  %vm6596_vm2 = vweird.f32 %v9177_v17 }
 0xbe6   : > { %v6255_v13 = vmul.f32 %v14057_v34, %v14057_v34  ;;  %v6256_v63 = vmul.f32 %v14060_v18, %v14060_v18  ;;  %9178 = vrsqrt.f32 %v14062_v26  ;;  %vm6597_vm4 = vmor %vm6595_vm3, %vm6596_vm2  ;;  %vm6605_vm6 = vweird.f32 %v14062_v26 }
 0xbe7   : > { %v6588_v23 = vsel %vm6587_vm1, %v9175_v3, %v6584_v5  ;;  %v6591_v48 = vmul.f32 %v9177_v17, %v6590_v43  ;;  %7546 = vst [vmem:[%s13932_s21 + $0x48] sm:$0xff] %v7468_v36  ;;  %v7200_v44 = vpop.f32.mrf.mxu2  ;;  %v6846_v3 = vmul.f32 %v13548_v59, %v6777_v33 }
 0xbe8   : > { %v6779_v6 = vmul.f32 %v6588_v23, %v13700_v60  ;;  %v6780_v30 = vmul.f32 %v6588_v23, %v13703_v47  ;;  %v7289_v50 = vpop.f32.mrf.mxu3  ;;  %v7201_v46 = vadd.f32 %v7200_v44, %v13917_v41  ;;  %v6344_v32 = vadd.f32 %v6256_v63, %v6255_v13 }
 0xbe9   : > { %v6592_v19 = vmul.f32 0.5, %v6591_v48  ;;  %v6093_v53 = vpop.xlane.xlu1 %6092  ;;  %v14077_v42 = vpop.xlane.xlu2 %6324  ;;  %v6847_v60 = vmul.f32 %v13554_v0, %v6778_v27  ;;  %v6915_v58 = vadd.f32 %v13568_v29, %v6846_v3 }
 0xbea   : > { %v6848_v61 = vmul.f32 %v13548_v59, %v6779_v6  ;;  %v6849_v47 = vmul.f32 %v13554_v0, %v6780_v30  ;;  %v7290_v49 = vadd.f32 %v7289_v50, %v7201_v46  ;;  %v6135_v15 = vmul.f32 %v6093_v53, %v14844_v9  ;;  %v7380_v14 = vpop.f32.mrf.mxu0  ;;  %v7469_v57 = vpop.f32.mrf.mxu1  ;;  %6345 = vadd.xlane.f32.xlu0 %v6344_v32 }
 0xbeb   : > { %v6593_v39 = vsub.f32 1.5, %v6592_v19  ;;  %v7381_v16 = vadd.f32 %v7380_v14, %v13888_v10  ;;  %v6916_v5 = vadd.f32 %v13588_v40, %v6847_v60 }
 0xbec   : > { %v6917_v37 = vadd.f32 %v13568_v29, %v6848_v61  ;;  %v6918_v24 = vadd.f32 %v13588_v40, %v6849_v47  ;;  %v9179_v20 = vpop.eup %9178  ;;  %7545 = vst [vmem:[%s13932_s21 + $0x40] sm:$0xff] %v7290_v49  ;;  %v14088_v28 = vsub.f32 %v13790_v7, %v6135_v15  ;;  %v14091_v21 = vsub.f32 %v13793_v8, %v6135_v15 }
 0xbed   : > { %v6594_v33 = vmul.f32 %v9177_v17, %v6593_v39  ;;  %v6600_v62 = vmul.f32 %v9179_v20, %v14062_v26  ;;  %v7470_v54 = vadd.f32 %v7469_v57, %v7381_v16  ;;  %vm6606_vm5 = vweird.f32 %v9179_v20  ;;  %v14883_v39 = vld [vmem:[#allocation25_spill] sm:$0xff]  ;;  %v14884_v16 = vld [vmem:[#allocation40_spill] sm:$0xff] }
 0xbee   : > { %v6257_v27 = vmul.f32 %v14088_v28, %v14088_v28  ;;  %v6258_v7 = vmul.f32 %v14091_v21, %v14091_v21  ;;  %v6965_v23 = vpack.c.bf16 %v6917_v37, %v6915_v58  ;;  %v6966_v13 = vpack.c.bf16 %v6918_v24, %v6916_v5  ;;  %vm6607_vm7 = vmor %vm6605_vm6, %vm6606_vm5 }
 0xbef   : > { %v6601_v43 = vmul.f32 %v9179_v20, %v6600_v62  ;;  %7548 = vst [vmem:[%s13932_s21 + $0x58] sm:$0xff] %v7470_v54  ;;  %v7202_v8 = vpop.f32.mrf.mxu2  ;;  %v6598_v63 = vsel %vm6597_vm4, %v9177_v17, %v6594_v33 }
 0xbf0   : > { %v7291_v36 = vpop.f32.mrf.mxu3  ;;  %v7203_v6 = vadd.f32 %v7202_v8, %v13917_v41  ;;  %v6347_v30 = vadd.f32 %v6258_v7, %v6257_v27  ;;  %v6781_v3 = vmul.f32 %v6598_v63, %v13734_v55  ;;  %v6782_v60 = vmul.f32 %v6598_v63, %v13737_v31 }
 0xbf1   : > { %v6602_v48 = vmul.f32 0.5, %v6601_v43  ;;  %v6096_v45 = vpop.xlane.xlu2 %6095 }
 0xbf2   : > { %v7292_v44 = vadd.f32 %v7291_v36, %v7203_v6  ;;  %7224 = vmatmul.bf16.gmra.mxu2 %v6965_v23  ;;  %7402 = vmatmul.bf16.gmra.mxu0 %v6965_v23  ;;  %v7383_v50 = vpop.f32.mrf.mxu0  ;;  %v7472_v46 = vpop.f32.mrf.mxu1  ;;  %v6136_v32 = vmul.f32 %v6096_v45, %v14844_v9  ;;  %v6851_v33 = vmul.f32 %v13554_v0, %v6782_v60  ;;  %v14885_v36 = vld [vmem:[#allocation45_spill] sm:$0xff] }
 0xbf3   : > { %v6603_v19 = vsub.f32 1.5, %v6602_v48  ;;  %7313 = vmatmul.bf16.gmra.mxu3 %v6966_v13  ;;  %7491 = vmatmul.bf16.gmra.mxu1 %v6966_v13  ;;  %v7384_v17 = vadd.f32 %v7383_v50, %v13888_v10  ;;  %v14886_v13 = vld [vmem:[#allocation37_spill] sm:$0xff] }
 0xbf4   : > { %7547 = vst [vmem:[%s13932_s21 + $0x50] sm:$0xff] %v7292_v44  ;;  %v14108_v53 = vsub.f32 %v13802_v11, %v6136_v32  ;;  %v14111_v61 = vsub.f32 %v13805_v52, %v6136_v32  ;;  %6348 = vadd.xlane.f32.xlu1 %v6347_v30  ;;  %v6850_v52 = vmul.f32 %v13548_v59, %v6781_v3 }
 0xbf5   : > { %v6604_v47 = vmul.f32 %v9179_v20, %v6603_v19  ;;  %v7473_v55 = vadd.f32 %v7472_v46, %v7384_v17  ;;  %v6920_v45 = vadd.f32 %v13588_v40, %v6851_v33 }
 0xbf6   : > { %v6259_v49 = vmul.f32 %v14108_v53, %v14108_v53  ;;  %v6260_v15 = vmul.f32 %v14111_v61, %v14111_v61  ;;  %v6919_v43 = vadd.f32 %v13568_v29, %v6850_v52 }
 0xbf7   : > { %v6608_v14 = vsel %vm6607_vm7, %v9179_v20, %v6604_v47  ;;  %7550 = vst [vmem:[%s13932_s21 + $0x68] sm:$0xff] %v7473_v55  ;;  %v7205_v11 = vpop.f32.mrf.mxu2  ;;  %v6383_v55 = vmul.f32 %v14077_v42, %v14844_v9 }
 0xbf8   : > { %v7294_v57 = vpop.f32.mrf.mxu3  ;;  %v6783_v31 = vmul.f32 %v6608_v14, %v14883_v39  ;;  %v6784_v37 = vmul.f32 %v6608_v14, %v14884_v16  ;;  %v7206_v26 = vadd.f32 %v7205_v11, %v13917_v41  ;;  %v6350_v24 = vadd.f32 %v6260_v15, %v6259_v49 }
 0xbf9   : > { %v6099_v58 = vpop.xlane.xlu2 %6098  ;;  %v6415_v49 = vadd.f32 1e-12, %v6383_v55 }
 0xbfa   : > { %v7295_v62 = vadd.f32 %v7294_v57, %v7206_v26  ;;  %v7385_v54 = vpop.f32.mrf.mxu0  ;;  %v6137_v20 = vmul.f32 %v6099_v58, %v14844_v9  ;;  %6351 = vadd.xlane.f32.xlu2 %v6350_v24  ;;  %v6852_v5 = vmul.f32 %v13548_v59, %v6783_v31  ;;  %v6853_v27 = vmul.f32 %v13554_v0, %v6784_v37  ;;  %v7474_v8 = vpop.f32.mrf.mxu1 }
 0xbfb   : > { %v7386_v7 = vadd.f32 %v7385_v54, %v13888_v10  ;;  %9180 = vrsqrt.f32 %v6415_v49  ;;  %vm6615_vm9 = vweird.f32 %v6415_v49 }
 0xbfc   : > { %7549 = vst [vmem:[%s13932_s21 + $0x60] sm:$0xff] %v7295_v62  ;;  %v14132_v23 = vsub.f32 %v14885_v36, %v6137_v20  ;;  %v14135_v63 = vsub.f32 %v14886_v13, %v6137_v20  ;;  %v6921_v6 = vadd.f32 %v13568_v29, %v6852_v5  ;;  %v6922_v30 = vadd.f32 %v13588_v40, %v6853_v27  ;;  %v14887_v5 = vld [vmem:[#allocation46_spill] sm:$0xff] }
 0xbfd   : > { %v7475_v48 = vadd.f32 %v7474_v8, %v7386_v7  ;;  %v14888_v7 = vld [vmem:[#allocation47_spill] sm:$0xff] }
 0xbfe   : > { %v6261_v44 = vmul.f32 %v14132_v23, %v14132_v23  ;;  %v6262_v50 = vmul.f32 %v14135_v63, %v14135_v63  ;;  %v6967_v46 = vpack.c.bf16 %v6921_v6, %v6919_v43  ;;  %v6968_v3 = vpack.c.bf16 %v6922_v30, %v6920_v45 }
 0xbff   : > { %7552 = vst [vmem:[%s13932_s21 + $0x78] sm:$0xff] %v7475_v48  ;;  %v7207_v32 = vpop.f32.mrf.mxu2 }
 0xc00   : > { %v7208_v19 = vadd.f32 %v7207_v32, %v13917_v41  ;;  %v6353_v17 = vadd.f32 %v6262_v50, %v6261_v44  ;;  %v7296_v60 = vpop.f32.mrf.mxu3 }
 0xc01   : > { %v9181_v15 = vpop.eup %9180 }
 0xc02   : > { %v7297_v47 = vadd.f32 %v7296_v60, %v7208_v19  ;;  %7229 = vmatmul.bf16.gmra.mxu2 %v6967_v46  ;;  %7407 = vmatmul.bf16.gmra.mxu0 %v6967_v46  ;;  %v6610_v14 = vmul.f32 %v9181_v15, %v6415_v49  ;;  %vm6616_vm8 = vweird.f32 %v9181_v15 }
 0xc03   : > { %7318 = vmatmul.bf16.gmra.mxu3 %v6968_v3  ;;  %7496 = vmatmul.bf16.gmra.mxu1 %v6968_v3  ;;  %vm6617_vm10 = vmor %vm6615_vm9, %vm6616_vm8 }
 0xc04   : > { %7551 = vst [vmem:[%s13932_s21 + $0x70] sm:$0xff] %v7297_v47  ;;  %6354 = vadd.xlane.f32.xlu0 %v6353_v17  ;;  %v6611_v11 = vmul.f32 %v9181_v15, %v6610_v14  ;;  %v14889_v17 = vld [vmem:[#allocation20_spill] sm:$0xff]  ;;  %v14890_v47 = vld [vmem:[#allocation33_spill] sm:$0xff] }
 0xc06   : > { %v6612_v39 = vmul.f32 0.5, %v6611_v11  ;;  %v14891_v11 = vld [vmem:[#allocation51_spill] sm:$0xff] }
 0xc08   : > { %v6613_v16 = vsub.f32 1.5, %v6612_v39 }
 0xc0a   : > { %v6614_v26 = vmul.f32 %v9181_v15, %v6613_v16 }
 0xc0c   : > { %v6618_v62 = vsel %vm6617_vm10, %v9181_v15, %v6614_v26 }
 0xc0d   : > { %v6785_v27 = vmul.f32 %v6618_v62, %v14887_v5  ;;  %v6786_v43 = vmul.f32 %v6618_v62, %v14888_v7 }
 0xc0f   : > { %v6854_v49 = vmul.f32 %v13548_v59, %v6785_v27  ;;  %v6855_v14 = vmul.f32 %v13554_v0, %v6786_v43 }
 0xc2d   : > { %v6328_v57 = vpop.xlane.xlu0 %6327 }
 0xc2e   : > { %v6384_v52 = vmul.f32 %v6328_v57, %v14844_v9 }
 0xc30   : > { %v6416_v31 = vadd.f32 1e-12, %v6384_v52  ;;  %v14892_v52 = vld [vmem:[#allocation48_spill] sm:$0xff] }
 0xc32   : > { %9182 = vrsqrt.f32 %v6416_v31  ;;  %vm6625_vm12 = vweird.f32 %v6416_v31 }
 0xc35   : > { %v6331_v37 = vpop.xlane.xlu0 %6330 }
 0xc36   : > { %v6385_v24 = vmul.f32 %v6331_v37, %v14844_v9 }
 0xc38   : > { %v9183_v58 = vpop.eup %9182  ;;  %v14151_v33 = vadd.f32 1e-12, %v6385_v24 }
 0xc39   : > { %v6620_v42 = vmul.f32 %v9183_v58, %v6416_v31  ;;  %vm6626_vm11 = vweird.f32 %v9183_v58 }
 0xc3a   : > { %9184 = vrsqrt.f32 %v14151_v33  ;;  %vm6627_vm13 = vmor %vm6625_vm12, %vm6626_vm11  ;;  %vm6635_vm15 = vweird.f32 %v14151_v33 }
 0xc3b   : > { %v6621_v54 = vmul.f32 %v9183_v58, %v6620_v42 }
 0xc3d   : > { %v6622_v20 = vmul.f32 0.5, %v6621_v54  ;;  %v7388_v36 = vpop.f32.mrf.mxu0  ;;  %v6102_v45 = vpop.xlane.xlu0 %6101 }
 0xc3e   : > { %v6334_v8 = vpop.xlane.xlu1 %6333  ;;  %v7389_v30 = vadd.f32 %v7388_v36, %v13888_v10  ;;  %v7477_v48 = vpop.f32.mrf.mxu1  ;;  %v6138_v44 = vmul.f32 %v6102_v45, %v14844_v9  ;;  %v6924_v36 = vadd.f32 %v13588_v40, %v6855_v14 }
 0xc3f   : > { %v6623_v13 = vsub.f32 1.5, %v6622_v20  ;;  %v6386_v6 = vmul.f32 %v6334_v8, %v14844_v9  ;;  %v6923_v20 = vadd.f32 %v13568_v29, %v6854_v49 }
 0xc40   : > { %v9185_v50 = vpop.eup %9184  ;;  %v7478_v3 = vadd.f32 %v7477_v48, %v7389_v30  ;;  %v14163_v60 = vsub.f32 %v14889_v17, %v6138_v44  ;;  %v14166_v55 = vsub.f32 %v14890_v47, %v6138_v44 }
 0xc41   : > { %v6624_v46 = vmul.f32 %v9183_v58, %v6623_v13  ;;  %v14159_v32 = vadd.f32 1e-12, %v6386_v6  ;;  %v6630_v19 = vmul.f32 %v9185_v50, %v14151_v33  ;;  %vm6636_vm14 = vweird.f32 %v9185_v50 }
 0xc42   : > { %7554 = vst [vmem:[%s13932_s21 + $0x88] sm:$0xff] %v7478_v3  ;;  %v6263_v16 = vmul.f32 %v14163_v60, %v14163_v60  ;;  %v6264_v26 = vmul.f32 %v14166_v55, %v14166_v55  ;;  %vm6637_vm0 = vmor %vm6635_vm15, %vm6636_vm14 }
 0xc43   : > { %v6628_v15 = vsel %vm6627_vm13, %v9183_v58, %v6624_v46  ;;  %9186 = vrsqrt.f32 %v14159_v32  ;;  %v6631_v31 = vmul.f32 %v9185_v50, %v6630_v19  ;;  %v7210_v37 = vpop.f32.mrf.mxu2  ;;  %vm6645_vm2 = vweird.f32 %v14159_v32 }
 0xc44   : > { %v6787_v57 = vmul.f32 %v6628_v15, %v14891_v11  ;;  %v6788_v39 = vmul.f32 %v6628_v15, %v14892_v52  ;;  %v7211_v24 = vadd.f32 %v7210_v37, %v13917_v41  ;;  %v7299_v58 = vpop.f32.mrf.mxu3  ;;  %v6356_v8 = vadd.f32 %v6264_v26, %v6263_v16 }
 0xc45   : > { %v6632_v42 = vmul.f32 0.5, %v6631_v31  ;;  %v7390_v62 = vpop.f32.mrf.mxu0 }
 0xc46   : > { %v6856_v54 = vmul.f32 %v13548_v59, %v6787_v57  ;;  %v6857_v5 = vmul.f32 %v13554_v0, %v6788_v39  ;;  %v7300_v27 = vadd.f32 %v7299_v58, %v7211_v24  ;;  %v7391_v7 = vadd.f32 %v7390_v62, %v13888_v10  ;;  %v7479_v43 = vpop.f32.mrf.mxu1  ;;  %6357 = vadd.xlane.f32.xlu1 %v6356_v8  ;;  %v14894_v24 = vld [vmem:[#allocation59_spill] sm:$0xff] }
 0xc47   : > { %v6633_v13 = vsub.f32 1.5, %v6632_v42  ;;  %v6337_v6 = vpop.xlane.xlu1 %6336  ;;  %v6105_v30 = vpop.xlane.xlu0 %6104 }
 0xc48   : > { %v6925_v48 = vadd.f32 %v13568_v29, %v6856_v54  ;;  %v6926_v45 = vadd.f32 %v13588_v40, %v6857_v5  ;;  %7553 = vst [vmem:[%s13932_s21 + $0x80] sm:$0xff] %v7300_v27  ;;  %v6387_v46 = vmul.f32 %v6337_v6, %v14844_v9  ;;  %v7480_v3 = vadd.f32 %v7479_v43, %v7391_v7 }
 0xc49   : > { %v9187_v44 = vpop.eup %9186  ;;  %v6139_v19 = vmul.f32 %v6105_v30, %v14844_v9  ;;  %v6634_v17 = vmul.f32 %v9185_v50, %v6633_v13 }
 0xc4a   : > { %v6640_v47 = vmul.f32 %v9187_v44, %v14159_v32  ;;  %v6969_v49 = vpack.c.bf16 %v6925_v48, %v6923_v20  ;;  %v14192_v15 = vadd.f32 1e-12, %v6387_v46  ;;  %7556 = vst [vmem:[%s13932_s21 + $0x98] sm:$0xff] %v7480_v3  ;;  %v6970_v57 = vpack.c.bf16 %v6926_v45, %v6924_v36 }
 0xc4b   : > { %v14196_v14 = vsub.f32 %v13937_v22, %v6139_v19  ;;  %v14199_v11 = vsub.f32 %v13940_v12, %v6139_v19  ;;  %v6638_v52 = vsel %vm6637_vm0, %v9185_v50, %v6634_v17  ;;  %v7212_v31 = vpop.f32.mrf.mxu2  ;;  %v14893_v50 = vld [vmem:[#allocation42_spill] sm:$0xff]  ;;  %vm6646_vm1 = vweird.f32 %v9187_v44 }
 0xc4c   : > { %v6641_v39 = vmul.f32 %v9187_v44, %v6640_v47  ;;  %7234 = vmatmul.bf16.gmra.mxu2 %v6969_v49  ;;  %7412 = vmatmul.bf16.gmra.mxu0 %v6969_v49  ;;  %9188 = vrsqrt.f32 %v14192_v15  ;;  %v7301_v33 = vpop.f32.mrf.mxu3  ;;  %v7213_v12 = vadd.f32 %v7212_v31, %v13917_v41  ;;  %v6789_v26 = vmul.f32 %v6638_v52, %v14893_v50  ;;  %vm6647_vm3 = vmor %vm6645_vm2, %vm6646_vm1  ;;  %v14895_v47 = vld [vmem:[#allocation57_spill] sm:$0xff] }
 0xc4d   : > { %7323 = vmatmul.bf16.gmra.mxu3 %v6970_v57  ;;  %7501 = vmatmul.bf16.gmra.mxu1 %v6970_v57  ;;  %v6265_v37 = vmul.f32 %v14196_v14, %v14196_v14  ;;  %v6266_v22 = vmul.f32 %v14199_v11, %v14199_v11  ;;  %v6790_v58 = vmul.f32 %v6638_v52, %v14894_v24  ;;  %v14896_v57 = vld [vmem:[#allocation34_spill] sm:$0xff]  ;;  %vm6655_vm5 = vweird.f32 %v14192_v15 }
 0xc4e   : > { %v6642_v16 = vmul.f32 0.5, %v6641_v39  ;;  %v7302_v62 = vadd.f32 %v7301_v33, %v7213_v12  ;;  %v6858_v46 = vmul.f32 %v13548_v59, %v6789_v26 }
 0xc4f   : > { %v7393_v54 = vpop.f32.mrf.mxu0  ;;  %v6108_v20 = vpop.xlane.xlu1 %6107  ;;  %v6359_v5 = vadd.f32 %v6266_v22, %v6265_v37  ;;  %v6859_v17 = vmul.f32 %v13554_v0, %v6790_v58 }
 0xc50   : > { %v6643_v42 = vsub.f32 1.5, %v6642_v16  ;;  %v7394_v27 = vadd.f32 %v7393_v54, %v13888_v10  ;;  %v7482_v7 = vpop.f32.mrf.mxu1  ;;  %v6340_v43 = vpop.xlane.xlu2 %6339  ;;  %v6140_v8 = vmul.f32 %v6108_v20, %v14844_v9  ;;  %7555 = vst [vmem:[%s13932_s21 + $0x90] sm:$0xff] %v7302_v62  ;;  %v6927_v26 = vadd.f32 %v13568_v29, %v6858_v46 }
 0xc51   : > { %v6388_v13 = vmul.f32 %v6340_v43, %v14844_v9  ;;  %6360 = vadd.xlane.f32.xlu2 %v6359_v5  ;;  %v6928_v24 = vadd.f32 %v13588_v40, %v6859_v17 }
 0xc52   : > { %v6644_v36 = vmul.f32 %v9187_v44, %v6643_v42  ;;  %v9189_v6 = vpop.eup %9188  ;;  %v7483_v30 = vadd.f32 %v7482_v7, %v7394_v27  ;;  %v14216_v48 = vsub.f32 %v13990_v1, %v6140_v8  ;;  %v14219_v45 = vsub.f32 %v13997_v25, %v6140_v8 }
 0xc53   : > { %v6650_v32 = vmul.f32 %v9189_v6, %v14192_v15  ;;  %v14223_v19 = vadd.f32 1e-12, %v6388_v13  ;;  %vm6656_vm4 = vweird.f32 %v9189_v6 }
 0xc54   : > { %v6648_v3 = vsel %vm6647_vm3, %v9187_v44, %v6644_v36  ;;  %7558 = vst [vmem:[%s13932_s21 + $0xa8] sm:$0xff] %v7483_v30  ;;  %v6267_v1 = vmul.f32 %v14216_v48, %v14216_v48  ;;  %v6268_v25 = vmul.f32 %v14219_v45, %v14219_v45  ;;  %vm6657_vm6 = vmor %vm6655_vm5, %vm6656_vm4 }
 0xc55   : > { %v6791_v49 = vmul.f32 %v6648_v3, %v14895_v47  ;;  %v6792_v52 = vmul.f32 %v6648_v3, %v14896_v57  ;;  %v6651_v39 = vmul.f32 %v9189_v6, %v6650_v32  ;;  %9190 = vrsqrt.f32 %v14223_v19  ;;  %v7215_v44 = vpop.f32.mrf.mxu2 }
 0xc56   : > { %v7216_v31 = vadd.f32 %v7215_v44, %v13917_v41  ;;  %v7304_v33 = vpop.f32.mrf.mxu3  ;;  %v6362_v16 = vadd.f32 %v6268_v25, %v6267_v1  ;;  %vm6665_vm8 = vweird.f32 %v14223_v19 }
 0xc57   : > { %v6860_v37 = vmul.f32 %v13548_v59, %v6791_v49  ;;  %v6861_v22 = vmul.f32 %v13554_v0, %v6792_v52  ;;  %v6652_v12 = vmul.f32 0.5, %v6651_v39  ;;  %v7395_v50 = vpop.f32.mrf.mxu0 }
 0xc58   : > { %v7305_v58 = vadd.f32 %v7304_v33, %v7216_v31  ;;  %v7396_v42 = vadd.f32 %v7395_v50, %v13888_v10  ;;  %v7484_v62 = vpop.f32.mrf.mxu1  ;;  %v6343_v54 = vpop.xlane.xlu2 %6342  ;;  %6363 = vadd.xlane.f32.xlu0 %v6362_v16 }
 0xc59   : > { %v6929_v20 = vadd.f32 %v13568_v29, %v6860_v37  ;;  %v6930_v5 = vadd.f32 %v13588_v40, %v6861_v22  ;;  %v6653_v27 = vsub.f32 1.5, %v6652_v12  ;;  %v6389_v7 = vmul.f32 %v6343_v54, %v14844_v9 }
 0xc5a   : > { %7557 = vst [vmem:[%s13932_s21 + $0xa0] sm:$0xff] %v7305_v58  ;;  %v7485_v43 = vadd.f32 %v7484_v62, %v7396_v42 }
 0xc5b   : > { %v6971_v8 = vpack.c.bf16 %v6929_v20, %v6927_v26  ;;  %v6972_v36 = vpack.c.bf16 %v6930_v5, %v6928_v24  ;;  %v9191_v13 = vpop.eup %9190  ;;  %v6654_v30 = vmul.f32 %v9189_v6, %v6653_v27  ;;  %v14244_v46 = vadd.f32 1e-12, %v6389_v7 }
 0xc5c   : > { %v6660_v3 = vmul.f32 %v9191_v13, %v14223_v19  ;;  %7560 = vst [vmem:[%s13932_s21 + $0xb8] sm:$0xff] %v7485_v43  ;;  %vm6666_vm7 = vweird.f32 %v9191_v13 }
 0xc5d   : > { %7239 = vmatmul.bf16.gmra.mxu2 %v6971_v8  ;;  %7328 = vmatmul.bf16.gmra.mxu3 %v6972_v36  ;;  %9192 = vrsqrt.f32 %v14244_v46  ;;  %v7217_v32 = vpop.f32.mrf.mxu2  ;;  %v6346_v17 = vpop.xlane.xlu0 %6345  ;;  %v6658_v47 = vsel %vm6657_vm6, %v9189_v6, %v6654_v30  ;;  %vm6667_vm9 = vmor %vm6665_vm8, %vm6666_vm7  ;;  %vm6675_vm11 = vweird.f32 %v14244_v46 }
 0xc5e   : > { %7417 = vmatmul.bf16.gmra.mxu0 %v6971_v8  ;;  %7506 = vmatmul.bf16.gmra.mxu1 %v6972_v36  ;;  %v6661_v49 = vmul.f32 %v9191_v13, %v6660_v3  ;;  %v7218_v57 = vadd.f32 %v7217_v32, %v13917_v41  ;;  %v7306_v52 = vpop.f32.mrf.mxu3  ;;  %v6390_v15 = vmul.f32 %v6346_v17, %v14844_v9 }
 0xc5f   : > { %v7398_v1 = vpop.f32.mrf.mxu0  ;;  %v6793_v33 = vmul.f32 %v6658_v47, %v13964_v35  ;;  %v6794_v12 = vmul.f32 %v6658_v47, %v13967_v56 }
 0xc60   : > { %v6662_v25 = vmul.f32 0.5, %v6661_v49  ;;  %v7307_v39 = vadd.f32 %v7306_v52, %v7218_v57  ;;  %v7399_v44 = vadd.f32 %v7398_v1, %v13888_v10  ;;  %v7487_v31 = vpop.f32.mrf.mxu1  ;;  %v14254_v16 = vadd.f32 1e-12, %v6390_v15 }
 0xc61   : > { %v6862_v35 = vmul.f32 %v13548_v59, %v6793_v33  ;;  %v6863_v19 = vmul.f32 %v13554_v0, %v6794_v12 }
 0xc62   : > { %v6663_v37 = vsub.f32 1.5, %v6662_v25  ;;  %7559 = vst [vmem:[%s13932_s21 + $0xb0] sm:$0xff] %v7307_v39  ;;  %v7488_v6 = vadd.f32 %v7487_v31, %v7399_v44  ;;  %9194 = vrsqrt.f32 %v14254_v16  ;;  %vm6685_vm14 = vweird.f32 %v14254_v16 }
 0xc63   : > { %v9193_v22 = vpop.eup %9192  ;;  %v6932_v52 = vadd.f32 %v13588_v40, %v6863_v19 }
 0xc64   : > { %v6664_v50 = vmul.f32 %v9191_v13, %v6663_v37  ;;  %v6670_v26 = vmul.f32 %v9193_v22, %v14244_v46  ;;  %7562 = vst [vmem:[%s13932_s21 + $0xc8] sm:$0xff] %v7488_v6  ;;  %vm6676_vm10 = vweird.f32 %v9193_v22 }
 0xc65   : > { %v7220_v24 = vpop.f32.mrf.mxu2  ;;  %vm6677_vm12 = vmor %vm6675_vm11, %vm6676_vm10 }
 0xc66   : > { %v6668_v58 = vsel %vm6667_vm9, %v9191_v13, %v6664_v50  ;;  %v6671_v42 = vmul.f32 %v9193_v22, %v6670_v26  ;;  %v7221_v62 = vadd.f32 %v7220_v24, %v13917_v41  ;;  %v7309_v54 = vpop.f32.mrf.mxu3 }
 0xc67   : > { %v6795_v20 = vmul.f32 %v6668_v58, %v14006_v2  ;;  %v6796_v56 = vmul.f32 %v6668_v58, %v14013_v51  ;;  %v7400_v5 = vpop.f32.mrf.mxu0  ;;  %v6349_v27 = vpop.xlane.xlu1 %6348  ;;  %v6931_v2 = vadd.f32 %v13568_v29, %v6862_v35 }
 0xc68   : > { %v6672_v7 = vmul.f32 0.5, %v6671_v42  ;;  %v7310_v43 = vadd.f32 %v7309_v54, %v7221_v62  ;;  %v7401_v8 = vadd.f32 %v7400_v5, %v13888_v10  ;;  %v7489_v36 = vpop.f32.mrf.mxu1  ;;  %v6391_v13 = vmul.f32 %v6349_v27, %v14844_v9  ;;  %v9195_v30 = vpop.eup %9194 }
 0xc69   : > { %v6864_v3 = vmul.f32 %v13548_v59, %v6795_v20  ;;  %v6865_v51 = vmul.f32 %v13554_v0, %v6796_v56  ;;  %v6680_v17 = vmul.f32 %v9195_v30, %v14254_v16  ;;  %vm6686_vm13 = vweird.f32 %v9195_v30 }
 0xc6a   : > { %v6673_v32 = vsub.f32 1.5, %v6672_v7  ;;  %7561 = vst [vmem:[%s13932_s21 + $0xc0] sm:$0xff] %v7310_v43  ;;  %v7490_v47 = vadd.f32 %v7489_v36, %v7401_v8  ;;  %v14274_v49 = vadd.f32 1e-12, %v6391_v13  ;;  %vm6687_vm15 = vmor %vm6685_vm14, %vm6686_vm13 }
 0xc6b   : > { %v6933_v57 = vadd.f32 %v13568_v29, %v6864_v3  ;;  %v6934_v1 = vadd.f32 %v13588_v40, %v6865_v51  ;;  %v6681_v25 = vmul.f32 %v9195_v30, %v6680_v17 }
 0xc6c   : > { %v6674_v15 = vmul.f32 %v9193_v22, %v6673_v32  ;;  %7564 = vst [vmem:[%s13932_s21 + $0xd8] sm:$0xff] %v7490_v47  ;;  %9196 = vrsqrt.f32 %v14274_v49  ;;  %vm6695_vm1 = vweird.f32 %v14274_v49 }
 0xc6d   : > { %v7222_v39 = vpop.f32.mrf.mxu2  ;;  %v6973_v44 = vpack.c.bf16 %v6933_v57, %v6931_v2  ;;  %v6974_v31 = vpack.c.bf16 %v6934_v1, %v6932_v52  ;;  %v6352_v33 = vpop.xlane.xlu2 %6351  ;;  %v6682_v6 = vmul.f32 0.5, %v6681_v25 }
 0xc6e   : > { %v6678_v37 = vsel %vm6677_vm12, %v9193_v22, %v6674_v15  ;;  %v7223_v12 = vadd.f32 %v7222_v39, %v13917_v41  ;;  %v7311_v50 = vpop.f32.mrf.mxu3  ;;  %v6392_v26 = vmul.f32 %v6352_v33, %v14844_v9 }
 0xc6f   : > { %v6797_v24 = vmul.f32 %v6678_v37, %v14040_v4  ;;  %7244 = vmatmul.bf16.gmra.mxu2 %v6973_v44  ;;  %7333 = vmatmul.bf16.gmra.mxu3 %v6974_v31  ;;  %v7403_v46 = vpop.f32.mrf.mxu0  ;;  %v6683_v35 = vsub.f32 1.5, %v6682_v6  ;;  %v6798_v54 = vmul.f32 %v6678_v37, %v14043_v38 }
 0xc70   : > { %v7312_v58 = vadd.f32 %v7311_v50, %v7223_v12  ;;  %7422 = vmatmul.bf16.gmra.mxu0 %v6973_v44  ;;  %7511 = vmatmul.bf16.gmra.mxu1 %v6974_v31  ;;  %v7404_v22 = vadd.f32 %v7403_v46, %v13888_v10  ;;  %v7492_v42 = vpop.f32.mrf.mxu1  ;;  %v14286_v62 = vadd.f32 1e-12, %v6392_v26 }
 0xc71   : > { %v6684_v20 = vmul.f32 %v9195_v30, %v6683_v35  ;;  %v6866_v19 = vmul.f32 %v13548_v59, %v6797_v24  ;;  %v6867_v16 = vmul.f32 %v13554_v0, %v6798_v54 }
 0xc72   : > { %7563 = vst [vmem:[%s13932_s21 + $0xd0] sm:$0xff] %v7312_v58  ;;  %v7493_v4 = vadd.f32 %v7492_v42, %v7404_v22  ;;  %9198 = vrsqrt.f32 %v14286_v62  ;;  %v9197_v56 = vpop.eup %9196  ;;  %vm6705_vm4 = vweird.f32 %v14286_v62 }
 0xc73   : > { %v6688_v5 = vsel %vm6687_vm15, %v9195_v30, %v6684_v20  ;;  %v6690_v27 = vmul.f32 %v9197_v56, %v14274_v49  ;;  %v6935_v47 = vadd.f32 %v13568_v29, %v6866_v19  ;;  %v6936_v1 = vadd.f32 %v13588_v40, %v6867_v16 }
 0xc74   : > { %7566 = vst [vmem:[%s13932_s21 + $0xe8] sm:$0xff] %v7493_v4  ;;  %v6799_v7 = vmul.f32 %v6688_v5, %v14057_v34  ;;  %v6800_v38 = vmul.f32 %v6688_v5, %v14060_v18  ;;  %vm6696_vm0 = vweird.f32 %v9197_v56 }
 0xc75   : > { %v7225_v43 = vpop.f32.mrf.mxu2  ;;  %v6691_v8 = vmul.f32 %v9197_v56, %v6690_v27  ;;  %vm6697_vm2 = vmor %vm6695_vm1, %vm6696_vm0 }
 0xc76   : > { %v7226_v36 = vadd.f32 %v7225_v43, %v13917_v41  ;;  %v7314_v13 = vpop.f32.mrf.mxu3  ;;  %v6868_v30 = vmul.f32 %v13548_v59, %v6799_v7  ;;  %v6869_v2 = vmul.f32 %v13554_v0, %v6800_v38 }
 0xc77   : > { %v7405_v3 = vpop.f32.mrf.mxu0  ;;  %v6692_v32 = vmul.f32 0.5, %v6691_v8 }
 0xc78   : > { %v9199_v51 = vpop.eup %9198  ;;  %v7315_v17 = vadd.f32 %v7314_v13, %v7226_v36  ;;  %v7406_v34 = vadd.f32 %v7405_v3, %v13888_v10  ;;  %v7494_v18 = vpop.f32.mrf.mxu1  ;;  %v6937_v52 = vadd.f32 %v13568_v29, %v6868_v30  ;;  %v6938_v15 = vadd.f32 %v13588_v40, %v6869_v2 }
 0xc79   : > { %v6700_v57 = vmul.f32 %v9199_v51, %v14286_v62  ;;  %v6693_v25 = vsub.f32 1.5, %v6692_v32  ;;  %vm6706_vm3 = vweird.f32 %v9199_v51 }
 0xc7a   : > { %7565 = vst [vmem:[%s13932_s21 + $0xe0] sm:$0xff] %v7315_v17  ;;  %v7495_v39 = vadd.f32 %v7494_v18, %v7406_v34  ;;  %v6975_v31 = vpack.c.bf16 %v6937_v52, %v6935_v47  ;;  %v6976_v33 = vpack.c.bf16 %v6938_v15, %v6936_v1  ;;  %vm6707_vm5 = vmor %vm6705_vm4, %vm6706_vm3 }
 0xc7b   : > { %v6701_v44 = vmul.f32 %v9199_v51, %v6700_v57  ;;  %v6694_v37 = vmul.f32 %v9197_v56, %v6693_v25  ;;  %v6355_v57 = vpop.xlane.xlu0 %6354 }
 0xc7c   : > { %7568 = vst [vmem:[%s13932_s21 + $0xf8] sm:$0xff] %v7495_v39  ;;  %v6393_v52 = vmul.f32 %v6355_v57, %v14844_v9 }
 0xc7d   : > { %v6702_v6 = vmul.f32 0.5, %v6701_v44  ;;  %v7227_v12 = vpop.f32.mrf.mxu2  ;;  %v6698_v50 = vsel %vm6697_vm2, %v9197_v56, %v6694_v37 }
 0xc7e   : > { %v7228_v26 = vadd.f32 %v7227_v12, %v13917_v41  ;;  %v7316_v24 = vpop.f32.mrf.mxu3  ;;  %v6801_v42 = vmul.f32 %v6698_v50, %v14088_v28  ;;  %v6802_v54 = vmul.f32 %v6698_v50, %v14091_v21  ;;  %v6425_v1 = vadd.f32 1e-12, %v6393_v52 }
 0xc7f   : > { %v6703_v46 = vsub.f32 1.5, %v6702_v6  ;;  %7249 = vmatmul.bf16.gmra.mxu2 %v6975_v31  ;;  %7338 = vmatmul.bf16.gmra.mxu3 %v6976_v33  ;;  %v7408_v35 = vpop.f32.mrf.mxu0 }
 0xc80   : > { %v7317_v58 = vadd.f32 %v7316_v24, %v7228_v26  ;;  %7427 = vmatmul.bf16.gmra.mxu0 %v6975_v31  ;;  %7516 = vmatmul.bf16.gmra.mxu1 %v6976_v33  ;;  %v7409_v49 = vadd.f32 %v7408_v35, %v13888_v10  ;;  %v7497_v22 = vpop.f32.mrf.mxu1  ;;  %v6870_v7 = vmul.f32 %v13548_v59, %v6801_v42  ;;  %9200 = vrsqrt.f32 %v6425_v1 }
 0xc81   : > { %v6704_v20 = vmul.f32 %v9199_v51, %v6703_v46  ;;  %v6871_v28 = vmul.f32 %v13554_v0, %v6802_v54  ;;  %vm6715_vm7 = vweird.f32 %v6425_v1 }
 0xc82   : > { %7567 = vst [vmem:[%s13932_s21 + $0xf0] sm:$0xff] %v7317_v58  ;;  %v7498_v4 = vadd.f32 %v7497_v22, %v7409_v49  ;;  %v6939_v3 = vadd.f32 %v13568_v29, %v6870_v7 }
 0xc83   : > { %v6708_v56 = vsel %vm6707_vm5, %v9199_v51, %v6704_v20  ;;  %v6940_v30 = vadd.f32 %v13588_v40, %v6871_v28 }
 0xc84   : > { %v6803_v5 = vmul.f32 %v6708_v56, %v14108_v53  ;;  %v6804_v27 = vmul.f32 %v6708_v56, %v14111_v61  ;;  %7570 = vst [vmem:[%s13932_s21 + $0x108] sm:$0xff] %v7498_v4 }
 0xc85   : > { %v7230_v19 = vpop.f32.mrf.mxu2 }
 0xc86   : > { %v7231_v21 = vadd.f32 %v7230_v19, %v13917_v41  ;;  %v7319_v38 = vpop.f32.mrf.mxu3  ;;  %v6872_v62 = vmul.f32 %v13548_v59, %v6803_v5  ;;  %v6873_v43 = vmul.f32 %v13554_v0, %v6804_v27  ;;  %v9201_v15 = vpop.eup %9200 }
 0xc87   : > { %v7410_v16 = vpop.f32.mrf.mxu0  ;;  %v6710_v25 = vmul.f32 %v9201_v15, %v6425_v1  ;;  %vm6716_vm6 = vweird.f32 %v9201_v15 }
 0xc88   : > { %v7320_v8 = vadd.f32 %v7319_v38, %v7231_v21  ;;  %v7411_v53 = vadd.f32 %v7410_v16, %v13888_v10  ;;  %v6941_v61 = vadd.f32 %v13568_v29, %v6872_v62  ;;  %v6942_v36 = vadd.f32 %v13588_v40, %v6873_v43  ;;  %v7499_v13 = vpop.f32.mrf.mxu1  ;;  %vm6717_vm8 = vmor %vm6715_vm7, %vm6716_vm6 }
 0xc89   : > { %v6711_v39 = vmul.f32 %v9201_v15, %v6710_v25 }
 0xc8a   : > { %7569 = vst [vmem:[%s13932_s21 + $0x100] sm:$0xff] %v7320_v8  ;;  %v7500_v2 = vadd.f32 %v7499_v13, %v7411_v53  ;;  %v6977_v51 = vpack.c.bf16 %v6941_v61, %v6939_v3  ;;  %v6978_v32 = vpack.c.bf16 %v6942_v36, %v6940_v30 }
 0xc8b   : > { %v6712_v33 = vmul.f32 0.5, %v6711_v39 }
 0xc8c   : > { %7572 = vst [vmem:[%s13932_s21 + $0x118] sm:$0xff] %v7500_v2 }
 0xc8d   : > { %v7232_v17 = vpop.f32.mrf.mxu2  ;;  %v6713_v6 = vsub.f32 1.5, %v6712_v33 }
 0xc8e   : > { %v7233_v34 = vadd.f32 %v7232_v17, %v13917_v41  ;;  %v7321_v18 = vpop.f32.mrf.mxu3 }
 0xc8f   : > { %7254 = vmatmul.bf16.gmra.mxu2 %v6977_v51  ;;  %7343 = vmatmul.bf16.gmra.mxu3 %v6978_v32  ;;  %v6714_v50 = vmul.f32 %v9201_v15, %v6713_v6 }
 0xc90   : > { %v7322_v47 = vadd.f32 %v7321_v18, %v7233_v34  ;;  %7432 = vmatmul.bf16.gmra.mxu0 %v6977_v51  ;;  %7521 = vmatmul.bf16.gmra.mxu1 %v6978_v32 }
 0xc91   : > { %v6718_v49 = vsel %vm6717_vm8, %v9201_v15, %v6714_v50 }
 0xc92   : > { %7571 = vst [vmem:[%s13932_s21 + $0x110] sm:$0xff] %v7322_v47  ;;  %v6805_v5 = vmul.f32 %v6718_v49, %v14132_v23  ;;  %v6806_v19 = vmul.f32 %v6718_v49, %v14135_v63 }
 0xc94   : > { %v6874_v23 = vmul.f32 %v13548_v59, %v6805_v5  ;;  %v6875_v13 = vmul.f32 %v13554_v0, %v6806_v19 }
 0xc96   : > { %v6943_v18 = vadd.f32 %v13568_v29, %v6874_v23  ;;  %v6944_v47 = vadd.f32 %v13588_v40, %v6875_v13 }
 0xcb9   : > { %v6358_v44 = vpop.xlane.xlu1 %6357 }
 0xcba   : > { %v6394_v31 = vmul.f32 %v6358_v44, %v14844_v9 }
 0xcbc   : > { %v6426_v37 = vadd.f32 1e-12, %v6394_v31 }
 0xcbe   : > { %9202 = vrsqrt.f32 %v6426_v37  ;;  %vm6725_vm10 = vweird.f32 %v6426_v37 }
 0xcc4   : > { %v6361_v12 = vpop.xlane.xlu2 %6360  ;;  %v9203_v24 = vpop.eup %9202 }
 0xcc5   : > { %v6395_v26 = vmul.f32 %v6361_v12, %v14844_v9  ;;  %v6720_v46 = vmul.f32 %v9203_v24, %v6426_v37  ;;  %vm6726_vm9 = vweird.f32 %v9203_v24 }
 0xcc6   : > { %vm6727_vm11 = vmor %vm6725_vm10, %vm6726_vm9 }
 0xcc7   : > { %v6427_v35 = vadd.f32 1e-12, %v6395_v26  ;;  %v6721_v22 = vmul.f32 %v9203_v24, %v6720_v46 }
 0xcc9   : > { %v7413_v58 = vpop.f32.mrf.mxu0  ;;  %9204 = vrsqrt.f32 %v6427_v35  ;;  %v6722_v20 = vmul.f32 0.5, %v6721_v22  ;;  %vm6735_vm13 = vweird.f32 %v6427_v35 }
 0xcca   : > { %v7414_v42 = vadd.f32 %v7413_v58, %v13888_v10  ;;  %v7502_v54 = vpop.f32.mrf.mxu1 }
 0xccb   : > { %v6364_v56 = vpop.xlane.xlu0 %6363  ;;  %v6723_v7 = vsub.f32 1.5, %v6722_v20 }
 0xccc   : > { %v7503_v4 = vadd.f32 %v7502_v54, %v7414_v42  ;;  %v6396_v27 = vmul.f32 %v6364_v56, %v14844_v9 }
 0xccd   : > { %v6724_v62 = vmul.f32 %v9203_v24, %v6723_v7 }
 0xcce   : > { %7574 = vst [vmem:[%s13932_s21 + $0x128] sm:$0xff] %v7503_v4  ;;  %v14342_v28 = vadd.f32 1e-12, %v6396_v27 }
 0xccf   : > { %v7235_v21 = vpop.f32.mrf.mxu2  ;;  %v9205_v38 = vpop.eup %9204  ;;  %v6728_v63 = vsel %vm6727_vm11, %v9203_v24, %v6724_v62 }
 0xcd0   : > { %v7236_v43 = vadd.f32 %v7235_v21, %v13917_v41  ;;  %v7324_v16 = vpop.f32.mrf.mxu3  ;;  %v6730_v8 = vmul.f32 %v9205_v38, %v6427_v35  ;;  %9206 = vrsqrt.f32 %v14342_v28  ;;  %v6807_v3 = vmul.f32 %v6728_v63, %v14163_v60 }
 0xcd1   : > { %v7415_v9 = vpop.f32.mrf.mxu0  ;;  %v6808_v30 = vmul.f32 %v6728_v63, %v14166_v55  ;;  %vm6736_vm12 = vweird.f32 %v9205_v38  ;;  %vm6745_vm0 = vweird.f32 %v14342_v28 }
 0xcd2   : > { %v7325_v53 = vadd.f32 %v7324_v16, %v7236_v43  ;;  %v7416_v61 = vadd.f32 %v7415_v9, %v13888_v10  ;;  %v7504_v36 = vpop.f32.mrf.mxu1  ;;  %v6731_v2 = vmul.f32 %v9205_v38, %v6730_v8  ;;  %v6876_v17 = vmul.f32 %v13548_v59, %v6807_v3  ;;  %vm6737_vm14 = vmor %vm6735_vm13, %vm6736_vm12 }
 0xcd3   : > { %v6877_v34 = vmul.f32 %v13554_v0, %v6808_v30 }
 0xcd4   : > { %7573 = vst [vmem:[%s13932_s21 + $0x120] sm:$0xff] %v7325_v53  ;;  %v7505_v51 = vadd.f32 %v7504_v36, %v7416_v61  ;;  %v6732_v32 = vmul.f32 0.5, %v6731_v2  ;;  %v6945_v60 = vadd.f32 %v13568_v29, %v6876_v17 }
 0xcd5   : > { %v6946_v55 = vadd.f32 %v13588_v40, %v6877_v34 }
 0xcd6   : > { %7576 = vst [vmem:[%s13932_s21 + $0x138] sm:$0xff] %v7505_v51  ;;  %v9207_v57 = vpop.eup %9206  ;;  %v6733_v52 = vsub.f32 1.5, %v6732_v32  ;;  %v6979_v31 = vpack.c.bf16 %v6945_v60, %v6943_v18 }
 0xcd7   : > { %v7237_v1 = vpop.f32.mrf.mxu2  ;;  %v6740_v15 = vmul.f32 %v9207_v57, %v14342_v28  ;;  %v6980_v33 = vpack.c.bf16 %v6946_v55, %v6944_v47  ;;  %vm6746_vm15 = vweird.f32 %v9207_v57 }
 0xcd8   : > { %v7238_v25 = vadd.f32 %v7237_v1, %v13917_v41  ;;  %v7326_v39 = vpop.f32.mrf.mxu3  ;;  %v6734_v44 = vmul.f32 %v9205_v38, %v6733_v52  ;;  %7259 = vmatmul.bf16.gmra.mxu2 %v6979_v31  ;;  %7437 = vmatmul.bf16.gmra.mxu0 %v6979_v31  ;;  %vm6747_vm1 = vmor %vm6745_vm0, %vm6746_vm15 }
 0xcd9   : > { %v6741_v37 = vmul.f32 %v9207_v57, %v6740_v15  ;;  %7348 = vmatmul.bf16.gmra.mxu3 %v6980_v33  ;;  %7526 = vmatmul.bf16.gmra.mxu1 %v6980_v33 }
 0xcda   : > { %v7327_v6 = vadd.f32 %v7326_v39, %v7238_v25  ;;  %v6738_v12 = vsel %vm6737_vm14, %v9205_v38, %v6734_v44 }
 0xcdb   : > { %v7418_v50 = vpop.f32.mrf.mxu0  ;;  %v7507_v26 = vpop.f32.mrf.mxu1  ;;  %v6742_v24 = vmul.f32 0.5, %v6741_v37  ;;  %v6809_v58 = vmul.f32 %v6738_v12, %v14196_v14  ;;  %v6810_v49 = vmul.f32 %v6738_v12, %v14199_v11 }
 0xcdc   : > { %7575 = vst [vmem:[%s13932_s21 + $0x130] sm:$0xff] %v7327_v6  ;;  %v7419_v46 = vadd.f32 %v7418_v50, %v13888_v10 }
 0xcdd   : > { %v6743_v35 = vsub.f32 1.5, %v6742_v24  ;;  %v6878_v5 = vmul.f32 %v13548_v59, %v6809_v58  ;;  %v6879_v7 = vmul.f32 %v13554_v0, %v6810_v49 }
 0xcde   : > { %v7508_v22 = vadd.f32 %v7507_v26, %v7419_v46 }
 0xcdf   : > { %v6744_v42 = vmul.f32 %v9207_v57, %v6743_v35  ;;  %v6947_v16 = vadd.f32 %v13568_v29, %v6878_v5 }
 0xce0   : > { %v7240_v54 = vpop.f32.mrf.mxu2  ;;  %v7329_v20 = vpop.f32.mrf.mxu3  ;;  %7578 = vst [vmem:[%s13932_s21 + $0x148] sm:$0xff] %v7508_v22 }
 0xce1   : > { %v7241_v4 = vadd.f32 %v7240_v54, %v13917_v41  ;;  %v6748_v56 = vsel %vm6747_vm1, %v9207_v57, %v6744_v42 }
 0xce2   : > { %v6811_v14 = vmul.f32 %v6748_v56, %v14216_v48  ;;  %v6812_v27 = vmul.f32 %v6748_v56, %v14219_v45  ;;  %v6948_v45 = vadd.f32 %v13588_v40, %v6879_v7 }
 0xce3   : > { %v7330_v11 = vadd.f32 %v7329_v20, %v7241_v4  ;;  %v7420_v19 = vpop.f32.mrf.mxu0  ;;  %v7509_v21 = vpop.f32.mrf.mxu1 }
 0xce4   : > { %v7421_v28 = vadd.f32 %v7420_v19, %v13888_v10  ;;  %v6880_v38 = vmul.f32 %v13548_v59, %v6811_v14  ;;  %v6881_v62 = vmul.f32 %v13554_v0, %v6812_v27 }
 0xce5   : > { %7577 = vst [vmem:[%s13932_s21 + $0x140] sm:$0xff] %v7330_v11 }
 0xce6   : > { %v7510_v43 = vadd.f32 %v7509_v21, %v7421_v28  ;;  %v6949_v48 = vadd.f32 %v13568_v29, %v6880_v38  ;;  %v6950_v8 = vadd.f32 %v13588_v40, %v6881_v62 }
 0xce8   : > { %7580 = vst [vmem:[%s13932_s21 + $0x158] sm:$0xff] %v7510_v43  ;;  %v7242_v9 = vpop.f32.mrf.mxu2  ;;  %v7331_v63 = vpop.f32.mrf.mxu3  ;;  %v6981_v53 = vpack.c.bf16 %v6949_v48, %v6947_v16  ;;  %v6982_v59 = vpack.c.bf16 %v6950_v8, %v6948_v45 }
 0xce9   : > { %v7243_v23 = vadd.f32 %v7242_v9, %v13917_v41 }
 0xcea   : > { %7264 = vmatmul.bf16.gmra.mxu2 %v6981_v53  ;;  %7353 = vmatmul.bf16.gmra.mxu3 %v6982_v59 }
 0xceb   : > { %v7332_v61 = vadd.f32 %v7331_v63, %v7243_v23  ;;  %7531 = vmatmul.bf16.gmra.mxu1 %v6982_v59 }
 0xced   : > { %7579 = vst [vmem:[%s13932_s21 + $0x150] sm:$0xff] %v7332_v61  ;;  %v7423_v0 = vpop.f32.mrf.mxu0  ;;  %v7512_v29 = vpop.f32.mrf.mxu1 }
 0xcee   : > { %v7424_v36 = vadd.f32 %v7423_v0, %v13888_v10 }
 0xcf0   : > { %v7513_v40 = vadd.f32 %v7512_v29, %v7424_v36 }
 0xcf2   : > { %7582 = vst [vmem:[%s13932_s21 + $0x168] sm:$0xff] %v7513_v40  ;;  %v7245_v13 = vpop.f32.mrf.mxu2  ;;  %v7334_v3 = vpop.f32.mrf.mxu3 }
 0xcf3   : > { %v7246_v30 = vadd.f32 %v7245_v13, %v13917_v41 }
 0xcf5   : > { %v7335_v2 = vadd.f32 %v7334_v3, %v7246_v30  ;;  %v7425_v51 = vpop.f32.mrf.mxu0  ;;  %v7514_v32 = vpop.f32.mrf.mxu1 }
 0xcf6   : > { %v7426_v17 = vadd.f32 %v7425_v51, %v13888_v10 }
 0xcf7   : > { %7581 = vst [vmem:[%s13932_s21 + $0x160] sm:$0xff] %v7335_v2 }
 0xcf8   : > { %v7515_v34 = vadd.f32 %v7514_v32, %v7426_v17 }
 0xcfa   : > { %7584 = vst [vmem:[%s13932_s21 + $0x178] sm:$0xff] %v7515_v34  ;;  %v7247_v18 = vpop.f32.mrf.mxu2  ;;  %v7336_v47 = vpop.f32.mrf.mxu3  ;;  %7442 = vmatmul.bf16.vlgmr.msrb.gmra.mxu2 %v6981_v53 }
 0xcfb   : > { %v7248_v57 = vadd.f32 %v7247_v18, %v13917_v41 }
 0xcfd   : > { %v7337_v52 = vadd.f32 %v7336_v47, %v7248_v57  ;;  %v7428_v1 = vpop.f32.mrf.mxu0  ;;  %v7517_v60 = vpop.f32.mrf.mxu1 }
 0xcfe   : > { %v7429_v55 = vadd.f32 %v7428_v1, %v13888_v10 }
 0xcff   : > { %7583 = vst [vmem:[%s13932_s21 + $0x170] sm:$0xff] %v7337_v52 }
 0xd00   : > { %v7518_v15 = vadd.f32 %v7517_v60, %v7429_v55 }
 0xd02   : > { %7586 = vst [vmem:[%s13932_s21 + $0x188] sm:$0xff] %v7518_v15  ;;  %v7250_v25 = vpop.f32.mrf.mxu2  ;;  %v7339_v39 = vpop.f32.mrf.mxu3 }
 0xd03   : > { %v7251_v44 = vadd.f32 %v7250_v25, %v13917_v41 }
 0xd05   : > { %v7340_v31 = vadd.f32 %v7339_v39, %v7251_v44  ;;  %v7430_v33 = vpop.f32.mrf.mxu0  ;;  %v7519_v37 = vpop.f32.mrf.mxu1 }
 0xd06   : > { %v7431_v6 = vadd.f32 %v7430_v33, %v13888_v10 }
 0xd07   : > { %7585 = vst [vmem:[%s13932_s21 + $0x180] sm:$0xff] %v7340_v31 }
 0xd08   : > { %v7520_v12 = vadd.f32 %v7519_v37, %v7431_v6 }
 0xd0a   : > { %7588 = vst [vmem:[%s13932_s21 + $0x198] sm:$0xff] %v7520_v12  ;;  %v7252_v50 = vpop.f32.mrf.mxu2  ;;  %v7341_v26 = vpop.f32.mrf.mxu3 }
 0xd0b   : > { %v7253_v24 = vadd.f32 %v7252_v50, %v13917_v41 }
 0xd0d   : > { %v7342_v46 = vadd.f32 %v7341_v26, %v7253_v24  ;;  %v7433_v58 = vpop.f32.mrf.mxu0  ;;  %v7522_v35 = vpop.f32.mrf.mxu1 }
 0xd0e   : > { %v7434_v49 = vadd.f32 %v7433_v58, %v13888_v10 }
 0xd0f   : > { %7587 = vst [vmem:[%s13932_s21 + $0x190] sm:$0xff] %v7342_v46 }
 0xd10   : > { %v7523_v22 = vadd.f32 %v7522_v35, %v7434_v49 }
 0xd12   : > { %7590 = vst [vmem:[%s13932_s21 + $0x1a8] sm:$0xff] %v7523_v22  ;;  %v7255_v42 = vpop.f32.mrf.mxu2  ;;  %v7344_v54 = vpop.f32.mrf.mxu3 }
 0xd13   : > { %v7256_v20 = vadd.f32 %v7255_v42, %v13917_v41 }
 0xd15   : > { %v7345_v4 = vadd.f32 %v7344_v54, %v7256_v20  ;;  %v7435_v56 = vpop.f32.mrf.mxu0  ;;  %v7524_v14 = vpop.f32.mrf.mxu1 }
 0xd16   : > { %v7436_v5 = vadd.f32 %v7435_v56, %v13888_v10 }
 0xd17   : > { %7589 = vst [vmem:[%s13932_s21 + $0x1a0] sm:$0xff] %v7345_v4 }
 0xd18   : > { %v7525_v27 = vadd.f32 %v7524_v14, %v7436_v5 }
 0xd1a   : > { %7592 = vst [vmem:[%s13932_s21 + $0x1b8] sm:$0xff] %v7525_v27  ;;  %v7257_v11 = vpop.f32.mrf.mxu2  ;;  %v7346_v7 = vpop.f32.mrf.mxu3 }
 0xd1b   : > { %v7258_v19 = vadd.f32 %v7257_v11, %v13917_v41 }
 0xd1d   : > { %v7347_v28 = vadd.f32 %v7346_v7, %v7258_v19 }
 0xd1f   : > { %7591 = vst [vmem:[%s13932_s21 + $0x1b0] sm:$0xff] %v7347_v28 }
 0xd55   : > { %v7438_v21 = vpop.f32.mrf.mxu0 }
 0xd56   : > { %v7527_v38 = vpop.f32.mrf.mxu1  ;;  %v7439_v62 = vadd.f32 %v7438_v21, %v13888_v10 }
 0xd58   : > { %v7528_v43 = vadd.f32 %v7527_v38, %v7439_v62 }
 0xd5a   : > { %7594 = vst [vmem:[%s13932_s21 + $0x1c8] sm:$0xff] %v7528_v43 }
 0xd5b   : > { %v7260_v16 = vpop.f32.mrf.mxu2 }
 0xd5c   : > { %v7349_v48 = vpop.f32.mrf.mxu3  ;;  %v7261_v45 = vadd.f32 %v7260_v16, %v13917_v41 }
 0xd5d   : > { %v7440_v9 = vpop.f32.mrf.mxu0 }
 0xd5e   : > { %v7350_v8 = vadd.f32 %v7349_v48, %v7261_v45  ;;  %v7441_v23 = vadd.f32 %v7440_v9, %v13888_v10  ;;  %v7529_v63 = vpop.f32.mrf.mxu1 }
 0xd60   : > { %7593 = vst [vmem:[%s13932_s21 + $0x1c0] sm:$0xff] %v7350_v8  ;;  %v7530_v53 = vadd.f32 %v7529_v63, %v7441_v23 }
 0xd62   : > { %7596 = vst [vmem:[%s13932_s21 + $0x1d8] sm:$0xff] %v7530_v53 }
 0xd63   : > { %v7262_v59 = vpop.f32.mrf.mxu2 }
 0xd64   : > { %v7351_v61 = vpop.f32.mrf.mxu3  ;;  %v7263_v0 = vadd.f32 %v7262_v59, %v13917_v41 }
 0xd66   : > { %v7352_v29 = vadd.f32 %v7351_v61, %v7263_v0 }
 0xd68   : > { %7595 = vst [vmem:[%s13932_s21 + $0x1d0] sm:$0xff] %v7352_v29  ;;  %v7532_v17 = vpop.f32.mrf.mxu1 }
 0xd6d   : > { %v7265_v36 = vpop.f32.mrf.mxu2  ;;  %v7354_v40 = vpop.f32.mrf.mxu3 }
 0xd6e   : > { %v7266_v13 = vadd.f32 %v7265_v36, %v13917_v41 }
 0xd70   : > { %v7355_v3 = vadd.f32 %v7354_v40, %v7266_v13  ;;  %v7534_v52 = vpop.f32.mrf.mxu1 }
 0xd72   : > { %7597 = vst [vmem:[%s13932_s21 + $0x1e0] sm:$0xff] %v7355_v3 }
 0xd75   : > { %v7267_v30 = vpop.f32.mrf.mxu2  ;;  %v7356_v51 = vpop.f32.mrf.mxu3 }
 0xd76   : > { %v7268_v2 = vadd.f32 %v7267_v30, %v13917_v41 }
 0xd78   : > { %v7357_v32 = vadd.f32 %v7356_v51, %v7268_v2 }
 0xd7a   : > { %7599 = vst [vmem:[%s13932_s21 + $0x1f0] sm:$0xff] %v7357_v32 }
 0xd7d   : > { %v7443_v34 = vpop.f32.mrf.mxu2 }
 0xd7e   : > { %v7444_v18 = vadd.f32 %v7443_v34, %v13888_v10 }
 0xd80   : > { %v7533_v47 = vadd.f32 %v7532_v17, %v7444_v18 }
 0xd82   : > { %7598 = vst [vmem:[%s13932_s21 + $0x1e8] sm:$0xff] %v7533_v47 }
 0xd85   : > { %v7445_v41 = vpop.f32.mrf.mxu2 }
 0xd86   : > { %v7446_v57 = vadd.f32 %v7445_v41, %v13888_v10 }
 0xd88   : > { %v7535_v1 = vadd.f32 %v7534_v52, %v7446_v57 }
 0xd8a   : > { %7600 = vst [vmem:[%s13932_s21 + $0x1f8] sm:$0xff] %v7535_v1 }
 0xd8b   : > { %9325 = shalt.err (!%p9322_p8)
}
 0xd8c   : > { %s9378_s28 = smov 256   ;;  %s9379_s21 = smov 16  }
 0xd8d   : > { %8629 = dma.vmem_to_hbm [thread:$0]  (%p9493_p5), %s7615_s22, 8192, %s7617_s29, %s7602_s16, %s9378_s28, %s9378_s28, %s9379_s21  }
 0xd8e PF: > { %s14898_s26 = sld [smem:[#allocation14_spill]] }
 0xd8f   : > { %s14899_s27 = sld [smem:[#allocation12_spill]] }
 0xd94   : > { %p8651_p9 = scmp.ge.s32.totalorder %s14898_s26, 2 }
 0xd95   : > { %s7631_s8 = sand.u32 1, %s14899_s27  }
 0xd96   : > { %p8642_p10 = pnand %p8651_p9, %p9497_p6  ;;  %s7632_s7 = scalar_lea.sflag [#allocation4], %s7631_s8 }
 0xd98   : > { %p8643_p11 = pneg %p8642_p10 }
 0xd9a   : > { %9351 = dma.done.wait (%p8643_p11), %s7632_s7, 8192  }
 0xd9b   : > { %9353 = vsyncadd (%p8643_p11), %s7632_s7, 4294959104  ;;  %s14901_s16 = sld [smem:[#allocation15_spill]]  ;;  %s14904_s29 = smov %s9360_s30 }
 0xd9c   : > { %s14902_s17 = sld [smem:[#allocation13_spill]] }
 0xd9d   : > { %s14903_s15 = sld [smem:[#allocation16_spill]] }
 0xda1   : > { %p26_p12 = scmp.ge.s32.totalorder %s14901_s16, 4  }
 0xda2   : > { %s14905_s30 = smov %s14902_s17 }
 0xda3   :  { %28 = sbr.rel (!%p26_p12) target bundleno = 8 (0x8), region = 124 }
 0xda8   :  { %7638 = vsyncpa [#allocation3], 1 }
 0xda9   :  { %7640 = vsyncpa [#allocation3 + $0x1], 1 }
 0xdaa   :  { %7641 = vsyncpa [#allocation6], 1 }
 0xdab   :  { %7642 = vsyncpa [#allocation4], 1 }
 0xdac   :  { %7644 = vsyncpa [#allocation4 + $0x1], 1 }

</bundles_post_ra>
